<compile_context>
chip_gen: v7x
topology: tpu7x:2x2x1
jax: 0.10.0
libtpu: 0.0.40
codegen_flags: <defaults>
</compile_context>

<pallas_src>
import functools
import math

import jax
import jax.numpy as jnp
from jax.experimental import pallas as pl
from jax.experimental.pallas import tpu as pltpu

SCALE_CLAMP = math.log(1000.0 / 16.0)     # detectron2 box-decode clamp


def _vmem_limit_bytes():
    """Generation-aware scoped-VMEM budget (~3/4 of physical capacity)."""
    try:
        cap = pltpu.get_tpu_info().vmem_capacity_bytes
        return int(min(cap * 3 // 4, 96 * 1024 * 1024))
    except Exception:
        return 32 * 1024 * 1024           # safe on every generation


_VMEM_LIMIT = _vmem_limit_bytes()


# --------------------------------------------------------------------------
# Pallas kernels
# --------------------------------------------------------------------------
def _im2col_3x3(x, h, w):
    """x: (H+2, W+2, C) bf16 padded tile -> (H*W, 9C) bf16 im2col matrix.

    Nine shifted slabs of the whole tile + ONE lane concat, all in bf16.
    Tap order (dy, dx, c) matches the weight packing done in the wrapper.
    """
    c = x.shape[-1]
    taps = [x[dy:dy + h, dx:dx + w, :].reshape(h * w, c)
            for dy in range(3) for dx in range(3)]
    return jnp.concatenate(taps, axis=-1)


def _conv3x3_relu_kernel(x_ref, w_ref, b_ref, o_ref, *, h, w):
    """3x3 'same' conv + bias + ReLU for one image.

    Output is written in (H*W, Co) GEMM layout with a single dense store
    (Co is a multiple of 128 -> no masked vst).
    """
    lhs = _im2col_3x3(x_ref[0], h, w)                               # (H*W, 9C) bf16
    y = jnp.dot(lhs, w_ref[...], preferred_element_type=jnp.float32) + b_ref[...]
    o_ref[0] = jnp.maximum(y, 0.0).astype(o_ref.dtype)              # one dense store


def _rpn_fused_kernel(x_ref, wc_ref, bc_ref, wh_ref, bh_ref, o_ref, *, h, w):
    """RPN shared 3x3 conv + ReLU fused with the 1x1 objectness/delta heads.

    The two 1x1 heads are one GEMM against a concatenated, 128-lane padded weight
    so the epilogue is a single dense full-block store.
    """
    lhs = _im2col_3x3(x_ref[0], h, w)                               # (H*W, 9Cb) bf16
    feat = jnp.dot(lhs, wc_ref[...], preferred_element_type=jnp.float32) + bc_ref[...]
    feat = jnp.maximum(feat, 0.0).astype(jnp.bfloat16)              # (H*W, Cb)
    head = jnp.dot(feat, wh_ref[...], preferred_element_type=jnp.float32) + bh_ref[...]
    o_ref[0] = head                                                 # f32, dense store


def _roi_box_head_kernel(idx_ref, feat_ref, w1_ref, b1_ref, w2_ref, b2_ref,
                         wp_ref, bp_ref, o_ref, *, r, taps, cb):
    """Fused ROI pooling gather + box head for one image.

    The nearest-sample gather is a one-hot MXU GEMM against the VMEM-resident
    feature map (no HBM round trip of the pooled tensor, no XLA gather).
    fc1 is accumulated per pooling tap (static unroll) so no lane-merge reshape
    is ever needed; fc2 and the fused [cls_score | bbox_pred] head follow, and
    the 128-lane padded result is written with one dense store.
    """
    feat = feat_ref[0]                                              # (HW, Cb) bf16
    hw = feat.shape[0]
    idx = idx_ref[0]                                                # (taps*r, 1) int32
    iota = jax.lax.broadcasted_iota(jnp.int32, (taps * r, hw), 1)
    onehot = jnp.where(idx == iota, 1.0, 0.0).astype(jnp.bfloat16)  # (taps*r, HW)
    g = jnp.dot(onehot, feat, preferred_element_type=jnp.float32)   # (taps*r, Cb)
    g = g.astype(jnp.bfloat16)

    acc = jnp.zeros((r, w1_ref.shape[1]), jnp.float32)
    for t in range(taps):                                           # static unroll
        acc = acc + jnp.dot(g[t * r:(t + 1) * r, :],
                            w1_ref[t * cb:(t + 1) * cb, :],
                            preferred_element_type=jnp.float32)
    h1 = jnp.maximum(acc + b1_ref[...], 0.0).astype(jnp.bfloat16)
    h2 = jnp.dot(h1, w2_ref[...], preferred_element_type=jnp.float32) + b2_ref[...]
    h2 = jnp.maximum(h2, 0.0).astype(jnp.bfloat16)
    o_ref[0] = jnp.dot(h2, wp_ref[...], preferred_element_type=jnp.float32) + bp_ref[...]


# --------------------------------------------------------------------------
# pallas_call wrappers
# --------------------------------------------------------------------------
# TODO(synk): for images too large for one VMEM tile, reintroduce a row-tiled grid
# with a 2-row halo (or pltpu.emit_pipeline); at 16x16 one-image-per-step is best.
def conv3x3_relu(xpad, w_mat, b_row, out_dtype):
    """xpad: (N, H+2, W+2, C) bf16 -> (N, H*W, Co) in out_dtype (lane-dense)."""
    n, hp, wp, c = xpad.shape
    h, w = hp - 2, wp - 2
    co = w_mat.shape[1]
    kern = functools.partial(_conv3x3_relu_kernel, h=h, w=w)
    return pl.pallas_call(
        kern,
        out_shape=jax.ShapeDtypeStruct((n, h * w, co), out_dtype),
        grid=(n,),
        in_specs=[
            pl.BlockSpec((1, hp, wp, c), lambda i: (i, 0, 0, 0)),   # whole padded image
            pl.BlockSpec((9 * c, co), lambda i: (0, 0)),            # resident weight
            pl.BlockSpec((1, co), lambda i: (0, 0)),                # resident bias
        ],
        out_specs=pl.BlockSpec((1, h * w, co), lambda i: (i, 0, 0)),
        compiler_params=pltpu.CompilerParams(
            dimension_semantics=("parallel",),                      # batch -> 2 TCs on v7x
            vmem_limit_bytes=_VMEM_LIMIT),
    )(xpad, w_mat, b_row)


def rpn_conv_heads(fpad, wc, bc, wh, bh):
    """fpad: (N, H+2, W+2, Cb) bf16 -> (N, H*W, head_dim) f32 (lane-dense)."""
    n, hp, wp, cb = fpad.shape
    h, w = hp - 2, wp - 2
    hd = wh.shape[1]
    kern = functools.partial(_rpn_fused_kernel, h=h, w=w)
    return pl.pallas_call(
        kern,
        out_shape=jax.ShapeDtypeStruct((n, h * w, hd), jnp.float32),
        grid=(n,),
        in_specs=[
            pl.BlockSpec((1, hp, wp, cb), lambda i: (i, 0, 0, 0)),
            pl.BlockSpec((9 * cb, cb), lambda i: (0, 0)),
            pl.BlockSpec((1, cb), lambda i: (0, 0)),
            pl.BlockSpec((cb, hd), lambda i: (0, 0)),
            pl.BlockSpec((1, hd), lambda i: (0, 0)),
        ],
        out_specs=pl.BlockSpec((1, h * w, hd), lambda i: (i, 0, 0)),
        compiler_params=pltpu.CompilerParams(
            dimension_semantics=("parallel",),
            vmem_limit_bytes=_VMEM_LIMIT),
    )(fpad, wc, bc, wh, bh)


def roi_box_head(idx, feat, w1, b1, w2, b2, wp, bp, *, r, taps, cb):
    """Fused ROI gather + box head.  idx: (N, taps*r, 1) int32, feat: (N, HW, Cb)."""
    n, hw, _ = feat.shape
    pred_dim = wp.shape[1]
    kern = functools.partial(_roi_box_head_kernel, r=r, taps=taps, cb=cb)
    # TODO(synk): at detectron2-scale fc1 (12544x1024) the resident-weight specs
    # should be single-buffered (pipeline_mode=pl.Buffered(1)) / K-tiled for v7x.
    return pl.pallas_call(
        kern,
        out_shape=jax.ShapeDtypeStruct((n, r, pred_dim), jnp.float32),
        grid=(n,),
        in_specs=[
            pl.BlockSpec((1, taps * r, 1), lambda i: (i, 0, 0)),    # pooling indices
            pl.BlockSpec((1, hw, cb), lambda i: (i, 0, 0)),         # whole feature map
            pl.BlockSpec(w1.shape, lambda i: (0, 0)),
            pl.BlockSpec(b1.shape, lambda i: (0, 0)),
            pl.BlockSpec(w2.shape, lambda i: (0, 0)),
            pl.BlockSpec(b2.shape, lambda i: (0, 0)),
            pl.BlockSpec(wp.shape, lambda i: (0, 0)),
            pl.BlockSpec(bp.shape, lambda i: (0, 0)),
        ],
        out_specs=pl.BlockSpec((1, r, pred_dim), lambda i: (i, 0, 0)),
        compiler_params=pltpu.CompilerParams(
            dimension_semantics=("parallel",),
            vmem_limit_bytes=_VMEM_LIMIT),
    )(idx, feat, w1, b1, w2, b2, wp, bp)


# --------------------------------------------------------------------------
# JAX glue (box decode, clipping, anchors)
# --------------------------------------------------------------------------
def decode_boxes(anchors, deltas):
    wa = anchors[..., 2] - anchors[..., 0]
    ha = anchors[..., 3] - anchors[..., 1]
    cxa = anchors[..., 0] + 0.5 * wa
    cya = anchors[..., 1] + 0.5 * ha
    dx, dy = deltas[..., 0], deltas[..., 1]
    dw = jnp.minimum(deltas[..., 2], SCALE_CLAMP)
    dh = jnp.minimum(deltas[..., 3], SCALE_CLAMP)
    cx = cxa + dx * wa
    cy = cya + dy * ha
    w = wa * jnp.exp(dw)
    h = ha * jnp.exp(dh)
    return jnp.stack([cx - 0.5 * w, cy - 0.5 * h, cx + 0.5 * w, cy + 0.5 * h], axis=-1)


def clip_boxes(boxes, w, h):
    return jnp.stack([
        jnp.clip(boxes[..., 0], 0.0, w),
        jnp.clip(boxes[..., 1], 0.0, h),
        jnp.clip(boxes[..., 2], 0.0, w),
        jnp.clip(boxes[..., 3], 0.0, h),
    ], axis=-1)


# --------------------------------------------------------------------------
# Model
# --------------------------------------------------------------------------
class GeneralizedRCNNPallas:
    def __init__(self, key,
                 in_channels=3, backbone_ch=128,
                 anchor_sizes=(4.0, 8.0, 12.0),
                 proposals_per_image=8, pool_size=4,
                 fc_dim=128, num_classes=5):
        self.Cin = in_channels
        self.Cb = backbone_ch                 # 128-lane aligned -> dense conv stores
        self.anchor_sizes = anchor_sizes
        self.A = len(anchor_sizes)
        self.R = proposals_per_image
        self.P = pool_size
        self.fc_dim = fc_dim
        self.num_classes = num_classes

        # cfg.MODEL.PIXEL_MEAN / PIXEL_STD (detectron2 BGR defaults)
        self.pixel_mean = jnp.array([103.530, 116.280, 123.675], jnp.float32)
        self.pixel_std = jnp.array([1.0, 1.0, 1.0], jnp.float32)
        inv_std = 1.0 / self.pixel_std        # folded into conv weights, never a divide

        ks = jax.random.split(key, 8)
        s = 0.1
        # backbone 3x3 conv (Cin -> Cb); 1/std folded into the weights (exact, because
        # the mean subtraction happens before the zero pad in forward()).
        bb_w = s * jax.random.normal(ks[0], (self.Cb, self.Cin, 3, 3), jnp.float32)
        bb_w = bb_w * inv_std[None, :, None, None]
        self.bb_w = bb_w.transpose(2, 3, 1, 0).reshape(9 * self.Cin, self.Cb).astype(jnp.bfloat16)
        self.bb_b = jnp.zeros((1, self.Cb), jnp.float32)

        # RPN shared 3x3 conv (Cb -> Cb)
        rpn_w = s * jax.random.normal(ks[1], (self.Cb, self.Cb, 3, 3), jnp.float32)
        self.rpn_w = rpn_w.transpose(2, 3, 1, 0).reshape(9 * self.Cb, self.Cb).astype(jnp.bfloat16)
        self.rpn_b = jnp.zeros((1, self.Cb), jnp.float32)

        # RPN 1x1 heads (objectness A + deltas 4A) fused into one 128-lane padded weight
        obj_w = s * jax.random.normal(ks[2], (self.Cb, self.A), jnp.float32)
        del_w = s * jax.random.normal(ks[3], (self.Cb, 4 * self.A), jnp.float32)
        head = jnp.concatenate([obj_w, del_w], axis=1)                  # (Cb, 5A)
        self.rpn_head_dim = 128
        self.rpn_head_w = jnp.pad(
            head, ((0, 0), (0, self.rpn_head_dim - 5 * self.A))).astype(jnp.bfloat16)
        self.rpn_head_b = jnp.zeros((1, self.rpn_head_dim), jnp.float32)

        # ROI box head: fc1 (rows ordered tap-major: (py,px,cb)), fc2,
        # fused+padded [cls_score | bbox_pred].
        in_fc = self.P * self.P * self.Cb
        self.fc1_w = (s * jax.random.normal(ks[4], (in_fc, fc_dim), jnp.float32)).astype(jnp.bfloat16)
        self.fc1_b = jnp.zeros((1, fc_dim), jnp.float32)
        self.fc2_w = (s * jax.random.normal(ks[5], (fc_dim, fc_dim), jnp.float32)).astype(jnp.bfloat16)
        self.fc2_b = jnp.zeros((1, fc_dim), jnp.float32)
        cls_w = s * jax.random.normal(ks[6], (fc_dim, num_classes + 1), jnp.float32)
        box_w = s * jax.random.normal(ks[7], (fc_dim, 4 * num_classes), jnp.float32)
        pred = jnp.concatenate([cls_w, box_w], axis=1)                  # (fc, K+1+4K)
        self.pred_dim = 128                                             # lane-dense output
        self.pred_w = jnp.pad(
            pred, ((0, 0), (0, self.pred_dim - pred.shape[1]))).astype(jnp.bfloat16)
        self.pred_b = jnp.zeros((1, self.pred_dim), jnp.float32)

        self._forward_jit = jax.jit(self._forward)

    # -- anchors ---------------------------------------------------------------
    def _anchors(self, h, w):
        ys, xs = jnp.meshgrid(jnp.arange(h, dtype=jnp.float32),
                              jnp.arange(w, dtype=jnp.float32), indexing="ij")
        cx = (xs + 0.5).reshape(-1)
        cy = (ys + 0.5).reshape(-1)
        sizes = jnp.array(self.anchor_sizes, jnp.float32)
        half = 0.5 * sizes[None, :]
        x1 = cx[:, None] - half
        y1 = cy[:, None] - half
        x2 = cx[:, None] + half
        y2 = cy[:, None] + half
        return jnp.stack([x1, y1, x2, y2], axis=-1).reshape(h * w * self.A, 4)

    # -- full forward (inference path: not self.training, flag != 12) ----------
    def _forward(self, images):
        n, c, h, w = images.shape

        # stage 0+1: preprocess + backbone. (x - mean), the zero pad and the bf16
        # cast fuse in XLA; 1/std lives in the conv weights -> no divide on-device.
        # TODO(synk): ImageList.from_tensors size_divisibility padding is not modeled.
        x = jnp.transpose(images, (0, 2, 3, 1)) - self.pixel_mean
        xpad = jnp.pad(x, ((0, 0), (1, 1), (1, 1), (0, 0))).astype(jnp.bfloat16)
        feat = conv3x3_relu(xpad, self.bb_w, self.bb_b, jnp.bfloat16)   # (N, H*W, Cb) bf16

        # stage 2: RPN — conv + ReLU + fused 1x1 heads in one kernel (f32 head map
        # kept to preserve top-k ordering of near-tied objectness scores).
        fpad = jnp.pad(feat.reshape(n, h, w, self.Cb),
                       ((0, 0), (1, 1), (1, 1), (0, 0)))
        rpn = rpn_conv_heads(fpad, self.rpn_w, self.rpn_b,
                             self.rpn_head_w, self.rpn_head_b)          # (N, H*W, 128)
        a = self.A
        obj = rpn[:, :, :a].reshape(n, h * w * a)
        deltas = rpn[:, :, a:5 * a].reshape(n, h * w * a, 4)
        anchors = self._anchors(h, w)
        # TODO(synk): proposal NMS has no clean Pallas equivalent; top-k only.
        scores, idx = jax.lax.top_k(obj, self.R)
        sel_anchors = anchors[idx]
        sel_deltas = jnp.take_along_axis(deltas, idx[:, :, None], axis=1)
        proposals = clip_boxes(decode_boxes(sel_anchors, sel_deltas), float(w), float(h))

        # stage 3: ROI heads — pooling indices in XLA (scalar math only), the gather
        # itself plus fc1/fc2/predictors run inside one fused Pallas kernel.
        # TODO(synk): nearest-sample pooling, not ROIAlign bilinear interpolation.
        p = self.P
        grid = (jnp.arange(p, dtype=jnp.float32) + 0.5) / p
        x1, y1 = proposals[..., 0], proposals[..., 1]
        x2, y2 = proposals[..., 2], proposals[..., 3]
        ys = y1[..., None] + (y2 - y1)[..., None] * grid                # (N, R, P)
        xs = x1[..., None] + (x2 - x1)[..., None] * grid
        yi = jnp.clip(jnp.round(ys).astype(jnp.int32), 0, h - 1)
        xi = jnp.clip(jnp.round(xs).astype(jnp.int32), 0, w - 1)
        lin = yi[:, :, :, None] * w + xi[:, :, None, :]                 # (N, R, P, P)
        lin = jnp.transpose(lin, (0, 2, 3, 1)).reshape(n, p * p * self.R, 1)  # tap-major

        out = roi_box_head(lin, feat, self.fc1_w, self.fc1_b,
                           self.fc2_w, self.fc2_b, self.pred_w, self.pred_b,
                           r=self.R, taps=p * p, cb=self.Cb)            # (N, R, 128)
        out = out.reshape(n * self.R, self.pred_dim)
        k = self.num_classes
        cls_logits = out[:, :k + 1]
        bbox_deltas = out[:, k + 1:k + 1 + 4 * k]
        probs = jax.nn.softmax(cls_logits, axis=-1)
        fg = probs[:, :k]
        pred_classes = jnp.argmax(fg, axis=-1)
        pred_scores = jnp.max(fg, axis=-1)
        per_cls = bbox_deltas.reshape(-1, k, 4)
        sel = jnp.take_along_axis(per_cls, pred_classes[:, None, None], axis=1)[:, 0, :]
        flat_props = proposals.reshape(n * self.R, 4)
        pred_boxes = clip_boxes(decode_boxes(flat_props, sel), float(w), float(h))
        # TODO(synk): detector_postprocess rescale is identity at this resolution.
        return (pred_boxes.reshape(n, self.R, 4),
                pred_classes.reshape(n, self.R),
                pred_scores.reshape(n, self.R))

    def forward(self, images):
        boxes, classes, scores = self._forward_jit(images)
        n = images.shape[0]
        return [{"instances": {"pred_boxes": boxes[i],
                               "pred_classes": classes[i],
                               "scores": scores[i]}} for i in range(n)]


# --------------------------------------------------------------------------
if __name__ == "__main__":
    key = jax.random.PRNGKey(0)
    k_img, k_model = jax.random.split(key)

    N, C, H, W = 2, 3, 16, 16
    images = jax.random.uniform(k_img, (N, C, H, W), jnp.float32, 0.0, 255.0)

    model = GeneralizedRCNNPallas(k_model)
    results = model.forward(images)

    for r in results:
        jax.block_until_ready(r["instances"]["pred_boxes"])
        jax.block_until_ready(r["instances"]["pred_classes"])
        jax.block_until_ready(r["instances"]["scores"])

    print("KERNEL_OK")
</pallas_src>

<mosaic_0001>
module attributes {stable_mosaic.version = 11 : i64} {
  func.func @_conv3x3_relu_kernel(%arg0: i32, %arg1: memref<1x18x18x3xbf16, #tpu.memory_space<vmem>>, %arg2: memref<27x128xbf16, #tpu.memory_space<vmem>>, %arg3: memref<1x128xf32, #tpu.memory_space<vmem>>, %arg4: memref<1x256x128xbf16, #tpu.memory_space<vmem>>) attributes {dimension_semantics = [#tpu.dimension_semantics<parallel>], iteration_bounds = array<i64: 2>, scalar_prefetch = 0 : i64, scratch_operands = 0 : i64, tpu.core_type = #tpu.core_type<tc>, window_params = [{transform_indices = @transform_0, window_bounds = array<i64: 1, 18, 18, 3>}, {pipeline_mode = #tpu.pipeline_mode<synchronous>, transform_indices = @transform_1, window_bounds = array<i64: 27, 128>}, {pipeline_mode = #tpu.pipeline_mode<synchronous>, transform_indices = @transform_2, window_bounds = array<i64: 1, 128>}, {transform_indices = @transform_3, window_bounds = array<i64: 1, 256, 128>}]} {
    %c0 = arith.constant 0 : index
    %c0_0 = arith.constant 0 : index
    %c0_1 = arith.constant 0 : index
    %c0_2 = arith.constant 0 : index
    %0 = vector.load %arg1[%c0, %c0_0, %c0_1, %c0_2] : memref<1x18x18x3xbf16, #tpu.memory_space<vmem>>, vector<1x18x18x3xbf16>
    %1 = vector.shape_cast %0 : vector<1x18x18x3xbf16> to vector<18x18x3xbf16>
    %2 = vector.extract_strided_slice %1 {offsets = [0, 0, 0], sizes = [16, 16, 3], strides = [1, 1, 1]} : vector<18x18x3xbf16> to vector<16x16x3xbf16>
    %3 = vector.shape_cast %2 : vector<16x16x3xbf16> to vector<256x3xbf16>
    %4 = vector.extract_strided_slice %1 {offsets = [0, 1, 0], sizes = [16, 16, 3], strides = [1, 1, 1]} : vector<18x18x3xbf16> to vector<16x16x3xbf16>
    %5 = vector.shape_cast %4 : vector<16x16x3xbf16> to vector<256x3xbf16>
    %6 = vector.extract_strided_slice %1 {offsets = [0, 2, 0], sizes = [16, 16, 3], strides = [1, 1, 1]} : vector<18x18x3xbf16> to vector<16x16x3xbf16>
    %7 = vector.shape_cast %6 : vector<16x16x3xbf16> to vector<256x3xbf16>
    %8 = vector.extract_strided_slice %1 {offsets = [1, 0, 0], sizes = [16, 16, 3], strides = [1, 1, 1]} : vector<18x18x3xbf16> to vector<16x16x3xbf16>
    %9 = vector.shape_cast %8 : vector<16x16x3xbf16> to vector<256x3xbf16>
    %10 = vector.extract_strided_slice %1 {offsets = [1, 1, 0], sizes = [16, 16, 3], strides = [1, 1, 1]} : vector<18x18x3xbf16> to vector<16x16x3xbf16>
    %11 = vector.shape_cast %10 : vector<16x16x3xbf16> to vector<256x3xbf16>
    %12 = vector.extract_strided_slice %1 {offsets = [1, 2, 0], sizes = [16, 16, 3], strides = [1, 1, 1]} : vector<18x18x3xbf16> to vector<16x16x3xbf16>
    %13 = vector.shape_cast %12 : vector<16x16x3xbf16> to vector<256x3xbf16>
    %14 = vector.extract_strided_slice %1 {offsets = [2, 0, 0], sizes = [16, 16, 3], strides = [1, 1, 1]} : vector<18x18x3xbf16> to vector<16x16x3xbf16>
    %15 = vector.shape_cast %14 : vector<16x16x3xbf16> to vector<256x3xbf16>
    %16 = vector.extract_strided_slice %1 {offsets = [2, 1, 0], sizes = [16, 16, 3], strides = [1, 1, 1]} : vector<18x18x3xbf16> to vector<16x16x3xbf16>
    %17 = vector.shape_cast %16 : vector<16x16x3xbf16> to vector<256x3xbf16>
    %18 = vector.extract_strided_slice %1 {offsets = [2, 2, 0], sizes = [16, 16, 3], strides = [1, 1, 1]} : vector<18x18x3xbf16> to vector<16x16x3xbf16>
    %19 = vector.shape_cast %18 : vector<16x16x3xbf16> to vector<256x3xbf16>
    %20 = tpu.concatenate %3, %5, %7, %9, %11, %13, %15, %17, %19 in 1 : vector<256x3xbf16>, vector<256x3xbf16>, vector<256x3xbf16>, vector<256x3xbf16>, vector<256x3xbf16>, vector<256x3xbf16>, vector<256x3xbf16>, vector<256x3xbf16>, vector<256x3xbf16> -> vector<256x27xbf16>
    %c0_3 = arith.constant 0 : index
    %c0_4 = arith.constant 0 : index
    %21 = vector.load %arg2[%c0_3, %c0_4] : memref<27x128xbf16, #tpu.memory_space<vmem>>, vector<27x128xbf16>
    %cst = arith.constant dense<0.000000e+00> : vector<256x128xf32>
    %22 = tpu.matmul %20, %21, %cst {dimension_numbers = #tpu.dot_dimension_numbers<[1], [0], [0], [1], [0, 0, 1, 1], [], []>} : vector<256x27xbf16>, vector<27x128xbf16>, vector<256x128xf32> -> vector<256x128xf32>
    %c0_5 = arith.constant 0 : index
    %c0_6 = arith.constant 0 : index
    %23 = vector.load %arg3[%c0_5, %c0_6] : memref<1x128xf32, #tpu.memory_space<vmem>>, vector<1x128xf32>
    %24 = vector.broadcast %23 : vector<1x128xf32> to vector<256x128xf32>
    %25 = arith.addf %22, %24 : vector<256x128xf32>
    %cst_7 = arith.constant 0.000000e+00 : f32
    %26 = vector.broadcast %cst_7 : f32 to vector<256x128xf32>
    %27 = arith.maximumf %25, %26 : vector<256x128xf32>
    %28 = arith.truncf %27 : vector<256x128xf32> to vector<256x128xbf16>
    %c0_8 = arith.constant 0 : index
    %c0_9 = arith.constant 0 : index
    %c0_10 = arith.constant 0 : index
    %29 = vector.load %arg4[%c0_8, %c0_9, %c0_10] : memref<1x256x128xbf16, #tpu.memory_space<vmem>>, vector<1x256x128xbf16>
    %30 = vector.shape_cast %29 : vector<1x256x128xbf16> to vector<256x128xbf16>
    %31 = vector.shape_cast %28 : vector<256x128xbf16> to vector<1x256x128xbf16>
    tpu.vector_store %arg4[%c0_8, %c0_9, %c0_10], %31 {strides = array<i32>} : memref<1x256x128xbf16, #tpu.memory_space<vmem>>, vector<1x256x128xbf16>,
    return
  }
  func.func @transform_0(%arg0: i32) -> (i32, i32, i32, i32) {
    %c0_i32 = arith.constant 0 : i32
    %c0_i32_0 = arith.constant 0 : i32
    %c0_i32_1 = arith.constant 0 : i32
    %c0_i32_2 = arith.constant 0 : i32
    return %arg0, %c0_i32, %c0_i32_0, %c0_i32_1 : i32, i32, i32, i32
  }
  func.func @transform_1(%arg0: i32) -> (i32, i32) {
    %c0_i32 = arith.constant 0 : i32
    %c0_i32_0 = arith.constant 0 : i32
    %c0_i32_1 = arith.constant 0 : i32
    return %c0_i32, %c0_i32_0 : i32, i32
  }
  func.func @transform_2(%arg0: i32) -> (i32, i32) {
    %c0_i32 = arith.constant 0 : i32
    %c0_i32_0 = arith.constant 0 : i32
    %c0_i32_1 = arith.constant 0 : i32
    return %c0_i32, %c0_i32_0 : i32, i32
  }
  func.func @transform_3(%arg0: i32) -> (i32, i32, i32) {
    %c0_i32 = arith.constant 0 : i32
    %c0_i32_0 = arith.constant 0 : i32
    %c0_i32_1 = arith.constant 0 : i32
    return %arg0, %c0_i32, %c0_i32_0 : i32, i32, i32
  }
}

module attributes {stable_mosaic.version = 11 : i64} {
  func.func @_rpn_fused_kernel(%arg0: i32, %arg1: memref<1x18x18x128xbf16, #tpu.memory_space<vmem>>, %arg2: memref<1152x128xbf16, #tpu.memory_space<vmem>>, %arg3: memref<1x128xf32, #tpu.memory_space<vmem>>, %arg4: memref<128x128xbf16, #tpu.memory_space<vmem>>, %arg5: memref<1x128xf32, #tpu.memory_space<vmem>>, %arg6: memref<1x256x128xf32, #tpu.memory_space<vmem>>) attributes {dimension_semantics = [#tpu.dimension_semantics<parallel>], iteration_bounds = array<i64: 2>, scalar_prefetch = 0 : i64, scratch_operands = 0 : i64, tpu.core_type = #tpu.core_type<tc>, window_params = [{transform_indices = @transform_0, window_bounds = array<i64: 1, 18, 18, 128>}, {pipeline_mode = #tpu.pipeline_mode<synchronous>, transform_indices = @transform_1, window_bounds = array<i64: 1152, 128>}, {pipeline_mode = #tpu.pipeline_mode<synchronous>, transform_indices = @transform_2, window_bounds = array<i64: 1, 128>}, {pipeline_mode = #tpu.pipeline_mode<synchronous>, transform_indices = @transform_3, window_bounds = array<i64: 128, 128>}, {pipeline_mode = #tpu.pipeline_mode<synchronous>, transform_indices = @transform_4, window_bounds = array<i64: 1, 128>}, {transform_indices = @transform_5, window_bounds = array<i64: 1, 256, 128>}]} {
    %c0 = arith.constant 0 : index
    %c0_0 = arith.constant 0 : index
    %c0_1 = arith.constant 0 : index
    %c0_2 = arith.constant 0 : index
    %0 = vector.load %arg1[%c0, %c0_0, %c0_1, %c0_2] : memref<1x18x18x128xbf16, #tpu.memory_space<vmem>>, vector<1x18x18x128xbf16>
    %1 = vector.shape_cast %0 : vector<1x18x18x128xbf16> to vector<18x18x128xbf16>
    %2 = vector.extract_strided_slice %1 {offsets = [0, 0, 0], sizes = [16, 16, 128], strides = [1, 1, 1]} : vector<18x18x128xbf16> to vector<16x16x128xbf16>
    %3 = vector.shape_cast %2 : vector<16x16x128xbf16> to vector<256x128xbf16>
    %4 = vector.extract_strided_slice %1 {offsets = [0, 1, 0], sizes = [16, 16, 128], strides = [1, 1, 1]} : vector<18x18x128xbf16> to vector<16x16x128xbf16>
    %5 = vector.shape_cast %4 : vector<16x16x128xbf16> to vector<256x128xbf16>
    %6 = vector.extract_strided_slice %1 {offsets = [0, 2, 0], sizes = [16, 16, 128], strides = [1, 1, 1]} : vector<18x18x128xbf16> to vector<16x16x128xbf16>
    %7 = vector.shape_cast %6 : vector<16x16x128xbf16> to vector<256x128xbf16>
    %8 = vector.extract_strided_slice %1 {offsets = [1, 0, 0], sizes = [16, 16, 128], strides = [1, 1, 1]} : vector<18x18x128xbf16> to vector<16x16x128xbf16>
    %9 = vector.shape_cast %8 : vector<16x16x128xbf16> to vector<256x128xbf16>
    %10 = vector.extract_strided_slice %1 {offsets = [1, 1, 0], sizes = [16, 16, 128], strides = [1, 1, 1]} : vector<18x18x128xbf16> to vector<16x16x128xbf16>
    %11 = vector.shape_cast %10 : vector<16x16x128xbf16> to vector<256x128xbf16>
    %12 = vector.extract_strided_slice %1 {offsets = [1, 2, 0], sizes = [16, 16, 128], strides = [1, 1, 1]} : vector<18x18x128xbf16> to vector<16x16x128xbf16>
    %13 = vector.shape_cast %12 : vector<16x16x128xbf16> to vector<256x128xbf16>
    %14 = vector.extract_strided_slice %1 {offsets = [2, 0, 0], sizes = [16, 16, 128], strides = [1, 1, 1]} : vector<18x18x128xbf16> to vector<16x16x128xbf16>
    %15 = vector.shape_cast %14 : vector<16x16x128xbf16> to vector<256x128xbf16>
    %16 = vector.extract_strided_slice %1 {offsets = [2, 1, 0], sizes = [16, 16, 128], strides = [1, 1, 1]} : vector<18x18x128xbf16> to vector<16x16x128xbf16>
    %17 = vector.shape_cast %16 : vector<16x16x128xbf16> to vector<256x128xbf16>
    %18 = vector.extract_strided_slice %1 {offsets = [2, 2, 0], sizes = [16, 16, 128], strides = [1, 1, 1]} : vector<18x18x128xbf16> to vector<16x16x128xbf16>
    %19 = vector.shape_cast %18 : vector<16x16x128xbf16> to vector<256x128xbf16>
    %20 = tpu.concatenate %3, %5, %7, %9, %11, %13, %15, %17, %19 in 1 : vector<256x128xbf16>, vector<256x128xbf16>, vector<256x128xbf16>, vector<256x128xbf16>, vector<256x128xbf16>, vector<256x128xbf16>, vector<256x128xbf16>, vector<256x128xbf16>, vector<256x128xbf16> -> vector<256x1152xbf16>
    %c0_3 = arith.constant 0 : index
    %c0_4 = arith.constant 0 : index
    %21 = vector.load %arg2[%c0_3, %c0_4] : memref<1152x128xbf16, #tpu.memory_space<vmem>>, vector<1152x128xbf16>
    %cst = arith.constant dense<0.000000e+00> : vector<256x128xf32>
    %22 = tpu.matmul %20, %21, %cst {dimension_numbers = #tpu.dot_dimension_numbers<[1], [0], [0], [1], [0, 0, 1, 1], [], []>} : vector<256x1152xbf16>, vector<1152x128xbf16>, vector<256x128xf32> -> vector<256x128xf32>
    %c0_5 = arith.constant 0 : index
    %c0_6 = arith.constant 0 : index
    %23 = vector.load %arg3[%c0_5, %c0_6] : memref<1x128xf32, #tpu.memory_space<vmem>>, vector<1x128xf32>
    %24 = vector.broadcast %23 : vector<1x128xf32> to vector<256x128xf32>
    %25 = arith.addf %22, %24 : vector<256x128xf32>
    %cst_7 = arith.constant 0.000000e+00 : f32
    %26 = vector.broadcast %cst_7 : f32 to vector<256x128xf32>
    %27 = arith.maximumf %25, %26 : vector<256x128xf32>
    %28 = arith.truncf %27 : vector<256x128xf32> to vector<256x128xbf16>
    %c0_8 = arith.constant 0 : index
    %c0_9 = arith.constant 0 : index
    %29 = vector.load %arg4[%c0_8, %c0_9] : memref<128x128xbf16, #tpu.memory_space<vmem>>, vector<128x128xbf16>
    %cst_10 = arith.constant dense<0.000000e+00> : vector<256x128xf32>
    %30 = tpu.matmul %28, %29, %cst_10 {dimension_numbers = #tpu.dot_dimension_numbers<[1], [0], [0], [1], [0, 0, 1, 1], [], []>} : vector<256x128xbf16>, vector<128x128xbf16>, vector<256x128xf32> -> vector<256x128xf32>
    %c0_11 = arith.constant 0 : index
    %c0_12 = arith.constant 0 : index
    %31 = vector.load %arg5[%c0_11, %c0_12] : memref<1x128xf32, #tpu.memory_space<vmem>>, vector<1x128xf32>
    %32 = vector.broadcast %31 : vector<1x128xf32> to vector<256x128xf32>
    %33 = arith.addf %30, %32 : vector<256x128xf32>
    %c0_13 = arith.constant 0 : index
    %c0_14 = arith.constant 0 : index
    %c0_15 = arith.constant 0 : index
    %34 = vector.load %arg6[%c0_13, %c0_14, %c0_15] : memref<1x256x128xf32, #tpu.memory_space<vmem>>, vector<1x256x128xf32>
    %35 = vector.shape_cast %34 : vector<1x256x128xf32> to vector<256x128xf32>
    %36 = vector.shape_cast %33 : vector<256x128xf32> to vector<1x256x128xf32>
    tpu.vector_store %arg6[%c0_13, %c0_14, %c0_15], %36 {strides = array<i32>} : memref<1x256x128xf32, #tpu.memory_space<vmem>>, vector<1x256x128xf32>,
    return
  }
  func.func @transform_0(%arg0: i32) -> (i32, i32, i32, i32) {
    %c0_i32 = arith.constant 0 : i32
    %c0_i32_0 = arith.constant 0 : i32
    %c0_i32_1 = arith.constant 0 : i32
    %c0_i32_2 = arith.constant 0 : i32
    return %arg0, %c0_i32, %c0_i32_0, %c0_i32_1 : i32, i32, i32, i32
  }
  func.func @transform_1(%arg0: i32) -> (i32, i32) {
    %c0_i32 = arith.constant 0 : i32
    %c0_i32_0 = arith.constant 0 : i32
    %c0_i32_1 = arith.constant 0 : i32
    return %c0_i32, %c0_i32_0 : i32, i32
  }
  func.func @transform_2(%arg0: i32) -> (i32, i32) {
    %c0_i32 = arith.constant 0 : i32
    %c0_i32_0 = arith.constant 0 : i32
    %c0_i32_1 = arith.constant 0 : i32
    return %c0_i32, %c0_i32_0 : i32, i32
  }
  func.func @transform_3(%arg0: i32) -> (i32, i32) {
    %c0_i32 = arith.constant 0 : i32
    %c0_i32_0 = arith.constant 0 : i32
    %c0_i32_1 = arith.constant 0 : i32
    return %c0_i32, %c0_i32_0 : i32, i32
  }
  func.func @transform_4(%arg0: i32) -> (i32, i32) {
    %c0_i32 = arith.constant 0 : i32
    %c0_i32_0 = arith.constant 0 : i32
    %c0_i32_1 = arith.constant 0 : i32
    return %c0_i32, %c0_i32_0 : i32, i32
  }
  func.func @transform_5(%arg0: i32) -> (i32, i32, i32) {
    %c0_i32 = arith.constant 0 : i32
    %c0_i32_0 = arith.constant 0 : i32
    %c0_i32_1 = arith.constant 0 : i32
    return %arg0, %c0_i32, %c0_i32_0 : i32, i32, i32
  }
}

module attributes {stable_mosaic.version = 11 : i64} {
  func.func @_roi_box_head_kernel(%arg0: i32, %arg1: memref<1x128x1xi32, #tpu.memory_space<vmem>>, %arg2: memref<1x256x128xbf16, #tpu.memory_space<vmem>>, %arg3: memref<2048x128xbf16, #tpu.memory_space<vmem>>, %arg4: memref<1x128xf32, #tpu.memory_space<vmem>>, %arg5: memref<128x128xbf16, #tpu.memory_space<vmem>>, %arg6: memref<1x128xf32, #tpu.memory_space<vmem>>, %arg7: memref<128x128xbf16, #tpu.memory_space<vmem>>, %arg8: memref<1x128xf32, #tpu.memory_space<vmem>>, %arg9: memref<1x8x128xf32, #tpu.memory_space<vmem>>) attributes {dimension_semantics = [#tpu.dimension_semantics<parallel>], iteration_bounds = array<i64: 2>, scalar_prefetch = 0 : i64, scratch_operands = 0 : i64, tpu.core_type = #tpu.core_type<tc>, window_params = [{transform_indices = @transform_0, window_bounds = array<i64: 1, 128, 1>}, {transform_indices = @transform_1, window_bounds = array<i64: 1, 256, 128>}, {pipeline_mode = #tpu.pipeline_mode<synchronous>, transform_indices = @transform_2, window_bounds = array<i64: 2048, 128>}, {pipeline_mode = #tpu.pipeline_mode<synchronous>, transform_indices = @transform_3, window_bounds = array<i64: 1, 128>}, {pipeline_mode = #tpu.pipeline_mode<synchronous>, transform_indices = @transform_4, window_bounds = array<i64: 128, 128>}, {pipeline_mode = #tpu.pipeline_mode<synchronous>, transform_indices = @transform_5, window_bounds = array<i64: 1, 128>}, {pipeline_mode = #tpu.pipeline_mode<synchronous>, transform_indices = @transform_6, window_bounds = array<i64: 128, 128>}, {pipeline_mode = #tpu.pipeline_mode<synchronous>, transform_indices = @transform_7, window_bounds = array<i64: 1, 128>}, {transform_indices = @transform_8, window_bounds = array<i64: 1, 8, 128>}]} {
    %c0 = arith.constant 0 : index
    %c0_0 = arith.constant 0 : index
    %c0_1 = arith.constant 0 : index
    %0 = vector.load %arg2[%c0, %c0_0, %c0_1] : memref<1x256x128xbf16, #tpu.memory_space<vmem>>, vector<1x256x128xbf16>
    %1 = vector.shape_cast %0 : vector<1x256x128xbf16> to vector<256x128xbf16>
    %c0_2 = arith.constant 0 : index
    %c0_3 = arith.constant 0 : index
    %c0_4 = arith.constant 0 : index
    %2 = vector.load %arg1[%c0_2, %c0_3, %c0_4] : memref<1x128x1xi32, #tpu.memory_space<vmem>>, vector<1x128x1xi32>
    %3 = vector.shape_cast %2 : vector<1x128x1xi32> to vector<128x1xi32>
    %4 = tpu.iota {dimensions = array<i32: 1>} : vector<128x256xi32>
    %5 = vector.broadcast %3 : vector<128x1xi32> to vector<128x256xi32>
    %6 = arith.cmpi eq, %5, %4 : vector<128x256xi32>
    %cst = arith.constant 1.000000e+00 : f32
    %cst_5 = arith.constant 0.000000e+00 : f32
    %7 = vector.broadcast %cst : f32 to vector<128x256xf32>
    %8 = vector.broadcast %cst_5 : f32 to vector<128x256xf32>
    %9 = arith.select %6, %7, %8 : vector<128x256xi1>, vector<128x256xf32>
    %10 = arith.truncf %9 : vector<128x256xf32> to vector<128x256xbf16>
    %cst_6 = arith.constant dense<0.000000e+00> : vector<128x128xf32>
    %11 = tpu.matmul %10, %1, %cst_6 {dimension_numbers = #tpu.dot_dimension_numbers<[1], [0], [0], [1], [0, 0, 1, 1], [], []>} : vector<128x256xbf16>, vector<256x128xbf16>, vector<128x128xf32> -> vector<128x128xf32>
    %12 = arith.truncf %11 : vector<128x128xf32> to vector<128x128xbf16>
    %cst_7 = arith.constant 0.000000e+00 : f32
    %13 = vector.broadcast %cst_7 : f32 to vector<8x128xf32>
    %14 = vector.extract_strided_slice %12 {offsets = [0, 0], sizes = [8, 128], strides = [1, 1]} : vector<128x128xbf16> to vector<8x128xbf16>
    %c0_8 = arith.constant 0 : index
    %c0_9 = arith.constant 0 : index
    %15 = vector.load %arg3[%c0_8, %c0_9] : memref<2048x128xbf16, #tpu.memory_space<vmem>>, vector<128x128xbf16>
    %cst_10 = arith.constant dense<0.000000e+00> : vector<8x128xf32>
    %16 = tpu.matmul %14, %15, %cst_10 {dimension_numbers = #tpu.dot_dimension_numbers<[1], [0], [0], [1], [0, 0, 1, 1], [], []>} : vector<8x128xbf16>, vector<128x128xbf16>, vector<8x128xf32> -> vector<8x128xf32>
    %17 = arith.addf %13, %16 : vector<8x128xf32>
    %18 = vector.extract_strided_slice %12 {offsets = [8, 0], sizes = [8, 128], strides = [1, 1]} : vector<128x128xbf16> to vector<8x128xbf16>
    %c128 = arith.constant 128 : index
    %c0_11 = arith.constant 0 : index
    %19 = vector.load %arg3[%c128, %c0_11] : memref<2048x128xbf16, #tpu.memory_space<vmem>>, vector<128x128xbf16>
    %cst_12 = arith.constant dense<0.000000e+00> : vector<8x128xf32>
    %20 = tpu.matmul %18, %19, %cst_12 {dimension_numbers = #tpu.dot_dimension_numbers<[1], [0], [0], [1], [0, 0, 1, 1], [], []>} : vector<8x128xbf16>, vector<128x128xbf16>, vector<8x128xf32> -> vector<8x128xf32>
    %21 = arith.addf %17, %20 : vector<8x128xf32>
    %22 = vector.extract_strided_slice %12 {offsets = [16, 0], sizes = [8, 128], strides = [1, 1]} : vector<128x128xbf16> to vector<8x128xbf16>
    %c256 = arith.constant 256 : index
    %c0_13 = arith.constant 0 : index
    %23 = vector.load %arg3[%c256, %c0_13] : memref<2048x128xbf16, #tpu.memory_space<vmem>>, vector<128x128xbf16>
    %cst_14 = arith.constant dense<0.000000e+00> : vector<8x128xf32>
    %24 = tpu.matmul %22, %23, %cst_14 {dimension_numbers = #tpu.dot_dimension_numbers<[1], [0], [0], [1], [0, 0, 1, 1], [], []>} : vector<8x128xbf16>, vector<128x128xbf16>, vector<8x128xf32> -> vector<8x128xf32>
    %25 = arith.addf %21, %24 : vector<8x128xf32>
    %26 = vector.extract_strided_slice %12 {offsets = [24, 0], sizes = [8, 128], strides = [1, 1]} : vector<128x128xbf16> to vector<8x128xbf16>
    %c384 = arith.constant 384 : index
    %c0_15 = arith.constant 0 : index
    %27 = vector.load %arg3[%c384, %c0_15] : memref<2048x128xbf16, #tpu.memory_space<vmem>>, vector<128x128xbf16>
    %cst_16 = arith.constant dense<0.000000e+00> : vector<8x128xf32>
    %28 = tpu.matmul %26, %27, %cst_16 {dimension_numbers = #tpu.dot_dimension_numbers<[1], [0], [0], [1], [0, 0, 1, 1], [], []>} : vector<8x128xbf16>, vector<128x128xbf16>, vector<8x128xf32> -> vector<8x128xf32>
    %29 = arith.addf %25, %28 : vector<8x128xf32>
    %30 = vector.extract_strided_slice %12 {offsets = [32, 0], sizes = [8, 128], strides = [1, 1]} : vector<128x128xbf16> to vector<8x128xbf16>
    %c512 = arith.constant 512 : index
    %c0_17 = arith.constant 0 : index
    %31 = vector.load %arg3[%c512, %c0_17] : memref<2048x128xbf16, #tpu.memory_space<vmem>>, vector<128x128xbf16>
    %cst_18 = arith.constant dense<0.000000e+00> : vector<8x128xf32>
    %32 = tpu.matmul %30, %31, %cst_18 {dimension_numbers = #tpu.dot_dimension_numbers<[1], [0], [0], [1], [0, 0, 1, 1], [], []>} : vector<8x128xbf16>, vector<128x128xbf16>, vector<8x128xf32> -> vector<8x128xf32>
    %33 = arith.addf %29, %32 : vector<8x128xf32>
    %34 = vector.extract_strided_slice %12 {offsets = [40, 0], sizes = [8, 128], strides = [1, 1]} : vector<128x128xbf16> to vector<8x128xbf16>
    %c640 = arith.constant 640 : index
    %c0_19 = arith.constant 0 : index
    %35 = vector.load %arg3[%c640, %c0_19] : memref<2048x128xbf16, #tpu.memory_space<vmem>>, vector<128x128xbf16>
    %cst_20 = arith.constant dense<0.000000e+00> : vector<8x128xf32>
    %36 = tpu.matmul %34, %35, %cst_20 {dimension_numbers = #tpu.dot_dimension_numbers<[1], [0], [0], [1], [0, 0, 1, 1], [], []>} : vector<8x128xbf16>, vector<128x128xbf16>, vector<8x128xf32> -> vector<8x128xf32>
    %37 = arith.addf %33, %36 : vector<8x128xf32>
    %38 = vector.extract_strided_slice %12 {offsets = [48, 0], sizes = [8, 128], strides = [1, 1]} : vector<128x128xbf16> to vector<8x128xbf16>
    %c768 = arith.constant 768 : index
    %c0_21 = arith.constant 0 : index
    %39 = vector.load %arg3[%c768, %c0_21] : memref<2048x128xbf16, #tpu.memory_space<vmem>>, vector<128x128xbf16>
    %cst_22 = arith.constant dense<0.000000e+00> : vector<8x128xf32>
    %40 = tpu.matmul %38, %39, %cst_22 {dimension_numbers = #tpu.dot_dimension_numbers<[1], [0], [0], [1], [0, 0, 1, 1], [], []>} : vector<8x128xbf16>, vector<128x128xbf16>, vector<8x128xf32> -> vector<8x128xf32>
    %41 = arith.addf %37, %40 : vector<8x128xf32>
    %42 = vector.extract_strided_slice %12 {offsets = [56, 0], sizes = [8, 128], strides = [1, 1]} : vector<128x128xbf16> to vector<8x128xbf16>
    %c896 = arith.constant 896 : index
    %c0_23 = arith.constant 0 : index
    %43 = vector.load %arg3[%c896, %c0_23] : memref<2048x128xbf16, #tpu.memory_space<vmem>>, vector<128x128xbf16>
    %cst_24 = arith.constant dense<0.000000e+00> : vector<8x128xf32>
    %44 = tpu.matmul %42, %43, %cst_24 {dimension_numbers = #tpu.dot_dimension_numbers<[1], [0], [0], [1], [0, 0, 1, 1], [], []>} : vector<8x128xbf16>, vector<128x128xbf16>, vector<8x128xf32> -> vector<8x128xf32>
    %45 = arith.addf %41, %44 : vector<8x128xf32>
    %46 = vector.extract_strided_slice %12 {offsets = [64, 0], sizes = [8, 128], strides = [1, 1]} : vector<128x128xbf16> to vector<8x128xbf16>
    %c1024 = arith.constant 1024 : index
    %c0_25 = arith.constant 0 : index
    %47 = vector.load %arg3[%c1024, %c0_25] : memref<2048x128xbf16, #tpu.memory_space<vmem>>, vector<128x128xbf16>
    %cst_26 = arith.constant dense<0.000000e+00> : vector<8x128xf32>
    %48 = tpu.matmul %46, %47, %cst_26 {dimension_numbers = #tpu.dot_dimension_numbers<[1], [0], [0], [1], [0, 0, 1, 1], [], []>} : vector<8x128xbf16>, vector<128x128xbf16>, vector<8x128xf32> -> vector<8x128xf32>
    %49 = arith.addf %45, %48 : vector<8x128xf32>
    %50 = vector.extract_strided_slice %12 {offsets = [72, 0], sizes = [8, 128], strides = [1, 1]} : vector<128x128xbf16> to vector<8x128xbf16>
    %c1152 = arith.constant 1152 : index
    %c0_27 = arith.constant 0 : index
    %51 = vector.load %arg3[%c1152, %c0_27] : memref<2048x128xbf16, #tpu.memory_space<vmem>>, vector<128x128xbf16>
    %cst_28 = arith.constant dense<0.000000e+00> : vector<8x128xf32>
    %52 = tpu.matmul %50, %51, %cst_28 {dimension_numbers = #tpu.dot_dimension_numbers<[1], [0], [0], [1], [0, 0, 1, 1], [], []>} : vector<8x128xbf16>, vector<128x128xbf16>, vector<8x128xf32> -> vector<8x128xf32>
    %53 = arith.addf %49, %52 : vector<8x128xf32>
    %54 = vector.extract_strided_slice %12 {offsets = [80, 0], sizes = [8, 128], strides = [1, 1]} : vector<128x128xbf16> to vector<8x128xbf16>
    %c1280 = arith.constant 1280 : index
    %c0_29 = arith.constant 0 : index
    %55 = vector.load %arg3[%c1280, %c0_29] : memref<2048x128xbf16, #tpu.memory_space<vmem>>, vector<128x128xbf16>
    %cst_30 = arith.constant dense<0.000000e+00> : vector<8x128xf32>
    %56 = tpu.matmul %54, %55, %cst_30 {dimension_numbers = #tpu.dot_dimension_numbers<[1], [0], [0], [1], [0, 0, 1, 1], [], []>} : vector<8x128xbf16>, vector<128x128xbf16>, vector<8x128xf32> -> vector<8x128xf32>
    %57 = arith.addf %53, %56 : vector<8x128xf32>
    %58 = vector.extract_strided_slice %12 {offsets = [88, 0], sizes = [8, 128], strides = [1, 1]} : vector<128x128xbf16> to vector<8x128xbf16>
    %c1408 = arith.constant 1408 : index
    %c0_31 = arith.constant 0 : index
    %59 = vector.load %arg3[%c1408, %c0_31] : memref<2048x128xbf16, #tpu.memory_space<vmem>>, vector<128x128xbf16>
    %cst_32 = arith.constant dense<0.000000e+00> : vector<8x128xf32>
    %60 = tpu.matmul %58, %59, %cst_32 {dimension_numbers = #tpu.dot_dimension_numbers<[1], [0], [0], [1], [0, 0, 1, 1], [], []>} : vector<8x128xbf16>, vector<128x128xbf16>, vector<8x128xf32> -> vector<8x128xf32>
    %61 = arith.addf %57, %60 : vector<8x128xf32>
    %62 = vector.extract_strided_slice %12 {offsets = [96, 0], sizes = [8, 128], strides = [1, 1]} : vector<128x128xbf16> to vector<8x128xbf16>
    %c1536 = arith.constant 1536 : index
    %c0_33 = arith.constant 0 : index
    %63 = vector.load %arg3[%c1536, %c0_33] : memref<2048x128xbf16, #tpu.memory_space<vmem>>, vector<128x128xbf16>
    %cst_34 = arith.constant dense<0.000000e+00> : vector<8x128xf32>
    %64 = tpu.matmul %62, %63, %cst_34 {dimension_numbers = #tpu.dot_dimension_numbers<[1], [0], [0], [1], [0, 0, 1, 1], [], []>} : vector<8x128xbf16>, vector<128x128xbf16>, vector<8x128xf32> -> vector<8x128xf32>
    %65 = arith.addf %61, %64 : vector<8x128xf32>
    %66 = vector.extract_strided_slice %12 {offsets = [104, 0], sizes = [8, 128], strides = [1, 1]} : vector<128x128xbf16> to vector<8x128xbf16>
    %c1664 = arith.constant 1664 : index
    %c0_35 = arith.constant 0 : index
    %67 = vector.load %arg3[%c1664, %c0_35] : memref<2048x128xbf16, #tpu.memory_space<vmem>>, vector<128x128xbf16>
    %cst_36 = arith.constant dense<0.000000e+00> : vector<8x128xf32>
    %68 = tpu.matmul %66, %67, %cst_36 {dimension_numbers = #tpu.dot_dimension_numbers<[1], [0], [0], [1], [0, 0, 1, 1], [], []>} : vector<8x128xbf16>, vector<128x128xbf16>, vector<8x128xf32> -> vector<8x128xf32>
    %69 = arith.addf %65, %68 : vector<8x128xf32>
    %70 = vector.extract_strided_slice %12 {offsets = [112, 0], sizes = [8, 128], strides = [1, 1]} : vector<128x128xbf16> to vector<8x128xbf16>
    %c1792 = arith.constant 1792 : index
    %c0_37 = arith.constant 0 : index
    %71 = vector.load %arg3[%c1792, %c0_37] : memref<2048x128xbf16, #tpu.memory_space<vmem>>, vector<128x128xbf16>
    %cst_38 = arith.constant dense<0.000000e+00> : vector<8x128xf32>
    %72 = tpu.matmul %70, %71, %cst_38 {dimension_numbers = #tpu.dot_dimension_numbers<[1], [0], [0], [1], [0, 0, 1, 1], [], []>} : vector<8x128xbf16>, vector<128x128xbf16>, vector<8x128xf32> -> vector<8x128xf32>
    %73 = arith.addf %69, %72 : vector<8x128xf32>
    %74 = vector.extract_strided_slice %12 {offsets = [120, 0], sizes = [8, 128], strides = [1, 1]} : vector<128x128xbf16> to vector<8x128xbf16>
    %c1920 = arith.constant 1920 : index
    %c0_39 = arith.constant 0 : index
    %75 = vector.load %arg3[%c1920, %c0_39] : memref<2048x128xbf16, #tpu.memory_space<vmem>>, vector<128x128xbf16>
    %cst_40 = arith.constant dense<0.000000e+00> : vector<8x128xf32>
    %76 = tpu.matmul %74, %75, %cst_40 {dimension_numbers = #tpu.dot_dimension_numbers<[1], [0], [0], [1], [0, 0, 1, 1], [], []>} : vector<8x128xbf16>, vector<128x128xbf16>, vector<8x128xf32> -> vector<8x128xf32>
    %77 = arith.addf %73, %76 : vector<8x128xf32>
    %c0_41 = arith.constant 0 : index
    %c0_42 = arith.constant 0 : index
    %78 = vector.load %arg4[%c0_41, %c0_42] : memref<1x128xf32, #tpu.memory_space<vmem>>, vector<1x128xf32>
    %79 = vector.broadcast %78 : vector<1x128xf32> to vector<8x128xf32>
    %80 = arith.addf %77, %79 : vector<8x128xf32>
    %cst_43 = arith.constant 0.000000e+00 : f32
    %81 = vector.broadcast %cst_43 : f32 to vector<8x128xf32>
    %82 = arith.maximumf %80, %81 : vector<8x128xf32>
    %83 = arith.truncf %82 : vector<8x128xf32> to vector<8x128xbf16>
    %c0_44 = arith.constant 0 : index
    %c0_45 = arith.constant 0 : index
    %84 = vector.load %arg5[%c0_44, %c0_45] : memref<128x128xbf16, #tpu.memory_space<vmem>>, vector<128x128xbf16>
    %cst_46 = arith.constant dense<0.000000e+00> : vector<8x128xf32>
    %85 = tpu.matmul %83, %84, %cst_46 {dimension_numbers = #tpu.dot_dimension_numbers<[1], [0], [0], [1], [0, 0, 1, 1], [], []>} : vector<8x128xbf16>, vector<128x128xbf16>, vector<8x128xf32> -> vector<8x128xf32>
    %c0_47 = arith.constant 0 : index
    %c0_48 = arith.constant 0 : index
    %86 = vector.load %arg6[%c0_47, %c0_48] : memref<1x128xf32, #tpu.memory_space<vmem>>, vector<1x128xf32>
    %87 = vector.broadcast %86 : vector<1x128xf32> to vector<8x128xf32>
    %88 = arith.addf %85, %87 : vector<8x128xf32>
    %cst_49 = arith.constant 0.000000e+00 : f32
    %89 = vector.broadcast %cst_49 : f32 to vector<8x128xf32>
    %90 = arith.maximumf %88, %89 : vector<8x128xf32>
    %91 = arith.truncf %90 : vector<8x128xf32> to vector<8x128xbf16>
    %c0_50 = arith.constant 0 : index
    %c0_51 = arith.constant 0 : index
    %92 = vector.load %arg7[%c0_50, %c0_51] : memref<128x128xbf16, #tpu.memory_space<vmem>>, vector<128x128xbf16>
    %cst_52 = arith.constant dense<0.000000e+00> : vector<8x128xf32>
    %93 = tpu.matmul %91, %92, %cst_52 {dimension_numbers = #tpu.dot_dimension_numbers<[1], [0], [0], [1], [0, 0, 1, 1], [], []>} : vector<8x128xbf16>, vector<128x128xbf16>, vector<8x128xf32> -> vector<8x128xf32>
    %c0_53 = arith.constant 0 : index
    %c0_54 = arith.constant 0 : index
    %94 = vector.load %arg8[%c0_53, %c0_54] : memref<1x128xf32, #tpu.memory_space<vmem>>, vector<1x128xf32>
    %95 = vector.broadcast %94 : vector<1x128xf32> to vector<8x128xf32>
    %96 = arith.addf %93, %95 : vector<8x128xf32>
    %c0_55 = arith.constant 0 : index
    %c0_56 = arith.constant 0 : index
    %c0_57 = arith.constant 0 : index
    %97 = vector.load %arg9[%c0_55, %c0_56, %c0_57] : memref<1x8x128xf32, #tpu.memory_space<vmem>>, vector<1x8x128xf32>
    %98 = vector.shape_cast %97 : vector<1x8x128xf32> to vector<8x128xf32>
    %99 = vector.shape_cast %96 : vector<8x128xf32> to vector<1x8x128xf32>
    tpu.vector_store %arg9[%c0_55, %c0_56, %c0_57], %99 {strides = array<i32>} : memref<1x8x128xf32, #tpu.memory_space<vmem>>, vector<1x8x128xf32>,
    return
  }
  func.func @transform_0(%arg0: i32) -> (i32, i32, i32) {
    %c0_i32 = arith.constant 0 : i32
    %c0_i32_0 = arith.constant 0 : i32
    %c0_i32_1 = arith.constant 0 : i32
    return %arg0, %c0_i32, %c0_i32_0 : i32, i32, i32
  }
  func.func @transform_1(%arg0: i32) -> (i32, i32, i32) {
    %c0_i32 = arith.constant 0 : i32
    %c0_i32_0 = arith.constant 0 : i32
    %c0_i32_1 = arith.constant 0 : i32
    return %arg0, %c0_i32, %c0_i32_0 : i32, i32, i32
  }
  func.func @transform_2(%arg0: i32) -> (i32, i32) {
    %c0_i32 = arith.constant 0 : i32
    %c0_i32_0 = arith.constant 0 : i32
    %c0_i32_1 = arith.constant 0 : i32
    return %c0_i32, %c0_i32_0 : i32, i32
  }
  func.func @transform_3(%arg0: i32) -> (i32, i32) {
    %c0_i32 = arith.constant 0 : i32
    %c0_i32_0 = arith.constant 0 : i32
    %c0_i32_1 = arith.constant 0 : i32
    return %c0_i32, %c0_i32_0 : i32, i32
  }
  func.func @transform_4(%arg0: i32) -> (i32, i32) {
    %c0_i32 = arith.constant 0 : i32
    %c0_i32_0 = arith.constant 0 : i32
    %c0_i32_1 = arith.constant 0 : i32
    return %c0_i32, %c0_i32_0 : i32, i32
  }
  func.func @transform_5(%arg0: i32) -> (i32, i32) {
    %c0_i32 = arith.constant 0 : i32
    %c0_i32_0 = arith.constant 0 : i32
    %c0_i32_1 = arith.constant 0 : i32
    return %c0_i32, %c0_i32_0 : i32, i32
  }
  func.func @transform_6(%arg0: i32) -> (i32, i32) {
    %c0_i32 = arith.constant 0 : i32
    %c0_i32_0 = arith.constant 0 : i32
    %c0_i32_1 = arith.constant 0 : i32
    return %c0_i32, %c0_i32_0 : i32, i32
  }
  func.func @transform_7(%arg0: i32) -> (i32, i32) {
    %c0_i32 = arith.constant 0 : i32
    %c0_i32_0 = arith.constant 0 : i32
    %c0_i32_1 = arith.constant 0 : i32
    return %c0_i32, %c0_i32_0 : i32, i32
  }
  func.func @transform_8(%arg0: i32) -> (i32, i32, i32) {
    %c0_i32 = arith.constant 0 : i32
    %c0_i32_0 = arith.constant 0 : i32
    %c0_i32_1 = arith.constant 0 : i32
    return %arg0, %c0_i32, %c0_i32_0 : i32, i32, i32
  }
}

</mosaic_0001>

<bundles_post_ra>
// kernel: custom-call
= control target key start
LH: loop header
LB: loop body
LE: loop exit
PB: predicated region body
PF: predicated region fallthrough
CT: control target
= control target key end

     0   :  { %5 = vsyncpa [#allocation9], 0  ;;  %v1086_v0 = vmov 2147483648   ;;  %v1087_v1 = vmov 2147483647   ;;  %s1221_s0 = inlined_call_operand.vmem [shape: f32[2,768], index: 0, kind: input, shape index: {}]   ;;  %s1222_s1 = inlined_call_operand.hbm [shape: f32[2,8], index: 1, kind: output, shape index: {0}]   ;;  %s1223_s2 = inlined_call_operand.vmem [shape: s32[2,8], index: 2, kind: output, shape index: {1}]  }
   0x1   :  { %7 = vst [vmem:[#allocation12] sm:$0xff] %v1086_v0  ;;  %8 = vst [vmem:[#allocation14] sm:$0xff] %v1087_v1 }
   0x2   :  { %v1022_v2 = vld [vmem:[%s1221_s0 + $0x8] sm:$0xf]  ;;  %v43_v3 = vlaneseq  ;;  %v27_v4 = vld [vmem:[%s1221_s0] sm:$0xff]  ;;  %v1088_v5 = vmov 2147483648   ;;  %v1089_v6 = vmov 2147483647  }
   0x3   :  { %39 = vst [vmem:[#allocation16 + $0x8] sm:$0xf] %v1022_v2  ;;  %84 = vst [vmem:[#allocation13] sm:$0xff] %v1088_v5  ;;  %v54_v10 = vsub.s32 2147483647, %v27_v4  ;;  %vm53_vm0 = vcmp.lt.s32.totalorder %v27_v4, 0 }
   0x4   :  { %85 = vst [vmem:[#allocation15] sm:$0xff] %v1089_v6  ;;  %v1118_v7 = vshrl.u32 %v43_v3, 7  ;;  %v44_v8 = vand.u32 127, %v43_v3  ;;  %s1122_s0 = smov 0  }
   0x5   :  { %v55_v13 = vsel %vm53_vm0, %v54_v10, %v27_v4 }
   0x6   :  { %v47_v9 = vshrl.u32 %v1118_v7, 1 }
   0x8   :  { %v49_v11 = vmul.u32 128, %v47_v9 }
   0xa   :  { %v50_v12 = vadd.s32 %v49_v11, %v44_v8  ;;  %v61_v14 = vld [vmem:[#allocation16 + $0x8] sm:$0xff] }
   0xb   :  { %vm62_vm1 = vcmp.lt.s32.totalorder %v61_v14, 0  ;;  %v63_v15 = vsub.s32 2147483647, %v61_v14 }
   0xc   :  { %vm57_vm2 = vcmp.lt.s32.totalorder %v50_v12, 768  ;;  %v65_v16 = vadd.s32 512, %v50_v12  ;;  %79 = vst [vmem:[#allocation17] sm:$0xff] %v50_v12 }
   0xd   :  { %v58_v17 = vsel %vm57_vm2, %v55_v13, 2147483648  ;;  %v64_v18 = vsel %vm62_vm1, %v63_v15, %v61_v14 }
   0xe   :  { %59 = vst [vmem:[#allocation16] sm:$0xff] %v58_v17  ;;  %vm66_vm3 = vcmp.lt.s32.totalorder %v65_v16, 768  ;;  %82 = vst [vmem:[#allocation17 + $0x8] sm:$0xff] %v65_v16 }
   0xf   :  { %v67_v19 = vsel %vm66_vm3, %v64_v18, 2147483648 }
  0x10   :  { %68 = vst [vmem:[#allocation16 + $0x8] sm:$0xff] %v67_v19 }
  0x11 LB: > { %s419_s13 = scalar_lea.vmem [#allocation13], %s1084_s0  ;;  %s421_s14 = scalar_lea.vmem [#allocation15], %s1084_s0  ;;  %s1084_s0 = sphi %s1122_s0, %s92_s0  }
  0x12   : > { %s92_s0 = sadd.s32 1, %s1084_s0  }
  0x13   : > { %v94_v21 = vld [vmem:[#allocation17] sm:$0xff]  ;;  %p89_p2 = scmp.ge.s32.totalorder %s92_s0, 8  }
  0x14   :  { %s1095_s0 = smov (%p89_p2), [#allocation8]  }
  0x15   : > { %v93_v20 = vld [vmem:[#allocation16] sm:$0xff]  ;;  %v99_v23 = vld [vmem:[#allocation17 + $0x8] sm:$0xff] }
  0x16   : > { %vm103_vm6 = vcmp.lt.s32.totalorder %v99_v23, %v94_v21 }
  0x17   : > { %v97_v22 = vld [vmem:[#allocation16 + $0x8] sm:$0xff] }
  0x18   : > { %vm101_vm4 = vcmp.gt.s32.totalorder %v97_v22, %v93_v20  ;;  %vm102_vm5 = vcmp.eq.s32.totalorder %v97_v22, %v93_v20 }
  0x19   : > { %vm104_vm7 = vmand %vm102_vm5, %vm103_vm6 }
  0x1a   : > { %vm105_vm8 = vmor %vm101_vm4, %vm104_vm7 }
  0x1b   : > { %v106_v24 = vsel %vm105_vm8, %v97_v22, %v93_v20  ;;  %v107_v25 = vsel %vm105_vm8, %v99_v23, %v94_v21 }
  0x1c   : > { %v109_v26 = vrot.slane %v106_v24, 2  ;;  %v110_v27 = vrot.slane %v107_v25, 2 }
  0x1e   : > { %vm112_vm9 = vcmp.gt.s32.totalorder %v109_v26, %v106_v24  ;;  %vm113_vm10 = vcmp.eq.s32.totalorder %v109_v26, %v106_v24  ;;  %vm114_vm11 = vcmp.lt.s32.totalorder %v110_v27, %v107_v25 }
  0x1f   : > { %vm115_vm12 = vmand %vm113_vm10, %vm114_vm11 }
  0x20   : > { %vm116_vm13 = vmor %vm112_vm9, %vm115_vm12 }
  0x21   : > { %v117_v28 = vsel %vm116_vm13, %v109_v26, %v106_v24  ;;  %v118_v29 = vsel %vm116_vm13, %v110_v27, %v107_v25 }
  0x22   : > { %v120_v30 = vrot.slane %v117_v28, 2  ;;  %v121_v31 = vrot.slane %v118_v29, 2 }
  0x24   : > { %vm123_vm14 = vcmp.gt.s32.totalorder %v120_v30, %v117_v28  ;;  %vm124_vm15 = vcmp.eq.s32.totalorder %v120_v30, %v117_v28  ;;  %vm125_vm0 = vcmp.lt.s32.totalorder %v121_v31, %v118_v29 }
  0x25   : > { %vm126_vm1 = vmand %vm124_vm15, %vm125_vm0 }
  0x26   : > { %vm127_vm2 = vmor %vm123_vm14, %vm126_vm1 }
  0x27   : > { %v128_v32 = vsel %vm127_vm2, %v120_v30, %v117_v28  ;;  %v129_v33 = vsel %vm127_vm2, %v121_v31, %v118_v29 }
  0x28   : > { %v131_v34 = vrot.slane %v128_v32, 2  ;;  %v132_v35 = vrot.slane %v129_v33, 2 }
  0x2a   : > { %vm134_vm3 = vcmp.gt.s32.totalorder %v131_v34, %v128_v32  ;;  %vm135_vm4 = vcmp.eq.s32.totalorder %v131_v34, %v128_v32  ;;  %vm136_vm5 = vcmp.lt.s32.totalorder %v132_v35, %v129_v33 }
  0x2b   : > { %vm137_vm6 = vmand %vm135_vm4, %vm136_vm5 }
  0x2c   : > { %vm138_vm7 = vmor %vm134_vm3, %vm137_vm6 }
  0x2d   : > { %v140_v36 = vsel %vm138_vm7, %v132_v35, %v129_v33  ;;  %v139_v37 = vsel %vm138_vm7, %v131_v34, %v128_v32 }
  0x2e   : > { %174 = vxpose.xlu1.b32.start [1/16] %v140_v36, 128  ;;  %142 = vxpose.xlu0.b32.start [1/16] %v139_v37, 128 }
  0x32   : > { %175 = vxpose.xlu1.b32.cont [2/16] %v140_v36, 128  ;;  %143 = vxpose.xlu0.b32.cont [2/16] %v139_v37, 128 }
  0x36   : > { %176 = vxpose.xlu1.b32.cont [3/16] %v140_v36, 128  ;;  %144 = vxpose.xlu0.b32.cont [3/16] %v139_v37, 128 }
  0x3a   : > { %177 = vxpose.xlu1.b32.cont [4/16] %v140_v36, 128  ;;  %145 = vxpose.xlu0.b32.cont [4/16] %v139_v37, 128 }
  0x3e   : > { %178 = vxpose.xlu1.b32.cont [5/16] %v140_v36, 128  ;;  %146 = vxpose.xlu0.b32.cont [5/16] %v139_v37, 128 }
  0x42   : > { %179 = vxpose.xlu1.b32.cont [6/16] %v140_v36, 128  ;;  %147 = vxpose.xlu0.b32.cont [6/16] %v139_v37, 128 }
  0x46   : > { %180 = vxpose.xlu1.b32.cont [7/16] %v140_v36, 128  ;;  %148 = vxpose.xlu0.b32.cont [7/16] %v139_v37, 128 }
  0x4a   : > { %181 = vxpose.xlu1.b32.cont [8/16] %v140_v36, 128  ;;  %149 = vxpose.xlu0.b32.cont [8/16] %v139_v37, 128 }
  0x4e   : > { %182 = vxpose.xlu1.b32.cont [9/16] %v140_v36, 128  ;;  %150 = vxpose.xlu0.b32.cont [9/16] %v139_v37, 128 }
  0x52   : > { %183 = vxpose.xlu1.b32.cont [10/16] %v140_v36, 128  ;;  %151 = vxpose.xlu0.b32.cont [10/16] %v139_v37, 128 }
  0x56   : > { %184 = vxpose.xlu1.b32.cont [11/16] %v140_v36, 128  ;;  %152 = vxpose.xlu0.b32.cont [11/16] %v139_v37, 128 }
  0x5a   : > { %185 = vxpose.xlu1.b32.cont [12/16] %v140_v36, 128  ;;  %153 = vxpose.xlu0.b32.cont [12/16] %v139_v37, 128 }
  0x5e   : > { %186 = vxpose.xlu1.b32.cont [13/16] %v140_v36, 128  ;;  %154 = vxpose.xlu0.b32.cont [13/16] %v139_v37, 128 }
  0x62   : > { %187 = vxpose.xlu1.b32.cont [14/16] %v140_v36, 128  ;;  %155 = vxpose.xlu0.b32.cont [14/16] %v139_v37, 128 }
  0x66   : > { %188 = vxpose.xlu1.b32.cont [15/16] %v140_v36, 128  ;;  %156 = vxpose.xlu0.b32.cont [15/16] %v139_v37, 128 }
  0x6a   : > { %189 = vxpose.xlu1.b32.end [16/16] %v140_v36, 128  ;;  %157 = vxpose.xlu0.b32.end [16/16] %v139_v37, 128 }
  0xae   : > { %v190_v38 = vpop.trf.xlu1  ;;  %v158_v39 = vpop.trf.xlu0 }
  0xb2   : > { %v191_v40 = vpop.trf.xlu1  ;;  %v159_v41 = vpop.trf.xlu0 }
  0xb3   : > { %vm210_vm8 = vcmp.lt.s32.totalorder %v191_v40, %v190_v38  ;;  %vm208_vm9 = vcmp.gt.s32.totalorder %v159_v41, %v158_v39  ;;  %vm209_vm10 = vcmp.eq.s32.totalorder %v159_v41, %v158_v39 }
  0xb4   : > { %vm211_vm11 = vmand %vm209_vm10, %vm210_vm8 }
  0xb5   : > { %vm212_vm12 = vmor %vm208_vm9, %vm211_vm11 }
  0xb6   : > { %v213_v42 = vsel %vm212_vm12, %v159_v41, %v158_v39  ;;  %v192_v43 = vpop.trf.xlu1  ;;  %v214_v44 = vsel %vm212_vm12, %v191_v40, %v190_v38  ;;  %v160_v45 = vpop.trf.xlu0 }
  0xb7   : > { %vm219_vm13 = vcmp.lt.s32.totalorder %v192_v43, %v214_v44  ;;  %vm217_vm14 = vcmp.gt.s32.totalorder %v160_v45, %v213_v42  ;;  %vm218_vm15 = vcmp.eq.s32.totalorder %v160_v45, %v213_v42 }
  0xb8   : > { %vm220_vm0 = vmand %vm218_vm15, %vm219_vm13 }
  0xb9   : > { %vm221_vm1 = vmor %vm217_vm14, %vm220_vm0 }
  0xba   : > { %v222_v46 = vsel %vm221_vm1, %v160_v45, %v213_v42  ;;  %v193_v47 = vpop.trf.xlu1  ;;  %v223_v48 = vsel %vm221_vm1, %v192_v43, %v214_v44  ;;  %v161_v49 = vpop.trf.xlu0 }
  0xbb   : > { %vm228_vm2 = vcmp.lt.s32.totalorder %v193_v47, %v223_v48  ;;  %vm226_vm3 = vcmp.gt.s32.totalorder %v161_v49, %v222_v46  ;;  %vm227_vm4 = vcmp.eq.s32.totalorder %v161_v49, %v222_v46 }
  0xbc   : > { %vm229_vm5 = vmand %vm227_vm4, %vm228_vm2 }
  0xbd   : > { %vm230_vm6 = vmor %vm226_vm3, %vm229_vm5 }
  0xbe   : > { %v231_v50 = vsel %vm230_vm6, %v161_v49, %v222_v46  ;;  %v194_v51 = vpop.trf.xlu1  ;;  %v232_v52 = vsel %vm230_vm6, %v193_v47, %v223_v48  ;;  %v162_v53 = vpop.trf.xlu0 }
  0xbf   : > { %vm237_vm7 = vcmp.lt.s32.totalorder %v194_v51, %v232_v52  ;;  %vm235_vm8 = vcmp.gt.s32.totalorder %v162_v53, %v231_v50  ;;  %vm236_vm9 = vcmp.eq.s32.totalorder %v162_v53, %v231_v50 }
  0xc0   : > { %vm238_vm10 = vmand %vm236_vm9, %vm237_vm7 }
  0xc1   : > { %vm239_vm11 = vmor %vm235_vm8, %vm238_vm10 }
  0xc2   : > { %v240_v54 = vsel %vm239_vm11, %v162_v53, %v231_v50  ;;  %v195_v55 = vpop.trf.xlu1  ;;  %v241_v56 = vsel %vm239_vm11, %v194_v51, %v232_v52  ;;  %v163_v57 = vpop.trf.xlu0 }
  0xc3   : > { %vm246_vm12 = vcmp.lt.s32.totalorder %v195_v55, %v241_v56  ;;  %vm244_vm13 = vcmp.gt.s32.totalorder %v163_v57, %v240_v54  ;;  %vm245_vm14 = vcmp.eq.s32.totalorder %v163_v57, %v240_v54 }
  0xc4   : > { %vm247_vm15 = vmand %vm245_vm14, %vm246_vm12 }
  0xc5   : > { %vm248_vm0 = vmor %vm244_vm13, %vm247_vm15 }
  0xc6   : > { %v249_v58 = vsel %vm248_vm0, %v163_v57, %v240_v54  ;;  %v196_v59 = vpop.trf.xlu1  ;;  %v250_v60 = vsel %vm248_vm0, %v195_v55, %v241_v56  ;;  %v164_v61 = vpop.trf.xlu0 }
  0xc7   : > { %vm255_vm1 = vcmp.lt.s32.totalorder %v196_v59, %v250_v60  ;;  %vm253_vm2 = vcmp.gt.s32.totalorder %v164_v61, %v249_v58  ;;  %vm254_vm3 = vcmp.eq.s32.totalorder %v164_v61, %v249_v58 }
  0xc8   : > { %vm256_vm4 = vmand %vm254_vm3, %vm255_vm1 }
  0xc9   : > { %vm257_vm5 = vmor %vm253_vm2, %vm256_vm4 }
  0xca   : > { %v258_v62 = vsel %vm257_vm5, %v164_v61, %v249_v58  ;;  %v197_v63 = vpop.trf.xlu1  ;;  %v259_v0 = vsel %vm257_vm5, %v196_v59, %v250_v60  ;;  %v165_v1 = vpop.trf.xlu0 }
  0xcb   : > { %vm264_vm6 = vcmp.lt.s32.totalorder %v197_v63, %v259_v0  ;;  %vm262_vm7 = vcmp.gt.s32.totalorder %v165_v1, %v258_v62  ;;  %vm263_vm8 = vcmp.eq.s32.totalorder %v165_v1, %v258_v62 }
  0xcc   : > { %vm265_vm9 = vmand %vm263_vm8, %vm264_vm6 }
  0xcd   : > { %vm266_vm10 = vmor %vm262_vm7, %vm265_vm9 }
  0xce   : > { %v267_v2 = vsel %vm266_vm10, %v165_v1, %v258_v62  ;;  %v198_v4 = vpop.trf.xlu1  ;;  %v268_v5 = vsel %vm266_vm10, %v197_v63, %v259_v0  ;;  %v166_v6 = vpop.trf.xlu0 }
  0xcf   : > { %vm273_vm11 = vcmp.lt.s32.totalorder %v198_v4, %v268_v5  ;;  %vm271_vm12 = vcmp.gt.s32.totalorder %v166_v6, %v267_v2  ;;  %vm272_vm13 = vcmp.eq.s32.totalorder %v166_v6, %v267_v2 }
  0xd0   : > { %vm274_vm14 = vmand %vm272_vm13, %vm273_vm11 }
  0xd1   : > { %vm275_vm15 = vmor %vm271_vm12, %vm274_vm14 }
  0xd2   : > { %v276_v8 = vsel %vm275_vm15, %v166_v6, %v267_v2  ;;  %v199_v9 = vpop.trf.xlu1  ;;  %v277_v10 = vsel %vm275_vm15, %v198_v4, %v268_v5  ;;  %v167_v11 = vpop.trf.xlu0  ;;  %v1090_v6 = vmov 2147483648  }
  0xd3   : > { %vm282_vm0 = vcmp.lt.s32.totalorder %v199_v9, %v277_v10  ;;  %vm280_vm1 = vcmp.gt.s32.totalorder %v167_v11, %v276_v8  ;;  %vm281_vm2 = vcmp.eq.s32.totalorder %v167_v11, %v276_v8 }
  0xd4   : > { %vm283_vm3 = vmand %vm281_vm2, %vm282_vm0 }
  0xd5   : > { %vm284_vm4 = vmor %vm280_vm1, %vm283_vm3 }
  0xd6   : > { %v285_v12 = vsel %vm284_vm4, %v167_v11, %v276_v8  ;;  %v200_v13 = vpop.trf.xlu1  ;;  %v286_v14 = vsel %vm284_vm4, %v199_v9, %v277_v10  ;;  %v168_v15 = vpop.trf.xlu0  ;;  %v1091_v8 = vmov 2147483647  }
  0xd7   : > { %vm291_vm5 = vcmp.lt.s32.totalorder %v200_v13, %v286_v14  ;;  %vm289_vm6 = vcmp.gt.s32.totalorder %v168_v15, %v285_v12  ;;  %vm290_vm7 = vcmp.eq.s32.totalorder %v168_v15, %v285_v12 }
  0xd8   : > { %vm292_vm8 = vmand %vm290_vm7, %vm291_vm5 }
  0xd9   : > { %vm293_vm9 = vmor %vm289_vm6, %vm292_vm8 }
  0xda   : > { %v294_v16 = vsel %vm293_vm9, %v168_v15, %v285_v12  ;;  %v201_v17 = vpop.trf.xlu1  ;;  %v295_v18 = vsel %vm293_vm9, %v200_v13, %v286_v14  ;;  %v169_v19 = vpop.trf.xlu0  ;;  %v517_v13 = vld [vmem:[#allocation12] sm:$0xff] (%p89_p2)  ;;  %v518_v14 = vld [vmem:[#allocation14] sm:$0xff] (%p89_p2)  ;;  %v1092_v15 = vmov (%p89_p2), 839939668  }
  0xdb   : > { %vm300_vm10 = vcmp.lt.s32.totalorder %v201_v17, %v295_v18  ;;  %vm298_vm11 = vcmp.gt.s32.totalorder %v169_v19, %v294_v16  ;;  %vm299_vm12 = vcmp.eq.s32.totalorder %v169_v19, %v294_v16 }
  0xdc   : > { %vm301_vm13 = vmand %vm299_vm12, %vm300_vm10 }
  0xdd   : > { %vm302_vm14 = vmor %vm298_vm11, %vm301_vm13 }
  0xde   : > { %v303_v20 = vsel %vm302_vm14, %v169_v19, %v294_v16  ;;  %v202_v21 = vpop.trf.xlu1  ;;  %v304_v22 = vsel %vm302_vm14, %v201_v17, %v295_v18  ;;  %v170_v23 = vpop.trf.xlu0  ;;  %v542_v16 = vunpack.c.l.s4 (%p89_p2), %v1092_v15  ;;  %v1093_v17 = vmov (%p89_p2), 1417023538  }
  0xdf   : > { %vm309_vm15 = vcmp.lt.s32.totalorder %v202_v21, %v304_v22  ;;  %vm307_vm0 = vcmp.gt.s32.totalorder %v170_v23, %v303_v20  ;;  %vm308_vm1 = vcmp.eq.s32.totalorder %v170_v23, %v303_v20  ;;  %v570_v18 = vunpack.c.l.s4 (%p89_p2), %v1093_v17 }
  0xe0   : > { %vm310_vm2 = vmand %vm308_vm1, %vm309_vm15  ;;  %v543_v19 = vunpack.c.0.s8 (%p89_p2), %v542_v16 }
  0xe1   : > { %vm311_vm3 = vmor %vm307_vm0, %vm310_vm2 }
  0xe2   : > { %v312_v24 = vsel %vm311_vm3, %v170_v23, %v303_v20  ;;  %v203_v25 = vpop.trf.xlu1  ;;  %v313_v26 = vsel %vm311_vm3, %v202_v21, %v304_v22  ;;  %v171_v27 = vpop.trf.xlu0  ;;  %v563_v23 = vand.u32 (%p89_p2), 4, %v1118_v7 }
  0xe3   : > { %vm318_vm4 = vcmp.lt.s32.totalorder %v203_v25, %v313_v26  ;;  %vm316_vm5 = vcmp.gt.s32.totalorder %v171_v27, %v312_v24  ;;  %vm317_vm6 = vcmp.eq.s32.totalorder %v171_v27, %v312_v24 }
  0xe4   : > { %vm319_vm7 = vmand %vm317_vm6, %vm318_vm4 }
  0xe5   : > { %vm320_vm8 = vmor %vm316_vm5, %vm319_vm7 }
  0xe6   : > { %v321_v28 = vsel %vm320_vm8, %v171_v27, %v312_v24  ;;  %v204_v29 = vpop.trf.xlu1  ;;  %v322_v30 = vsel %vm320_vm8, %v203_v25, %v313_v26  ;;  %v172_v31 = vpop.trf.xlu0  ;;  %v571_v25 = vunpack.c.0.s8 (%p89_p2), %v570_v18 }
  0xe7   : > { %vm327_vm9 = vcmp.lt.s32.totalorder %v204_v29, %v322_v30  ;;  %vm325_vm10 = vcmp.gt.s32.totalorder %v172_v31, %v321_v28  ;;  %vm326_vm11 = vcmp.eq.s32.totalorder %v172_v31, %v321_v28 }
  0xe8   : > { %vm328_vm12 = vmand %vm326_vm11, %vm327_vm9 }
  0xe9   : > { %vm329_vm13 = vmor %vm325_vm10, %vm328_vm12 }
  0xea   : > { %v330_v32 = vsel %vm329_vm13, %v172_v31, %v321_v28  ;;  %v205_v33 = vpop.trf.xlu1  ;;  %v331_v34 = vsel %vm329_vm13, %v204_v29, %v322_v30  ;;  %v173_v35 = vpop.trf.xlu0  ;;  %v1094_v31 = vmov (%p89_p2), 1732584193  }
  0xeb   : > { %vm336_vm14 = vcmp.lt.s32.totalorder %v205_v33, %v331_v34  ;;  %vm334_vm15 = vcmp.gt.s32.totalorder %v173_v35, %v330_v32  ;;  %vm335_vm0 = vcmp.eq.s32.totalorder %v173_v35, %v330_v32 }
  0xec   : > { %vm337_vm1 = vmand %vm335_vm0, %vm336_vm14 }
  0xed   : > { %vm338_vm2 = vmor %vm334_vm15, %vm337_vm1 }
  0xee   : > { %v339_v36 = vsel %vm338_vm2, %v173_v35, %v330_v32  ;;  %v340_v37 = vsel %vm338_vm2, %v205_v33, %v331_v34  ;;  %v598_v32 = vunpack.c.l.s4 (%p89_p2), %v1094_v31  ;;  %v1147_v33 = vsub.s32 (%p89_p2), %v571_v25, %v1118_v7 }
  0xef   : > { %v342_v38 = vrot.slane %v339_v36, 1  ;;  %v343_v39 = vrot.slane %v340_v37, 1  ;;  %v591_v34 = vand.u32 (%p89_p2), 2, %v1118_v7 }
  0xf1   : > { %vm345_vm3 = vcmp.gt.s32.totalorder %v342_v38, %v339_v36  ;;  %vm346_vm4 = vcmp.eq.s32.totalorder %v342_v38, %v339_v36  ;;  %vm347_vm5 = vcmp.lt.s32.totalorder %v343_v39, %v340_v37 }
  0xf2   : > { %vm348_vm6 = vmand %vm346_vm4, %vm347_vm5 }
  0xf3   : > { %vm349_vm7 = vmor %vm345_vm3, %vm348_vm6 }
  0xf4   : > { %v350_v40 = vsel %vm349_vm7, %v342_v38, %v339_v36  ;;  %v351_v41 = vsel %vm349_vm7, %v343_v39, %v340_v37  ;;  %v599_v37 = vunpack.c.0.s8 (%p89_p2), %v598_v32 }
  0xf5   : > { %v353_v42 = vrot.slane %v350_v40, 1  ;;  %v354_v43 = vrot.slane %v351_v41, 1 }
  0xf7   : > { %vm356_vm8 = vcmp.gt.s32.totalorder %v353_v42, %v350_v40  ;;  %vm357_vm9 = vcmp.eq.s32.totalorder %v353_v42, %v350_v40  ;;  %vm358_vm10 = vcmp.lt.s32.totalorder %v354_v43, %v351_v41 }
  0xf8   : > { %vm359_vm11 = vmand %vm357_vm9, %vm358_vm10 }
  0xf9   : > { %vm360_vm12 = vmor %vm356_vm8, %vm359_vm11 }
  0xfa   : > { %v361_v44 = vsel %vm360_vm12, %v353_v42, %v350_v40  ;;  %v362_v45 = vsel %vm360_vm12, %v354_v43, %v351_v41  ;;  %v1161_v42 = vsub.s32 (%p89_p2), %v599_v37, %v1118_v7 }
  0xfb   : > { %v364_v46 = vrot.slane %v361_v44, 1  ;;  %v365_v47 = vrot.slane %v362_v45, 1 }
  0xfd   : > { %vm369_vm13 = vcmp.lt.s32.totalorder %v365_v47, %v362_v45  ;;  %vm367_vm14 = vcmp.gt.s32.totalorder %v364_v46, %v361_v44  ;;  %vm368_vm15 = vcmp.eq.s32.totalorder %v364_v46, %v361_v44 }
  0xfe   : > { %vm370_vm0 = vmand %vm368_vm15, %vm369_vm13 }
  0xff   : > { %vm371_vm1 = vmor %vm367_vm14, %vm370_vm0 }
 0x100   : > { %v372_v48 = vsel %vm371_vm1, %v364_v46, %v361_v44  ;;  %v373_v49 = vsel %vm371_vm1, %v365_v47, %v362_v45  ;;  %v619_v46 = vand.u32 (%p89_p2), 1, %v1118_v7 }
 0x101   : > { %v375_v50 = vrot.slane %v372_v48, 1  ;;  %v376_v51 = vrot.slane %v373_v49, 1 }
 0x103   : > { %vm378_vm2 = vcmp.gt.s32.totalorder %v375_v50, %v372_v48  ;;  %vm379_vm3 = vcmp.eq.s32.totalorder %v375_v50, %v372_v48  ;;  %vm380_vm4 = vcmp.lt.s32.totalorder %v376_v51, %v373_v49 }
 0x104   : > { %vm381_vm5 = vmand %vm379_vm3, %vm380_vm4 }
 0x105   : > { %vm382_vm6 = vmor %vm378_vm2, %vm381_vm5 }
 0x106   : > { %v383_v52 = vsel %vm382_vm6, %v375_v50, %v372_v48  ;;  %v384_v53 = vsel %vm382_vm6, %v376_v51, %v373_v49 }
 0x107   : > { %v386_v54 = vrot.slane %v383_v52, 1  ;;  %v387_v55 = vrot.slane %v384_v53, 1 }
 0x109   : > { %vm389_vm7 = vcmp.gt.s32.totalorder %v386_v54, %v383_v52  ;;  %vm390_vm8 = vcmp.eq.s32.totalorder %v386_v54, %v383_v52  ;;  %vm391_vm9 = vcmp.lt.s32.totalorder %v387_v55, %v384_v53 }
 0x10a   : > { %vm392_vm10 = vmand %vm390_vm8, %vm391_vm9 }
 0x10b   : > { %vm393_vm11 = vmor %vm389_vm7, %vm392_vm10 }
 0x10c   : > { %v394_v56 = vsel %vm393_vm11, %v386_v54, %v383_v52  ;;  %v395_v57 = vsel %vm393_vm11, %v387_v55, %v384_v53 }
 0x10d   : > { %v397_v58 = vrot.slane %v394_v56, 1  ;;  %v398_v59 = vrot.slane %v395_v57, 1 }
 0x10f   : > { %vm400_vm12 = vcmp.gt.s32.totalorder %v397_v58, %v394_v56  ;;  %vm401_vm13 = vcmp.eq.s32.totalorder %v397_v58, %v394_v56  ;;  %vm402_vm14 = vcmp.lt.s32.totalorder %v398_v59, %v395_v57 }
 0x110   : > { %vm403_vm15 = vmand %vm401_vm13, %vm402_vm14  ;;  %vm1141_vm13 = vcmp.ne.s32.totalorder (%p89_p2), %v563_v23, 0 }
 0x111   : > { %vm404_vm0 = vmor %vm400_vm12, %vm403_vm15 }
 0x112   : > { %v405_v60 = vsel %vm404_vm0, %v397_v58, %v394_v56  ;;  %v406_v61 = vsel %vm404_vm0, %v398_v59, %v395_v57 }
 0x113   : > { %v408_v62 = vrot.slane %v405_v60, 1  ;;  %v409_v63 = vrot.slane %v406_v61, 1 }
 0x115   : > { %vm411_vm1 = vcmp.gt.s32.totalorder %v408_v62, %v405_v60  ;;  %vm412_vm2 = vcmp.eq.s32.totalorder %v408_v62, %v405_v60  ;;  %vm413_vm3 = vcmp.lt.s32.totalorder %v409_v63, %v406_v61 }
 0x116   : > { %vm414_vm4 = vmand %vm412_vm2, %vm413_vm3 }
 0x117   : > { %vm415_vm5 = vmor %vm411_vm1, %vm414_vm4 }
 0x118   : > { %v417_v0 = vsel %vm415_vm5, %v409_v63, %v406_v61  ;;  %v416_v1 = vsel %vm415_vm5, %v408_v62, %v405_v60 }
 0x119   : > { %424 = vxpose.xlu0.b32.start.end [1/1] (short) (narrow) %v417_v0, 8  ;;  %420 = vst [vmem:[%s419_s13] sm:$0x1] %v416_v1  ;;  %422 = vst [vmem:[%s421_s14] sm:$0x1] %v417_v0  ;;  %s958_s13 = sshll.u32 (%p89_p2), %s1095_s0, 4  ;;  %s959_s13 = int_to_ptr.vmem [resolvable:$true] %s958_s13 }
 0x11a   :  { %s1054_s14 = scalar_lea.vmem (%p89_p2), %s959_s13, 32  ;;  %p1059_p4 = scmp.lt.s32.totalorder (%p89_p2), %s959_s13, %s959_s13 }
 0x11b   :  { %p1055_p3 = scmp.ne.s32.totalorder (%p89_p2), %s959_s13, %s1054_s14  ;;  %p1060_p5 = scmp.lt.s32.totalorder (%p89_p2), %s1054_s14, %s1054_s14 }
 0x11d   :  { %p1061_p6 = por (%p89_p2), %p1060_p5, %p1059_p4 }
 0x11f   :  { %p1062_p7 = pnand (%p89_p2), %p1061_p6, %p1055_p3 }
 0x120   :  { %v505_v11 = vld [vmem:[#allocation13 + $0x7] ss:$-1 sm:$0xff] (%p89_p2)  ;;  %v511_v12 = vld [vmem:[#allocation15 + $0x7] ss:$-1 sm:$0xff] (%p89_p2) }
 0x121   :  { %vm523_vm8 = vcmp.gt.s32.totalorder (%p89_p2), %v517_v13, %v505_v11  ;;  %vm524_vm9 = vcmp.eq.s32.totalorder (%p89_p2), %v517_v13, %v505_v11  ;;  %vm525_vm10 = vcmp.lt.s32.totalorder (%p89_p2), %v518_v14, %v511_v12 }
 0x122   :  { %vm526_vm11 = vmand (%p89_p2), %vm524_vm9, %vm525_vm10  ;;  %vm1154_vm9 = vcmp.ne.s32.totalorder (%p89_p2), %v591_v34, 0 }
 0x123   :  { %vm527_vm12 = vmor (%p89_p2), %vm523_vm8, %vm526_vm11 }
 0x124   :  { %v528_v20 = vsel (%p89_p2), %vm527_vm12, %v517_v13, %v505_v11  ;;  %v530_v21 = vsel (%p89_p2), %vm527_vm12, %v505_v11, %v517_v13  ;;  %v532_v22 = vsel (%p89_p2), %vm527_vm12, %v518_v14, %v511_v12  ;;  %v534_v24 = vsel (%p89_p2), %vm527_vm12, %v511_v12, %v518_v14 }
 0x199   : > { %v440_v2 = vpop.trf.xlu0 }
 0x19a   : > { %v479_v4 = vrot.slane %v440_v2, 1  ;;  %1031 = vpush %v440_v2 }
 0x19c   : > { %1033 = vpush %v479_v4 }
 0x1cb   : > { %s1032_s15 = spop %1031 }
 0x1cc   : > { %s457_s16 = sshrl.u32 %s1032_s15, 9  ;;  %s459_s17 = ssub.s32 0, %s1032_s15 }
 0x1cd   : > { %p458_p0 = scmp.lt.s32.totalorder %s1032_s15, 0  ;;  %s1023_s18 = smin.u32 %s1032_s15, %s459_s17 }
 0x1ce   : > { %s461_s19 = sand.u32 511, %s1023_s18   ;;  %s1025_s20 = sshll.u32 %s457_s16, 3 }
 0x1cf   : > { %s462_s21 = ssub.s32 0, %s461_s19  ;;  %s1034_s22 = spop %1033 }
 0x1d0   : > { %s1231_s21 = smov (!%p458_p0, %s462_s21), %s461_s19  ;;  %s483_s26 = ssub.s32 0, %s1034_s22 }
 0x1d1   : > { %s464_s23 = sshrl.u32 %s1231_s21, 7  ;;  %s466_s24 = sand.u32 127, %s1231_s21  }
 0x1d2   : > { %s1024_s25 = sshll.u32 %s464_s23, 8  ;;  %s1027_s28 = smin.u32 %s1034_s22, %s483_s26 }
 0x1d3   : > { %s467_s27 = sadd.s32 %s1024_s25, %s466_s24  ;;  %p482_p1 = scmp.lt.s32.totalorder %s1034_s22, 0 }
 0x1d4   : > { %v469_v5 = vstv %s467_s27  ;;  %s485_s29 = sand.u32 511, %s1027_s28   ;;  %s473_s3 = scalar_lea.vmem [#allocation16], %s1025_s20 }
 0x1d5   : > { %vm471_vm6 = vcmp.eq.s32.totalorder %v43_v3, %v469_v5  ;;  %s486_s30 = ssub.s32 0, %s485_s29  ;;  %s476_s4 = scalar_lea.vmem [#allocation17], %s1025_s20 }
 0x1d6   : > { %474 = vst.msk [vmem:[%s473_s3] sm:$0xff] %vm471_vm6, %v1090_v6  ;;  %477 = vst.msk [vmem:[%s476_s4] sm:$0xff] %vm471_vm6, %v1091_v8  ;;  %s1233_s30 = smov (!%p482_p1, %s486_s30), %s485_s29  ;;  %s481_s5 = sshrl.u32 %s1034_s22, 9 }
 0x1d7   : > { %s488_s6 = sshrl.u32 %s1233_s30, 7  ;;  %s490_s7 = sand.u32 127, %s1233_s30  }
 0x1d8   : > { %s1028_s8 = sshll.u32 %s488_s6, 8  ;;  %s1029_s10 = sshll.u32 %s481_s5, 3 }
 0x1d9   : > { %s491_s9 = sadd.s32 %s1028_s8, %s490_s7  ;;  %s497_s11 = scalar_lea.vmem [#allocation16], %s1029_s10 }
 0x1da   : > { %v493_v9 = vstv %s491_s9  ;;  %s500_s12 = scalar_lea.vmem [#allocation17], %s1029_s10  ;;  %91 = sbr.rel (!%p89_p2) target bundleno = 17 (0x11), region = 107 }
 0x1db   : > { %v494_v10 = vadd.s32 128, %v493_v9 }
 0x1dd   : > { %vm495_vm7 = vcmp.eq.s32.totalorder %v43_v3, %v494_v10  ;;  %v1136_v3 = vsub.s32 (%p89_p2), %v543_v19, %v1118_v7 }
 0x1de   : > { %498 = vst.msk [vmem:[%s497_s11] sm:$0xff] %vm495_vm7, %v1090_v6  ;;  %501 = vst.msk [vmem:[%s500_s12] sm:$0xff] %vm495_vm7, %v1091_v8 }
 0x1df   :  { %v547_v26 = vrot.slane (%p89_p2), %v528_v20, %v1136_v3  ;;  %v554_v27 = vrot.slane (%p89_p2), %v532_v22, %v1136_v3  ;;  %v728_v28 = vrot.slane (%p89_p2), %v530_v21, %v1136_v3  ;;  %v735_v30 = vrot.slane (%p89_p2), %v534_v24, %v1136_v3 }
 0x1e1   :  { %vm556_vm14 = vcmp.gt.s32.totalorder %v528_v20, %v547_v26  ;;  %vm557_vm15 = vcmp.eq.s32.totalorder %v528_v20, %v547_v26  ;;  %vm558_vm0 = vcmp.lt.s32.totalorder %v532_v22, %v554_v27  ;;  %vm738_vm2 = vcmp.eq.s32.totalorder %v530_v21, %v728_v28 }
 0x1e2   :  { %vm559_vm1 = vmand %vm557_vm15, %vm558_vm0  ;;  %vm739_vm3 = vcmp.lt.s32.totalorder %v534_v24, %v735_v30  ;;  %vm737_vm5 = vcmp.gt.s32.totalorder %v530_v21, %v728_v28 }
 0x1e3   :  { %vm560_vm4 = vmor %vm556_vm14, %vm559_vm1 }
 0x1e4   :  { %vm565_vm6 = vmxor %vm560_vm4, %vm1141_vm13 }
 0x1e5   :  { %v566_v35 = vsel %vm565_vm6, %v528_v20, %v547_v26  ;;  %v567_v36 = vsel %vm565_vm6, %v532_v22, %v554_v27  ;;  %vm740_vm7 = vmand %vm738_vm2, %vm739_vm3 }
 0x1e6   :  { %v575_v38 = vrot.slane %v566_v35, %v1147_v33  ;;  %v582_v39 = vrot.slane %v567_v36, %v1147_v33  ;;  %vm741_vm8 = vmor %vm737_vm5, %vm740_vm7 }
 0x1e7   :  { %vm746_vm10 = vmxor %vm741_vm8, %vm1141_vm13 }
 0x1e8   :  { %vm584_vm11 = vcmp.gt.s32.totalorder %v566_v35, %v575_v38  ;;  %vm585_vm12 = vcmp.eq.s32.totalorder %v566_v35, %v575_v38  ;;  %vm586_vm14 = vcmp.lt.s32.totalorder %v567_v36, %v582_v39  ;;  %v747_v41 = vsel %vm746_vm10, %v530_v21, %v728_v28 }
 0x1e9   :  { %vm587_vm15 = vmand %vm585_vm12, %vm586_vm14  ;;  %v748_v43 = vsel %vm746_vm10, %v534_v24, %v735_v30  ;;  %v756_v44 = vrot.slane %v747_v41, %v1147_v33 }
 0x1ea   :  { %vm588_vm0 = vmor %vm584_vm11, %vm587_vm15  ;;  %v763_v45 = vrot.slane %v748_v43, %v1147_v33  ;;  %vm1170_vm11 = vcmp.ne.s32.totalorder %v619_v46, 0 }
 0x1eb   :  { %vm593_vm1 = vmxor %vm588_vm0, %vm1154_vm9  ;;  %vm765_vm2 = vcmp.gt.s32.totalorder %v747_v41, %v756_v44  ;;  %vm766_vm3 = vcmp.eq.s32.totalorder %v747_v41, %v756_v44 }
 0x1ec   :  { %v594_v47 = vsel %vm593_vm1, %v566_v35, %v575_v38  ;;  %v595_v48 = vsel %vm593_vm1, %v567_v36, %v582_v39  ;;  %vm767_vm4 = vcmp.lt.s32.totalorder %v748_v43, %v763_v45 }
 0x1ed   :  { %v603_v49 = vrot.slane %v594_v47, %v1161_v42  ;;  %v610_v50 = vrot.slane %v595_v48, %v1161_v42  ;;  %vm768_vm5 = vmand %vm766_vm3, %vm767_vm4 }
 0x1ee   :  { %vm769_vm6 = vmor %vm765_vm2, %vm768_vm5 }
 0x1ef   :  { %vm612_vm7 = vcmp.gt.s32.totalorder %v594_v47, %v603_v49  ;;  %vm613_vm8 = vcmp.eq.s32.totalorder %v594_v47, %v603_v49  ;;  %vm614_vm10 = vcmp.lt.s32.totalorder %v595_v48, %v610_v50  ;;  %vm774_vm12 = vmxor %vm769_vm6, %vm1154_vm9 }
 0x1f0   :  { %vm615_vm14 = vmand %vm613_vm8, %vm614_vm10  ;;  %v775_v7 = vsel %vm774_vm12, %v747_v41, %v756_v44  ;;  %v776_v52 = vsel %vm774_vm12, %v748_v43, %v763_v45 }
 0x1f1   :  { %vm616_vm15 = vmor %vm612_vm7, %vm615_vm14  ;;  %v784_v53 = vrot.slane %v775_v7, %v1161_v42  ;;  %v791_v54 = vrot.slane %v776_v52, %v1161_v42 }
 0x1f2   :  { %vm621_vm0 = vmxor %vm616_vm15, %vm1170_vm11 }
 0x1f3   :  { %v622_v55 = vsel %vm621_vm0, %v594_v47, %v603_v49  ;;  %v623_v56 = vsel %vm621_vm0, %v595_v48, %v610_v50  ;;  %vm793_vm1 = vcmp.gt.s32.totalorder %v775_v7, %v784_v53  ;;  %vm794_vm2 = vcmp.eq.s32.totalorder %v775_v7, %v784_v53 }
 0x1f4   :  { %v637_v57 = vrot.slane %v622_v55, %v1136_v3  ;;  %v644_v58 = vrot.slane %v623_v56, %v1136_v3  ;;  %vm795_vm3 = vcmp.lt.s32.totalorder %v776_v52, %v791_v54 }
 0x1f5   :  { %vm796_vm4 = vmand %vm794_vm2, %vm795_vm3 }
 0x1f6   :  { %vm646_vm5 = vcmp.gt.s32.totalorder %v622_v55, %v637_v57  ;;  %vm647_vm6 = vcmp.eq.s32.totalorder %v622_v55, %v637_v57  ;;  %vm648_vm7 = vcmp.lt.s32.totalorder %v623_v56, %v644_v58  ;;  %vm797_vm8 = vmor %vm793_vm1, %vm796_vm4 }
 0x1f7   :  { %vm649_vm10 = vmand %vm647_vm6, %vm648_vm7 }
 0x1f8   :  { %vm650_vm12 = vmor %vm646_vm5, %vm649_vm10 }
 0x1f9   :  { %vm655_vm14 = vmxor %vm650_vm12, %vm1141_vm13 }
 0x1fa   :  { %v656_v59 = vsel %vm655_vm14, %v622_v55, %v637_v57  ;;  %v657_v60 = vsel %vm655_vm14, %v623_v56, %v644_v58  ;;  %vm802_vm15 = vmxor %vm797_vm8, %vm1170_vm11 }
 0x1fb   :  { %v665_v61 = vrot.slane %v656_v59, %v1147_v33  ;;  %v672_v62 = vrot.slane %v657_v60, %v1147_v33  ;;  %v803_v63 = vsel %vm802_vm15, %v775_v7, %v784_v53  ;;  %v804_v0 = vsel %vm802_vm15, %v776_v52, %v791_v54 }
 0x1fc   :  { %v818_v1 = vrot.slane %v803_v63, %v1136_v3  ;;  %v825_v2 = vrot.slane %v804_v0, %v1136_v3 }
 0x1fd   :  { %vm674_vm0 = vcmp.gt.s32.totalorder %v656_v59, %v665_v61  ;;  %vm675_vm1 = vcmp.eq.s32.totalorder %v656_v59, %v665_v61  ;;  %vm676_vm2 = vcmp.lt.s32.totalorder %v657_v60, %v672_v62 }
 0x1fe   :  { %vm677_vm3 = vmand %vm675_vm1, %vm676_vm2  ;;  %vm828_vm4 = vcmp.eq.s32.totalorder %v803_v63, %v818_v1  ;;  %vm829_vm5 = vcmp.lt.s32.totalorder %v804_v0, %v825_v2  ;;  %vm827_vm7 = vcmp.gt.s32.totalorder %v803_v63, %v818_v1 }
 0x1ff   :  { %vm678_vm6 = vmor %vm674_vm0, %vm677_vm3 }
 0x200   :  { %vm683_vm8 = vmxor %vm678_vm6, %vm1154_vm9 }
 0x201   :  { %v684_v4 = vsel %vm683_vm8, %v656_v59, %v665_v61  ;;  %v685_v5 = vsel %vm683_vm8, %v657_v60, %v672_v62  ;;  %vm830_vm10 = vmand %vm828_vm4, %vm829_vm5 }
 0x202   :  { %v693_v6 = vrot.slane %v684_v4, %v1161_v42  ;;  %v700_v8 = vrot.slane %v685_v5, %v1161_v42  ;;  %vm831_vm12 = vmor %vm827_vm7, %vm830_vm10 }
 0x203   :  { %vm836_vm14 = vmxor %vm831_vm12, %vm1141_vm13 }
 0x204   :  { %vm702_vm15 = vcmp.gt.s32.totalorder %v684_v4, %v693_v6  ;;  %vm703_vm1 = vcmp.eq.s32.totalorder %v684_v4, %v693_v6  ;;  %vm704_vm2 = vcmp.lt.s32.totalorder %v685_v5, %v700_v8  ;;  %v837_v9 = vsel %vm836_vm14, %v803_v63, %v818_v1 }
 0x205   :  { %vm705_vm0 = vmand %vm703_vm1, %vm704_vm2  ;;  %v838_v10 = vsel %vm836_vm14, %v804_v0, %v825_v2  ;;  %v846_v11 = vrot.slane %v837_v9, %v1147_v33 }
 0x206   :  { %vm706_vm3 = vmor %vm702_vm15, %vm705_vm0  ;;  %v853_v12 = vrot.slane %v838_v10, %v1147_v33 }
 0x207   :  { %vm711_vm4 = vmxor %vm706_vm3, %vm1170_vm11  ;;  %vm855_vm5 = vcmp.gt.s32.totalorder %v837_v9, %v846_v11  ;;  %vm856_vm6 = vcmp.eq.s32.totalorder %v837_v9, %v846_v11 }
 0x208   :  { %v712_v13 = vsel %vm711_vm4, %v684_v4, %v693_v6  ;;  %v713_v14 = vsel %vm711_vm4, %v685_v5, %v700_v8  ;;  %vm857_vm7 = vcmp.lt.s32.totalorder %v838_v10, %v853_v12 }
 0x209   :  { %715 = vst [vmem:[#allocation12] sm:$0xff] %v712_v13  ;;  %716 = vst [vmem:[#allocation14] sm:$0xff] %v713_v14 }
 0x20a   :  { %vm858_vm13 = vmand %vm856_vm6, %vm857_vm7 }
 0x20b   :  { %vm859_vm8 = vmor %vm855_vm5, %vm858_vm13 }
 0x20c   :  { %vm864_vm10 = vmxor %vm859_vm8, %vm1154_vm9 }
 0x20d   :  { %v865_v15 = vsel %vm864_vm10, %v837_v9, %v846_v11  ;;  %v866_v16 = vsel %vm864_vm10, %v838_v10, %v853_v12 }
 0x20e   :  { %v874_v17 = vrot.slane %v865_v15, %v1161_v42  ;;  %v881_v18 = vrot.slane %v866_v16, %v1161_v42 }
 0x210   :  { %vm883_vm12 = vcmp.gt.s32.totalorder %v865_v15, %v874_v17  ;;  %vm884_vm14 = vcmp.eq.s32.totalorder %v865_v15, %v874_v17  ;;  %vm885_vm15 = vcmp.lt.s32.totalorder %v866_v16, %v881_v18  ;;  %v923_v21 = vld [vmem:[#allocation14] sm:$0xff]  ;;  %v899_v22 = vld [vmem:[#allocation12] sm:$0xff] }
 0x211   :  { %vm886_vm1 = vmand %vm884_vm14, %vm885_vm15  ;;  %924 = vxpose.xlu0.b32.start.end [1/1] (short) (narrow) %v923_v21, 8  ;;  %vm900_vm9 = vcmp.lt.s32.totalorder %v899_v22, 0  ;;  %v901_v23 = vsub.s32 2147483647, %v899_v22 }
 0x212   :  { %vm887_vm2 = vmor %vm883_vm12, %vm886_vm1 }
 0x213   :  { %vm892_vm0 = vmxor %vm887_vm2, %vm1170_vm11  ;;  %v902_v24 = vsel %vm900_vm9, %v901_v23, %v899_v22 }
 0x214   :  { %v893_v19 = vsel %vm892_vm0, %v865_v15, %v874_v17  ;;  %v894_v20 = vsel %vm892_vm0, %v866_v16, %v881_v18  ;;  %903 = vst [vmem:[#allocation12] sm:$0xff] %v902_v24 }
 0x215   :  { %896 = vst [vmem:[#allocation13] sm:$0xff] %v893_v19  ;;  %897 = vst [vmem:[#allocation15] sm:$0xff] %v894_v20  ;;  %905 = vxpose.xlu0.b32.start.end [1/1] (short) (narrow) %v902_v24, 8 }
 0x291   :  { %v925_v3 = vpop.trf.xlu0 }
 0x292   :  { %941 = vst [vmem:[#allocation10] sm:$0xff] %v925_v3 }
 0x295   :  { %v906_v25 = vpop.trf.xlu0 }
 0x296   :  { %922 = vst [vmem:[#allocation7] sm:$0xff] %v906_v25 }
 0x299   :  { %v951_v26 = vld [vmem:[#allocation10] sm:$0x3] }
 0x29a   :  { %953 = vst [vmem:[#allocation11] sm:$0x3] %v951_v26 }
 0x29d   :  { %v945_v27 = vld [vmem:[#allocation7] sm:$0x3] }
 0x29e   :  { %947 = vst [vmem:[#allocation8] sm:$0x3] %v945_v27 }
 0x29f   :  { %1065 = shalt.err (!%p1062_p7)
}
 0x2a0   :  { %s1066_s17 = scalar_lea.hbm %s1222_s1, 32 }
 0x2a1   :  { %p1067_p8 = scmp.ne.s32.totalorder %s1222_s1, %s1066_s17  ;;  %p1070_p9 = scmp.lt.u32.totalorder %s1066_s17, %s1222_s1 }
 0x2a3   :  { %p1072_p10 = pnand %p1070_p9, %p1067_p8 }
 0x2a5   :  { %1075 = shalt.err (!%p1072_p10)
}
 0x2a6   :  { %961 = dma.vmem_to_hbm [thread:$0]  %s959_s13, 32, %s1222_s1, [#allocation9]   ;;  %v977_v28 = vld [vmem:[#allocation11] sm:$0x3] }
 0x2a7   :  { %978 = vst [vmem:[%s1223_s2] sm:$0x3] %v977_v28 }
 0x2a8   :  { %1080 = dma.done.wait [#allocation9], 32  }
 0x2a9   :  { %1081 = vsyncadd [#allocation9], 4294967264 }
 0x2aa   :  { %994 = vsyncpa [#allocation9], 1 }

// kernel: _forward.3
= control target key start
LH: loop header
LB: loop body
LE: loop exit
PB: predicated region body
PF: predicated region fallthrough
CT: control target
= control target key end

     0   :  { %s2406_s12 = smov 0   ;;  %s3571_s0 = inlined_call_operand.vmem [shape: bf16[2,18,18,3], index: 0, kind: input, shape index: {}]   ;;  %s3572_s1 = inlined_call_operand.vmem [shape: bf16[27,128], index: 1, kind: input, shape index: {}]   ;;  %s3573_s2 = inlined_call_operand.vmem [shape: f32[1,128], index: 2, kind: input, shape index: {}]   ;;  %s3574_s3 = inlined_call_operand.vmem [shape: bf16[2,256,128], index: 3, kind: output, shape index: {}]  }
   0x1 LB: > { %s2012_s13 = sadd.s32 4294967295, %s2375_s12   ;;  %p2016_p0 = scmp.ge.s32.totalorder %s2375_s12, 1  ;;  %s2375_s12 = sphi %s2406_s12, %s13_s12  }
   0x2   : > { %p137_p1 = scmp.lt.s32.totalorder %s2375_s12, 3 }
   0x4   : > { %p138_p2 = pnand %p2016_p0, %p137_p1 }
   0x6   : > { %141 = sbr.rel (%p138_p2) target bundleno = 627 (0x273), region = 32 }
   0xd   : > { %p161_p3 = scmp.lt.s32.totalorder %s2012_s13, 1  ;;  %vm661_vm0 = vcmask 1042432   ;;  %vm662_vm1 = vcmask 1046532   ;;  %vm226_vm2 = vsmask.f32 3328  ;;  %s2377_s18 = smov 9  }
   0xe   : > { %vm227_vm3 = vsmask.f32 7440  ;;  %vm2452_vm4 = vmor %vm661_vm0, %vm662_vm1  ;;  %s2378_s19 = smov 6   ;;  %s2379_s20 = smov 3   ;;  %vm1597_vm6 = vcmask 1044480   ;;  %vm1598_vm7 = vcmask 1045504  }
   0xf   : > { %s3601_s13 = smov (!%p161_p3, %s2012_s13), 1  ;;  %vm2497_vm5 = vmor %vm226_vm2, %vm227_vm3  ;;  %s2380_s21 = smov 12   ;;  %vm1262_vm8 = vcmask 23552   ;;  %vm1311_vm9 = vcmask 48128   ;;  %vm1344_vm10 = vcmask 72704   ;;  %vm1377_vm11 = vcmask 97280  }
  0x10   : > { %s2331_s14 = smul.u32 216, %s3601_s13  ;;  %s2381_s22 = smov 15   ;;  %vm1410_vm12 = vcmask 121856   ;;  %vm1443_vm13 = vcmask 146432   ;;  %vm1476_vm14 = vcmask 171008   ;;  %vm1509_vm15 = vcmask 195584  }
  0x11   : > { %s2382_s23 = smov 18   ;;  %s2383_s24 = smov 21   ;;  %vm1564_vm0 = vcmask 220160  }
  0x12   : > { %s2420_s17 = scalar_lea.vmem %s3571_s0, %s2331_s14  ;;  %s2384_s27 = smov 24  }
  0x13   : > { %v2423_v0 = vld [vmem:[%s2420_s17 + $0x6c] sm:$0xf]  ;;  %v2426_v1 = vld [vmem:[%s2420_s17 + $0x70] sm:$0xf]  ;;  %v2440_v12 = vld [vmem:[%s2420_s17 + $0x60] sm:$0xf] }
  0x14   : > { %v175_v2 = vld [vmem:[%s2420_s17 + $0xc] sm:$0xf]  ;;  %v459_v3 = vshrl.u32 %v2426_v1, 16  ;;  %v2432_v4 = vcombine.low %v2423_v0, %v2426_v1  ;;  %v446_v5 = vshrl.u32 %v2423_v0, 16  ;;  %v449_v6 = vshll.u32 %v2423_v0, 16  ;;  %s2145_s5 = sshll.u32 %s3601_s13, 7 }
  0x15   : > { %v176_v7 = vld [vmem:[%s2420_s17 + $0x10] sm:$0xf]  ;;  %v254_v11 = vshrl.u32 %v175_v2, 16  ;;  %v257_v13 = vshll.u32 %v175_v2, 16  ;;  %v2445_v14 = vld [vmem:[%s2420_s17 + $0x64] sm:$0xf]  ;;  %s3522_s8 = scalar_lea.vmem %s3574_s3, %s2145_s5 }
  0x16   : > { %v263_v8 = vshll.u32 %v176_v7, 16  ;;  %v267_v9 = vshrl.u32 %v176_v7, 16  ;;  %v2437_v10 = vcombine.low %v175_v2, %v176_v7  ;;  %1071 = vrot.lane.b32.xlu1 %v2432_v4, %s2377_s18  ;;  %v2448_v15 = vld [vmem:[%s2420_s17 + $0x68] sm:$0x1]  ;;  %v2028_v17 = vrot.slane %v2440_v12, 9 }
  0x17   : > { %v256_v19 = vrot.slane %v254_v11, 4  ;;  %v722_v20 = vrot.slane %v2445_v14, 5  ;;  %v725_v21 = vrot.slane %v2448_v15, 5  ;;  %v2462_v22 = vld [vmem:[%s2420_s17] sm:$0xf]  ;;  %v259_v23 = vrot.slane %v257_v13, 5 }
  0x18   : > { %v269_v18 = vrot.slane %v267_v9, 4  ;;  %1055 = vrot.lane.b32.xlu0 %v2437_v10, %s2377_s18  ;;  %v2465_v24 = vld [vmem:[%s2420_s17 + $0x4] sm:$0xf]  ;;  %v174_v25 = vld [vmem:[%s2420_s17 + $0x8] sm:$0x1]  ;;  %v2020_v26 = vrot.slane %v2462_v22, 9 }
  0x19   : > { %v723_v27 = vsel %vm2452_vm4, %v2028_v17, %v722_v20  ;;  %v724_v28 = vrot.slane %v722_v20, 4  ;;  %v666_v29 = vrot.slane %v2465_v24, 5  ;;  %v669_v30 = vrot.slane %v174_v25, 5  ;;  %v2473_v31 = vld [vmem:[%s2420_s17 + $0x74] sm:$0x1] }
  0x1a   : > { %v2029_v32 = vrot.slane %v2423_v0, 9  ;;  %v729_v33 = vrot.slane %v2426_v1, 5  ;;  %v732_v34 = vrot.slane %v2473_v31, 5  ;;  %v177_v35 = vld [vmem:[%s2420_s17 + $0x14] sm:$0x1]  ;;  %v2021_v36 = vrot.slane %v175_v2, 9 }
  0x1b   : > { %v726_v37 = vsel %vm2452_vm4, %v724_v28, %v725_v21  ;;  %v667_v38 = vsel %vm2452_vm4, %v2020_v26, %v666_v29  ;;  %v668_v39 = vrot.slane %v666_v29, 4  ;;  %v673_v40 = vrot.slane %v176_v7, 5 }
  0x1c   : > { %v2483_v41 = vcombine.low %v723_v27, %v726_v37  ;;  %v730_v42 = vsel %vm2452_vm4, %v2029_v32, %v729_v33  ;;  %v731_v43 = vrot.slane %v729_v33, 4  ;;  %v676_v44 = vrot.slane %v177_v35, 5 }
  0x1d   : > { %v670_v45 = vsel %vm2452_vm4, %v668_v39, %v669_v30  ;;  %v674_v46 = vsel %vm2452_vm4, %v2021_v36, %v673_v40  ;;  %v675_v47 = vrot.slane %v673_v40, 4  ;;  %v260_v48 = vor.u32 %v259_v23, %v256_v19  ;;  %v2541_v39 = vld [vmem:[%s2420_s17 + $0x7c] sm:$0xf] }
  0x1e   : > { %1036 = vrot.lane.b32.xlu1 %v2483_v41, %s2378_s19  ;;  %v2070_v49 = vcombine.low %v667_v38, %v670_v45  ;;  %v733_v50 = vsel %vm2452_vm4, %v731_v43, %v732_v34  ;;  %v265_v52 = vrot.slane %v263_v8, 5  ;;  %v273_v53 = vshll.u32 %v177_v35, 16  ;;  %v2536_v35 = vld [vmem:[%s2420_s17 + $0x78] sm:$0xf] }
  0x1f   : > { %v2501_v54 = vcombine.low %v730_v42, %v733_v50  ;;  %v677_v55 = vsel %vm2452_vm4, %v675_v47, %v676_v44  ;;  %v261_v56 = vrot.slane %v260_v48, 4  ;;  %v230_v57 = vshrl.u32 %v2462_v22, 16  ;;  %v2553_v50 = vld [vmem:[%s2420_s17 + $0x1c] sm:$0xf] }
  0x20   : > { %1020 = vrot.lane.b32.xlu0 %v2070_v49, %s2378_s19  ;;  %v2507_v58 = vcombine.low %v674_v46, %v677_v55  ;;  %v270_v59 = vor.u32 %v269_v18, %v265_v52  ;;  %v275_v60 = vrot.slane %v273_v53, 5  ;;  %v233_v61 = vshll.u32 %v2462_v22, 16  ;;  %v2550_v49 = vld [vmem:[%s2420_s17 + $0x18] sm:$0xf] }
  0x21   : > { %3586 = vst [vmem:[#allocation2_spill] sm:$0xff] %v2501_v54  ;;  %v266_v62 = vsel %vm2497_vm5, %v261_v56, %v265_v52  ;;  %v232_v63 = vrot.slane %v230_v57, 4  ;;  %v239_v2 = vshll.u32 %v2465_v24, 16  ;;  %v243_v7 = vshrl.u32 %v2465_v24, 16 }
  0x22   : > { %1038 = vrot.lane.b32.xlu1 %v2501_v54, %s2378_s19  ;;  %v271_v8 = vrot.slane %v270_v59, 4  ;;  %v235_v9 = vrot.slane %v233_v61, 5  ;;  %v249_v11 = vshll.u32 %v174_v25, 16  ;;  %v448_v13 = vrot.slane %v446_v5, 4 }
  0x23   : > { %v241_v17 = vrot.slane %v239_v2, 5  ;;  %v245_v18 = vrot.slane %v243_v7, 4  ;;  %v451_v19 = vrot.slane %v449_v6, 5  ;;  %v455_v20 = vshll.u32 %v2426_v1, 16 }
  0x24   : > { %1022 = vrot.lane.b32.xlu0 %v2507_v58, %s2378_s19  ;;  %v276_v21 = vsel %vm2497_vm5, %v271_v8, %v275_v60  ;;  %v236_v23 = vor.u32 %v235_v9, %v232_v63  ;;  %v251_v26 = vrot.slane %v249_v11, 5  ;;  %v461_v25 = vrot.slane %v459_v3, 4  ;;  %v204_v60 = vld [vmem:[%s2420_s17 + $0x80] sm:$0x1] }
  0x25   : > { %v2527_v5 = vcombine.low %v266_v62, %v276_v21  ;;  %v246_v27 = vor.u32 %v245_v18, %v241_v17  ;;  %v452_v28 = vor.u32 %v451_v19, %v448_v13  ;;  %v457_v0 = vrot.slane %v455_v20, 5  ;;  %v2577_v20 = vld [vmem:[%s2420_s17 + $0x20] sm:$0x1] }
  0x26   : > { %v237_v6 = vrot.slane %v236_v23, 4  ;;  %v465_v29 = vshll.u32 %v2473_v31, 16  ;;  %v422_v30 = vshrl.u32 %v2440_v12, 16  ;;  %v425_v32 = vshll.u32 %v2440_v12, 16 }
  0x27   : > { %942 = vrot.lane.b32.xlu1 %v2527_v5, %s2379_s20  ;;  %v247_v1 = vrot.slane %v246_v27, 4  ;;  %v453_v33 = vrot.slane %v452_v28, 4  ;;  %v462_v3 = vor.u32 %v461_v25, %v457_v0  ;;  %v431_v34 = vshll.u32 %v2445_v14, 16 }
  0x28   : > { %v242_v31 = vsel %vm2497_vm5, %v237_v6, %v241_v17  ;;  %v467_v36 = vrot.slane %v465_v29, 5  ;;  %v424_v37 = vrot.slane %v422_v30, 4  ;;  %v427_v38 = vrot.slane %v425_v32, 5 }
  0x29   : > { %v252_v40 = vsel %vm2497_vm5, %v247_v1, %v251_v26  ;;  %v458_v42 = vsel %vm2497_vm5, %v453_v33, %v457_v0  ;;  %v463_v43 = vrot.slane %v462_v3, 4  ;;  %v433_v44 = vrot.slane %v431_v34, 5 }
  0x2a   : > { %v2054_v45 = vcombine.low %v242_v31, %v252_v40  ;;  %v428_v46 = vor.u32 %v427_v38, %v424_v37  ;;  %v435_v47 = vshrl.u32 %v2445_v14, 16  ;;  %v441_v48 = vshll.u32 %v2448_v15, 16 }
  0x2b   : > { %v468_v52 = vsel %vm2497_vm5, %v463_v43, %v467_v36  ;;  %v470_v53 = vshrl.u32 %v2536_v35, 16  ;;  %v473_v55 = vshll.u32 %v2536_v35, 16  ;;  %v483_v56 = vshrl.u32 %v2541_v39, 16 }
  0x2c   : > { %940 = vrot.lane.b32.xlu0 %v2054_v45, %s2379_s20  ;;  %v2561_v57 = vcombine.low %v458_v42, %v468_v52  ;;  %v429_v59 = vrot.slane %v428_v46, 4  ;;  %v437_v15 = vrot.slane %v435_v47, 4  ;;  %v443_v61 = vrot.slane %v441_v48, 5  ;;  %v2604_v52 = vld [vmem:[%s2420_s17 + $0x84] sm:$0xf] }
  0x2d   : > { %v278_v62 = vshrl.u32 %v2550_v49, 16  ;;  %v281_v63 = vshll.u32 %v2550_v49, 16  ;;  %v291_v2 = vshrl.u32 %v2553_v50, 16  ;;  %v2573_v9 = vcombine.low %v2536_v35, %v2541_v39 }
  0x2e   : > { %3587 = vst [vmem:[#allocation3_spill] sm:$0xff] %v2561_v57  ;;  %958 = vrot.lane.b32.xlu1 %v2561_v57, %s2379_s20  ;;  %v434_v7 = vsel %vm2497_vm5, %v429_v59, %v433_v44  ;;  %v438_v8 = vor.u32 %v437_v15, %v433_v44  ;;  %v472_v11 = vrot.slane %v470_v53, 4  ;;  %v475_v13 = vrot.slane %v473_v55, 5  ;;  %v2607_v53 = vld [vmem:[%s2420_s17 + $0x88] sm:$0xf] }
  0x2f   : > { %v479_v17 = vshll.u32 %v2541_v39, 16  ;;  %v485_v18 = vrot.slane %v483_v56, 4  ;;  %v489_v19 = vshll.u32 %v204_v60, 16  ;;  %v280_v23 = vrot.slane %v278_v62, 4 }
  0x30   : > { %v439_v21 = vrot.slane %v438_v8, 4  ;;  %v283_v26 = vrot.slane %v281_v63, 5  ;;  %v287_v25 = vshll.u32 %v2553_v50, 16  ;;  %v476_v27 = vor.u32 %v475_v13, %v472_v11  ;;  %v2637_v13 = vld [vmem:[%s2420_s17 + $0x24] sm:$0xf] }
  0x31   : > { %v481_v28 = vrot.slane %v479_v17, 5  ;;  %v293_v0 = vrot.slane %v291_v2, 4  ;;  %v297_v32 = vshll.u32 %v2577_v20, 16  ;;  %v491_v34 = vrot.slane %v489_v19, 5  ;;  %v2640_v17 = vld [vmem:[%s2420_s17 + $0x28] sm:$0xf] }
  0x32   : > { %v444_v6 = vsel %vm2497_vm5, %v439_v21, %v443_v61  ;;  %1073 = vrot.lane.b32.xlu1 %v2573_v9, %s2377_s18  ;;  %v284_v29 = vor.u32 %v283_v26, %v280_v23  ;;  %v289_v30 = vrot.slane %v287_v25, 5  ;;  %v477_v33 = vrot.slane %v476_v27, 4  ;;  %v207_v23 = vld [vmem:[%s2420_s17 + $0x8c] sm:$0x1] }
  0x33   : > { %v2585_v1 = vcombine.low %v434_v7, %v444_v6  ;;  %v486_v3 = vor.u32 %v485_v18, %v481_v28  ;;  %v736_v36 = vrot.slane %v2541_v39, 5  ;;  %v2592_v37 = vcombine.low %v2550_v49, %v2553_v50 }
  0x34   : > { %v294_v31 = vor.u32 %v293_v0, %v289_v30  ;;  %v482_v38 = vsel %vm2497_vm5, %v477_v33, %v481_v28  ;;  %v285_v42 = vrot.slane %v284_v29, 4  ;;  %v299_v44 = vrot.slane %v297_v32, 5 }
  0x35   : > { %956 = vrot.lane.b32.xlu0 %v2585_v1, %s2379_s20  ;;  %v487_v40 = vrot.slane %v486_v3, 4  ;;  %v2030_v39 = vrot.slane %v2536_v35, 9  ;;  %v738_v46 = vrot.slane %v736_v36, 4  ;;  %v739_v47 = vrot.slane %v204_v60, 5 }
  0x36   : > { %1106 = vrot.lane.b32.xlu1 %v2561_v57, %s2380_s21  ;;  %v295_v43 = vrot.slane %v294_v31, 4  ;;  %v290_v35 = vsel %vm2497_vm5, %v285_v42, %v289_v30  ;;  %v680_v59 = vrot.slane %v2553_v50, 5  ;;  %v494_v60 = vshrl.u32 %v2604_v52, 16  ;;  %v183_v42 = vld [vmem:[%s2420_s17 + $0x2c] sm:$0x1] }
  0x37   : > { %v492_v45 = vsel %vm2497_vm5, %v487_v40, %v491_v34  ;;  %v737_v56 = vsel %vm2452_vm4, %v2030_v39, %v736_v36  ;;  %v740_v15 = vsel %vm2452_vm4, %v738_v46, %v739_v47  ;;  %v497_v61 = vshll.u32 %v2604_v52, 16 }
  0x38   : > { %v2601_v48 = vcombine.low %v482_v38, %v492_v45  ;;  %v300_v55 = vsel %vm2497_vm5, %v295_v43, %v299_v44  ;;  %v507_v62 = vshrl.u32 %v2607_v53, 16  ;;  %v503_v63 = vshll.u32 %v2607_v53, 16 }
  0x39   : > { %1057 = vrot.lane.b32.xlu0 %v2592_v37, %s2377_s18  ;;  %v2628_v2 = vcombine.low %v290_v35, %v300_v55  ;;  %v2022_v7 = vrot.slane %v2550_v49, 9  ;;  %v2633_v50 = vcombine.low %v737_v56, %v740_v15  ;;  %v682_v8 = vrot.slane %v680_v59, 4  ;;  %v2363_v15 = vld [vmem:[%s3572_s1] sm:$0xff]  }
  0x3a   : > { %1108 = vrot.lane.b32.xlu1 %v2601_v48, %s2380_s21  ;;  %v683_v11 = vrot.slane %v2577_v20, 5  ;;  %v496_v18 = vrot.slane %v494_v60, 4  ;;  %v499_v19 = vrot.slane %v497_v61, 5  ;;  %v509_v21 = vrot.slane %v507_v62, 4  ;;  %2291 = vmatprep.subr.bf16.mxu0 %v2363_v15 }
  0x3b   : > { %v681_v49 = vsel %vm2452_vm4, %v2022_v7, %v680_v59  ;;  %v302_v26 = vshrl.u32 %v2637_v13, 16  ;;  %v305_v25 = vshll.u32 %v2637_v13, 16  ;;  %v315_v27 = vshrl.u32 %v2640_v17, 16  ;;  %2327 = vmatprep.subr.bf16.mxu1 %v2363_v15  ;;  %2292 = vmatpush3.bf16.msra.mxu0 %v2363_v15 }
  0x3c   : > { %v684_v20 = vsel %vm2452_vm4, %v682_v8, %v683_v11  ;;  %v311_v28 = vshll.u32 %v2640_v17, 16  ;;  %v500_v0 = vor.u32 %v499_v19, %v496_v18  ;;  %v513_v29 = vshll.u32 %v207_v23, 16  ;;  %2329 = vmatpush3.bf16.msra.mxu1 %v2363_v15  ;;  %v2366_v15 = vld [vmem:[%s3572_s1 + $0x8] sm:$0x3f]  }
  0x3d   : > { %1090 = vrot.lane.b32.xlu0 %v2527_v5, %s2380_s21  ;;  %v505_v5 = vrot.slane %v503_v63, 5  ;;  %v2657_v30 = vcombine.low %v681_v49, %v684_v20  ;;  %v2661_v32 = vcombine.low %v2604_v52, %v2607_v53  ;;  %v304_v33 = vrot.slane %v302_v26, 4  ;;  %v2727_v49 = vld [vmem:[%s2420_s17 + $0x94] sm:$0xf] }
  0x3e   : > { %1141 = vrot.lane.b32.xlu1 %v2501_v54, %s2381_s22  ;;  %v307_v3 = vrot.slane %v305_v25, 5  ;;  %v313_v34 = vrot.slane %v311_v28, 5  ;;  %v317_v31 = vrot.slane %v315_v27, 4  ;;  %v501_v36 = vrot.slane %v500_v0, 4  ;;  %v2747_v28 = vld [vmem:[%s2420_s17 + $0x34] sm:$0xf] }
  0x3f   : > { %v510_v6 = vor.u32 %v509_v21, %v505_v5  ;;  %v515_v40 = vrot.slane %v513_v29, 5  ;;  %v321_v44 = vshll.u32 %v183_v42, 16  ;;  %v2678_v46 = vcombine.low %v2637_v13, %v2640_v17 }
  0x40   : > { %v318_v43 = vor.u32 %v317_v31, %v313_v34  ;;  %v506_v39 = vsel %vm2497_vm5, %v501_v36, %v505_v5  ;;  %v743_v59 = vrot.slane %v2607_v53, 5  ;;  %v2031_v53 = vrot.slane %v2604_v52, 9 }
  0x41   : > { %1092 = vrot.lane.b32.xlu0 %v2628_v2, %s2380_s21  ;;  %v511_v38 = vrot.slane %v510_v6, 4  ;;  %3588 = vst [vmem:[#allocation4_spill] sm:$0xff] %v2678_v46  ;;  %v323_v56 = vrot.slane %v321_v44, 5  ;;  %v746_v63 = vrot.slane %v207_v23, 5  ;;  %v687_v8 = vrot.slane %v2640_v17, 5 }
  0x42   : > { %1143 = vrot.lane.b32.xlu1 %v2633_v50, %s2381_s22  ;;  %v319_v55 = vrot.slane %v318_v43, 4  ;;  %v745_v62 = vrot.slane %v743_v59, 4  ;;  %v744_v52 = vsel %vm2452_vm4, %v2031_v53, %v743_v59  ;;  %v2023_v19 = vrot.slane %v2637_v13, 9  ;;  %v2724_v23 = vld [vmem:[%s2420_s17 + $0x90] sm:$0xf] }
  0x43   : > { %v516_v45 = vsel %vm2497_vm5, %v511_v38, %v515_v40  ;;  %v689_v5 = vrot.slane %v687_v8, 4  ;;  %v690_v21 = vrot.slane %v183_v42, 5  ;;  %v518_v26 = vshrl.u32 %v2724_v23, 16  ;;  %v186_v59 = vld [vmem:[%s2420_s17 + $0x38] sm:$0x1] }
  0x44   : > { %v2682_v47 = vcombine.low %v506_v39, %v516_v45  ;;  %v324_v61 = vsel %vm2497_vm5, %v319_v55, %v323_v56  ;;  %v747_v11 = vsel %vm2452_vm4, %v745_v62, %v746_v63  ;;  %v688_v17 = vsel %vm2452_vm4, %v2023_v19, %v687_v8 }
  0x45   : > { %1125 = vrot.lane.b32.xlu0 %v2507_v58, %s2381_s22  ;;  %v308_v58 = vor.u32 %v307_v3, %v304_v33  ;;  %v2712_v18 = vcombine.low %v744_v52, %v747_v11  ;;  %v521_v20 = vshll.u32 %v2724_v23, 16  ;;  %v531_v25 = vshrl.u32 %v2727_v49, 16  ;;  %v210_v3 = vld [vmem:[%s2420_s17 + $0x98] sm:$0x1] }
  0x46   : > { %1176 = vrot.lane.b32.xlu1 %v2573_v9, %s2382_s23  ;;  %v527_v27 = vshll.u32 %v2727_v49, 16  ;;  %v520_v0 = vrot.slane %v518_v26, 4  ;;  %v335_v36 = vshll.u32 %v2747_v28, 16  ;;  %v537_v42 = vshll.u32 %v210_v3, 16 }
  0x47   : > { %v309_v35 = vrot.slane %v308_v58, 4  ;;  %v523_v6 = vrot.slane %v521_v20, 5  ;;  %v533_v33 = vrot.slane %v531_v25, 4  ;;  %v2762_v58 = vcombine.low %v2724_v23, %v2727_v49 }
  0x48   : > { %v529_v29 = vrot.slane %v527_v27, 5  ;;  %v337_v39 = vrot.slane %v335_v36, 5  ;;  %v539_v56 = vrot.slane %v537_v42, 5  ;;  %v2385_v53 = vmov 65535   ;;  %v2791_v27 = vld [vmem:[%s2420_s17 + $0x9c] sm:$0xf] }
  0x49   : > { %1127 = vrot.lane.b32.xlu0 %v2657_v30, %s2381_s22  ;;  %v314_v60 = vsel %vm2497_vm5, %v309_v35, %v313_v34  ;;  %v524_v38 = vor.u32 %v523_v6, %v520_v0  ;;  %3589 = vst [vmem:[#allocation5_spill] sm:$0xff] %v2762_v58  ;;  %v1599_v62 = vsel %vm1597_vm6, 4294967295, %v2385_v53  ;;  %v750_v52 = vrot.slane %v2727_v49, 5  ;;  %v2794_v0 = vld [vmem:[%s2420_s17 + $0xa0] sm:$0xf] }
  0x4a   : > { %1178 = vrot.lane.b32.xlu1 %v2661_v32, %s2382_s23  ;;  %v2699_v7 = vcombine.low %v314_v60, %v324_v61  ;;  %v534_v40 = vor.u32 %v533_v33, %v529_v29  ;;  %v345_v61 = vshll.u32 %v186_v59, 16  ;;  %v1600_v11 = vsel %vm1598_vm7, %v1599_v62, 0 }
  0x4b   : > { %v525_v35 = vrot.slane %v524_v38, 4  ;;  %v1602_v19 = vand.u32 %v2366_v15, %v1600_v11  ;;  %v752_v20 = vrot.slane %v750_v52, 4  ;;  %v753_v25 = vrot.slane %v210_v3, 5 }
  0x4c   : > { %v535_v55 = vrot.slane %v534_v40, 4  ;;  %v347_v49 = vrot.slane %v345_v61, 5  ;;  %v542_v33 = vshrl.u32 %v2791_v27, 16  ;;  %v697_v40 = vrot.slane %v186_v59, 5 }
  0x4d   : > { %1160 = vrot.lane.b32.xlu0 %v2592_v37, %s2382_s23  ;;  %v530_v63 = vsel %vm2497_vm5, %v525_v35, %v529_v29  ;;  %2293 = vmatprep.subr.bf16.mxu0 %v1602_v19  ;;  %v754_v3 = vsel %vm2452_vm4, %v752_v20, %v753_v25 }
  0x4e   : > { %1211 = vrot.lane.b32.xlu1 %v2601_v48, %s2383_s24  ;;  %v540_v8 = vsel %vm2497_vm5, %v535_v55, %v539_v56  ;;  %2328 = vmatprep.subr.bf16.mxu1 %v1602_v19 }
  0x4f   : > { %2294 = vmatpush3.bf16.msra.mxu0 %v1602_v19  ;;  %2330 = vmatpush3.bf16.msra.mxu1 %v1602_v19 }
  0x51   : > { %1162 = vrot.lane.b32.xlu0 %v2678_v46, %s2382_s23 }
  0x52   : > { %1213 = vrot.lane.b32.xlu1 %v2682_v47, %s2383_s24 }
  0x55   : > { %1195 = vrot.lane.b32.xlu0 %v2628_v2, %s2383_s24 }
  0x56   : > { %1246 = vrot.lane.b32.xlu1 %v2633_v50, %s2384_s27 }
  0x59   : > { %1197 = vrot.lane.b32.xlu0 %v2699_v7, %s2383_s24 }
  0x5a   : > { %960 = vrot.lane.b32.xlu1 %v2601_v48, %s2379_s20  ;;  %v691_v48 = vsel %vm2452_vm4, %v689_v5, %v690_v21  ;;  %v2032_v21 = vrot.slane %v2724_v23, 9 }
  0x5b   : > { %v2731_v13 = vcombine.low %v688_v17, %v691_v48  ;;  %v2788_v17 = vcombine.low %v530_v63, %v540_v8  ;;  %v2847_v63 = vcombine.low %v2791_v27, %v2794_v0 }
  0x5c   : > { %v751_v29 = vsel %vm2452_vm4, %v2032_v21, %v750_v52 }
  0x5d   : > { %1230 = vrot.lane.b32.xlu0 %v2657_v30, %s2384_s27  ;;  %v2820_v42 = vcombine.low %v751_v29, %v754_v3  ;;  %3591 = vst [vmem:[#allocation7_spill] sm:$0xff] %v2847_v63 }
  0x5e   : > { %1248 = vrot.lane.b32.xlu1 %v2712_v18, %s2384_s27 }
  0x61   : > { %944 = vrot.lane.b32.xlu0 %v2628_v2, %s2379_s20  ;;  %v2744_v2 = vld [vmem:[%s2420_s17 + $0x30] sm:$0xf] }
  0x62   : > { %962 = vrot.lane.b32.xlu1 %v2682_v47, %s2379_s20  ;;  %v326_v34 = vshrl.u32 %v2744_v2, 16  ;;  %v329_v31 = vshll.u32 %v2744_v2, 16  ;;  %v2783_v5 = vcombine.low %v2744_v2, %v2747_v28  ;;  %v2024_v36 = vrot.slane %v2744_v2, 9 }
  0x64   : > { %v328_v43 = vrot.slane %v326_v34, 4  ;;  %v331_v44 = vrot.slane %v329_v31, 5  ;;  %3590 = vst [vmem:[#allocation6_spill] sm:$0xff] %v2783_v5  ;;  %v555_v34 = vshrl.u32 %v2794_v0, 16  ;;  %v551_v31 = vshll.u32 %v2794_v0, 16 }
  0x65   : > { %1232 = vrot.lane.b32.xlu0 %v2731_v13, %s2384_s27 }
  0x66   : > { %1040 = vrot.lane.b32.xlu1 %v2633_v50, %s2378_s19  ;;  %v339_v50 = vshrl.u32 %v2747_v28, 16  ;;  %v553_v35 = vrot.slane %v551_v31, 5  ;;  %v557_v55 = vrot.slane %v555_v34, 4 }
  0x68   : > { %v341_v45 = vrot.slane %v339_v50, 4  ;;  %v558_v61 = vor.u32 %v557_v55, %v553_v35 }
  0x69   : > { %946 = vrot.lane.b32.xlu0 %v2699_v7, %s2379_s20 }
  0x6a   : > { %1042 = vrot.lane.b32.xlu1 %v2712_v18, %s2378_s19  ;;  %v342_v60 = vor.u32 %v341_v45, %v337_v39 }
  0x6c   : > { %v343_v26 = vrot.slane %v342_v60, 4 }
  0x6d   : > { %1024 = vrot.lane.b32.xlu0 %v2657_v30, %s2378_s19  ;;  %v332_v30 = vor.u32 %v331_v44, %v328_v43  ;;  %v2823_v43 = vld [vmem:[%s2420_s17 + $0x3c] sm:$0xf]  ;;  %v2826_v44 = vld [vmem:[%s2420_s17 + $0x40] sm:$0xf] }
  0x6e   : > { %1075 = vrot.lane.b32.xlu1 %v2661_v32, %s2377_s18  ;;  %v348_v6 = vsel %vm2497_vm5, %v343_v26, %v347_v49  ;;  %v350_v56 = vshrl.u32 %v2823_v43, 16  ;;  %v353_v59 = vshll.u32 %v2823_v43, 16  ;;  %v363_v15 = vshrl.u32 %v2826_v44, 16  ;;  %v189_v49 = vld [vmem:[%s2420_s17 + $0x44] sm:$0x1] }
  0x6f   : > { %v333_v48 = vrot.slane %v332_v30, 4  ;;  %v359_v30 = vshll.u32 %v2826_v44, 16  ;;  %v2866_v29 = vcombine.low %v2823_v43, %v2826_v44 }
  0x70   : > { %v352_v8 = vrot.slane %v350_v56, 4  ;;  %v355_v52 = vrot.slane %v353_v59, 5  ;;  %v365_v19 = vrot.slane %v363_v15, 4  ;;  %v701_v56 = vrot.slane %v2826_v44, 5 }
  0x71   : > { %1026 = vrot.lane.b32.xlu0 %v2731_v13, %s2378_s19  ;;  %v338_v23 = vsel %vm2497_vm5, %v333_v48, %v337_v39  ;;  %v544_v39 = vrot.slane %v542_v33, 4  ;;  %v361_v11 = vrot.slane %v359_v30, 5  ;;  %v559_v48 = vrot.slane %v558_v61, 4  ;;  %3592 = vst [vmem:[#allocation8_spill] sm:$0xff] %v2866_v29 }
  0x72   : > { %1077 = vrot.lane.b32.xlu1 %v2762_v58, %s2377_s18  ;;  %v2815_v50 = vcombine.low %v338_v23, %v348_v6  ;;  %v356_v20 = vor.u32 %v355_v52, %v352_v8  ;;  %v2025_v44 = vrot.slane %v2823_v43, 9  ;;  %v703_v30 = vrot.slane %v701_v56, 4  ;;  %v2923_v43 = vld [vmem:[%s2420_s17 + $0xa8] sm:$0xf]  ;;  %v2926_v52 = vld [vmem:[%s2420_s17 + $0xac] sm:$0xf] }
  0x73   : > { %v366_v25 = vor.u32 %v365_v19, %v361_v11 }
  0x74   : > { %v357_v3 = vrot.slane %v356_v20, 4 }
  0x75   : > { %1059 = vrot.lane.b32.xlu0 %v2678_v46, %s2377_s18 }
  0x76   : > { %1110 = vrot.lane.b32.xlu1 %v2682_v47, %s2380_s21  ;;  %v694_v47 = vrot.slane %v2747_v28, 5  ;;  %v545_v28 = vshll.u32 %v2791_v27, 16 }
  0x78   : > { %v696_v38 = vrot.slane %v694_v47, 4  ;;  %v547_v45 = vrot.slane %v545_v28, 5  ;;  %v695_v2 = vsel %vm2452_vm4, %v2024_v36, %v694_v47  ;;  %v369_v47 = vshll.u32 %v189_v49, 16 }
  0x79   : > { %1061 = vrot.lane.b32.xlu0 %v2783_v5, %s2377_s18  ;;  %v367_v28 = vrot.slane %v366_v25, 4  ;;  %v757_v36 = vrot.slane %v2794_v0, 5 }
  0x7a   : > { %1112 = vrot.lane.b32.xlu1 %v2788_v17, %s2380_s21  ;;  %v548_v60 = vor.u32 %v547_v45, %v544_v39  ;;  %v371_v34 = vrot.slane %v369_v47, 5  ;;  %v2033_v45 = vrot.slane %v2791_v27, 9  ;;  %v2952_v47 = vld [vmem:[%s2420_s17 + $0x4c] sm:$0xf] }
  0x7c   : > { %v549_v21 = vrot.slane %v548_v60, 4  ;;  %v372_v39 = vsel %vm2497_vm5, %v367_v28, %v371_v34  ;;  %v758_v27 = vsel %vm2452_vm4, %v2033_v45, %v757_v36  ;;  %v704_v60 = vrot.slane %v189_v49, 5 }
  0x7d   : > { %1094 = vrot.lane.b32.xlu0 %v2699_v7, %s2380_s21  ;;  %v213_v7 = vld [vmem:[%s2420_s17 + $0xa4] sm:$0x1]  ;;  %v575_v49 = vshll.u32 %v2926_v52, 16  ;;  %v383_v45 = vshll.u32 %v2952_v47, 16 }
  0x7e   : > { %1145 = vrot.lane.b32.xlu1 %v2712_v18, %s2381_s22  ;;  %v698_v18 = vsel %vm2452_vm4, %v696_v38, %v697_v40  ;;  %v561_v53 = vshll.u32 %v213_v7, 16  ;;  %v554_v23 = vsel %vm2497_vm5, %v549_v21, %v553_v35  ;;  %v362_v40 = vsel %vm2497_vm5, %v357_v3, %v361_v11 }
  0x7f   : > { %v2843_v62 = vcombine.low %v695_v2, %v698_v18  ;;  %v759_v35 = vrot.slane %v757_v36, 4  ;;  %v760_v55 = vrot.slane %v213_v7, 5  ;;  %v2890_v0 = vcombine.low %v362_v40, %v372_v39  ;;  %v216_v36 = vld [vmem:[%s2420_s17 + $0xb0] sm:$0x1] }
  0x80   : > { %v563_v26 = vrot.slane %v561_v53, 5  ;;  %v702_v53 = vsel %vm2452_vm4, %v2025_v44, %v701_v56  ;;  %v566_v21 = vshrl.u32 %v2923_v43, 16  ;;  %v577_v3 = vrot.slane %v575_v49, 5 }
  0x81   : > { %1096 = vrot.lane.b32.xlu0 %v2815_v50, %s2380_s21  ;;  %v761_v7 = vsel %vm2452_vm4, %v759_v35, %v760_v55  ;;  %v387_v39 = vshrl.u32 %v2952_v47, 16  ;;  %v2973_v44 = vcombine.low %v2923_v43, %v2926_v52 }
  0x82   : > { %1147 = vrot.lane.b32.xlu1 %v2820_v42, %s2381_s22  ;;  %v564_v6 = vsel %vm2497_vm5, %v559_v48, %v563_v26  ;;  %v2907_v15 = vcombine.low %v758_v27, %v761_v7  ;;  %v569_v48 = vshll.u32 %v2923_v43, 16  ;;  %v579_v26 = vshrl.u32 %v2926_v52, 16 }
  0x83   : > { %v2870_v33 = vcombine.low %v554_v23, %v564_v6  ;;  %v568_v23 = vrot.slane %v566_v21, 4  ;;  %v585_v27 = vshll.u32 %v216_v36, 16 }
  0x84   : > { %v571_v6 = vrot.slane %v569_v48, 5  ;;  %v581_v28 = vrot.slane %v579_v26, 4 }
  0x85   : > { %1129 = vrot.lane.b32.xlu0 %v2731_v13, %s2381_s22  ;;  %v587_v49 = vrot.slane %v585_v27, 5 }
  0x86   : > { %1180 = vrot.lane.b32.xlu1 %v2762_v58, %s2382_s23  ;;  %v572_v55 = vor.u32 %v571_v6, %v568_v23  ;;  %v582_v56 = vor.u32 %v581_v28, %v577_v3  ;;  %v2980_v23 = vld [vmem:[%s2420_s17 + $0x50] sm:$0x1] }
  0x88   : > { %v2856_v13 = vpop.permute.xlu1 %1071  ;;  %v573_v48 = vrot.slane %v572_v55, 4  ;;  %v583_v26 = vrot.slane %v582_v56, 4  ;;  %v764_v55 = vrot.slane %v2926_v52, 5 }
  0x89   : > { %1131 = vrot.lane.b32.xlu0 %v2843_v62, %s2381_s22 }
  0x8a   : > { %1182 = vrot.lane.b32.xlu1 %v2847_v63, %s2382_s23  ;;  %v2872_v31 = vpop.permute.xlu0 %1055 }
  0x8d   : > { %1164 = vrot.lane.b32.xlu0 %v2783_v5, %s2382_s23  ;;  %v3017_v5 = vld [vmem:[%s2420_s17 + $0xb8] sm:$0xf] }
  0x8e   : > { %1215 = vrot.lane.b32.xlu1 %v2788_v17, %s2383_s24 }
  0x90   : > { %v2875_v38 = vpop.permute.xlu1 %1036 }
  0x91   : > { %1166 = vrot.lane.b32.xlu0 %v2866_v29, %s2382_s23 }
  0x92   : > { %1217 = vrot.lane.b32.xlu1 %v2870_v33, %s2383_s24  ;;  %v2892_v18 = vpop.permute.xlu0 %1020 }
  0x94   : > { %v2886_v2 = vpop.permute.xlu1 %1038 }
  0x95   : > { %1199 = vrot.lane.b32.xlu0 %v2815_v50, %s2383_s24 }
  0x96   : > { %1250 = vrot.lane.b32.xlu1 %v2820_v42, %s2384_s27  ;;  %v2910_v61 = vpop.permute.xlu0 %1022 }
  0x99   : > { %1201 = vrot.lane.b32.xlu0 %v2890_v0, %s2383_s24  ;;  %v2905_v59 = vpop.permute.xlu1 %942 }
  0x9a   : > { %964 = vrot.lane.b32.xlu1 %v2788_v17, %s2379_s20  ;;  %v705_v17 = vsel %vm2452_vm4, %v703_v30, %v704_v60 }
  0x9b   : > { %v2932_v19 = vcombine.low %v702_v53, %v705_v17  ;;  %v385_v53 = vrot.slane %v383_v45, 5  ;;  %v389_v17 = vrot.slane %v387_v39, 4  ;;  %v578_v39 = vsel %vm2497_vm5, %v573_v48, %v577_v3 }
  0x9c   : > { %v588_v45 = vsel %vm2497_vm5, %v583_v26, %v587_v49  ;;  %v766_v26 = vrot.slane %v764_v55, 4  ;;  %v767_v49 = vrot.slane %v216_v36, 5 }
  0x9d   : > { %1234 = vrot.lane.b32.xlu0 %v2843_v62, %s2384_s27  ;;  %v390_v28 = vor.u32 %v389_v17, %v385_v53  ;;  %v3007_v3 = vcombine.low %v578_v39, %v588_v45  ;;  %v603_v39 = vshrl.u32 %v3017_v5, 16 }
  0x9e   : > { %1252 = vrot.lane.b32.xlu1 %v2907_v15, %s2384_s27  ;;  %v2930_v11 = vpop.permute.xlu0 %940 }
  0x9f   : > { %v391_v17 = vrot.slane %v390_v28, 4 }
  0xa0   : > { %v2920_v8 = vpop.permute.xlu1 %958 }
  0xa1   : > { %948 = vrot.lane.b32.xlu0 %v2815_v50, %s2379_s20  ;;  %v2947_v50 = vld [vmem:[%s2420_s17 + $0x48] sm:$0xf] }
  0xa2   : > { %966 = vrot.lane.b32.xlu1 %v2870_v33, %s2379_s20  ;;  %v377_v40 = vshll.u32 %v2947_v50, 16  ;;  %v3002_v27 = vcombine.low %v2947_v50, %v2952_v47 }
  0xa4   : > { %v2940_v20 = vpop.permute.xlu1 %1073  ;;  %v379_v60 = vrot.slane %v377_v40, 5 }
  0xa5   : > { %1236 = vrot.lane.b32.xlu0 %v2932_v19, %s2384_s27 }
  0xa6   : > { %1044 = vrot.lane.b32.xlu1 %v2820_v42, %s2378_s19  ;;  %v374_v42 = vshrl.u32 %v2947_v50, 16 }
  0xa7   : > { %v2949_v25 = vpop.permute.xlu0 %956 }
  0xa8   : > { %v2954_v34 = vpop.permute.xlu1 %1106  ;;  %v376_v30 = vrot.slane %v374_v42, 4  ;;  %v393_v42 = vshll.u32 %v2980_v23, 16 }
  0xa9   : > { %950 = vrot.lane.b32.xlu0 %v2890_v0, %s2379_s20 }
  0xaa   : > { %1046 = vrot.lane.b32.xlu1 %v2907_v15, %s2378_s19  ;;  %v395_v48 = vrot.slane %v393_v42, 5 }
  0xab   : > { %v2965_v35 = vpop.permute.xlu0 %1057 }
  0xac   : > { %v2967_v7 = vpop.permute.xlu1 %1108 }
  0xad   : > { %1028 = vrot.lane.b32.xlu0 %v2843_v62, %s2378_s19  ;;  %v380_v62 = vor.u32 %v379_v60, %v376_v30  ;;  %v2034_v30 = vrot.slane %v2923_v43, 9  ;;  %v3021_v43 = vcombine.low %v2440_v12, %v2445_v14 }
  0xae   : > { %1079 = vrot.lane.b32.xlu1 %v2847_v63, %s2377_s18  ;;  %v3012_v63 = vld [vmem:[%s2420_s17 + $0xb4] sm:$0xf] }
  0xaf   : > { %v2977_v21 = vpop.permute.xlu0 %1090  ;;  %v381_v60 = vrot.slane %v380_v62, 4  ;;  %v396_v62 = vsel %vm2497_vm5, %v391_v17, %v395_v48  ;;  %v765_v28 = vsel %vm2452_vm4, %v2034_v30, %v764_v55  ;;  %v590_v12 = vshrl.u32 %v3012_v63, 16 }
  0xb0   : > { %v2982_v6 = vpop.permute.xlu1 %1141  ;;  %v593_v42 = vshll.u32 %v3012_v63, 16  ;;  %v711_v17 = vrot.slane %v2980_v23, 5  ;;  %v2038_v48 = vcombine.low %v2462_v22, %v2465_v24  ;;  %v605_v22 = vrot.slane %v603_v39, 4 }
  0xb1   : > { %1030 = vrot.lane.b32.xlu0 %v2932_v19, %s2378_s19  ;;  %v386_v36 = vsel %vm2497_vm5, %v381_v60, %v385_v53  ;;  %v599_v53 = vshll.u32 %v3017_v5, 16  ;;  %v2026_v60 = vrot.slane %v2947_v50, 9  ;;  %v592_v23 = vrot.slane %v590_v12, 4 }
  0xb2   : > { %1081 = vrot.lane.b32.xlu1 %v2973_v44, %s2377_s18  ;;  %v3047_v55 = vcombine.low %v386_v36, %v396_v62  ;;  %v3065_v36 = vld [vmem:[%s2420_s17 + $0x58] sm:$0xf]  ;;  %v595_v62 = vrot.slane %v593_v42, 5  ;;  %v3096_v57 = vcombine.low %v3012_v63, %v3017_v5  ;;  %v1265_v46 = vsel %vm1262_vm8, %v2038_v48, %v2930_v11 }
  0xb3   : > { %v2989_v40 = vpop.permute.xlu0 %1092  ;;  %v3067_v58 = vrot.slane %v599_v53, 5  ;;  %v407_v39 = vshll.u32 %v3065_v36, 16 }
  0xb4   : > { %v2996_v56 = vpop.permute.xlu1 %1143  ;;  %v596_v53 = vor.u32 %v595_v62, %v592_v23 }
  0xb5   : > { %1063 = vrot.lane.b32.xlu0 %v2866_v29, %s2377_s18 }
  0xb6   : > { %1114 = vrot.lane.b32.xlu1 %v2870_v33, %s2380_s21  ;;  %v708_v33 = vrot.slane %v2952_v47, 5  ;;  %v768_v47 = vsel %vm2452_vm4, %v766_v26, %v767_v49  ;;  %v1289_v26 = vsel %vm1262_vm8, %v3021_v43, %v2949_v25  ;;  %v3060_v49 = vld [vmem:[%s2420_s17 + $0x54] sm:$0xf]  ;;  %v3072_v25 = vld [vmem:[%s2420_s17 + $0xbc] sm:$0x1] }
  0xb7   : > { %v3009_v52 = vpop.permute.xlu0 %1125  ;;  %v3057_v50 = vcombine.low %v765_v28, %v768_v47  ;;  %v1329_v28 = vsel %vm1311_vm9, %v1289_v26, %v2875_v38  ;;  %v398_v47 = vshrl.u32 %v3060_v49, 16  ;;  %v401_v42 = vshll.u32 %v3060_v49, 16 }
  0xb8   : > { %v3014_v29 = vpop.permute.xlu1 %1176  ;;  %v710_v30 = vrot.slane %v708_v33, 4 }
  0xb9   : > { %1065 = vrot.lane.b32.xlu0 %v3002_v27, %s2377_s18  ;;  %v400_v62 = vrot.slane %v398_v47, 4 }
  0xba   : > { %1116 = vrot.lane.b32.xlu1 %v3007_v3, %s2380_s21  ;;  %v712_v12 = vsel %vm2452_vm4, %v710_v30, %v711_v17  ;;  %v609_v30 = vshll.u32 %v3072_v25, 16  ;;  %v1362_v17 = vsel %vm1344_vm10, %v1329_v28, %v2856_v13  ;;  %v3111_v28 = vrot.slane %v407_v39, 5 }
  0xbb   : > { %v3035_v14 = vpop.permute.xlu0 %1127  ;;  %v1395_v23 = vsel %vm1377_vm11, %v1362_v17, %v2954_v34 }
  0xbc   : > { %v3042_v45 = vpop.permute.xlu1 %1178  ;;  %v1428_v13 = vsel %vm1410_vm12, %v1395_v23, %v2982_v6  ;;  %v611_v47 = vrot.slane %v609_v30, 5  ;;  %v1292_v6 = vsel %vm1262_vm8, %v2432_v4, %v2920_v8 }
  0xbd   : > { %1098 = vrot.lane.b32.xlu0 %v2890_v0, %s2380_s21  ;;  %v1461_v34 = vsel %vm1443_vm13, %v1428_v13, %v3014_v29 }
  0xbe   : > { %1149 = vrot.lane.b32.xlu1 %v2907_v15, %s2381_s22  ;;  %v709_v15 = vsel %vm2452_vm4, %v2026_v60, %v708_v33  ;;  %v411_v33 = vshrl.u32 %v3065_v36, 16  ;;  %v606_v60 = vor.u32 %v605_v22, %v3067_v58  ;;  %v403_v22 = vrot.slane %v401_v42, 5 }
  0xbf   : > { %v3062_v0 = vpop.permute.xlu0 %1160  ;;  %v3092_v26 = vcombine.low %v709_v15, %v712_v12  ;;  %v3109_v15 = vld [vmem:[%s2420_s17 + $0x5c] sm:$0x1]  ;;  %v597_v12 = vrot.slane %v596_v53, 4  ;;  %v1313_v42 = vsel %vm1311_vm9, %v1265_v46, %v2892_v18  ;;  %v1331_v18 = vsel %vm1311_vm9, %v1292_v6, %v2886_v2 }
  0xc0   : > { %v1212_v24 = vpop.permute.xlu1 %1211  ;;  %v413_v11 = vrot.slane %v411_v33, 4  ;;  %v404_v29 = vor.u32 %v403_v22, %v400_v62  ;;  %v417_v39 = vshll.u32 %v3109_v15, 16  ;;  %v1346_v8 = vsel %vm1344_vm10, %v1313_v42, %v2872_v31 }
  0xc1   : > { %1100 = vrot.lane.b32.xlu0 %v3047_v55, %s2380_s21  ;;  %v1494_v17 = vsel %vm1476_vm14, %v1461_v34, %v1212_v24  ;;  %v602_v53 = vsel %vm2497_vm5, %v597_v12, %v3067_v58  ;;  %v1364_v30 = vsel %vm1344_vm10, %v1331_v18, %v2940_v20  ;;  %v1379_v62 = vsel %vm1377_vm11, %v1346_v8, %v2977_v21 }
  0xc2   : > { %1151 = vrot.lane.b32.xlu1 %v3057_v50, %s2381_s22  ;;  %v414_v46 = vor.u32 %v413_v11, %v3111_v28  ;;  %v3144_v2 = vcombine.low %v3060_v49, %v3065_v36  ;;  %v1397_v31 = vsel %vm1377_vm11, %v1364_v30, %v2967_v7  ;;  %v1412_v58 = vsel %vm1410_vm12, %v1379_v62, %v3009_v52 }
  0xc3   : > { %v3086_v38 = vpop.permute.xlu0 %1162  ;;  %v405_v13 = vrot.slane %v404_v29, 4  ;;  %v419_v20 = vrot.slane %v417_v39, 5  ;;  %v1430_v21 = vsel %vm1410_vm12, %v1397_v31, %v2996_v56  ;;  %v1445_v11 = vsel %vm1443_vm13, %v1412_v58, %v3062_v0  ;;  %v221_v58 = vld [vmem:[%s2420_s17 + $0xc4] sm:$0xf] }
  0xc4   : > { %v1214_v54 = vpop.permute.xlu1 %1213  ;;  %v415_v7 = vrot.slane %v414_v46, 4  ;;  %v1268_v52 = vsel %vm1262_vm8, %v2437_v10, %v2905_v59  ;;  %v1463_v12 = vsel %vm1443_vm13, %v1430_v21, %v3042_v45  ;;  %v771_v56 = vrot.slane %v3017_v5, 5 }
  0xc5   : > { %1133 = vrot.lane.b32.xlu0 %v2932_v19, %s2381_s22  ;;  %v607_v19 = vrot.slane %v606_v60, 4  ;;  %v1496_v0 = vsel %vm1476_vm14, %v1463_v12, %v1214_v54  ;;  %v1315_v59 = vsel %vm1311_vm9, %v1268_v52, %v2910_v61  ;;  %v410_v54 = vsel %vm2497_vm5, %v405_v13, %v3111_v28 }
  0xc6   : > { %1184 = vrot.lane.b32.xlu1 %v2973_v44, %s2382_s23  ;;  %v420_v5 = vsel %vm2497_vm5, %v415_v7, %v419_v20  ;;  %v1348_v45 = vsel %vm1344_vm10, %v1315_v59, %v2965_v35  ;;  %v773_v61 = vrot.slane %v771_v56, 4  ;;  %v790_v7 = vshrl.u32 %v221_v58, 16 }
  0xc7   : > { %v1196_v48 = vpop.permute.xlu0 %1195  ;;  %v612_v60 = vsel %vm2497_vm5, %v607_v19, %v611_v47  ;;  %v3199_v39 = vcombine.low %v410_v54, %v420_v5  ;;  %v786_v52 = vshll.u32 %v221_v58, 16 }
  0xc8   : > { %v1247_v23 = vpop.permute.xlu1 %1246  ;;  %v3160_v34 = vcombine.low %v602_v53, %v612_v60  ;;  %v1478_v19 = vsel %vm1476_vm14, %v1445_v11, %v1196_v48  ;;  %v718_v53 = vrot.slane %v3109_v15, 5  ;;  %v220_v15 = vld [vmem:[%s2420_s17 + $0xc0] sm:$0xf] }
  0xc9   : > { %1135 = vrot.lane.b32.xlu0 %v3092_v26, %s2381_s22  ;;  %v1527_v33 = vsel %vm1509_vm15, %v1494_v17, %v1247_v23  ;;  %v2035_v17 = vrot.slane %v3012_v63, 9  ;;  %v774_v23 = vrot.slane %v3072_v25, 5  ;;  %v715_v63 = vrot.slane %v3065_v36, 5 }
  0xca   : > { %1186 = vrot.lane.b32.xlu1 %v3096_v57, %s2382_s23  ;;  %2311 = vmatprep.mubr.msk.bf16.mxu1 %vm1564_vm0, %v1527_v33  ;;  %v1381_v33 = vsel %vm1377_vm11, %v1348_v45, %v2989_v40  ;;  %v777_v21 = vshrl.u32 %v220_v15, 16  ;;  %v780_v11 = vshll.u32 %v220_v15, 16  ;;  %v2086_v45 = vcombine.low %v220_v15, %v221_v58 }
  0xcb   : > { %v1198_v24 = vpop.permute.xlu0 %1197  ;;  %v1414_v28 = vsel %vm1410_vm12, %v1381_v33, %v3035_v14  ;;  %v772_v46 = vsel %vm2452_vm4, %v2035_v17, %v771_v56  ;;  %v775_v14 = vsel %vm2452_vm4, %v773_v61, %v774_v23  ;;  %v788_v56 = vrot.slane %v786_v52, 5 }
  0xcc   : > { %v3146_v22 = vpop.permute.xlu1 %960  ;;  %v1447_v35 = vsel %vm1443_vm13, %v1414_v28, %v3086_v38  ;;  %v3219_v36 = vcombine.low %v772_v46, %v775_v14  ;;  %v2027_v38 = vrot.slane %v3060_v49, 9 }
  0xcd   : > { %1168 = vrot.lane.b32.xlu0 %v3002_v27, %s2382_s23  ;;  %v1480_v40 = vsel %vm1476_vm14, %v1447_v35, %v1198_v24  ;;  %v717_v24 = vrot.slane %v715_v63, 4 }
  0xce   : > { %1219 = vrot.lane.b32.xlu1 %v3007_v3, %s2383_s24 }
  0xcf   : > { %v1231_v47 = vpop.permute.xlu0 %1230  ;;  %v719_v62 = vsel %vm2452_vm4, %v717_v24, %v718_v53  ;;  %v3294_v53 = vld [vmem:[%s2420_s17 + $0xcc] sm:$0xf] }
  0xd0   : > { %v1511_v42 = vsel %vm1509_vm15, %v1478_v19, %v1231_v47  ;;  %v1249_v6 = vpop.permute.xlu1 %1248  ;;  %v779_v19 = vrot.slane %v777_v21, 4  ;;  %v782_v47 = vrot.slane %v780_v11, 5 }
  0xd1   : > { %1170 = vrot.lane.b32.xlu0 %v3144_v2, %s2382_s23  ;;  %2295 = vmatprep.mubr.msk.bf16.mxu0 %vm1564_vm0, %v1511_v42  ;;  %v1529_v10 = vsel %vm1509_vm15, %v1496_v0, %v1249_v6  ;;  %v792_v0 = vrot.slane %v790_v7, 4  ;;  %v222_v6 = vld [vmem:[%s2420_s17 + $0xc8] sm:$0x1] }
  0xd2   : > { %1221 = vrot.lane.b32.xlu1 %v3160_v34, %s2383_s24  ;;  %2312 = vmatmul.mubr.msk.bf16.vlgmr.msra.gmra.mrb[0].mxu1 %vm1564_vm0, %v1529_v10  ;;  %v783_v59 = vor.u32 %v782_v47, %v779_v19  ;;  %v808_v24 = vrot.slane %v222_v6, 5 }
  0xd3   : > { %v3187_v48 = vpop.permute.xlu0 %944  ;;  %v793_v54 = vor.u32 %v792_v0, %v788_v56 }
  0xd4   : > { %v3193_v29 = vpop.permute.xlu1 %962  ;;  %v784_v61 = vrot.slane %v783_v59, 4 }
  0xd5   : > { %1203 = vrot.lane.b32.xlu0 %v3047_v55, %s2383_s24  ;;  %v794_v23 = vrot.slane %v793_v54, 4 }
  0xd6   : > { %1254 = vrot.lane.b32.xlu1 %v3057_v50, %s2384_s27 }
  0xd7   : > { %v1233_v25 = vpop.permute.xlu0 %1232 }
  0xd8   : > { %v1513_v18 = vsel %vm1509_vm15, %v1480_v40, %v1233_v25  ;;  %v3212_v8 = vpop.permute.xlu1 %1040  ;;  %v805_v40 = vrot.slane %v221_v58, 5  ;;  %v814_v58 = vshll.u32 %v3294_v53, 16 }
  0xd9   : > { %1205 = vrot.lane.b32.xlu0 %v3199_v39, %s2383_s24  ;;  %2296 = vmatmul.mubr.msk.bf16.vlgmr.msra.gmra.mrb[0].mxu0 %vm1564_vm0, %v1513_v18  ;;  %v2036_v18 = vrot.slane %v220_v15, 9 }
  0xda   : > { %968 = vrot.lane.b32.xlu1 %v3007_v3, %s2379_s20  ;;  %v716_v3 = vsel %vm2452_vm4, %v2027_v38, %v715_v63  ;;  %v807_v38 = vrot.slane %v805_v40, 4  ;;  %v816_v0 = vrot.slane %v814_v58, 5 }
  0xdb   : > { %v3223_v60 = vpop.permute.xlu0 %946  ;;  %v3243_v13 = vcombine.low %v716_v3, %v719_v62  ;;  %v3297_v62 = vld [vmem:[%s2420_s17 + $0xd0] sm:$0xf]  ;;  %v806_v15 = vsel %vm2452_vm4, %v2036_v18, %v805_v40 }
  0xdc   : > { %v3225_v30 = vpop.permute.xlu1 %1042  ;;  %v809_v11 = vsel %vm2452_vm4, %v807_v38, %v808_v24  ;;  %v824_v7 = vshrl.u32 %v3297_v62, 16  ;;  %v820_v52 = vshll.u32 %v3297_v62, 16 }
  0xdd   : > { %1238 = vrot.lane.b32.xlu0 %v3092_v26, %s2384_s27  ;;  %v3317_v47 = vcombine.low %v806_v15, %v809_v11 }
  0xde   : > { %1256 = vrot.lane.b32.xlu1 %v3219_v36, %s2384_s27  ;;  %v822_v59 = vrot.slane %v820_v52, 5  ;;  %v826_v54 = vrot.slane %v824_v7, 4 }
  0xdf   : > { %v3235_v49 = vpop.permute.xlu0 %1024 }
  0xe0   : > { %v3237_v31 = vpop.permute.xlu1 %1075 }
  0xe1   : > { %952 = vrot.lane.b32.xlu0 %v3047_v55, %s2379_s20 }
  0xe2   : > { %970 = vrot.lane.b32.xlu1 %v3160_v34, %s2379_s20 }
  0xe3   : > { %v3247_v20 = vpop.permute.xlu0 %1026 }
  0xe4   : > { %v3249_v12 = vpop.permute.xlu1 %1077 }
  0xe5   : > { %1240 = vrot.lane.b32.xlu0 %v3243_v13, %s2384_s27 }
  0xe6   : > { %1048 = vrot.lane.b32.xlu1 %v3057_v50, %s2378_s19  ;;  %v796_v50 = vshll.u32 %v222_v6, 16 }
  0xe7   : > { %v3255_v55 = vpop.permute.xlu0 %1059 }
  0xe8   : > { %v3257_v42 = vpop.permute.xlu1 %1110  ;;  %v798_v33 = vrot.slane %v796_v50, 5 }
  0xe9   : > { %954 = vrot.lane.b32.xlu0 %v3199_v39, %s2379_s20 }
  0xea   : > { %1050 = vrot.lane.b32.xlu1 %v3219_v36, %s2378_s19  ;;  %v799_v63 = vsel %vm2497_vm5, %v794_v23, %v798_v33 }
  0xeb   : > { %v3264_v10 = vpop.permute.xlu0 %1061 }
  0xec   : > { %v3266_v5 = vpop.permute.xlu1 %1112 }
  0xed   : > { %1032 = vrot.lane.b32.xlu0 %v3092_v26, %s2378_s19  ;;  %v789_v26 = vsel %vm2497_vm5, %v784_v61, %v788_v56  ;;  %v3320_v61 = vld [vmem:[%s2420_s17 + $0xd4] sm:$0x1] }
  0xee   : > { %1083 = vrot.lane.b32.xlu1 %v3096_v57, %s2377_s18  ;;  %v3289_v46 = vcombine.low %v789_v26, %v799_v63  ;;  %v827_v26 = vor.u32 %v826_v54, %v822_v59  ;;  %v830_v63 = vshll.u32 %v3320_v61, 16  ;;  %v842_v54 = vrot.slane %v3320_v61, 5 }
  0xef   : > { %v3272_v17 = vpop.permute.xlu0 %1094 }
  0xf0   : > { %v1146_v28 = vpop.permute.xlu1 %1145  ;;  %v828_v58 = vrot.slane %v827_v26, 4 }
  0xf1   : > { %1034 = vrot.lane.b32.xlu0 %v3243_v13, %s2378_s19 }
  0xf2   : > { %1085 = vrot.lane.b32.xlu1 %v2086_v45, %s2377_s18 }
  0xf3   : > { %v3277_v35 = vpop.permute.xlu0 %1096 }
  0xf4   : > { %v3283_v25 = vpop.permute.xlu1 %1147 }
  0xf5   : > { %1067 = vrot.lane.b32.xlu0 %v3144_v2, %s2377_s18 }
  0xf6   : > { %1118 = vrot.lane.b32.xlu1 %v3160_v34, %s2380_s21  ;;  %v811_v34 = vshrl.u32 %v3294_v53, 16 }
  0xf7   : > { %v3291_v14 = vpop.permute.xlu0 %1129 }
  0xf8   : > { %v1181_v3 = vpop.permute.xlu1 %1180  ;;  %v813_v56 = vrot.slane %v811_v34, 4 }
  0xf9   : > { %1069 = vrot.lane.b32.xlu0 %v3021_v43, %s2377_s18 }
  0xfa   : > { %1120 = vrot.lane.b32.xlu1 %v3289_v46, %s2380_s21 }
  0xfb   : > { %v3305_v21 = vpop.permute.xlu0 %1131 }
  0xfc   : > { %v1183_v19 = vpop.permute.xlu1 %1182 }
  0xfd   : > { %1102 = vrot.lane.b32.xlu0 %v3199_v39, %s2380_s21  ;;  %v1295_v39 = vsel %vm1262_vm8, %v2573_v9, %v3146_v22  ;;  %v2089_v22 = vcombine.low %v3294_v53, %v3297_v62 }
  0xfe   : > { %1153 = vrot.lane.b32.xlu1 %v3219_v36, %s2381_s22  ;;  %v817_v36 = vor.u32 %v816_v0, %v813_v56  ;;  %v1333_v23 = vsel %vm1311_vm9, %v1295_v39, %v3212_v8 }
  0xff   : > { %v1165_v6 = vpop.permute.xlu0 %1164  ;;  %v1366_v40 = vsel %vm1344_vm10, %v1333_v23, %v3237_v31  ;;  %v832_v31 = vrot.slane %v830_v63, 5 }
 0x100   : > { %v1216_v50 = vpop.permute.xlu1 %1215  ;;  %v1399_v38 = vsel %vm1377_vm11, %v1366_v40, %v3257_v42  ;;  %v818_v8 = vrot.slane %v817_v36, 4 }
 0x101   : > { %1104 = vrot.lane.b32.xlu0 %v2585_v1, %s2380_s21  ;;  %v1432_v9 = vsel %vm1410_vm12, %v1399_v38, %v1146_v28  ;;  %v3595_v38 = vld [vmem:[#allocation2_spill] sm:$0xff] }
 0x102   : > { %1155 = vrot.lane.b32.xlu1 %v3317_v47, %s2381_s22  ;;  %v1465_v24 = vsel %vm1443_vm13, %v1432_v9, %v1181_v3  ;;  %v823_v3 = vsel %vm2497_vm5, %v818_v8, %v822_v59 }
 0x103   : > { %v3331_v33 = vpop.permute.xlu0 %1166  ;;  %v1498_v15 = vsel %vm1476_vm14, %v1465_v24, %v1216_v50 }
 0x104   : > { %v1218_v18 = vpop.permute.xlu1 %1217 }
 0x105   : > { %1137 = vrot.lane.b32.xlu0 %v3243_v13, %s2381_s22  ;;  %v1271_v13 = vsel %vm1262_vm8, %v2592_v37, %v3187_v48 }
 0x106   : > { %1188 = vrot.lane.b32.xlu1 %v2086_v45, %s2382_s23  ;;  %v1298_v45 = vsel %vm1262_vm8, %v2661_v32, %v3193_v29  ;;  %v1317_v28 = vsel %vm1311_vm9, %v1271_v13, %v3235_v49  ;;  %v833_v32 = vsel %vm2497_vm5, %v828_v58, %v832_v31  ;;  %v839_v29 = vrot.slane %v3297_v62, 5 }
 0x107   : > { %v1200_v34 = vpop.permute.xlu0 %1199  ;;  %v1335_v37 = vsel %vm1311_vm9, %v1298_v45, %v3225_v30  ;;  %v1350_v48 = vsel %vm1344_vm10, %v1317_v28, %v3255_v55 }
 0x108   : > { %v1251_v11 = vpop.permute.xlu1 %1250  ;;  %v1368_v49 = vsel %vm1344_vm10, %v1335_v37, %v3249_v12  ;;  %v1383_v52 = vsel %vm1377_vm11, %v1350_v48, %v3272_v17  ;;  %v2090_v12 = vcombine.low %v823_v3, %v833_v32  ;;  %v2037_v17 = vrot.slane %v3294_v53, 9  ;;  %v3596_v48 = vld [vmem:[#allocation5_spill] sm:$0xff] }
 0x109   : > { %1139 = vrot.lane.b32.xlu0 %v2483_v41, %s2381_s22  ;;  %v1531_v42 = vsel %vm1509_vm15, %v1498_v15, %v1251_v11  ;;  %v1401_v30 = vsel %vm1377_vm11, %v1368_v49, %v3266_v5  ;;  %v1416_v55 = vsel %vm1410_vm12, %v1383_v52, %v3291_v14  ;;  %v841_v14 = vrot.slane %v839_v29, 4 }
 0x10a   : > { %1190 = vrot.lane.b32.xlu1 %v2089_v22, %s2382_s23  ;;  %2315 = vmatprep.mubr.msk.bf16.mxu1 %vm1564_vm0, %v1531_v42  ;;  %v1434_v51 = vsel %vm1410_vm12, %v1401_v30, %v3283_v25  ;;  %v1449_v62 = vsel %vm1443_vm13, %v1416_v55, %v1165_v6  ;;  %v3593_v6 = vld [vmem:[#allocation4_spill] sm:$0xff] }
 0x10b   : > { %v1202_v7 = vpop.permute.xlu0 %1201  ;;  %v1467_v0 = vsel %vm1443_vm13, %v1434_v51, %v1183_v19  ;;  %v1482_v5 = vsel %vm1476_vm14, %v1449_v62, %v1200_v34 }
 0x10c   : > { %v3372_v56 = vpop.permute.xlu1 %964 }
 0x10d   : > { %1172 = vrot.lane.b32.xlu0 %v3021_v43, %s2382_s23  ;;  %v1500_v43 = vsel %vm1476_vm14, %v1467_v0, %v1218_v18  ;;  %v3594_v18 = vld [vmem:[#allocation3_spill] sm:$0xff]  ;;  %v3597_v0 = vld [vmem:[#allocation6_spill] sm:$0xff] }
 0x10e   : > { %1223 = vrot.lane.b32.xlu1 %v3289_v46, %s2383_s24  ;;  %v1274_v46 = vsel %vm1262_vm8, %v3593_v6, %v3223_v60  ;;  %v840_v60 = vsel %vm2452_vm4, %v2037_v17, %v839_v29 }
 0x10f   : > { %v1235_v59 = vpop.permute.xlu0 %1234  ;;  %v1319_v19 = vsel %vm1311_vm9, %v1274_v46, %v3247_v20 }
 0x110   : > { %v1515_v25 = vsel %vm1509_vm15, %v1482_v5, %v1235_v59  ;;  %v1253_v50 = vpop.permute.xlu1 %1252  ;;  %v1352_v61 = vsel %vm1344_vm10, %v1319_v19, %v3264_v10  ;;  %v3598_v59 = vld [vmem:[#allocation7_spill] sm:$0xff] }
 0x111   : > { %1174 = vrot.lane.b32.xlu0 %v2432_v4, %s2382_s23  ;;  %2299 = vmatprep.mubr.msk.bf16.mxu0 %vm1564_vm0, %v1515_v25  ;;  %v1533_v53 = vsel %vm1509_vm15, %v1500_v43, %v1253_v50  ;;  %v843_v4 = vsel %vm2452_vm4, %v841_v14, %v842_v54  ;;  %v1385_v36 = vsel %vm1377_vm11, %v1352_v61, %v3277_v35 }
 0x112   : > { %1225 = vrot.lane.b32.xlu1 %v2090_v12, %s2383_s24  ;;  %2316 = vmatmul.mubr.msk.bf16.gmra.mrb[4].mxu1 %vm1564_vm0, %v1533_v53  ;;  %v1418_v20 = vsel %vm1410_vm12, %v1385_v36, %v3305_v21  ;;  %v2091_v26 = vcombine.low %v840_v60, %v843_v4 }
 0x113   : > { %v949_v39 = vpop.permute.xlu0 %948  ;;  %v1451_v10 = vsel %vm1443_vm13, %v1418_v20, %v3331_v33 }
 0x114   : > { %v967_v23 = vpop.permute.xlu1 %966  ;;  %v1484_v16 = vsel %vm1476_vm14, %v1451_v10, %v1202_v7  ;;  %v1301_v7 = vsel %vm1262_vm8, %v3596_v48, %v3372_v56  ;;  %v1277_v5 = vsel %vm1262_vm8, %v3597_v0, %v949_v39 }
 0x115   : > { %1207 = vrot.lane.b32.xlu0 %v2585_v1, %s2383_s24  ;;  %v1304_v14 = vsel %vm1262_vm8, %v3598_v59, %v967_v23 }
 0x116   : > { %1258 = vrot.lane.b32.xlu1 %v3317_v47, %s2384_s27 }
 0x117   : > { %v1237_v63 = vpop.permute.xlu0 %1236 }
 0x118   : > { %v1517_v40 = vsel %vm1509_vm15, %v1484_v16, %v1237_v63  ;;  %v1045_v35 = vpop.permute.xlu1 %1044  ;;  %v3599_v16 = vld [vmem:[#allocation8_spill] sm:$0xff] }
 0x119   : > { %1209 = vrot.lane.b32.xlu0 %v3594_v18, %s2383_s24  ;;  %2300 = vmatmul.mubr.msk.bf16.gmra.mrb[4].mxu0 %vm1564_vm0, %v1517_v40  ;;  %v1337_v32 = vsel %vm1311_vm9, %v1301_v7, %v1045_v35 }
 0x11a   : > { %1260 = vrot.lane.b32.xlu1 %v2091_v26, %s2384_s27 }
 0x11b   : > { %v951_v1 = vpop.permute.xlu0 %950 }
 0x11c   : > { %v1047_v21 = vpop.permute.xlu1 %1046  ;;  %v1280_v63 = vsel %vm1262_vm8, %v3599_v16, %v951_v1 }
 0x11d   : > { %1242 = vrot.lane.b32.xlu0 %v2483_v41, %s2384_s27  ;;  %v1339_v43 = vsel %vm1311_vm9, %v1304_v14, %v1047_v21 }
 0x11f   : > { %v1029_v47 = vpop.permute.xlu0 %1028 }
 0x120   : > { %v1080_v33 = vpop.permute.xlu1 %1079  ;;  %v1321_v54 = vsel %vm1311_vm9, %v1277_v5, %v1029_v47 }
 0x121   : > { %1244 = vrot.lane.b32.xlu0 %v3595_v38, %s2384_s27  ;;  %v1370_v49 = vsel %vm1344_vm10, %v1337_v32, %v1080_v33 }
 0x123   : > { %v1031_v9 = vpop.permute.xlu0 %1030 }
 0x124   : > { %v1082_v22 = vpop.permute.xlu1 %1081  ;;  %v1323_v35 = vsel %vm1311_vm9, %v1280_v63, %v1031_v9 }
 0x125   : > { %v1372_v6 = vsel %vm1344_vm10, %v1339_v43, %v1082_v22 }
 0x127   : > { %v1064_v8 = vpop.permute.xlu0 %1063 }
 0x128   : > { %v1115_v24 = vpop.permute.xlu1 %1114  ;;  %v1354_v25 = vsel %vm1344_vm10, %v1321_v54, %v1064_v8 }
 0x129   : > { %v1403_v30 = vsel %vm1377_vm11, %v1370_v49, %v1115_v24 }
 0x12b   : > { %v1066_v34 = vpop.permute.xlu0 %1065 }
 0x12c   : > { %v1117_v58 = vpop.permute.xlu1 %1116  ;;  %v1356_v18 = vsel %vm1344_vm10, %v1323_v35, %v1066_v34 }
 0x12d   : > { %v1405_v19 = vsel %vm1377_vm11, %v1372_v6, %v1117_v58 }
 0x12f   : > { %v1099_v31 = vpop.permute.xlu0 %1098 }
 0x130   : > { %v1150_v15 = vpop.permute.xlu1 %1149  ;;  %v1387_v46 = vsel %vm1377_vm11, %v1354_v25, %v1099_v31 }
 0x131   : > { %v1436_v55 = vsel %vm1410_vm12, %v1403_v30, %v1150_v15 }
 0x133   : > { %v1101_v11 = vpop.permute.xlu0 %1100 }
 0x134   : > { %v1152_v13 = vpop.permute.xlu1 %1151  ;;  %v1389_v47 = vsel %vm1377_vm11, %v1356_v18, %v1101_v11 }
 0x135   : > { %v1438_v39 = vsel %vm1410_vm12, %v1405_v19, %v1152_v13 }
 0x137   : > { %v1134_v42 = vpop.permute.xlu0 %1133 }
 0x138   : > { %v1185_v45 = vpop.permute.xlu1 %1184  ;;  %v1420_v61 = vsel %vm1410_vm12, %v1387_v46, %v1134_v42 }
 0x139   : > { %v1469_v51 = vsel %vm1443_vm13, %v1436_v55, %v1185_v45 }
 0x13b   : > { %v1136_v28 = vpop.permute.xlu0 %1135 }
 0x13c   : > { %v1187_v3 = vpop.permute.xlu1 %1186  ;;  %v1422_v38 = vsel %vm1410_vm12, %v1389_v47, %v1136_v28 }
 0x13d   : > { %v1471_v4 = vsel %vm1443_vm13, %v1438_v39, %v1187_v3 }
 0x13f   : > { %v1169_v41 = vpop.permute.xlu0 %1168 }
 0x140   : > { %v1220_v37 = vpop.permute.xlu1 %1219  ;;  %v1453_v60 = vsel %vm1443_vm13, %v1420_v61, %v1169_v41 }
 0x141   : > { %v1502_v12 = vsel %vm1476_vm14, %v1469_v51, %v1220_v37 }
 0x143   : > { %v1171_v29 = vpop.permute.xlu0 %1170 }
 0x144   : > { %v1222_v52 = vpop.permute.xlu1 %1221  ;;  %v1455_v22 = vsel %vm1443_vm13, %v1422_v38, %v1171_v29 }
 0x145   : > { %v1504_v20 = vsel %vm1476_vm14, %v1471_v4, %v1222_v52 }
 0x147   : > { %v1204_v62 = vpop.permute.xlu0 %1203 }
 0x148   : > { %v1255_v17 = vpop.permute.xlu1 %1254  ;;  %v1486_v36 = vsel %vm1476_vm14, %v1453_v60, %v1204_v62 }
 0x149   : > { %v1535_v56 = vsel %vm1509_vm15, %v1502_v12, %v1255_v17 }
 0x14a   : > { %2319 = vmatprep.mubr.msk.bf16.mxu1 %vm1564_vm0, %v1535_v56 }
 0x14b   : > { %v1206_v50 = vpop.permute.xlu0 %1205 }
 0x14c   : > { %v969_v53 = vpop.permute.xlu1 %968  ;;  %v1488_v1 = vsel %vm1476_vm14, %v1455_v22, %v1206_v50 }
 0x14d   : > { %v1307_v51 = vsel %vm1262_vm8, %v2973_v44, %v969_v53 }
 0x14f   : > { %v1239_v23 = vpop.permute.xlu0 %1238 }
 0x150   : > { %v1519_v10 = vsel %vm1509_vm15, %v1486_v36, %v1239_v23  ;;  %v1257_v26 = vpop.permute.xlu1 %1256 }
 0x151   : > { %2303 = vmatprep.mubr.msk.bf16.mxu0 %vm1564_vm0, %v1519_v10  ;;  %v1537_v40 = vsel %vm1509_vm15, %v1504_v20, %v1257_v26 }
 0x152   : > { %2320 = vmatmul.mubr.msk.bf16.gmra.mrb[8].mxu1 %vm1564_vm0, %v1537_v40 }
 0x153   : > { %v953_v21 = vpop.permute.xlu0 %952 }
 0x154   : > { %v971_v33 = vpop.permute.xlu1 %970  ;;  %v1283_v6 = vsel %vm1262_vm8, %v3002_v27, %v953_v21 }
 0x155   : > { %v1310_v56 = vsel %vm1262_vm8, %v3096_v57, %v971_v33 }
 0x157   : > { %v1241_v8 = vpop.permute.xlu0 %1240 }
 0x158   : > { %v1521_v24 = vsel %vm1509_vm15, %v1488_v1, %v1241_v8  ;;  %v1049_v58 = vpop.permute.xlu1 %1048  ;;  %v3512_v1 = vld [vmem:[%s3573_s2] ss:$0 sm:$0xff] }
 0x159   : > { %2304 = vmatmul.mubr.msk.bf16.gmra.mrb[8].mxu0 %vm1564_vm0, %v1521_v24  ;;  %v1341_v62 = vsel %vm1311_vm9, %v1307_v51, %v1049_v58 }
 0x15b   : > { %v955_v9 = vpop.permute.xlu0 %954 }
 0x15c   : > { %v1051_v31 = vpop.permute.xlu1 %1050  ;;  %v1286_v23 = vsel %vm1262_vm8, %v3144_v2, %v955_v9 }
 0x15d   : > { %v1343_v14 = vsel %vm1311_vm9, %v1310_v56, %v1051_v31 }
 0x15f   : > { %v1033_v15 = vpop.permute.xlu0 %1032 }
 0x160   : > { %v1084_v34 = vpop.permute.xlu1 %1083  ;;  %v1325_v57 = vsel %vm1311_vm9, %v1283_v6, %v1033_v15 }
 0x161   : > { %v1374_v17 = vsel %vm1344_vm10, %v1341_v62, %v1084_v34 }
 0x163   : > { %v1035_v13 = vpop.permute.xlu0 %1034 }
 0x164   : > { %v1086_v42 = vpop.permute.xlu1 %1085  ;;  %v1327_v26 = vsel %vm1311_vm9, %v1286_v23, %v1035_v13 }
 0x165   : > { %v1376_v44 = vsel %vm1344_vm10, %v1343_v14, %v1086_v42 }
 0x167   : > { %v1068_v11 = vpop.permute.xlu0 %1067 }
 0x168   : > { %v1119_v45 = vpop.permute.xlu1 %1118  ;;  %v1358_v61 = vsel %vm1344_vm10, %v1325_v57, %v1068_v11 }
 0x169   : > { %v1407_v5 = vsel %vm1377_vm11, %v1374_v17, %v1119_v45 }
 0x16b   : > { %v1070_v3 = vpop.permute.xlu0 %1069 }
 0x16c   : > { %v1121_v28 = vpop.permute.xlu1 %1120  ;;  %v1360_v63 = vsel %vm1344_vm10, %v1327_v26, %v1070_v3 }
 0x16d   : > { %v1409_v46 = vsel %vm1377_vm11, %v1376_v44, %v1121_v28 }
 0x16f   : > { %v1103_v41 = vpop.permute.xlu0 %1102 }
 0x170   : > { %v1154_v37 = vpop.permute.xlu1 %1153  ;;  %v1391_v4 = vsel %vm1377_vm11, %v1358_v61, %v1103_v41 }
 0x171   : > { %v1440_v59 = vsel %vm1410_vm12, %v1407_v5, %v1154_v37 }
 0x173   : > { %v1105_v48 = vpop.permute.xlu0 %1104 }
 0x174   : > { %v1156_v7 = vpop.permute.xlu1 %1155  ;;  %v1393_v18 = vsel %vm1377_vm11, %v1360_v63, %v1105_v48 }
 0x175   : > { %v1442_v19 = vsel %vm1410_vm12, %v1409_v46, %v1156_v7 }
 0x177   : > { %v1138_v32 = vpop.permute.xlu0 %1137 }
 0x178   : > { %v1189_v29 = vpop.permute.xlu1 %1188  ;;  %v1424_v20 = vsel %vm1410_vm12, %v1391_v4, %v1138_v32 }
 0x179   : > { %v1473_v54 = vsel %vm1443_vm13, %v1440_v59, %v1189_v29 }
 0x17b   : > { %v1140_v49 = vpop.permute.xlu0 %1139 }
 0x17c   : > { %v1191_v52 = vpop.permute.xlu1 %1190  ;;  %v1426_v21 = vsel %vm1410_vm12, %v1393_v18, %v1140_v49 }
 0x17d   : > { %v1475_v39 = vsel %vm1443_vm13, %v1442_v19, %v1191_v52 }
 0x17f   : > { %v1173_v30 = vpop.permute.xlu0 %1172 }
 0x180   : > { %v1224_v55 = vpop.permute.xlu1 %1223  ;;  %v1457_v16 = vsel %vm1443_vm13, %v1424_v20, %v1173_v30 }
 0x181   : > { %v1506_v25 = vsel %vm1476_vm14, %v1473_v54, %v1224_v55 }
 0x183   : > { %v1175_v12 = vpop.permute.xlu0 %1174 }
 0x184   : > { %v1226_v0 = vpop.permute.xlu1 %1225  ;;  %v1459_v47 = vsel %vm1443_vm13, %v1426_v21, %v1175_v12 }
 0x185   : > { %v1508_v36 = vsel %vm1476_vm14, %v1475_v39, %v1226_v0 }
 0x187   : > { %v1208_v43 = vpop.permute.xlu0 %1207 }
 0x188   : > { %v1259_v50 = vpop.permute.xlu1 %1258  ;;  %v1490_v40 = vsel %vm1476_vm14, %v1457_v16, %v1208_v43 }
 0x189   : > { %v1539_v53 = vsel %vm1509_vm15, %v1506_v25, %v1259_v50 }
 0x18a   : > { %2323 = vmatprep.mubr.msk.bf16.mxu1 %vm1564_vm0, %v1539_v53 }
 0x18b   : > { %v1210_v60 = vpop.permute.xlu0 %1209 }
 0x18c   : > { %v1261_v27 = vpop.permute.xlu1 %1260  ;;  %v1492_v33 = vsel %vm1476_vm14, %v1459_v47, %v1210_v60 }
 0x18d   : > { %v1541_v10 = vsel %vm1509_vm15, %v1508_v36, %v1261_v27 }
 0x18e   : > { %2324 = vmatmul.mubr.msk.bf16.gmra.mrb[12].mxu1 %vm1564_vm0, %v1541_v10 }
 0x18f   : > { %v1243_v35 = vpop.permute.xlu0 %1242 }
 0x190   : > { %v1523_v2 = vsel %vm1509_vm15, %v1490_v40, %v1243_v35 }
 0x191   : > { %2307 = vmatprep.mubr.msk.bf16.mxu0 %vm1564_vm0, %v1523_v2 }
 0x193   : > { %v1245_v38 = vpop.permute.xlu0 %1244 }
 0x194   : > { %v1525_v22 = vsel %vm1509_vm15, %v1492_v33, %v1245_v38 }
 0x195   : > { %2308 = vmatmul.mubr.msk.bf16.gmra.mrb[12].mxu0 %vm1564_vm0, %v1525_v22 }
 0x1a5   : > { %v2313_v8 = vpop.f32.mrb[0].mxu1 }
 0x1a6   : > { %v1711_v24 = vadd.f32 %v2313_v8, %v3512_v1  ;;  %v1702_v58 = vpop.f32.mrb[1].mxu1 }
 0x1a7   : > { %v1703_v9 = vadd.f32 %v3512_v1, %v1702_v58  ;;  %v2314_v31 = vpop.f32.mrb[2].mxu1 }
 0x1a8   : > { %v1714_v15 = vadd.f32 %v2314_v31, %v3512_v1  ;;  %v1705_v34 = vpop.f32.mrb[3].mxu1  ;;  %v1783_v42 = vmax.f32 %v1711_v24, 0.0 }
 0x1a9   : > { %v1706_v13 = vadd.f32 %v3512_v1, %v1705_v34  ;;  %v1781_v45 = vmax.f32 %v1703_v9, 0.0 }
 0x1aa   : > { %v1784_v11 = vmax.f32 %v1714_v15, 0.0 }
 0x1ab   : > { %v1782_v3 = vmax.f32 %v1706_v13, 0.0 }
 0x1ac   : > { %v2297_v28 = vpop.f32.mrb[0].mxu0  ;;  %v2226_v41 = vpack.c.bf16 %v1784_v11, %v1783_v42 }
 0x1ad   : > { %v1647_v37 = vadd.f32 %v2297_v28, %v3512_v1  ;;  %v1638_v48 = vpop.f32.mrb[1].mxu0  ;;  %v2221_v7 = vpack.c.bf16 %v1782_v3, %v1781_v45 }
 0x1ae   : > { %v1639_v32 = vadd.f32 %v3512_v1, %v1638_v48  ;;  %v2298_v29 = vpop.f32.mrb[2].mxu0  ;;  %2266 = vst [vmem:[%s3522_s8 + $0x48] sm:$0xff] %v2226_v41  }
 0x1af   : > { %v1650_v49 = vadd.f32 %v2298_v29, %v3512_v1  ;;  %v1641_v52 = vpop.f32.mrb[3].mxu0  ;;  %2265 = vst [vmem:[%s3522_s8 + $0x40] sm:$0xff] %v2221_v7   ;;  %v1767_v55 = vmax.f32 %v1647_v37, 0.0 }
 0x1b0   : > { %v1642_v30 = vadd.f32 %v3512_v1, %v1641_v52  ;;  %v1765_v62 = vmax.f32 %v1639_v32, 0.0 }
 0x1b1   : > { %v1768_v51 = vmax.f32 %v1650_v49, 0.0 }
 0x1b2   : > { %v1766_v12 = vmax.f32 %v1642_v30, 0.0 }
 0x1b3   : > { %v2186_v17 = vpack.c.bf16 %v1768_v51, %v1767_v55 }
 0x1b4   : > { %v2181_v0 = vpack.c.bf16 %v1766_v12, %v1765_v62 }
 0x1b5   : > { %2258 = vst [vmem:[%s3522_s8 + $0x8] sm:$0xff] %v2186_v17  }
 0x1b6   : > { %2182 = vst [vmem:[%s3522_s8] sm:$0xff] %v2181_v0  }
 0x1e5   : > { %v2317_v5 = vpop.f32.mrb[4].mxu1 }
 0x1e6   : > { %v1727_v56 = vadd.f32 %v2317_v5, %v3512_v1  ;;  %v1718_v59 = vpop.f32.mrb[5].mxu1 }
 0x1e7   : > { %v1719_v14 = vadd.f32 %v3512_v1, %v1718_v59  ;;  %v2318_v54 = vpop.f32.mrb[6].mxu1 }
 0x1e8   : > { %v1730_v43 = vadd.f32 %v2318_v54, %v3512_v1  ;;  %v1721_v44 = vpop.f32.mrb[7].mxu1  ;;  %v1787_v50 = vmax.f32 %v1727_v56, 0.0 }
 0x1e9   : > { %v1722_v25 = vadd.f32 %v3512_v1, %v1721_v44  ;;  %v1785_v46 = vmax.f32 %v1719_v14, 0.0 }
 0x1ea   : > { %v1788_v6 = vmax.f32 %v1730_v43, 0.0 }
 0x1eb   : > { %v1786_v53 = vmax.f32 %v1722_v25, 0.0 }
 0x1ec   : > { %v2301_v57 = vpop.f32.mrb[4].mxu0  ;;  %v2236_v19 = vpack.c.bf16 %v1788_v6, %v1787_v50 }
 0x1ed   : > { %v1663_v61 = vadd.f32 %v2301_v57, %v3512_v1  ;;  %v1654_v39 = vpop.f32.mrb[5].mxu0  ;;  %v2231_v60 = vpack.c.bf16 %v1786_v53, %v1785_v46 }
 0x1ee   : > { %v1655_v4 = vadd.f32 %v3512_v1, %v1654_v39  ;;  %v2302_v36 = vpop.f32.mrb[6].mxu0  ;;  %2268 = vst [vmem:[%s3522_s8 + $0x58] sm:$0xff] %v2236_v19  }
 0x1ef   : > { %v1666_v27 = vadd.f32 %v2302_v36, %v3512_v1  ;;  %v1657_v23 = vpop.f32.mrb[7].mxu0  ;;  %2267 = vst [vmem:[%s3522_s8 + $0x50] sm:$0xff] %v2231_v60   ;;  %v1771_v10 = vmax.f32 %v1663_v61, 0.0 }
 0x1f0   : > { %v1658_v20 = vadd.f32 %v3512_v1, %v1657_v23  ;;  %v1769_v16 = vmax.f32 %v1655_v4, 0.0 }
 0x1f1   : > { %v1772_v26 = vmax.f32 %v1666_v27, 0.0 }
 0x1f2   : > { %v1770_v63 = vmax.f32 %v1658_v20, 0.0 }
 0x1f3   : > { %v2196_v40 = vpack.c.bf16 %v1772_v26, %v1771_v10 }
 0x1f4   : > { %v2191_v35 = vpack.c.bf16 %v1770_v63, %v1769_v16 }
 0x1f5   : > { %2260 = vst [vmem:[%s3522_s8 + $0x18] sm:$0xff] %v2196_v40  }
 0x1f6   : > { %2259 = vst [vmem:[%s3522_s8 + $0x10] sm:$0xff] %v2191_v35  }
 0x225   : > { %v2321_v18 = vpop.f32.mrb[8].mxu1 }
 0x226   : > { %v1743_v2 = vadd.f32 %v2321_v18, %v3512_v1  ;;  %v1734_v21 = vpop.f32.mrb[9].mxu1 }
 0x227   : > { %v1735_v47 = vadd.f32 %v3512_v1, %v1734_v21  ;;  %v2322_v33 = vpop.f32.mrb[10].mxu1 }
 0x228   : > { %v1746_v38 = vadd.f32 %v2322_v33, %v3512_v1  ;;  %v1737_v22 = vpop.f32.mrb[11].mxu1  ;;  %v1791_v24 = vmax.f32 %v1743_v2, 0.0 }
 0x229   : > { %v1738_v8 = vadd.f32 %v3512_v1, %v1737_v22  ;;  %v1789_v9 = vmax.f32 %v1735_v47, 0.0 }
 0x22a   : > { %v1792_v58 = vmax.f32 %v1746_v38, 0.0 }
 0x22b   : > { %v1790_v31 = vmax.f32 %v1738_v8, 0.0 }
 0x22c   : > { %v2305_v15 = vpop.f32.mrb[8].mxu0  ;;  %v2246_v34 = vpack.c.bf16 %v1792_v58, %v1791_v24 }
 0x22d   : > { %v1679_v13 = vadd.f32 %v2305_v15, %v3512_v1  ;;  %v1670_v42 = vpop.f32.mrb[9].mxu0  ;;  %v2241_v11 = vpack.c.bf16 %v1790_v31, %v1789_v9 }
 0x22e   : > { %v1671_v45 = vadd.f32 %v3512_v1, %v1670_v42  ;;  %v2306_v3 = vpop.f32.mrb[10].mxu0  ;;  %2270 = vst [vmem:[%s3522_s8 + $0x68] sm:$0xff] %v2246_v34  }
 0x22f   : > { %v1682_v28 = vadd.f32 %v2306_v3, %v3512_v1  ;;  %v1673_v41 = vpop.f32.mrb[11].mxu0  ;;  %2269 = vst [vmem:[%s3522_s8 + $0x60] sm:$0xff] %v2241_v11   ;;  %v1775_v48 = vmax.f32 %v1679_v13, 0.0 }
 0x230   : > { %v1674_v37 = vadd.f32 %v3512_v1, %v1673_v41  ;;  %v1773_v32 = vmax.f32 %v1671_v45, 0.0 }
 0x231   : > { %v1776_v7 = vmax.f32 %v1682_v28, 0.0 }
 0x232   : > { %v1774_v29 = vmax.f32 %v1674_v37, 0.0 }
 0x233   : > { %v2206_v49 = vpack.c.bf16 %v1776_v7, %v1775_v48 }
 0x234   : > { %v2201_v52 = vpack.c.bf16 %v1774_v29, %v1773_v32 }
 0x235   : > { %2262 = vst [vmem:[%s3522_s8 + $0x28] sm:$0xff] %v2206_v49  }
 0x236   : > { %2261 = vst [vmem:[%s3522_s8 + $0x20] sm:$0xff] %v2201_v52  }
 0x261   : > { %v2325_v30 = vpop.f32.mrb[12].mxu1 }
 0x262   : > { %v1759_v55 = vadd.f32 %v2325_v30, %v3512_v1  ;;  %v1750_v51 = vpop.f32.mrb[13].mxu1 }
 0x263   : > { %v1751_v62 = vadd.f32 %v3512_v1, %v1750_v51  ;;  %v2326_v12 = vpop.f32.mrb[14].mxu1 }
 0x264   : > { %v1762_v17 = vadd.f32 %v2326_v12, %v3512_v1  ;;  %v1753_v0 = vpop.f32.mrb[15].mxu1  ;;  %v1795_v56 = vmax.f32 %v1759_v55, 0.0 }
 0x265   : > { %v1754_v5 = vadd.f32 %v3512_v1, %v1753_v0  ;;  %v1793_v14 = vmax.f32 %v1751_v62, 0.0 }
 0x266   : > { %v1796_v59 = vmax.f32 %v1762_v17, 0.0 }
 0x267   : > { %v1794_v54 = vmax.f32 %v1754_v5, 0.0 }
 0x268   : > { %v2309_v43 = vpop.f32.mrb[12].mxu0  ;;  %v2256_v44 = vpack.c.bf16 %v1796_v59, %v1795_v56 }
 0x269   : > { %v1695_v25 = vadd.f32 %v2309_v43, %v3512_v1  ;;  %v1686_v50 = vpop.f32.mrb[13].mxu0  ;;  %v2251_v6 = vpack.c.bf16 %v1794_v54, %v1793_v14 }
 0x26a   : > { %v1687_v46 = vadd.f32 %v3512_v1, %v1686_v50  ;;  %v2310_v53 = vpop.f32.mrb[14].mxu0  ;;  %2272 = vst [vmem:[%s3522_s8 + $0x78] sm:$0xff] %v2256_v44  }
 0x26b   : > { %v1698_v57 = vadd.f32 %v2310_v53, %v3512_v1  ;;  %v1689_v19 = vpop.f32.mrb[15].mxu0  ;;  %2271 = vst [vmem:[%s3522_s8 + $0x70] sm:$0xff] %v2251_v6   ;;  %v1779_v39 = vmax.f32 %v1695_v25, 0.0 }
 0x26c   : > { %v1690_v61 = vadd.f32 %v3512_v1, %v1689_v19  ;;  %v1777_v4 = vmax.f32 %v1687_v46, 0.0 }
 0x26d   : > { %v1780_v60 = vmax.f32 %v1698_v57, 0.0 }
 0x26e   : > { %v1778_v36 = vmax.f32 %v1690_v61, 0.0 }
 0x26f   : > { %v2216_v27 = vpack.c.bf16 %v1780_v60, %v1779_v39 }
 0x270   : > { %v2211_v23 = vpack.c.bf16 %v1778_v36, %v1777_v4 }
 0x271   : > { %2264 = vst [vmem:[%s3522_s8 + $0x38] sm:$0xff] %v2216_v27  }
 0x272   : > { %2263 = vst [vmem:[%s3522_s8 + $0x30] sm:$0xff] %v2211_v23  }
 0x273 PF: > { %s13_s12 = sadd.s32 1, %s2375_s12  }
 0x274   : > { %p10_p4 = scmp.ge.s32.totalorder %s13_s12, 4  }
 0x276   :  { %12 = sbr.rel (!%p10_p4) target bundleno = 1 (0x1), region = 62 }

// kernel: _forward.4
= control target key start
LH: loop header
LB: loop body
LE: loop exit
PB: predicated region body
PF: predicated region fallthrough
CT: control target
= control target key end

     0   :  { %s3771_s18 = smov 0   ;;  %s5052_s0 = inlined_call_operand.vmem [shape: bf16[2,18,18,128], index: 0, kind: input, shape index: {}]   ;;  %s5053_s1 = inlined_call_operand.vmem [shape: bf16[1152,128], index: 1, kind: input, shape index: {}]   ;;  %s5054_s2 = inlined_call_operand.vmem [shape: f32[1,128], index: 2, kind: input, shape index: {}, may-alias: {2,4}]   ;;  %s5055_s3 = inlined_call_operand.vmem [shape: bf16[128,128], index: 3, kind: input, shape index: {}]   ;;  %s5056_s4 = inlined_call_operand.vmem [shape: f32[1,128], index: 4, kind: input, shape index: {}, may-alias: {2,4}]   ;;  %s5057_s5 = inlined_call_operand.vmem [shape: f32[2,256,128], index: 5, kind: output, shape index: {}]  }
   0x1 LB: > { %s2869_s19 = sadd.s32 4294967295, %s3739_s18   ;;  %p2873_p0 = scmp.ge.s32.totalorder %s3739_s18, 1  ;;  %s3739_s18 = sphi %s3771_s18, %s15_s18  }
   0x2   : > { %p187_p1 = scmp.lt.s32.totalorder %s3739_s18, 3 }
   0x4   : > { %p188_p2 = pnand %p2873_p0, %p187_p1 }
   0x6   : > { %191 = sbr.rel (%p188_p2) target bundleno = 798 (0x31e), region = 40 }
   0xd   : > { %v3635_v0 = vld [vmem:[%s5053_s1 + $0x40] sm:$0xff]   ;;  %v3639_v4 = vld [vmem:[%s5053_s1 + $0x48] sm:$0xff]   ;;  %v3643_v8 = vld [vmem:[%s5053_s1 + $0x50] sm:$0xff]   ;;  %p215_p3 = scmp.lt.s32.totalorder %s2869_s19, 1  ;;  %vm715_vm0 = vcmask 1042432   ;;  %vm716_vm3 = vcmask 1046532  }
   0xe   : > { %v3636_v1 = vld [vmem:[%s5053_s1] sm:$0xff]   ;;  %3034 = vmatprep.subr.bf16.mxu0 %v3635_v0  ;;  %v3640_v5 = vld [vmem:[%s5053_s1 + $0x8] sm:$0xff]   ;;  %v3644_v9 = vld [vmem:[%s5053_s1 + $0x10] sm:$0xff]   ;;  %vm280_vm1 = vsmask.f32 3328 }
   0xf   : > { %v3637_v2 = vld [vmem:[%s5053_s1 + $0xc0] sm:$0xff]   ;;  %3035 = vmatpush3.bf16.msra.mxu0 %v3636_v1  ;;  %v3641_v6 = vld [vmem:[%s5053_s1 + $0xc8] sm:$0xff]   ;;  %v3645_v10 = vld [vmem:[%s5053_s1 + $0xd0] sm:$0xff]   ;;  %s5094_s19 = smov (!%p215_p3, %s2869_s19), 1  ;;  %vm281_vm2 = vsmask.f32 7440 }
  0x10   : > { %v3638_v3 = vld [vmem:[%s5053_s1 + $0x80] sm:$0xff]   ;;  %3146 = vmatprep.subr.bf16.mxu1 %v3637_v2  ;;  %3036 = vmatprep.subr.bf16.mxu0 %v3639_v4  ;;  %v3642_v7 = vld [vmem:[%s5053_s1 + $0x88] sm:$0xff]   ;;  %v3646_v11 = vld [vmem:[%s5053_s1 + $0x90] sm:$0xff]   ;;  %s3626_s24 = smul.u32 216, %s5094_s19  ;;  %s3033_s28 = sshll.u32 %s5094_s19, 8 }
  0x11   : > { %3147 = vmatpush3.bf16.msra.mxu1 %v3638_v3  ;;  %v3647_v12 = vld [vmem:[%s5053_s1 + $0x58] sm:$0xff]   ;;  %v3651_v16 = vld [vmem:[%s5053_s1 + $0x60] sm:$0xff]   ;;  %v3655_v20 = vld [vmem:[%s5053_s1 + $0x68] sm:$0xff]   ;;  %s4983_s8 = scalar_lea.vmem %s5057_s5, %s3033_s28 }
  0x12   : > { %3148 = vmatprep.subr.bf16.mxu1 %v3641_v6  ;;  %v3648_v13 = vld [vmem:[%s5053_s1 + $0x18] sm:$0xff]   ;;  %v3652_v17 = vld [vmem:[%s5053_s1 + $0x20] sm:$0xff]   ;;  %v3656_v21 = vld [vmem:[%s5053_s1 + $0x28] sm:$0xff]   ;;  %s3876_s10 = scalar_lea.vmem %s5052_s0, %s3626_s24 }
  0x13   : > { %3037 = vmatpush3.bf16.msra.mxu0 %v3640_v5  ;;  %v3649_v14 = vld [vmem:[%s5053_s1 + $0xd8] sm:$0xff]   ;;  %v3653_v18 = vld [vmem:[%s5053_s1 + $0xe0] sm:$0xff]   ;;  %v3657_v22 = vld [vmem:[%s5053_s1 + $0xe8] sm:$0xff]  }
  0x14   : > { %3038 = vmatprep.subr.bf16.mxu0 %v3643_v8  ;;  %v3650_v15 = vld [vmem:[%s5053_s1 + $0x98] sm:$0xff]   ;;  %v3654_v19 = vld [vmem:[%s5053_s1 + $0xa0] sm:$0xff]   ;;  %v3658_v23 = vld [vmem:[%s5053_s1 + $0xa8] sm:$0xff]  }
  0x15   : > { %3149 = vmatpush3.bf16.msra.mxu1 %v3642_v7  ;;  %v3659_v24 = vld [vmem:[%s5053_s1 + $0x70] sm:$0xff]   ;;  %v3663_v28 = vld [vmem:[%s5053_s1 + $0x78] sm:$0xff]   ;;  %v3885_v31 = vld [vmem:[%s3876_s10] sm:$0xf] }
  0x16   : > { %3150 = vmatprep.subr.bf16.mxu1 %v3645_v10  ;;  %v3660_v25 = vld [vmem:[%s5053_s1 + $0x30] sm:$0xff]   ;;  %v3664_v29 = vld [vmem:[%s5053_s1 + $0x38] sm:$0xff]   ;;  %v3888_v32 = vld [vmem:[%s3876_s10 + $0x4] sm:$0xf]  ;;  %v284_v34 = vshrl.u32 %v3885_v31, 16  ;;  %v287_v35 = vshll.u32 %v3885_v31, 16 }
  0x17   : > { %3039 = vmatpush3.bf16.msra.mxu0 %v3644_v9  ;;  %v3661_v26 = vld [vmem:[%s5053_s1 + $0xf0] sm:$0xff]   ;;  %v3665_v30 = vld [vmem:[%s5053_s1 + $0xf8] sm:$0xff]   ;;  %v228_v33 = vld [vmem:[%s3876_s10 + $0x8] sm:$0x1]  ;;  %v293_v36 = vshll.u32 %v3888_v32, 16  ;;  %v297_v37 = vshrl.u32 %v3888_v32, 16  ;;  %v2895_v48 = vcombine.low %v3885_v31, %v3888_v32 }
  0x18   : > { %3040 = vmatprep.subr.bf16.mxu0 %v3647_v12  ;;  %v3662_v27 = vld [vmem:[%s5053_s1 + $0xb0] sm:$0xff]   ;;  %v303_v38 = vshll.u32 %v228_v33, 16  ;;  %v286_v39 = vrot.slane %v284_v34, 4  ;;  %v289_v40 = vrot.slane %v287_v35, 5  ;;  %v3666_v41 = vld [vmem:[%s5053_s1 + $0xb8] sm:$0xff]   ;;  %v3668_v42 = vld [vmem:[%s5053_s1 + $0x140] sm:$0xff]  }
  0x19   : > { %3151 = vmatpush3.bf16.msra.mxu1 %v3646_v11  ;;  %v295_v43 = vrot.slane %v293_v36, 5  ;;  %v299_v44 = vrot.slane %v297_v37, 4  ;;  %v723_v46 = vrot.slane %v228_v33, 5  ;;  %v3904_v49 = vld [vmem:[%s3876_s10 + $0xc] sm:$0xf]  ;;  %vm3909_vm4 = vmor %vm280_vm1, %vm281_vm2  ;;  %v2877_v60 = vrot.slane %v3885_v31, 9 }
  0x1a   : > { %3152 = vmatprep.subr.bf16.mxu1 %v3649_v14  ;;  %v305_v45 = vrot.slane %v303_v38, 5  ;;  %v290_v47 = vor.u32 %v289_v40, %v286_v39  ;;  %v230_v50 = vld [vmem:[%s3876_s10 + $0x10] sm:$0xf]  ;;  %v308_v53 = vshrl.u32 %v3904_v49, 16  ;;  %v311_v54 = vshll.u32 %v3904_v49, 16  ;;  %vm3920_vm5 = vmor %vm715_vm0, %vm716_vm3  ;;  %v3670_v8 = vld [vmem:[%s5053_s1 + $0x100] sm:$0xff]  }
  0x1b   : > { %3041 = vmatpush3.bf16.msra.mxu0 %v3648_v13  ;;  %v300_v52 = vor.u32 %v299_v44, %v295_v43  ;;  %v317_v55 = vshll.u32 %v230_v50, 16  ;;  %v321_v57 = vshrl.u32 %v230_v50, 16  ;;  %v3916_v58 = vcombine.low %v3904_v49, %v230_v50  ;;  %v231_v1 = vld [vmem:[%s3876_s10 + $0x14] sm:$0x1]  ;;  %v3931_v6 = vld [vmem:[%s3876_s10 + $0x18] sm:$0xf] }
  0x1c   : > { %3042 = vmatprep.subr.bf16.mxu0 %v3651_v16  ;;  %v291_v56 = vrot.slane %v290_v47, 4  ;;  %v310_v62 = vrot.slane %v308_v53, 4  ;;  %v313_v63 = vrot.slane %v311_v54, 5  ;;  %v720_v0 = vrot.slane %v3888_v32, 5  ;;  %v3941_v12 = vld [vmem:[%s3876_s10 + $0x1c] sm:$0xf] }
  0x1d   : > { %3153 = vmatpush3.bf16.msra.mxu1 %v3650_v15  ;;  %v301_v61 = vrot.slane %v300_v52, 4  ;;  %v323_v3 = vrot.slane %v321_v57, 4  ;;  %1890 = vmatprep.mubr.bf16.mxu1 %v3916_v58  ;;  %v319_v4 = vrot.slane %v317_v55, 5  ;;  %v327_v5 = vshll.u32 %v231_v1, 16  ;;  %v3674_v32 = vld [vmem:[%s5053_s1 + $0x108] sm:$0xff]   ;;  %v3684_v38 = vld [vmem:[%s5053_s1 + $0x1c0] sm:$0xff]  }
  0x1e   : > { %3154 = vmatprep.subr.bf16.mxu1 %v3653_v18  ;;  %v296_v2 = vsel %vm3909_vm4, %v291_v56, %v295_v43  ;;  %v721_v9 = vsel %vm3920_vm5, %v2877_v60, %v720_v0  ;;  %v722_v10 = vrot.slane %v720_v0, 4  ;;  %v314_v11 = vor.u32 %v313_v63, %v310_v62  ;;  %v3971_v37 = vld [vmem:[%s3876_s10 + $0x28] sm:$0xf]  ;;  %v3676_v43 = vld [vmem:[%s5053_s1 + $0x150] sm:$0xff]   ;;  %v3680_v55 = vld [vmem:[%s5053_s1 + $0x158] sm:$0xff]  }
  0x1f   : > { %3043 = vmatpush3.bf16.msra.mxu0 %v3652_v17  ;;  %v306_v7 = vsel %vm3909_vm4, %v301_v61, %v305_v45  ;;  %v324_v14 = vor.u32 %v323_v3, %v319_v4  ;;  %v329_v15 = vrot.slane %v327_v5, 5  ;;  %v332_v16 = vshrl.u32 %v3931_v6, 16  ;;  %v4008_v62 = vld [vmem:[%s3876_s10 + $0x2c] sm:$0x1]  ;;  %v4011_v63 = vld [vmem:[%s3876_s10 + $0x30] sm:$0xf] }
  0x20   : > { %3044 = vmatprep.subr.bf16.mxu0 %v3655_v20  ;;  %v2911_v13 = vcombine.low %v296_v2, %v306_v7  ;;  %v724_v17 = vsel %vm3920_vm5, %v722_v10, %v723_v46  ;;  %v315_v18 = vrot.slane %v314_v11, 4  ;;  %v345_v20 = vshrl.u32 %v3941_v12, 16 }
  0x21   : > { %3155 = vmatpush3.bf16.msra.mxu1 %v3654_v19  ;;  %v335_v19 = vshll.u32 %v3931_v6, 16  ;;  %v334_v31 = vrot.slane %v332_v16, 4  ;;  %v341_v35 = vshll.u32 %v3941_v12, 16  ;;  %v369_v53 = vshrl.u32 %v3971_v37, 16  ;;  %v4031_v16 = vld [vmem:[%s3876_s10 + $0x38] sm:$0x1] }
  0x22   : > { %3156 = vmatprep.subr.bf16.mxu1 %v3657_v22  ;;  %v3672_v22 = vld [vmem:[%s5053_s1 + $0x148] sm:$0xff]   ;;  %1729 = vmatprep.mubr.bf16.mxu0 %v2911_v13  ;;  %v347_v36 = vrot.slane %v345_v20, 4  ;;  %v2879_v61 = vrot.slane %v3931_v6, 9  ;;  %v734_v0 = vrot.slane %v3941_v12, 5  ;;  %v375_v11 = vshll.u32 %v4008_v62, 16 }
  0x23   : > { %3045 = vmatpush3.bf16.msra.mxu0 %v3656_v21  ;;  %v3949_v21 = vld [vmem:[%s3876_s10 + $0x20] sm:$0x1]  ;;  %v337_v34 = vrot.slane %v335_v19, 5  ;;  %v343_v45 = vrot.slane %v341_v35, 5  ;;  %v371_v7 = vrot.slane %v369_v53, 4 }
  0x24   : > { %3046 = vmatprep.subr.bf16.mxu0 %v3659_v24  ;;  %v325_v24 = vrot.slane %v324_v14, 4  ;;  %v3688_v35 = vld [vmem:[%s5053_s1 + $0x120] sm:$0xff]  }
  0x25   : > { %3157 = vmatpush3.bf16.msra.mxu1 %v3658_v23  ;;  %v2927_v23 = vcombine.low %v721_v9, %v724_v17  ;;  %v338_v44 = vor.u32 %v337_v34, %v334_v31  ;;  %v348_v60 = vor.u32 %v347_v36, %v343_v45  ;;  %v736_v9 = vrot.slane %v734_v0, 4  ;;  %v3682_v17 = vld [vmem:[%s5053_s1 + $0x118] sm:$0xff]   ;;  %v4060_v34 = vld [vmem:[%s3876_s10 + $0x40] sm:$0xf]  ;;  %v3691_v36 = vld [vmem:[%s5053_s1 + $0x188] sm:$0xff]  }
  0x26   : > { %3158 = vmatprep.subr.bf16.mxu1 %v3661_v26  ;;  %v2878_v26 = vrot.slane %v3904_v49, 9  ;;  %v330_v33 = vsel %vm3909_vm4, %v325_v24, %v329_v15  ;;  %v3685_v49 = vld [vmem:[%s5053_s1 + $0x180] sm:$0xff]   ;;  %v380_v15 = vshrl.u32 %v4011_v63, 16 }
  0x27   : > { %3047 = vmatpush3.bf16.msra.mxu0 %v3660_v25  ;;  %v3956_v25 = vcombine.low %v3931_v6, %v3941_v12  ;;  %v339_v57 = vrot.slane %v338_v44, 4  ;;  %v349_v5 = vrot.slane %v348_v60, 4  ;;  %v365_v6 = vshll.u32 %v3971_v37, 16  ;;  %v4023_v12 = vld [vmem:[%s3876_s10 + $0x34] sm:$0xf] }
  0x28   : > { %3048 = vmatprep.subr.bf16.mxu0 %v3663_v28  ;;  %v320_v28 = vsel %vm3909_vm4, %v315_v18, %v319_v4  ;;  %v399_v44 = vshll.u32 %v4031_v16, 16  ;;  %v4090_v60 = vld [vmem:[%s3876_s10 + $0x48] sm:$0xf] }
  0x29   : > { %3159 = vmatpush3.bf16.msra.mxu1 %v3662_v27  ;;  %v3960_v27 = vld [vmem:[%s3876_s10 + $0x24] sm:$0xf]  ;;  %v3976_v39 = vcombine.low %v320_v28, %v330_v33  ;;  %v344_v4 = vsel %vm3909_vm4, %v339_v57, %v343_v45  ;;  %v367_v14 = vrot.slane %v365_v6, 5  ;;  %v393_v28 = vshrl.u32 %v4023_v12, 16 }
  0x2a   : > { %3160 = vmatprep.subr.bf16.mxu1 %v3665_v30  ;;  %v730_v30 = vrot.slane %v231_v1, 5  ;;  %v356_v46 = vshrl.u32 %v3960_v27, 16  ;;  %v359_v47 = vshll.u32 %v3960_v27, 16  ;;  %v3999_v54 = vcombine.low %v3960_v27, %v3971_v37  ;;  %v4087_v57 = vld [vmem:[%s3876_s10 + $0x44] sm:$0x1] }
  0x2b   : > { %3049 = vmatpush3.bf16.msra.mxu0 %v3664_v29  ;;  %v727_v29 = vrot.slane %v230_v50, 5  ;;  %v737_v1 = vrot.slane %v3949_v21, 5  ;;  %v372_v24 = vor.u32 %v371_v7, %v367_v14  ;;  %v2880_v31 = vrot.slane %v3960_v27, 9 }
  0x2c   : > { %3258 = vmatprep.subr.bf16.mxu0 %v3668_v42  ;;  %v351_v42 = vshll.u32 %v3949_v21, 16  ;;  %v358_v2 = vrot.slane %v356_v46, 4  ;;  %v361_v3 = vrot.slane %v359_v47, 5  ;;  %v4042_v21 = vld [vmem:[%s3876_s10 + $0x3c] sm:$0xf]  ;;  %v744_v33 = vrot.slane %v4008_v62, 5 }
  0x2d   : > { %3161 = vmatpush3.bf16.msra.mxu1 %v3666_v41  ;;  %v728_v40 = vsel %vm3920_vm5, %v2878_v26, %v727_v29  ;;  %v729_v41 = vrot.slane %v727_v29, 4  ;;  %v738_v19 = vsel %vm3920_vm5, %v736_v9, %v737_v1  ;;  %v377_v26 = vrot.slane %v375_v11, 5  ;;  %v3690_v29 = vld [vmem:[%s5053_s1 + $0x1c8] sm:$0xff]  }
  0x2e   : > { %1730 = vmatmul.mubr.bf16.vlgmr.msra.gmra.mrb[0].mxu0 %v2895_v48  ;;  %v3678_v48 = vld [vmem:[%s5053_s1 + $0x110] sm:$0xff]   ;;  %3370 = vmatprep.subr.bf16.mxu1 %v3684_v38  ;;  %v353_v52 = vrot.slane %v351_v42, 5  ;;  %v362_v10 = vor.u32 %v361_v3, %v358_v2  ;;  %v373_v38 = vrot.slane %v372_v24, 4  ;;  %v389_v42 = vshll.u32 %v4023_v12, 16 }
  0x2f   : > { %3259 = vmatpush3.bf16.msra.mxu0 %v3670_v8  ;;  %1737 = vmatprep.mubr.bf16.mxu0 %v3976_v39  ;;  %v731_v50 = vsel %vm3920_vm5, %v729_v41, %v730_v30  ;;  %v735_v8 = vsel %vm3920_vm5, %v2879_v61, %v734_v0  ;;  %v4071_v27 = vcombine.low %v4011_v63, %v4023_v12  ;;  %v401_v53 = vrot.slane %v399_v44, 5 }
  0x30   : > { %1891 = vmatmul.mubr.bf16.vlgmr.msra.gmra.mrb[0].mxu1 %v2927_v23  ;;  %3260 = vmatprep.subr.bf16.mxu0 %v3672_v22  ;;  %v4004_v56 = vcombine.low %v728_v40, %v731_v50  ;;  %v354_v13 = vsel %vm3909_vm4, %v349_v5, %v353_v52  ;;  %v363_v20 = vrot.slane %v362_v10, 4  ;;  %v3686_v22 = vld [vmem:[%s5053_s1 + $0x160] sm:$0xff]   ;;  %v4047_v23 = vcombine.low %v735_v8, %v738_v19  ;;  %v3694_v5 = vld [vmem:[%s5053_s1 + $0x128] sm:$0xff]  }
  0x31   : > { %1898 = vmatprep.mubr.bf16.mxu1 %v3956_v25  ;;  %3371 = vmatpush3.bf16.msra.mxu1 %v3685_v49  ;;  %v4036_v18 = vcombine.low %v344_v4, %v354_v13  ;;  %v382_v40 = vrot.slane %v380_v15, 4  ;;  %v378_v45 = vsel %vm3909_vm4, %v373_v38, %v377_v26  ;;  %v391_v47 = vrot.slane %v389_v42, 5  ;;  %v3692_v49 = vld [vmem:[%s5053_s1 + $0x168] sm:$0xff]   ;;  %v3697_v15 = vld [vmem:[%s5053_s1 + $0x190] sm:$0xff]  }
  0x32   : > { %v368_v30 = vsel %vm3909_vm4, %v363_v20, %v367_v14  ;;  %3372 = vmatprep.subr.bf16.mxu1 %v3690_v29  ;;  %v417_v1 = vshrl.u32 %v4060_v34, 16  ;;  %v2881_v2 = vrot.slane %v4011_v63, 9  ;;  %v748_v3 = vrot.slane %v4023_v12, 5  ;;  %v4107_v10 = vld [vmem:[%s3876_s10 + $0x4c] sm:$0xf] }
  0x33   : > { %3261 = vmatpush3.bf16.msra.mxu0 %v3674_v32  ;;  %v741_v32 = vrot.slane %v3971_v37, 5  ;;  %v4081_v50 = vcombine.low %v368_v30, %v378_v45  ;;  %v751_v4 = vrot.slane %v4031_v16, 5  ;;  %v413_v13 = vshll.u32 %v4060_v34, 16  ;;  %v3698_v30 = vld [vmem:[%s5053_s1 + $0x170] sm:$0xff]  }
  0x34   : > { %3262 = vmatprep.subr.bf16.mxu0 %v3676_v43  ;;  %v395_v43 = vrot.slane %v393_v28, 4  ;;  %v750_v12 = vrot.slane %v748_v3, 4  ;;  %v419_v14 = vrot.slane %v417_v1, 4  ;;  %v428_v19 = vshrl.u32 %v4090_v60, 16  ;;  %v4172_v1 = vld [vmem:[%s3876_s10 + $0x5c] sm:$0x1] }
  0x35   : > { %v743_v37 = vrot.slane %v741_v32, 4  ;;  %3373 = vmatpush3.bf16.msra.mxu1 %v3691_v36  ;;  %v742_v52 = vsel %vm3920_vm5, %v2880_v31, %v741_v32  ;;  %v415_v24 = vrot.slane %v413_v13, 5  ;;  %v431_v26 = vshll.u32 %v4090_v60, 16  ;;  %v4140_v36 = vld [vmem:[%s3876_s10 + $0x54] sm:$0xf] }
  0x36   : > { %1738 = vmatmul.mubr.bf16.gmra.mrb[4].mxu0 %v3916_v58  ;;  %v383_v58 = vshll.u32 %v4011_v63, 16  ;;  %v396_v0 = vor.u32 %v395_v43, %v391_v47  ;;  %v3696_v63 = vld [vmem:[%s5053_s1 + $0x1d0] sm:$0xff]   ;;  %v441_v29 = vshrl.u32 %v4107_v10, 16  ;;  %v749_v31 = vsel %vm3920_vm5, %v2881_v2, %v748_v3 }
  0x37   : > { %3263 = vmatpush3.bf16.msra.mxu0 %v3678_v48  ;;  %1745 = vmatprep.mubr.bf16.mxu0 %v4036_v18  ;;  %v404_v48 = vshrl.u32 %v4042_v21, 16  ;;  %v745_v61 = vsel %vm3920_vm5, %v743_v37, %v744_v33  ;;  %v420_v32 = vor.u32 %v419_v14, %v415_v24  ;;  %v752_v38 = vsel %vm3920_vm5, %v750_v12, %v751_v4  ;;  %v4148_v37 = vld [vmem:[%s3876_s10 + $0x58] sm:$0xf]  ;;  %v3700_v43 = vld [vmem:[%s5053_s1 + $0x130] sm:$0xff]  }
  0x38   : > { %1899 = vmatmul.mubr.bf16.gmra.mrb[4].mxu1 %v4004_v56  ;;  %3264 = vmatprep.subr.bf16.mxu0 %v3680_v55  ;;  %v385_v41 = vrot.slane %v383_v58, 5  ;;  %v407_v55 = vshll.u32 %v4042_v21, 16  ;;  %v397_v7 = vrot.slane %v396_v0, 4  ;;  %v4112_v11 = vcombine.low %v742_v52, %v745_v61 }
  0x39   : > { %1906 = vmatprep.mubr.bf16.mxu1 %v3999_v54  ;;  %v406_v8 = vrot.slane %v404_v48, 4  ;;  %3374 = vmatprep.subr.bf16.mxu1 %v3696_v63  ;;  %v433_v42 = vrot.slane %v431_v26, 5  ;;  %v421_v45 = vrot.slane %v420_v32, 4  ;;  %v455_v0 = vshll.u32 %v4140_v36, 16  ;;  %v4183_v63 = vld [vmem:[%s3876_s10 + $0x60] sm:$0xf] }
  0x3a   : > { %v386_v46 = vor.u32 %v385_v41, %v382_v40  ;;  %v409_v9 = vrot.slane %v407_v55, 5  ;;  %v402_v58 = vsel %vm3909_vm4, %v397_v7, %v401_v53  ;;  %3375 = vmatpush3.bf16.msra.mxu1 %v3697_v15  ;;  %v755_v40 = vrot.slane %v4060_v34, 5  ;;  %v3703_v55 = vld [vmem:[%s5053_s1 + $0x198] sm:$0xff]   ;;  %v4189_v15 = vld [vmem:[%s3876_s10 + $0x64] sm:$0xf] }
  0x3b   : > { %3265 = vmatpush3.bf16.msra.mxu0 %v3682_v17  ;;  %v423_v17 = vshll.u32 %v4087_v57, 16  ;;  %v430_v41 = vrot.slane %v428_v19, 4  ;;  %v452_v53 = vshrl.u32 %v4140_v36, 16  ;;  %v758_v4 = vrot.slane %v4087_v57, 5  ;;  %v3704_v57 = vld [vmem:[%s5053_s1 + $0x178] sm:$0xff]  }
  0x3c   : > { %3266 = vmatprep.subr.bf16.mxu0 %v3686_v22  ;;  %v387_v62 = vrot.slane %v386_v46, 4  ;;  %v410_v16 = vor.u32 %v409_v9, %v406_v8  ;;  %v4126_v22 = vcombine.low %v4042_v21, %v4060_v34  ;;  %v2882_v46 = vrot.slane %v4042_v21, 9  ;;  %v3702_v34 = vld [vmem:[%s5053_s1 + $0x1d8] sm:$0xff]  }
  0x3d   : > { %v425_v33 = vrot.slane %v423_v17, 5  ;;  %v434_v48 = vor.u32 %v433_v42, %v430_v41  ;;  %v4166_v21 = vcombine.low %v749_v31, %v752_v38  ;;  %3376 = vmatprep.subr.bf16.mxu1 %v3702_v34  ;;  %v757_v3 = vrot.slane %v755_v40, 4 }
  0x3e   : > { %1746 = vmatmul.mubr.bf16.gmra.mrb[8].mxu0 %v3956_v25  ;;  %v392_v6 = vsel %vm3909_vm4, %v387_v62, %v391_v47  ;;  %v411_v28 = vrot.slane %v410_v16, 4  ;;  %v437_v47 = vshll.u32 %v4107_v10, 16  ;;  %3377 = vmatpush3.bf16.msra.mxu1 %v3703_v55  ;;  %v465_v9 = vshrl.u32 %v4148_v37, 16 }
  0x3f   : > { %3267 = vmatpush3.bf16.msra.mxu0 %v3688_v35  ;;  %1753 = vmatprep.mubr.bf16.mxu0 %v4081_v50  ;;  %v4122_v20 = vcombine.low %v392_v6, %v402_v58  ;;  %v4137_v35 = vld [vmem:[%s3876_s10 + $0x50] sm:$0x1]  ;;  %v426_v61 = vsel %vm3909_vm4, %v421_v45, %v425_v33  ;;  %v4179_v6 = vcombine.low %v4090_v60, %v4107_v10  ;;  %v762_v13 = vrot.slane %v4107_v10, 5  ;;  %v3707_v45 = vld [vmem:[%s5053_s1 + $0x1e0] sm:$0xff]  }
  0x40   : > { %1907 = vmatmul.mubr.bf16.gmra.mrb[8].mxu1 %v4047_v23  ;;  %3268 = vmatprep.subr.bf16.mxu0 %v3692_v49  ;;  %v416_v44 = vsel %vm3909_vm4, %v411_v28, %v415_v24  ;;  %v443_v49 = vrot.slane %v441_v29, 4  ;;  %v447_v52 = vshll.u32 %v4137_v35, 16  ;;  %v439_v62 = vrot.slane %v437_v47, 5  ;;  %v3706_v29 = vld [vmem:[%s5053_s1 + $0x138] sm:$0xff]  }
  0x41   : > { %1914 = vmatprep.mubr.bf16.mxu1 %v4071_v27  ;;  %v4174_v2 = vcombine.low %v416_v44, %v426_v61  ;;  %v756_v12 = vsel %vm3920_vm5, %v2882_v46, %v755_v40  ;;  %v454_v14 = vrot.slane %v452_v53, 4  ;;  %v457_v16 = vrot.slane %v455_v0, 5  ;;  %3378 = vmatprep.subr.bf16.mxu1 %v3707_v45  ;;  %v3708_v61 = vld [vmem:[%s5053_s1 + $0x1a0] sm:$0xff]   ;;  %v4290_v45 = vld [vmem:[%s3876_s10 + $0x7c] sm:$0xf] }
  0x42   : > { %v444_v7 = vor.u32 %v443_v49, %v439_v62  ;;  %v449_v8 = vrot.slane %v447_v52, 5  ;;  %v461_v17 = vshll.u32 %v4148_v37, 16  ;;  %v467_v19 = vrot.slane %v465_v9, 4  ;;  %v4229_v52 = vld [vmem:[%s3876_s10 + $0x68] sm:$0x1]  ;;  %3379 = vmatpush3.bf16.msra.mxu1 %v3708_v61 }
  0x43   : > { %3269 = vmatpush3.bf16.msra.mxu0 %v3694_v5  ;;  %v435_v5 = vrot.slane %v434_v48, 4  ;;  %v759_v10 = vsel %vm3920_vm5, %v757_v3, %v758_v4  ;;  %v471_v26 = vshll.u32 %v4172_v1, 16  ;;  %v476_v28 = vshrl.u32 %v4183_v63, 16  ;;  %v4240_v4 = vld [vmem:[%s3876_s10 + $0x70] sm:$0xf] }
  0x44   : > { %3270 = vmatprep.subr.bf16.mxu0 %v3698_v30  ;;  %v445_v58 = vrot.slane %v444_v7, 4  ;;  %v458_v31 = vor.u32 %v457_v16, %v454_v14  ;;  %v463_v32 = vrot.slane %v461_v17, 5  ;;  %v479_v33 = vshll.u32 %v4183_v63, 16 }
  0x45   : > { %v440_v24 = vsel %vm3909_vm4, %v435_v5, %v439_v62  ;;  %v2883_v38 = vrot.slane %v4090_v60, 9  ;;  %v764_v40 = vrot.slane %v762_v13, 4  ;;  %v765_v41 = vrot.slane %v4137_v35, 5  ;;  %v4222_v60 = vld [vmem:[%s3876_s10 + $0x6c] sm:$0xf] }
  0x46   : > { %1754 = vmatmul.mubr.bf16.gmra.mrb[12].mxu0 %v3999_v54  ;;  %v450_v30 = vsel %vm3909_vm4, %v445_v58, %v449_v8  ;;  %v489_v42 = vshrl.u32 %v4189_v15, 16  ;;  %v468_v44 = vor.u32 %v467_v19, %v463_v32  ;;  %v4217_v46 = vcombine.low %v756_v12, %v759_v10  ;;  %v3709_v5 = vld [vmem:[%s5053_s1 + $0x1e8] sm:$0xff]  }
  0x47   : > { %1761 = vmatprep.mubr.bf16.mxu0 %v4122_v20  ;;  %3271 = vmatpush3.bf16.msra.mxu0 %v3700_v43  ;;  %v459_v43 = vrot.slane %v458_v31, 4  ;;  %v4219_v47 = vcombine.low %v440_v24, %v450_v30  ;;  %v473_v34 = vrot.slane %v471_v26, 5  ;;  %v478_v48 = vrot.slane %v476_v28, 4  ;;  %v3710_v24 = vld [vmem:[%s5053_s1 + $0x1a8] sm:$0xff]  }
  0x48   : > { %1915 = vmatmul.mubr.bf16.gmra.mrb[12].mxu1 %v4112_v11  ;;  %3272 = vmatprep.subr.bf16.mxu0 %v3704_v57  ;;  %v4226_v35 = vcombine.low %v4140_v36, %v4148_v37  ;;  %v469_v49 = vrot.slane %v468_v44, 4  ;;  %v481_v53 = vrot.slane %v479_v33, 5  ;;  %v485_v55 = vshll.u32 %v4189_v15, 16 }
  0x49   : > { %1922 = vmatprep.mubr.bf16.mxu1 %v4126_v22  ;;  %v763_v62 = vsel %vm3920_vm5, %v2883_v38, %v762_v13  ;;  %v766_v0 = vsel %vm3920_vm5, %v764_v40, %v765_v41  ;;  %v491_v3 = vrot.slane %v489_v42, 4  ;;  %v464_v7 = vsel %vm3909_vm4, %v459_v43, %v463_v32  ;;  %3380 = vmatprep.subr.bf16.mxu1 %v3709_v5  ;;  %v4274_v32 = vld [vmem:[%s3876_s10 + $0x78] sm:$0xf]  ;;  %v3713_v43 = vld [vmem:[%s5053_s1 + $0x1b0] sm:$0xff]  }
  0x4a   : > { %v769_v8 = vrot.slane %v4148_v37, 5  ;;  %v4249_v9 = vrot.slane %v485_v55, 5  ;;  %v500_v12 = vshrl.u32 %v4222_v60, 16  ;;  %v474_v13 = vsel %vm3909_vm4, %v469_v49, %v473_v34  ;;  %3381 = vmatpush3.bf16.msra.mxu1 %v3710_v24  ;;  %v3714_v55 = vld [vmem:[%s5053_s1 + $0x1f8] sm:$0xff]  }
  0x4b   : > { %3273 = vmatpush3.bf16.msra.mxu0 %v3706_v29  ;;  %v482_v14 = vor.u32 %v481_v53, %v478_v48  ;;  %v495_v57 = vshll.u32 %v4229_v52, 16  ;;  %v503_v58 = vshll.u32 %v4222_v60, 16  ;;  %v513_v16 = vshrl.u32 %v4240_v4, 16  ;;  %v4271_v29 = vld [vmem:[%s3876_s10 + $0x74] sm:$0x1] }
  0x4c   : > { %v492_v37 = vor.u32 %v491_v3, %v4249_v9  ;;  %v4261_v17 = vcombine.low %v763_v62, %v766_v0  ;;  %v2884_v19 = vrot.slane %v4140_v36, 9  ;;  %v772_v10 = vrot.slane %v4172_v1, 5  ;;  %v3712_v36 = vld [vmem:[%s5053_s1 + $0x1f0] sm:$0xff]  }
  0x4d   : > { %v4268_v26 = vcombine.low %v464_v7, %v474_v13  ;;  %v771_v28 = vrot.slane %v769_v8, 4  ;;  %v502_v30 = vrot.slane %v500_v12, 4  ;;  %v505_v31 = vrot.slane %v503_v58, 5  ;;  %3382 = vmatprep.subr.bf16.mxu1 %v3712_v36 }
  0x4e   : > { %1762 = vmatmul.mubr.bf16.gmra.mrb[16].mxu0 %v4071_v27  ;;  %v483_v33 = vrot.slane %v482_v14, 4  ;;  %v497_v1 = vrot.slane %v495_v57, 5  ;;  %v509_v38 = vshll.u32 %v4240_v4, 16  ;;  %v515_v40 = vrot.slane %v513_v16, 4  ;;  %3383 = vmatpush3.bf16.msra.mxu1 %v3713_v43 }
  0x4f   : > { %1769 = vmatprep.mubr.bf16.mxu0 %v4174_v2  ;;  %v4282_v41 = vcombine.low %v4183_v63, %v4189_v15  ;;  %v493_v42 = vrot.slane %v492_v37, 4  ;;  %v776_v34 = vrot.slane %v4189_v15, 5  ;;  %v506_v48 = vor.u32 %v505_v31, %v502_v30  ;;  %3384 = vmatprep.subr.bf16.mxu1 %v3714_v55  ;;  %v4326_v37 = vld [vmem:[%s3876_s10 + $0x80] sm:$0x1] }
  0x50   : > { %1923 = vmatmul.mubr.bf16.gmra.mrb[16].mxu1 %v4166_v21  ;;  %v4287_v44 = vrot.slane %v509_v38, 5  ;;  %v524_v49 = vshrl.u32 %v4274_v32, 16  ;;  %v527_v53 = vshll.u32 %v4274_v32, 16  ;;  %v770_v61 = vsel %vm3920_vm5, %v2884_v19, %v769_v8  ;;  %v3715_v8 = vld [vmem:[%s5053_s1 + $0x1b8] sm:$0xff]  }
  0x51   : > { %1930 = vmatprep.mubr.bf16.mxu1 %v4179_v6  ;;  %v519_v15 = vshll.u32 %v4271_v29, 16  ;;  %v773_v0 = vsel %vm3920_vm5, %v771_v28, %v772_v10  ;;  %v488_v3 = vsel %vm3909_vm4, %v483_v33, %v4249_v9  ;;  %v498_v5 = vsel %vm3909_vm4, %v493_v42, %v497_v1  ;;  %v4323_v9 = vld [vmem:[%s5053_s1 + $0x200] sm:$0xff]   ;;  %v4341_v33 = vld [vmem:[%s3876_s10 + $0x88] sm:$0xf] }
  0x52   : > { %v516_v62 = vor.u32 %v515_v40, %v4287_v44  ;;  %v537_v7 = vshrl.u32 %v4290_v45, 16  ;;  %v2885_v12 = vrot.slane %v4183_v63, 9  ;;  %v779_v13 = vrot.slane %v4229_v52, 5  ;;  %v4329_v10 = vld [vmem:[%s3876_s10 + $0x84] sm:$0xf]  ;;  %3530 = vmatprep.subr.bf16.mxu0 %v4323_v9  ;;  %3385 = vmatpush3.bf16.msra.mxu1 %v3715_v8 }
  0x53   : > { %v533_v14 = vshll.u32 %v4290_v45, 16  ;;  %v778_v57 = vrot.slane %v776_v34, 4  ;;  %v507_v58 = vrot.slane %v506_v48, 4  ;;  %v526_v16 = vrot.slane %v524_v49, 4 }
  0x54   : > { %v529_v19 = vrot.slane %v527_v53, 5  ;;  %v4331_v63 = vcombine.low %v770_v61, %v773_v0  ;;  %v4333_v52 = vcombine.low %v488_v3, %v498_v5  ;;  %v517_v24 = vrot.slane %v516_v62, 4 }
  0x55   : > { %v521_v28 = vrot.slane %v519_v15, 5  ;;  %v4338_v30 = vcombine.low %v4222_v60, %v4240_v4  ;;  %v535_v31 = vrot.slane %v533_v14, 5  ;;  %v539_v36 = vrot.slane %v537_v7, 4  ;;  %v4365_v15 = vld [vmem:[%s3876_s10 + $0x8c] sm:$0x1] }
  0x56   : > { %1770 = vmatmul.mubr.bf16.gmra.mrb[20].mxu0 %v4126_v22  ;;  %v777_v1 = vsel %vm3920_vm5, %v2885_v12, %v776_v34  ;;  %v780_v38 = vsel %vm3920_vm5, %v778_v57, %v779_v13  ;;  %v783_v40 = vrot.slane %v4240_v4, 5  ;;  %v530_v42 = vor.u32 %v529_v19, %v526_v16  ;;  %v4370_v7 = vld [vmem:[%s3876_s10 + $0x90] sm:$0xf]  ;;  %v4379_v16 = vld [vmem:[%s3876_s10 + $0x94] sm:$0xf] }
  0x57   : > { %1777 = vmatprep.mubr.bf16.mxu0 %v4219_v47  ;;  %5077 = vst [vmem:[#allocation2_spill] sm:$0xff] %v4338_v30  ;;  %v512_v43 = vsel %vm3909_vm4, %v507_v58, %v4287_v44  ;;  %v543_v48 = vshll.u32 %v4326_v37, 16  ;;  %v548_v34 = vshrl.u32 %v4329_v10, 16  ;;  %v551_v49 = vshll.u32 %v4329_v10, 16 }
  0x58   : > { %1931 = vmatmul.mubr.bf16.gmra.mrb[20].mxu1 %v4217_v46  ;;  %v522_v4 = vsel %vm3909_vm4, %v517_v24, %v521_v28  ;;  %v540_v53 = vor.u32 %v539_v36, %v535_v31  ;;  %v561_v55 = vshrl.u32 %v4341_v33, 16  ;;  %v557_v61 = vshll.u32 %v4341_v33, 16 }
  0x59   : > { %1938 = vmatprep.mubr.bf16.mxu1 %v4226_v35  ;;  %v2886_v62 = vrot.slane %v4222_v60, 9  ;;  %v786_v44 = vrot.slane %v4271_v29, 5  ;;  %v4367_v0 = vcombine.low %v777_v1, %v780_v38  ;;  %v785_v3 = vrot.slane %v783_v40, 4 }
  0x5a   : > { %v531_v5 = vrot.slane %v530_v42, 4  ;;  %v4372_v8 = vcombine.low %v512_v43, %v522_v4  ;;  %v4376_v12 = vcombine.low %v4274_v32, %v4290_v45  ;;  %v550_v13 = vrot.slane %v548_v34, 4  ;;  %v4402_v4 = vld [vmem:[%s3876_s10 + $0x9c] sm:$0xf] }
  0x5b   : > { %v553_v14 = vrot.slane %v551_v49, 5  ;;  %v541_v57 = vrot.slane %v540_v53, 4  ;;  %v545_v60 = vrot.slane %v543_v48, 5  ;;  %v559_v58 = vrot.slane %v557_v61, 5 }
  0x5c   : > { %5078 = vst [vmem:[#allocation3_spill] sm:$0xff] %v4372_v8  ;;  %v563_v29 = vrot.slane %v561_v55, 4  ;;  %v784_v19 = vsel %vm3920_vm5, %v2886_v62, %v783_v40  ;;  %v787_v24 = vsel %vm3920_vm5, %v785_v3, %v786_v44  ;;  %v790_v28 = vrot.slane %v4290_v45, 5  ;;  %v4411_v62 = vld [vmem:[%s3876_s10 + $0x98] sm:$0x1] }
  0x5d   : > { %v567_v36 = vshll.u32 %v4365_v15, 16  ;;  %v536_v1 = vsel %vm3909_vm4, %v531_v5, %v535_v31  ;;  %v554_v38 = vor.u32 %v553_v14, %v550_v13  ;;  %v572_v40 = vshrl.u32 %v4370_v7, 16  ;;  %v4414_v44 = vld [vmem:[%s3876_s10 + $0xa0] sm:$0xf] }
  0x5e   : > { %1778 = vmatmul.mubr.bf16.gmra.mrb[24].mxu0 %v4179_v6  ;;  %v575_v42 = vshll.u32 %v4370_v7, 16  ;;  %v546_v45 = vsel %vm3909_vm4, %v541_v57, %v545_v60  ;;  %v564_v43 = vor.u32 %v563_v29, %v559_v58  ;;  %v585_v48 = vshrl.u32 %v4379_v16, 16 }
  0x5f   : > { %1785 = vmatprep.mubr.bf16.mxu0 %v4268_v26  ;;  %v581_v34 = vshll.u32 %v4379_v16, 16  ;;  %v4399_v49 = vcombine.low %v784_v19, %v787_v24  ;;  %v4406_v31 = vcombine.low %v4329_v10, %v4341_v33  ;;  %v2887_v53 = vrot.slane %v4274_v32, 9 }
  0x60   : > { %1939 = vmatmul.mubr.bf16.gmra.mrb[24].mxu1 %v4261_v17  ;;  %v792_v55 = vrot.slane %v790_v28, 4  ;;  %v793_v61 = vrot.slane %v4326_v37, 5  ;;  %v4416_v3 = vcombine.low %v536_v1, %v546_v45  ;;  %v555_v5 = vrot.slane %v554_v38, 4 }
  0x61   : > { %1946 = vmatprep.mubr.bf16.mxu1 %v4282_v41  ;;  %5079 = vst [vmem:[#allocation4_spill] sm:$0xff] %v4399_v49  ;;  %v569_v13 = vrot.slane %v567_v36, 5  ;;  %v574_v14 = vrot.slane %v572_v40, 4  ;;  %v565_v57 = vrot.slane %v564_v43, 4  ;;  %v577_v60 = vrot.slane %v575_v42, 5 }
  0x62   : > { %5080 = vst [vmem:[#allocation5_spill] sm:$0xff] %v4416_v3  ;;  %v583_v29 = vrot.slane %v581_v34, 5  ;;  %v587_v19 = vrot.slane %v585_v48, 4  ;;  %v596_v24 = vshrl.u32 %v4402_v4, 16  ;;  %v599_v32 = vshll.u32 %v4402_v4, 16 }
  0x63   : > { %v791_v37 = vsel %vm3920_vm5, %v2887_v53, %v790_v28  ;;  %v797_v1 = vrot.slane %v4341_v33, 5  ;;  %v794_v36 = vsel %vm3920_vm5, %v792_v55, %v793_v61  ;;  %v591_v38 = vshll.u32 %v4411_v62, 16  ;;  %v4437_v48 = vld [vmem:[%s3876_s10 + $0xa4] sm:$0x1]  ;;  %v4440_v55 = vld [vmem:[%s3876_s10 + $0xa8] sm:$0xf] }
  0x64   : > { %v609_v40 = vshrl.u32 %v4414_v44, 16  ;;  %v605_v42 = vshll.u32 %v4414_v44, 16  ;;  %v560_v28 = vsel %vm3909_vm4, %v555_v5, %v559_v58  ;;  %v570_v33 = vsel %vm3909_vm4, %v565_v57, %v569_v13 }
  0x65   : > { %v578_v45 = vor.u32 %v577_v60, %v574_v14  ;;  %v588_v43 = vor.u32 %v587_v19, %v583_v29  ;;  %v598_v34 = vrot.slane %v596_v24, 4  ;;  %v601_v53 = vrot.slane %v599_v32, 5  ;;  %v4449_v14 = vld [vmem:[%s3876_s10 + $0xac] sm:$0xf] }
  0x66   : > { %1786 = vmatmul.mubr.bf16.gmra.mrb[28].mxu0 %v4226_v35  ;;  %v4442_v61 = vcombine.low %v791_v37, %v794_v36  ;;  %v4446_v58 = vcombine.low %v560_v28, %v570_v33  ;;  %v593_v5 = vrot.slane %v591_v38, 5  ;;  %v611_v13 = vrot.slane %v609_v40, 4 }
  0x67   : > { %1793 = vmatprep.mubr.bf16.mxu0 %v4333_v52  ;;  %v4453_v57 = vcombine.low %v4370_v7, %v4379_v16  ;;  %v579_v60 = vrot.slane %v578_v45, 4  ;;  %v589_v19 = vrot.slane %v588_v43, 4  ;;  %v804_v24 = vrot.slane %v4379_v16, 5  ;;  %v4476_v43 = vld [vmem:[%s3876_s10 + $0xb0] sm:$0x1] }
  0x68   : > { %1947 = vmatmul.mubr.bf16.gmra.mrb[28].mxu1 %v4331_v63  ;;  %5081 = vst [vmem:[#allocation6_spill] sm:$0xff] %v4446_v58  ;;  %v602_v32 = vor.u32 %v601_v53, %v598_v34  ;;  %v623_v38 = vshll.u32 %v4440_v55, 16  ;;  %v633_v28 = vshrl.u32 %v4449_v14, 16  ;;  %v629_v33 = vshll.u32 %v4449_v14, 16  ;;  %v4479_v53 = vld [vmem:[%s3876_s10 + $0xb4] sm:$0xf] }
  0x69   : > { %1954 = vmatprep.mubr.bf16.mxu1 %v4338_v30  ;;  %v584_v40 = vsel %vm3909_vm4, %v579_v60, %v583_v29 }
  0x6a   : > { %v625_v60 = vrot.slane %v623_v38, 5  ;;  %v644_v38 = vshrl.u32 %v4479_v53, 16 }
  0x6e   : > { %1794 = vmatmul.mubr.bf16.gmra.mrb[32].mxu0 %v4282_v41 }
  0x6f   : > { %1801 = vmatprep.mubr.bf16.mxu0 %v4372_v8  ;;  %v607_v8 = vrot.slane %v605_v42, 5  ;;  %v594_v42 = vsel %vm3909_vm4, %v589_v19, %v593_v5  ;;  %v4487_v19 = vcombine.low %v4402_v4, %v4414_v44 }
  0x70   : > { %1955 = vmatmul.mubr.bf16.gmra.mrb[32].mxu1 %v4367_v0  ;;  %v4483_v5 = vcombine.low %v584_v40, %v594_v42  ;;  %v647_v40 = vshll.u32 %v4479_v53, 16 }
  0x71   : > { %1962 = vmatprep.mubr.bf16.mxu1 %v4376_v12  ;;  %v612_v16 = vor.u32 %v611_v13, %v607_v8 }
  0x72   : > { %5082 = vst [vmem:[#allocation7_spill] sm:$0xff] %v4483_v5 }
  0x73   : > { %v613_v13 = vrot.slane %v612_v16, 4  ;;  %v639_v16 = vshll.u32 %v4476_v43, 16 }
  0x76   : > { %1802 = vmatmul.mubr.bf16.gmra.mrb[36].mxu0 %v4338_v30  ;;  %v800_v30 = vrot.slane %v4365_v15, 5  ;;  %v620_v15 = vshrl.u32 %v4440_v55, 16 }
  0x77   : > { %1809 = vmatprep.mubr.bf16.mxu0 %v4416_v3  ;;  %v2888_v3 = vrot.slane %v4329_v10, 9  ;;  %v615_v10 = vshll.u32 %v4437_v48, 16 }
  0x78   : > { %1963 = vmatmul.mubr.bf16.gmra.mrb[36].mxu1 %v4399_v49  ;;  %v799_v49 = vrot.slane %v797_v1, 4  ;;  %v622_v34 = vrot.slane %v620_v15, 4 }
  0x79   : > { %1970 = vmatprep.mubr.bf16.mxu1 %v4406_v31  ;;  %v798_v37 = vsel %vm3920_vm5, %v2888_v3, %v797_v1  ;;  %v2889_v3 = vrot.slane %v4370_v7, 9  ;;  %v806_v1 = vrot.slane %v804_v24, 4  ;;  %v617_v45 = vrot.slane %v615_v10, 5 }
  0x7a   : > { %v801_v36 = vsel %vm3920_vm5, %v799_v49, %v800_v30  ;;  %v807_v30 = vrot.slane %v4411_v62, 5  ;;  %v603_v49 = vrot.slane %v602_v32, 4  ;;  %v631_v7 = vrot.slane %v629_v33, 5  ;;  %v4490_v62 = vld [vmem:[%s3876_s10 + $0xb8] sm:$0xf] }
  0x7b   : > { %v4481_v29 = vcombine.low %v798_v37, %v801_v36  ;;  %v805_v32 = vsel %vm3920_vm5, %v2889_v3, %v804_v24  ;;  %v811_v37 = vrot.slane %v4414_v44, 5  ;;  %v626_v36 = vor.u32 %v625_v60, %v622_v34 }
  0x7c   : > { %v808_v10 = vsel %vm3920_vm5, %v806_v1, %v807_v30  ;;  %v608_v15 = vsel %vm3909_vm4, %v603_v49, %v607_v8  ;;  %v618_v24 = vsel %vm3909_vm4, %v613_v13, %v617_v45  ;;  %v657_v8 = vshrl.u32 %v4490_v62, 16 }
  0x7d   : > { %v653_v44 = vshll.u32 %v4490_v62, 16  ;;  %v4514_v33 = vcombine.low %v4440_v55, %v4449_v14  ;;  %v2890_v3 = vrot.slane %v4402_v4, 9  ;;  %v813_v1 = vrot.slane %v811_v37, 4 }
  0x7e   : > { %1810 = vmatmul.mubr.bf16.gmra.mrb[40].mxu0 %v4376_v12  ;;  %v814_v30 = vrot.slane %v4437_v48, 5  ;;  %v4518_v49 = vcombine.low %v608_v15, %v618_v24  ;;  %v627_v45 = vrot.slane %v626_v36, 4  ;;  %v649_v34 = vrot.slane %v647_v40, 5 }
  0x7f   : > { %1817 = vmatprep.mubr.bf16.mxu0 %v4446_v58  ;;  %v635_v58 = vrot.slane %v633_v28, 4  ;;  %v4510_v28 = vcombine.low %v805_v32, %v808_v10  ;;  %v641_v60 = vrot.slane %v639_v16, 5  ;;  %v659_v32 = vrot.slane %v657_v8, 4  ;;  %v4521_v10 = vld [vmem:[%s3876_s10 + $0xbc] sm:$0x1] }
  0x80   : > { %1971 = vmatmul.mubr.bf16.gmra.mrb[40].mxu1 %v4442_v61  ;;  %5083 = vst [vmem:[#allocation8_spill] sm:$0xff] %v4518_v49  ;;  %v812_v4 = vsel %vm3920_vm5, %v2890_v3, %v811_v37  ;;  %v815_v48 = vsel %vm3920_vm5, %v813_v1, %v814_v30  ;;  %v818_v15 = vrot.slane %v4449_v14, 5  ;;  %v632_v16 = vsel %vm3909_vm4, %v627_v45, %v631_v7  ;;  %v275_v8 = vld [vmem:[%s3876_s10 + $0xc4] sm:$0xf] }
  0x81   : > { %1978 = vmatprep.mubr.bf16.mxu1 %v4453_v57  ;;  %v636_v42 = vor.u32 %v635_v58, %v631_v7  ;;  %v646_v58 = vrot.slane %v644_v38, 4  ;;  %v663_v37 = vshll.u32 %v4521_v10, 16  ;;  %v4537_v24 = vcombine.low %v812_v4, %v815_v48 }
  0x82   : > { %v844_v1 = vshrl.u32 %v275_v8, 16  ;;  %v821_v7 = vrot.slane %v4476_v43, 5 }
  0x83   : > { %v637_v13 = vrot.slane %v636_v42, 4  ;;  %v650_v36 = vor.u32 %v649_v34, %v646_v58  ;;  %v274_v42 = vld [vmem:[%s3876_s10 + $0xc0] sm:$0xf]  ;;  %v820_v58 = vrot.slane %v818_v15, 4  ;;  %v4547_v34 = vcombine.low %v4479_v53, %v4490_v62 }
  0x84   : > { %v831_v3 = vshrl.u32 %v274_v42, 16  ;;  %v834_v14 = vshll.u32 %v274_v42, 16 }
  0x85   : > { %v642_v38 = vsel %vm3909_vm4, %v637_v13, %v641_v60  ;;  %v651_v45 = vrot.slane %v650_v36, 4  ;;  %v665_v60 = vrot.slane %v663_v37, 5  ;;  %v822_v36 = vsel %vm3920_vm5, %v820_v58, %v821_v7 }
  0x86   : > { %1818 = vmatmul.mubr.bf16.gmra.mrb[44].mxu0 %v4406_v31  ;;  %v4542_v30 = vcombine.low %v632_v16, %v642_v38  ;;  %v836_v4 = vrot.slane %v834_v14, 5  ;;  %v825_v38 = vrot.slane %v4490_v62, 5  ;;  %v4567_v7 = vcombine.low %v274_v42, %v275_v8 }
  0x87   : > { %1825 = vmatprep.mubr.bf16.mxu0 %v4483_v5  ;;  %v655_v5 = vrot.slane %v653_v44, 5  ;;  %v2891_v44 = vrot.slane %v4440_v55, 9  ;;  %v833_v55 = vrot.slane %v831_v3, 4 }
  0x88   : > { %1979 = vmatmul.mubr.bf16.gmra.mrb[44].mxu1 %v4481_v29  ;;  %5084 = vst [vmem:[#allocation9_spill] sm:$0xff] %v4542_v30  ;;  %v827_v62 = vrot.slane %v825_v38, 4 }
  0x89   : > { %1986 = vmatprep.mubr.bf16.mxu1 %v4487_v19  ;;  %v660_v40 = vor.u32 %v659_v32, %v655_v5  ;;  %v840_v32 = vshll.u32 %v275_v8, 16  ;;  %v819_v43 = vsel %vm3920_vm5, %v2891_v44, %v818_v15  ;;  %v656_v16 = vsel %vm3909_vm4, %v651_v45, %v655_v5 }
  0x8a   : > { %v837_v3 = vor.u32 %v836_v4, %v833_v55  ;;  %v4563_v44 = vcombine.low %v819_v43, %v822_v36  ;;  %v2892_v5 = vrot.slane %v4479_v53, 9  ;;  %v828_v45 = vrot.slane %v4521_v10, 5 }
  0x8b   : > { %v661_v13 = vrot.slane %v660_v40, 4  ;;  %v842_v48 = vrot.slane %v840_v32, 5  ;;  %v276_v40 = vld [vmem:[%s3876_s10 + $0xc8] sm:$0x1]  ;;  %v859_v55 = vrot.slane %v275_v8, 5  ;;  %v2893_v4 = vrot.slane %v274_v42, 9 }
  0x8c   : > { %v838_v32 = vrot.slane %v837_v3, 4  ;;  %v826_v53 = vsel %vm3920_vm5, %v2892_v5, %v825_v38  ;;  %v829_v10 = vsel %vm3920_vm5, %v827_v62, %v828_v45  ;;  %v3717_v42 = vld [vmem:[%s5053_s1 + $0x208] sm:$0xff]   ;;  %v3719_v38 = vld [vmem:[%s5053_s1 + $0x218] sm:$0xff]   ;;  %v4674_v5 = vld [vmem:[%s3876_s10 + $0xd0] sm:$0xf] }
  0x8d   : > { %v666_v37 = vsel %vm3909_vm4, %v661_v13, %v665_v60  ;;  %v860_v43 = vsel %vm3920_vm5, %v2893_v4, %v859_v55  ;;  %v4589_v36 = vcombine.low %v826_v53, %v829_v10  ;;  %v874_v4 = vshll.u32 %v4674_v5, 16 }
  0x8e   : > { %1826 = vmatmul.mubr.bf16.gmra.mrb[48].mxu0 %v4453_v57  ;;  %v4565_v58 = vcombine.low %v656_v16, %v666_v37  ;;  %v843_v13 = vsel %vm3909_vm4, %v838_v32, %v842_v48  ;;  %v4670_v32 = vld [vmem:[%s3876_s10 + $0xcc] sm:$0xf] }
  0x8f   : > { %1833 = vmatprep.mubr.bf16.mxu0 %v4518_v49  ;;  %v846_v49 = vrot.slane %v844_v1, 4  ;;  %v850_v1 = vshll.u32 %v276_v40, 16 }
  0x90   : > { %1987 = vmatmul.mubr.bf16.gmra.mrb[48].mxu1 %v4510_v28 }
  0x91   : > { %1994 = vmatprep.mubr.bf16.mxu1 %v4514_v33  ;;  %v847_v14 = vor.u32 %v846_v49, %v842_v48  ;;  %v852_v15 = vrot.slane %v850_v1, 5  ;;  %v861_v48 = vrot.slane %v859_v55, 4  ;;  %v868_v55 = vshll.u32 %v4670_v32, 16 }
  0x96   : > { %1834 = vmatmul.mubr.bf16.gmra.mrb[52].mxu0 %v4487_v19 }
  0x97   : > { %1841 = vmatprep.mubr.bf16.mxu0 %v4542_v30  ;;  %v848_v30 = vrot.slane %v847_v14, 4 }
  0x98   : > { %1995 = vmatmul.mubr.bf16.gmra.mrb[52].mxu1 %v4537_v24 }
  0x99   : > { %2002 = vmatprep.mubr.bf16.mxu1 %v4547_v34  ;;  %v853_v49 = vsel %vm3909_vm4, %v848_v30, %v852_v15  ;;  %v862_v30 = vrot.slane %v276_v40, 5 }
  0x9a   : > { %v4575_v60 = vcombine.low %v843_v13, %v853_v49  ;;  %v5092_v13 = vld [vmem:[#allocation9_spill] sm:$0xff]  ;;  %v865_v49 = vshrl.u32 %v4670_v32, 16 }
  0x9b   : > { %v863_v8 = vsel %vm3920_vm5, %v861_v48, %v862_v30  ;;  %v878_v48 = vshrl.u32 %v4674_v5, 16 }
  0x9c   : > { %v4591_v16 = vcombine.low %v860_v43, %v863_v8 }
  0x9e   : > { %1842 = vmatmul.mubr.bf16.gmra.mrb[56].mxu0 %v4514_v33 }
  0x9f   : > { %1849 = vmatprep.mubr.bf16.mxu0 %v4565_v58 }
  0xa0   : > { %2003 = vmatmul.mubr.bf16.gmra.mrb[56].mxu1 %v4563_v44 }
  0xa1   : > { %2010 = vmatprep.mubr.bf16.mxu1 %v4567_v7 }
  0xa6   : > { %1850 = vmatmul.mubr.bf16.gmra.mrb[60].mxu0 %v4547_v34 }
  0xa7   : > { %2051 = vmatprep.mubr.bf16.mxu0 %v4004_v56  ;;  %v3718_v56 = vld [vmem:[%s5053_s1 + $0x210] sm:$0xff]  }
  0xa8   : > { %2011 = vmatmul.mubr.bf16.gmra.mrb[60].mxu1 %v4589_v36 }
  0xa9   : > { %2212 = vmatprep.mubr.bf16.mxu1 %v4036_v18 }
  0xae   : > { %2052 = vmatmul.mubr.bf16.vlgmr.msra.gmra.mrb[64].mxu0 %v3976_v39  ;;  %v3721_v39 = vld [vmem:[%s5053_s1 + $0x228] sm:$0xff]  }
  0xaf   : > { %3531 = vmatpush3.bf16.msra.mxu0 %v4323_v9  ;;  %2059 = vmatprep.mubr.bf16.mxu0 %v4047_v23 }
  0xb0   : > { %2213 = vmatmul.mubr.bf16.vlgmr.msra.gmra.mrb[64].mxu1 %v3956_v25  ;;  %3532 = vmatprep.subr.bf16.mxu0 %v3717_v42  ;;  %v3720_v25 = vld [vmem:[%s5053_s1 + $0x220] sm:$0xff]  }
  0xb1   : > { %2220 = vmatprep.mubr.bf16.mxu1 %v4081_v50 }
  0xb3   : > { %3533 = vmatpush3.bf16.msra.mxu0 %v3717_v42 }
  0xb4   : > { %3534 = vmatprep.subr.bf16.mxu0 %v3718_v56 }
  0xb6   : > { %2060 = vmatmul.mubr.bf16.gmra.mrb[68].mxu0 %v4036_v18  ;;  %v3723_v18 = vld [vmem:[%s5053_s1 + $0x238] sm:$0xff]  }
  0xb7   : > { %2067 = vmatprep.mubr.bf16.mxu0 %v4112_v11  ;;  %3535 = vmatpush3.bf16.msra.mxu0 %v3718_v56 }
  0xb8   : > { %2221 = vmatmul.mubr.bf16.gmra.mrb[68].mxu1 %v3999_v54  ;;  %3536 = vmatprep.subr.bf16.mxu0 %v3719_v38  ;;  %v3722_v54 = vld [vmem:[%s5053_s1 + $0x230] sm:$0xff]  }
  0xb9   : > { %2228 = vmatprep.mubr.bf16.mxu1 %v4122_v20 }
  0xbb   : > { %3537 = vmatpush3.bf16.msra.mxu0 %v3719_v38 }
  0xbc   : > { %3538 = vmatprep.subr.bf16.mxu0 %v3720_v25 }
  0xbe   : > { %2068 = vmatmul.mubr.bf16.gmra.mrb[72].mxu0 %v4081_v50  ;;  %v5086_v50 = vld [vmem:[#allocation2_spill] sm:$0xff] }
  0xbf   : > { %2075 = vmatprep.mubr.bf16.mxu0 %v4166_v21  ;;  %3539 = vmatpush3.bf16.msra.mxu0 %v3720_v25 }
  0xc0   : > { %2229 = vmatmul.mubr.bf16.gmra.mrb[72].mxu1 %v4071_v27  ;;  %3540 = vmatprep.subr.bf16.mxu0 %v3721_v39  ;;  %v5085_v27 = vld [vmem:[#allocation3_spill] sm:$0xff] }
  0xc1   : > { %2236 = vmatprep.mubr.bf16.mxu1 %v4174_v2 }
  0xc3   : > { %3541 = vmatpush3.bf16.msra.mxu0 %v3721_v39  ;;  %v867_v39 = vrot.slane %v865_v49, 4 }
  0xc4   : > { %3542 = vmatprep.subr.bf16.mxu0 %v3722_v54 }
  0xc6   : > { %2076 = vmatmul.mubr.bf16.gmra.mrb[76].mxu0 %v4122_v20  ;;  %v5087_v20 = vld [vmem:[#allocation4_spill] sm:$0xff] }
  0xc7   : > { %2083 = vmatprep.mubr.bf16.mxu0 %v4217_v46  ;;  %3543 = vmatpush3.bf16.msra.mxu0 %v3722_v54  ;;  %v870_v54 = vrot.slane %v868_v55, 5 }
  0xc8   : > { %2237 = vmatmul.mubr.bf16.gmra.mrb[76].mxu1 %v4126_v22  ;;  %3544 = vmatprep.subr.bf16.mxu0 %v3723_v18  ;;  %v5088_v22 = vld [vmem:[#allocation5_spill] sm:$0xff] }
  0xc9   : > { %2244 = vmatprep.mubr.bf16.mxu1 %v4219_v47 }
  0xcb   : > { %3545 = vmatpush3.bf16.msra.mxu0 %v3723_v18 }
  0xce   : > { %2084 = vmatmul.mubr.bf16.gmra.mrb[80].mxu0 %v4174_v2  ;;  %v5089_v2 = vld [vmem:[#allocation6_spill] sm:$0xff] }
  0xcf   : > { %2091 = vmatprep.mubr.bf16.mxu0 %v4261_v17 }
  0xd0   : > { %2245 = vmatmul.mubr.bf16.gmra.mrb[80].mxu1 %v4179_v6  ;;  %v5090_v6 = vld [vmem:[#allocation7_spill] sm:$0xff] }
  0xd1   : > { %2252 = vmatprep.mubr.bf16.mxu1 %v4268_v26 }
  0xd6   : > { %2092 = vmatmul.mubr.bf16.gmra.mrb[84].mxu0 %v4219_v47  ;;  %v5091_v47 = vld [vmem:[#allocation8_spill] sm:$0xff] }
  0xd7   : > { %2099 = vmatprep.mubr.bf16.mxu0 %v4331_v63 }
  0xd8   : > { %2253 = vmatmul.mubr.bf16.gmra.mrb[84].mxu1 %v4226_v35 }
  0xd9   : > { %2260 = vmatprep.mubr.bf16.mxu1 %v4333_v52 }
  0xde   : > { %2100 = vmatmul.mubr.bf16.gmra.mrb[88].mxu0 %v4268_v26  ;;  %v4666_v26 = vld [vmem:[%s5054_s2] ss:$0 sm:$0xff] }
  0xdf   : > { %2107 = vmatprep.mubr.bf16.mxu0 %v4367_v0 }
  0xe0   : > { %2261 = vmatmul.mubr.bf16.gmra.mrb[88].mxu1 %v4282_v41 }
  0xe1   : > { %2268 = vmatprep.mubr.bf16.mxu1 %v5085_v27 }
  0xe6   : > { %2108 = vmatmul.mubr.bf16.gmra.mrb[92].mxu0 %v4333_v52 }
  0xe7   : > { %2115 = vmatprep.mubr.bf16.mxu0 %v5087_v20 }
  0xe8   : > { %2269 = vmatmul.mubr.bf16.gmra.mrb[92].mxu1 %v5086_v50 }
  0xe9   : > { %2276 = vmatprep.mubr.bf16.mxu1 %v5088_v22 }
  0xee   : > { %2116 = vmatmul.mubr.bf16.gmra.mrb[96].mxu0 %v5085_v27 }
  0xef   : > { %2123 = vmatprep.mubr.bf16.mxu0 %v4442_v61 }
  0xf0   : > { %2277 = vmatmul.mubr.bf16.gmra.mrb[96].mxu1 %v4376_v12 }
  0xf1   : > { %2284 = vmatprep.mubr.bf16.mxu1 %v5089_v2 }
  0xf6   : > { %2124 = vmatmul.mubr.bf16.gmra.mrb[100].mxu0 %v5088_v22  ;;  %v876_v22 = vrot.slane %v874_v4, 5 }
  0xf7   : > { %2131 = vmatprep.mubr.bf16.mxu0 %v4481_v29 }
  0xf8   : > { %2285 = vmatmul.mubr.bf16.gmra.mrb[100].mxu1 %v4406_v31 }
  0xf9   : > { %2292 = vmatprep.mubr.bf16.mxu1 %v5090_v6 }
  0xfe   : > { %2132 = vmatmul.mubr.bf16.gmra.mrb[104].mxu0 %v5089_v2  ;;  %v880_v2 = vrot.slane %v878_v48, 4 }
  0xff   : > { %2139 = vmatprep.mubr.bf16.mxu0 %v4510_v28 }
 0x100   : > { %2293 = vmatmul.mubr.bf16.gmra.mrb[104].mxu1 %v4453_v57 }
 0x101   : > { %2300 = vmatprep.mubr.bf16.mxu1 %v5091_v47  ;;  %v3050_v35 = vpop.f32.mrb[0].mxu0 }
 0x102   : > { %v3051_v41 = vpop.f32.mrb[1].mxu0 }
 0x103   : > { %v3162_v9 = vpop.f32.mrb[0].mxu1  ;;  %v3052_v52 = vadd.f32 %v3051_v41, %v3050_v35  ;;  %v3053_v12 = vpop.f32.mrb[2].mxu0  ;;  %v4691_v35 = vld [vmem:[%s3876_s10 + $0xd4] sm:$0x1] }
 0x104   : > { %v3163_v31 = vpop.f32.mrb[1].mxu1  ;;  %v3054_v40 = vpop.f32.mrb[3].mxu0 }
 0x105   : > { %v3164_v37 = vadd.f32 %v3163_v31, %v3162_v9  ;;  %v3165_v57 = vpop.f32.mrb[2].mxu1  ;;  %v1732_v3 = vadd.f32 %v3052_v52, %v4666_v26  ;;  %v3055_v14 = vadd.f32 %v3054_v40, %v3053_v12  ;;  %v3725_v52 = vld [vmem:[%s5055_s3] sm:$0xff]   ;;  %v871_v12 = vor.u32 %v870_v54, %v867_v39 }
 0x106   : > { %v3166_v1 = vpop.f32.mrb[3].mxu1  ;;  %2140 = vmatmul.mubr.bf16.gmra.mrb[108].mxu0 %v5090_v6  ;;  %v881_v40 = vor.u32 %v880_v2, %v876_v22  ;;  %3578 = vmatprep.subr.bf16.mxu1 %v3725_v52 }
 0x107   : > { %v3167_v15 = vadd.f32 %v3166_v1, %v3165_v57  ;;  %v1735_v62 = vadd.f32 %v3055_v14, %v4666_v26  ;;  %v4677_v45 = vadd.f32 %v3164_v37, %v1732_v3  ;;  %2147 = vmatprep.mubr.bf16.mxu0 %v4537_v24  ;;  %v884_v37 = vshll.u32 %v4691_v35, 16  ;;  %3579 = vmatpush3.bf16.msra.mxu1 %v3725_v52 }
 0x108   : > { %2301 = vmatmul.mubr.bf16.gmra.mrb[108].mxu1 %v4487_v19  ;;  %v872_v55 = vrot.slane %v871_v12, 4 }
 0x109   : > { %2308 = vmatprep.mubr.bf16.mxu1 %v5092_v13  ;;  %v4684_v53 = vadd.f32 %v3167_v15, %v1735_v62  ;;  %v3056_v10 = vpop.f32.mrb[4].mxu0 }
 0x10a   : > { %v3057_v30 = vpop.f32.mrb[5].mxu0 }
 0x10b   : > { %v3168_v43 = vpop.f32.mrb[4].mxu1  ;;  %v3058_v8 = vadd.f32 %v3057_v30, %v3056_v10  ;;  %v3059_v19 = vpop.f32.mrb[6].mxu0  ;;  %v882_v30 = vrot.slane %v881_v40, 4 }
 0x10c   : > { %v3169_v42 = vpop.f32.mrb[5].mxu1  ;;  %v3060_v56 = vpop.f32.mrb[7].mxu0 }
 0x10d   : > { %v3170_v38 = vadd.f32 %v3169_v42, %v3168_v43  ;;  %v3171_v25 = vpop.f32.mrb[6].mxu1  ;;  %v1740_v18 = vadd.f32 %v3058_v8, %v4666_v26  ;;  %v3061_v27 = vadd.f32 %v3060_v56, %v3059_v19  ;;  %v886_v43 = vrot.slane %v884_v37, 5  ;;  %v3726_v37 = vld [vmem:[%s5055_s3 + $0x8] sm:$0xff]  }
 0x10e   : > { %v3172_v50 = vpop.f32.mrb[7].mxu1  ;;  %2148 = vmatmul.mubr.bf16.gmra.mrb[112].mxu0 %v5091_v47  ;;  %3580 = vmatprep.subr.bf16.mxu1 %v3726_v37 }
 0x10f   : > { %v3173_v6 = vadd.f32 %v3172_v50, %v3171_v25  ;;  %v1743_v41 = vadd.f32 %v3061_v27, %v4666_v26  ;;  %v4694_v9 = vadd.f32 %v3170_v38, %v1740_v18  ;;  %2155 = vmatprep.mubr.bf16.mxu0 %v4563_v44  ;;  %v877_v25 = vsel %vm3909_vm4, %v872_v55, %v876_v22 }
 0x110   : > { %2309 = vmatmul.mubr.bf16.gmra.mrb[112].mxu1 %v4514_v33  ;;  %v887_v39 = vsel %vm3909_vm4, %v882_v30, %v886_v43 }
 0x111   : > { %2316 = vmatprep.mubr.bf16.mxu1 %v4565_v58  ;;  %v4702_v31 = vadd.f32 %v3173_v6, %v1743_v41  ;;  %v3062_v47 = vpop.f32.mrb[8].mxu0  ;;  %v2947_v41 = vcombine.low %v877_v25, %v887_v39  ;;  %3581 = vmatpush3.bf16.msra.mxu1 %v3726_v37 }
 0x112   : > { %v3063_v57 = vpop.f32.mrb[9].mxu0 }
 0x113   : > { %v3174_v3 = vpop.f32.mrb[8].mxu1  ;;  %v3064_v33 = vadd.f32 %v3063_v57, %v3062_v47  ;;  %v3065_v14 = vpop.f32.mrb[10].mxu0 }
 0x114   : > { %v3175_v1 = vpop.f32.mrb[9].mxu1  ;;  %v3066_v15 = vpop.f32.mrb[11].mxu0 }
 0x115   : > { %v3176_v62 = vadd.f32 %v3175_v1, %v3174_v3  ;;  %v3177_v49 = vpop.f32.mrb[10].mxu1  ;;  %v1748_v10 = vadd.f32 %v3064_v33, %v4666_v26  ;;  %v3067_v4 = vadd.f32 %v3066_v15, %v3065_v14 }
 0x116   : > { %v3178_v48 = vpop.f32.mrb[11].mxu1  ;;  %2156 = vmatmul.mubr.bf16.gmra.mrb[116].mxu0 %v5092_v13 }
 0x117   : > { %v3179_v8 = vadd.f32 %v3178_v48, %v3177_v49  ;;  %v1751_v19 = vadd.f32 %v3067_v4, %v4666_v26  ;;  %v4708_v42 = vadd.f32 %v3176_v62, %v1748_v10  ;;  %2163 = vmatprep.mubr.bf16.mxu0 %v4589_v36 }
 0x118   : > { %2317 = vmatmul.mubr.bf16.gmra.mrb[116].mxu1 %v4547_v34 }
 0x119   : > { %2324 = vmatprep.mubr.bf16.mxu1 %v4575_v60  ;;  %v4713_v56 = vadd.f32 %v3179_v8, %v1751_v19  ;;  %v3068_v38 = vpop.f32.mrb[12].mxu0 }
 0x11a   : > { %v3069_v13 = vpop.f32.mrb[13].mxu0 }
 0x11b   : > { %v3180_v54 = vpop.f32.mrb[12].mxu1  ;;  %v3070_v18 = vadd.f32 %v3069_v13, %v3068_v38  ;;  %v3071_v27 = vpop.f32.mrb[14].mxu0 }
 0x11c   : > { %v3181_v50 = vpop.f32.mrb[13].mxu1  ;;  %v3072_v2 = vpop.f32.mrb[15].mxu0 }
 0x11d   : > { %v3182_v34 = vadd.f32 %v3181_v50, %v3180_v54  ;;  %v3183_v6 = vpop.f32.mrb[14].mxu1  ;;  %v1756_v52 = vadd.f32 %v3070_v18, %v4666_v26  ;;  %v3073_v12 = vadd.f32 %v3072_v2, %v3071_v27 }
 0x11e   : > { %v3184_v47 = vpop.f32.mrb[15].mxu1  ;;  %2164 = vmatmul.mubr.bf16.gmra.mrb[120].mxu0 %v4565_v58 }
 0x11f   : > { %v3185_v40 = vadd.f32 %v3184_v47, %v3183_v6  ;;  %v1759_v22 = vadd.f32 %v3073_v12, %v4666_v26  ;;  %v4722_v51 = vadd.f32 %v3182_v34, %v1756_v52  ;;  %2171 = vmatprep.mubr.bf16.mxu0 %v4591_v16  ;;  %v3727_v12 = vld [vmem:[%s5055_s3 + $0x10] sm:$0xff]  }
 0x120   : > { %2325 = vmatmul.mubr.bf16.gmra.mrb[120].mxu1 %v4567_v7  ;;  %v2946_v7 = vcombine.low %v4670_v32, %v4674_v5  ;;  %3582 = vmatprep.subr.bf16.mxu1 %v3727_v12 }
 0x121   : > { %2332 = vmatprep.mubr.bf16.mxu1 %v2947_v41  ;;  %v4729_v57 = vadd.f32 %v3185_v40, %v1759_v22  ;;  %v3074_v3 = vpop.f32.mrb[16].mxu0  ;;  %3583 = vmatpush3.bf16.msra.mxu1 %v3727_v12 }
 0x122   : > { %v3075_v33 = vpop.f32.mrb[17].mxu0 }
 0x123   : > { %v3186_v14 = vpop.f32.mrb[16].mxu1  ;;  %v3076_v58 = vadd.f32 %v3075_v33, %v3074_v3  ;;  %v3077_v1 = vpop.f32.mrb[18].mxu0 }
 0x124   : > { %v3187_v15 = vpop.f32.mrb[17].mxu1  ;;  %v3078_v62 = vpop.f32.mrb[19].mxu0 }
 0x125   : > { %v3188_v49 = vadd.f32 %v3187_v15, %v3186_v14  ;;  %v3189_v55 = vpop.f32.mrb[18].mxu1  ;;  %v1764_v10 = vadd.f32 %v3076_v58, %v4666_v26  ;;  %v3079_v4 = vadd.f32 %v3078_v62, %v3077_v1 }
 0x126   : > { %v3190_v48 = vpop.f32.mrb[19].mxu1  ;;  %2172 = vmatmul.mubr.bf16.gmra.mrb[124].mxu0 %v4575_v60 }
 0x127   : > { %v3191_v30 = vadd.f32 %v3190_v48, %v3189_v55  ;;  %v1767_v43 = vadd.f32 %v3079_v4, %v4666_v26  ;;  %v4736_v8 = vadd.f32 %v3188_v49, %v1764_v10  ;;  %3546 = vmatprep.mubr.bf16.mxu0 %v4047_v23 }
 0x128   : > { %2333 = vmatmul.mubr.bf16.gmra.mrb[124].mxu1 %v2946_v7 }
 0x129   : > { %v4739_v19 = vadd.f32 %v3191_v30, %v1767_v43  ;;  %v3080_v38 = vpop.f32.mrb[20].mxu0 }
 0x12a   : > { %v3081_v25 = vpop.f32.mrb[21].mxu0 }
 0x12b   : > { %v3192_v39 = vpop.f32.mrb[20].mxu1  ;;  %v3082_v13 = vadd.f32 %v3081_v25, %v3080_v38  ;;  %v3083_v54 = vpop.f32.mrb[22].mxu0 }
 0x12c   : > { %v3193_v18 = vpop.f32.mrb[21].mxu1  ;;  %v3084_v27 = vpop.f32.mrb[23].mxu0 }
 0x12d   : > { %v3194_v50 = vadd.f32 %v3193_v18, %v3192_v39  ;;  %v3195_v2 = vpop.f32.mrb[22].mxu1  ;;  %v1772_v60 = vadd.f32 %v3082_v13, %v4666_v26  ;;  %v3085_v34 = vadd.f32 %v3084_v27, %v3083_v54 }
 0x12e   : > { %v3196_v6 = vpop.f32.mrb[23].mxu1  ;;  %3547 = vmatmul.mubr.bf16.vlgmr.msra.gmra.mrb[128].mxu0 %v4112_v11 }
 0x12f   : > { %v3197_v41 = vadd.f32 %v3196_v6, %v3195_v2  ;;  %v1775_v23 = vadd.f32 %v3085_v34, %v4666_v26  ;;  %v4744_v52 = vadd.f32 %v3194_v50, %v1772_v60  ;;  %3550 = vmatprep.mubr.bf16.mxu0 %v4166_v21  ;;  %v3728_v60 = vld [vmem:[%s5055_s3 + $0x18] sm:$0xff]  }
 0x130   : > { %3584 = vmatprep.subr.bf16.mxu1 %v3728_v60 }
 0x131   : > { %v4750_v47 = vadd.f32 %v3197_v41, %v1775_v23  ;;  %v3086_v40 = vpop.f32.mrb[24].mxu0  ;;  %3585 = vmatpush3.bf16.msra.mxu1 %v3728_v60 }
 0x132   : > { %v3087_v22 = vpop.f32.mrb[25].mxu0 }
 0x133   : > { %v3198_v37 = vpop.f32.mrb[24].mxu1  ;;  %v3088_v3 = vadd.f32 %v3087_v22, %v3086_v40  ;;  %v3089_v33 = vpop.f32.mrb[26].mxu0 }
 0x134   : > { %v3199_v11 = vpop.f32.mrb[25].mxu1  ;;  %v3090_v14 = vpop.f32.mrb[27].mxu0 }
 0x135   : > { %v3200_v58 = vadd.f32 %v3199_v11, %v3198_v37  ;;  %v3201_v1 = vpop.f32.mrb[26].mxu1  ;;  %v1780_v15 = vadd.f32 %v3088_v3, %v4666_v26  ;;  %v3091_v21 = vadd.f32 %v3090_v14, %v3089_v33 }
 0x136   : > { %v3202_v7 = vpop.f32.mrb[27].mxu1  ;;  %3551 = vmatmul.mubr.bf16.gmra.mrb[132].mxu0 %v4217_v46 }
 0x137   : > { %v3203_v62 = vadd.f32 %v3202_v7, %v3201_v1  ;;  %v1783_v49 = vadd.f32 %v3091_v21, %v4666_v26  ;;  %v4755_v55 = vadd.f32 %v3200_v58, %v1780_v15  ;;  %3554 = vmatprep.mubr.bf16.mxu0 %v4261_v17 }
 0x139   : > { %v4758_v10 = vadd.f32 %v3203_v62, %v1783_v49  ;;  %v3092_v4 = vpop.f32.mrb[28].mxu0 }
 0x13a   : > { %v3093_v48 = vpop.f32.mrb[29].mxu0 }
 0x13b   : > { %v3204_v30 = vpop.f32.mrb[28].mxu1  ;;  %v3094_v43 = vadd.f32 %v3093_v48, %v3092_v4  ;;  %v3095_v38 = vpop.f32.mrb[30].mxu0 }
 0x13c   : > { %v3205_v25 = vpop.f32.mrb[29].mxu1  ;;  %v3096_v39 = vpop.f32.mrb[31].mxu0 }
 0x13d   : > { %v3206_v13 = vadd.f32 %v3205_v25, %v3204_v30  ;;  %v3207_v54 = vpop.f32.mrb[30].mxu1  ;;  %v1788_v18 = vadd.f32 %v3094_v43, %v4666_v26  ;;  %v3097_v46 = vadd.f32 %v3096_v39, %v3095_v38 }
 0x13e   : > { %v3208_v27 = vpop.f32.mrb[31].mxu1  ;;  %3555 = vmatmul.mubr.bf16.gmra.mrb[136].mxu0 %v4331_v63 }
 0x13f   : > { %v3209_v50 = vadd.f32 %v3208_v27, %v3207_v54  ;;  %v1791_v17 = vadd.f32 %v3097_v46, %v4666_v26  ;;  %v4763_v2 = vadd.f32 %v3206_v13, %v1788_v18  ;;  %3558 = vmatprep.mubr.bf16.mxu0 %v4367_v0  ;;  %v3729_v18 = vld [vmem:[%s5055_s3 + $0x20] sm:$0xff]  }
 0x140   : > { %3586 = vmatprep.subr.bf16.mxu1 %v3729_v18 }
 0x141   : > { %v4769_v34 = vadd.f32 %v3209_v50, %v1791_v17  ;;  %v3098_v6 = vpop.f32.mrb[32].mxu0  ;;  %3587 = vmatpush3.bf16.msra.mxu1 %v3729_v18 }
 0x142   : > { %v3099_v41 = vpop.f32.mrb[33].mxu0 }
 0x143   : > { %v3210_v23 = vpop.f32.mrb[32].mxu1  ;;  %v3100_v12 = vadd.f32 %v3099_v41, %v3098_v6  ;;  %v3101_v40 = vpop.f32.mrb[34].mxu0 }
 0x144   : > { %v3211_v63 = vpop.f32.mrb[33].mxu1  ;;  %v3102_v22 = vpop.f32.mrb[35].mxu0 }
 0x145   : > { %v3212_v37 = vadd.f32 %v3211_v63, %v3210_v23  ;;  %v3213_v3 = vpop.f32.mrb[34].mxu1  ;;  %v1796_v33 = vadd.f32 %v3100_v12, %v4666_v26  ;;  %v3103_v0 = vadd.f32 %v3102_v22, %v3101_v40 }
 0x146   : > { %v3214_v11 = vpop.f32.mrb[35].mxu1  ;;  %3559 = vmatmul.mubr.bf16.gmra.mrb[140].mxu0 %v5087_v20 }
 0x147   : > { %v3215_v14 = vadd.f32 %v3214_v11, %v3213_v3  ;;  %v1799_v58 = vadd.f32 %v3103_v0, %v4666_v26  ;;  %v4774_v1 = vadd.f32 %v3212_v37, %v1796_v33  ;;  %3562 = vmatprep.mubr.bf16.mxu0 %v4442_v61  ;;  %v893_v33 = vrot.slane %v4674_v5, 5 }
 0x149   : > { %v4777_v15 = vadd.f32 %v3215_v14, %v1799_v58  ;;  %v3104_v21 = vpop.f32.mrb[36].mxu0 }
 0x14a   : > { %v3105_v7 = vpop.f32.mrb[37].mxu0 }
 0x14b   : > { %v3216_v62 = vpop.f32.mrb[36].mxu1  ;;  %v3106_v49 = vadd.f32 %v3105_v7, %v3104_v21  ;;  %v3107_v4 = vpop.f32.mrb[38].mxu0 }
 0x14c   : > { %v3217_v48 = vpop.f32.mrb[37].mxu1  ;;  %v3108_v30 = vpop.f32.mrb[39].mxu0 }
 0x14d   : > { %v3218_v43 = vadd.f32 %v3217_v48, %v3216_v62  ;;  %v3219_v38 = vpop.f32.mrb[38].mxu1  ;;  %v1804_v25 = vadd.f32 %v3106_v49, %v4666_v26  ;;  %v3109_v20 = vadd.f32 %v3108_v30, %v3107_v4  ;;  %v2894_v49 = vrot.slane %v4670_v32, 9 }
 0x14e   : > { %v3220_v39 = vpop.f32.mrb[39].mxu1  ;;  %3563 = vmatmul.mubr.bf16.gmra.mrb[144].mxu0 %v4481_v29  ;;  %v895_v4 = vrot.slane %v893_v33, 4 }
 0x14f   : > { %v3221_v13 = vadd.f32 %v3220_v39, %v3219_v38  ;;  %v1807_v61 = vadd.f32 %v3109_v20, %v4666_v26  ;;  %v4782_v54 = vadd.f32 %v3218_v43, %v1804_v25  ;;  %3566 = vmatprep.mubr.bf16.mxu0 %v4510_v28  ;;  %v894_v32 = vsel %vm3920_vm5, %v2894_v49, %v893_v33 }
 0x151   : > { %v4788_v46 = vadd.f32 %v3221_v13, %v1807_v61  ;;  %v3110_v27 = vpop.f32.mrb[40].mxu0  ;;  %v3730_v13 = vld [vmem:[%s5055_s3 + $0x28] sm:$0xff]  }
 0x152   : > { %v3111_v50 = vpop.f32.mrb[41].mxu0  ;;  %3588 = vmatprep.subr.bf16.mxu1 %v3730_v13 }
 0x153   : > { %v3222_v17 = vpop.f32.mrb[40].mxu1  ;;  %v3112_v60 = vadd.f32 %v3111_v50, %v3110_v27  ;;  %v3113_v6 = vpop.f32.mrb[42].mxu0  ;;  %3589 = vmatpush3.bf16.msra.mxu1 %v3730_v13 }
 0x154   : > { %v3223_v29 = vpop.f32.mrb[41].mxu1  ;;  %v3114_v41 = vpop.f32.mrb[43].mxu0 }
 0x155   : > { %v3224_v23 = vadd.f32 %v3223_v29, %v3222_v17  ;;  %v3225_v12 = vpop.f32.mrb[42].mxu1  ;;  %v1812_v40 = vadd.f32 %v3112_v60, %v4666_v26  ;;  %v3115_v28 = vadd.f32 %v3114_v41, %v3113_v6 }
 0x156   : > { %v3226_v63 = vpop.f32.mrb[43].mxu1  ;;  %3567 = vmatmul.mubr.bf16.gmra.mrb[148].mxu0 %v4537_v24  ;;  %v896_v24 = vrot.slane %v4691_v35, 5 }
 0x157   : > { %v3227_v22 = vadd.f32 %v3226_v63, %v3225_v12  ;;  %v1815_v37 = vadd.f32 %v3115_v28, %v4666_v26  ;;  %v4793_v3 = vadd.f32 %v3224_v23, %v1812_v40  ;;  %3570 = vmatprep.mubr.bf16.mxu0 %v4563_v44 }
 0x158   : > { %v897_v35 = vsel %vm3920_vm5, %v895_v4, %v896_v24 }
 0x159   : > { %v4797_v0 = vadd.f32 %v3227_v22, %v1815_v37  ;;  %v3116_v11 = vpop.f32.mrb[44].mxu0  ;;  %v2948_v50 = vcombine.low %v894_v32, %v897_v35 }
 0x15a   : > { %v3117_v14 = vpop.f32.mrb[45].mxu0 }
 0x15b   : > { %v3228_v58 = vpop.f32.mrb[44].mxu1  ;;  %v3118_v21 = vadd.f32 %v3117_v14, %v3116_v11  ;;  %v3119_v7 = vpop.f32.mrb[46].mxu0 }
 0x15c   : > { %v3229_v62 = vpop.f32.mrb[45].mxu1  ;;  %v3120_v48 = vpop.f32.mrb[47].mxu0 }
 0x15d   : > { %v3230_v30 = vadd.f32 %v3229_v62, %v3228_v58  ;;  %v3231_v43 = vpop.f32.mrb[46].mxu1  ;;  %v1820_v44 = vadd.f32 %v3118_v21, %v4666_v26  ;;  %v3121_v38 = vadd.f32 %v3120_v48, %v3119_v7 }
 0x15e   : > { %v3232_v5 = vpop.f32.mrb[47].mxu1  ;;  %3571 = vmatmul.mubr.bf16.gmra.mrb[152].mxu0 %v4589_v36 }
 0x15f   : > { %v3233_v25 = vadd.f32 %v3232_v5, %v3231_v43  ;;  %v1823_v20 = vadd.f32 %v3121_v38, %v4666_v26  ;;  %v4804_v39 = vadd.f32 %v3230_v30, %v1820_v44  ;;  %3574 = vmatprep.mubr.bf16.mxu0 %v4591_v16  ;;  %v3731_v38 = vld [vmem:[%s5055_s3 + $0x30] sm:$0xff]  }
 0x160   : > { %3590 = vmatprep.subr.bf16.mxu1 %v3731_v38 }
 0x161   : > { %v4814_v61 = vadd.f32 %v3233_v25, %v1823_v20  ;;  %v3122_v18 = vpop.f32.mrb[48].mxu0  ;;  %3591 = vmatpush3.bf16.msra.mxu1 %v3731_v38 }
 0x162   : > { %v3123_v36 = vpop.f32.mrb[49].mxu0 }
 0x163   : > { %v3234_v27 = vpop.f32.mrb[48].mxu1  ;;  %v3124_v17 = vadd.f32 %v3123_v36, %v3122_v18  ;;  %v3125_v16 = vpop.f32.mrb[50].mxu0 }
 0x164   : > { %v3235_v60 = vpop.f32.mrb[49].mxu1  ;;  %v3126_v6 = vpop.f32.mrb[51].mxu0 }
 0x165   : > { %v3236_v29 = vadd.f32 %v3235_v60, %v3234_v27  ;;  %v3237_v41 = vpop.f32.mrb[50].mxu1  ;;  %v1828_v59 = vadd.f32 %v3124_v17, %v4666_v26  ;;  %v3127_v23 = vadd.f32 %v3126_v6, %v3125_v16 }
 0x166   : > { %v3238_v12 = vpop.f32.mrb[51].mxu1  ;;  %3575 = vmatmul.mubr.bf16.gmra.mrb[156].mxu0 %v2948_v50 }
 0x167   : > { %v3239_v40 = vadd.f32 %v3238_v12, %v3237_v41  ;;  %v1831_v28 = vadd.f32 %v3127_v23, %v4666_v26  ;;  %v4818_v63 = vadd.f32 %v3236_v29, %v1828_v59 }
 0x169   : > { %v4820_v22 = vadd.f32 %v3239_v40, %v1831_v28  ;;  %v3128_v37 = vpop.f32.mrb[52].mxu0 }
 0x16a   : > { %v3129_v33 = vpop.f32.mrb[53].mxu0 }
 0x16b   : > { %v3240_v11 = vpop.f32.mrb[52].mxu1  ;;  %v3130_v14 = vadd.f32 %v3129_v33, %v3128_v37  ;;  %v3131_v58 = vpop.f32.mrb[54].mxu0 }
 0x16c   : > { %v3241_v21 = vpop.f32.mrb[53].mxu1  ;;  %v3132_v7 = vpop.f32.mrb[55].mxu0 }
 0x16d   : > { %v3242_v62 = vadd.f32 %v3241_v21, %v3240_v11  ;;  %v3243_v49 = vpop.f32.mrb[54].mxu1  ;;  %v1836_v4 = vadd.f32 %v3130_v14, %v4666_v26  ;;  %v3133_v24 = vadd.f32 %v3132_v7, %v3131_v58 }
 0x16e   : > { %v3244_v48 = vpop.f32.mrb[55].mxu1 }
 0x16f   : > { %v3245_v30 = vadd.f32 %v3244_v48, %v3243_v49  ;;  %v1839_v43 = vadd.f32 %v3133_v24, %v4666_v26  ;;  %v4824_v44 = vadd.f32 %v3242_v62, %v1836_v4  ;;  %v3732_v48 = vld [vmem:[%s5055_s3 + $0x38] sm:$0xff]  }
 0x170   : > { %3592 = vmatprep.subr.bf16.mxu1 %v3732_v48 }
 0x171   : > { %v4829_v5 = vadd.f32 %v3245_v30, %v1839_v43  ;;  %v3134_v25 = vpop.f32.mrb[56].mxu0  ;;  %3593 = vmatpush3.bf16.msra.mxu1 %v3732_v48 }
 0x172   : > { %v3135_v20 = vpop.f32.mrb[57].mxu0 }
 0x173   : > { %v3246_v32 = vpop.f32.mrb[56].mxu1  ;;  %v3136_v35 = vadd.f32 %v3135_v20, %v3134_v25  ;;  %v3137_v13 = vpop.f32.mrb[58].mxu0 }
 0x174   : > { %v3247_v18 = vpop.f32.mrb[57].mxu1  ;;  %v3138_v36 = vpop.f32.mrb[59].mxu0 }
 0x175   : > { %v3248_v27 = vadd.f32 %v3247_v18, %v3246_v32  ;;  %v3249_v50 = vpop.f32.mrb[58].mxu1  ;;  %v1844_v17 = vadd.f32 %v3136_v35, %v4666_v26  ;;  %v3139_v16 = vadd.f32 %v3138_v36, %v3137_v13 }
 0x176   : > { %v3250_v60 = vpop.f32.mrb[59].mxu1 }
 0x177   : > { %v3251_v6 = vadd.f32 %v3250_v60, %v3249_v50  ;;  %v1847_v29 = vadd.f32 %v3139_v16, %v4666_v26  ;;  %v4833_v41 = vadd.f32 %v3248_v27, %v1844_v17 }
 0x179   : > { %v4835_v59 = vadd.f32 %v3251_v6, %v1847_v29  ;;  %v3140_v23 = vpop.f32.mrb[60].mxu0 }
 0x17a   : > { %v3141_v12 = vpop.f32.mrb[61].mxu0 }
 0x17b   : > { %v3252_v40 = vpop.f32.mrb[60].mxu1  ;;  %v3142_v28 = vadd.f32 %v3141_v12, %v3140_v23  ;;  %v3143_v37 = vpop.f32.mrb[62].mxu0 }
 0x17c   : > { %v3253_v33 = vpop.f32.mrb[61].mxu1  ;;  %v3144_v11 = vpop.f32.mrb[63].mxu0 }
 0x17d   : > { %v3254_v14 = vadd.f32 %v3253_v33, %v3252_v40  ;;  %v3255_v58 = vpop.f32.mrb[62].mxu1  ;;  %v1852_v21 = vadd.f32 %v3142_v28, %v4666_v26  ;;  %v3145_v7 = vadd.f32 %v3144_v11, %v3143_v37 }
 0x17e   : > { %v3256_v62 = vpop.f32.mrb[63].mxu1 }
 0x17f   : > { %v3257_v49 = vadd.f32 %v3256_v62, %v3255_v58  ;;  %v1855_v4 = vadd.f32 %v3145_v7, %v4666_v26  ;;  %v4839_v24 = vadd.f32 %v3254_v14, %v1852_v21 }
 0x181   : > { %v4844_v30 = vadd.f32 %v3257_v49, %v1855_v4  ;;  %v3274_v43 = vpop.f32.mrb[64].mxu0 }
 0x182   : > { %v3275_v38 = vpop.f32.mrb[65].mxu0 }
 0x183   : > { %v3386_v25 = vpop.f32.mrb[64].mxu1  ;;  %v3276_v20 = vadd.f32 %v3275_v38, %v3274_v43  ;;  %v3277_v32 = vpop.f32.mrb[66].mxu0 }
 0x184   : > { %v3387_v35 = vpop.f32.mrb[65].mxu1  ;;  %v3278_v13 = vpop.f32.mrb[67].mxu0 }
 0x185   : > { %v3388_v18 = vadd.f32 %v3387_v35, %v3386_v25  ;;  %v3389_v36 = vpop.f32.mrb[66].mxu1  ;;  %v2054_v26 = vadd.f32 %v3276_v20, %v4677_v45  ;;  %v3279_v27 = vadd.f32 %v3278_v13, %v3277_v32 }
 0x186   : > { %v3390_v50 = vpop.f32.mrb[67].mxu1 }
 0x187   : > { %v3391_v17 = vadd.f32 %v3390_v50, %v3389_v36  ;;  %v2057_v16 = vadd.f32 %v3279_v27, %v4684_v53  ;;  %v4848_v60 = vadd.f32 %v3388_v18, %v2054_v26 }
 0x189   : > { %v3280_v6 = vpop.f32.mrb[68].mxu0  ;;  %v4850_v29 = vadd.f32 %v3391_v17, %v2057_v16 }
 0x18a   : > { %v3281_v23 = vpop.f32.mrb[69].mxu0 }
 0x18b   : > { %v3392_v12 = vpop.f32.mrb[68].mxu1  ;;  %v3282_v40 = vadd.f32 %v3281_v23, %v3280_v6  ;;  %v3283_v28 = vpop.f32.mrb[70].mxu0 }
 0x18c   : > { %v3393_v37 = vpop.f32.mrb[69].mxu1  ;;  %v3284_v33 = vpop.f32.mrb[71].mxu0 }
 0x18d   : > { %v3394_v11 = vadd.f32 %v3393_v37, %v3392_v12  ;;  %v3395_v14 = vpop.f32.mrb[70].mxu1  ;;  %v2062_v45 = vadd.f32 %v3282_v40, %v4694_v9  ;;  %v3285_v58 = vadd.f32 %v3284_v33, %v3283_v28 }
 0x18e   : > { %v3396_v21 = vpop.f32.mrb[71].mxu1 }
 0x18f   : > { %v3397_v7 = vadd.f32 %v3396_v21, %v3395_v14  ;;  %v2065_v53 = vadd.f32 %v3285_v58, %v4702_v31  ;;  %v4854_v62 = vadd.f32 %v3394_v11, %v2062_v45 }
 0x191   : > { %v3286_v49 = vpop.f32.mrb[72].mxu0  ;;  %v4856_v4 = vadd.f32 %v3397_v7, %v2065_v53 }
 0x192   : > { %v3287_v48 = vpop.f32.mrb[73].mxu0 }
 0x193   : > { %v3398_v43 = vpop.f32.mrb[72].mxu1  ;;  %v3288_v38 = vadd.f32 %v3287_v48, %v3286_v49  ;;  %v3289_v25 = vpop.f32.mrb[74].mxu0 }
 0x194   : > { %v3399_v20 = vpop.f32.mrb[73].mxu1  ;;  %v3290_v32 = vpop.f32.mrb[75].mxu0 }
 0x195   : > { %v3400_v35 = vadd.f32 %v3399_v20, %v3398_v43  ;;  %v3401_v13 = vpop.f32.mrb[74].mxu1  ;;  %v2070_v9 = vadd.f32 %v3288_v38, %v4708_v42  ;;  %v3291_v18 = vadd.f32 %v3290_v32, %v3289_v25 }
 0x196   : > { %v3402_v36 = vpop.f32.mrb[75].mxu1 }
 0x197   : > { %v3403_v26 = vadd.f32 %v3402_v36, %v3401_v13  ;;  %v2073_v31 = vadd.f32 %v3291_v18, %v4713_v56  ;;  %v4860_v27 = vadd.f32 %v3400_v35, %v2070_v9 }
 0x199   : > { %v3292_v50 = vpop.f32.mrb[76].mxu0  ;;  %v4862_v17 = vadd.f32 %v3403_v26, %v2073_v31 }
 0x19a   : > { %v3293_v16 = vpop.f32.mrb[77].mxu0 }
 0x19b   : > { %v3404_v6 = vpop.f32.mrb[76].mxu1  ;;  %v3294_v23 = vadd.f32 %v3293_v16, %v3292_v50  ;;  %v3295_v12 = vpop.f32.mrb[78].mxu0 }
 0x19c   : > { %v3405_v40 = vpop.f32.mrb[77].mxu1  ;;  %v3296_v28 = vpop.f32.mrb[79].mxu0 }
 0x19d   : > { %v3406_v37 = vadd.f32 %v3405_v40, %v3404_v6  ;;  %v3407_v33 = vpop.f32.mrb[78].mxu1  ;;  %v2078_v42 = vadd.f32 %v3294_v23, %v4722_v51  ;;  %v3297_v11 = vadd.f32 %v3296_v28, %v3295_v12 }
 0x19e   : > { %v3408_v14 = vpop.f32.mrb[79].mxu1 }
 0x19f   : > { %v3409_v45 = vadd.f32 %v3408_v14, %v3407_v33  ;;  %v2081_v56 = vadd.f32 %v3297_v11, %v4729_v57  ;;  %v4866_v58 = vadd.f32 %v3406_v37, %v2078_v42 }
 0x1a1   : > { %v3298_v21 = vpop.f32.mrb[80].mxu0  ;;  %v4868_v7 = vadd.f32 %v3409_v45, %v2081_v56 }
 0x1a2   : > { %v3299_v53 = vpop.f32.mrb[81].mxu0 }
 0x1a3   : > { %v3410_v49 = vpop.f32.mrb[80].mxu1  ;;  %v3300_v48 = vadd.f32 %v3299_v53, %v3298_v21  ;;  %v3301_v43 = vpop.f32.mrb[82].mxu0 }
 0x1a4   : > { %v3411_v38 = vpop.f32.mrb[81].mxu1  ;;  %v3302_v25 = vpop.f32.mrb[83].mxu0 }
 0x1a5   : > { %v3412_v20 = vadd.f32 %v3411_v38, %v3410_v49  ;;  %v3413_v32 = vpop.f32.mrb[82].mxu1  ;;  %v2086_v51 = vadd.f32 %v3300_v48, %v4736_v8  ;;  %v3303_v35 = vadd.f32 %v3302_v25, %v3301_v43 }
 0x1a6   : > { %v3414_v13 = vpop.f32.mrb[83].mxu1 }
 0x1a7   : > { %v3415_v9 = vadd.f32 %v3414_v13, %v3413_v32  ;;  %v2089_v57 = vadd.f32 %v3303_v35, %v4739_v19  ;;  %v4872_v18 = vadd.f32 %v3412_v20, %v2086_v51 }
 0x1a9   : > { %v3304_v36 = vpop.f32.mrb[84].mxu0  ;;  %v4874_v26 = vadd.f32 %v3415_v9, %v2089_v57 }
 0x1aa   : > { %v3305_v31 = vpop.f32.mrb[85].mxu0 }
 0x1ab   : > { %v3416_v50 = vpop.f32.mrb[84].mxu1  ;;  %v3306_v16 = vadd.f32 %v3305_v31, %v3304_v36  ;;  %v3307_v6 = vpop.f32.mrb[86].mxu0 }
 0x1ac   : > { %v3417_v23 = vpop.f32.mrb[85].mxu1  ;;  %v3308_v12 = vpop.f32.mrb[87].mxu0 }
 0x1ad   : > { %v3418_v40 = vadd.f32 %v3417_v23, %v3416_v50  ;;  %v3419_v28 = vpop.f32.mrb[86].mxu1  ;;  %v2094_v8 = vadd.f32 %v3306_v16, %v4744_v52  ;;  %v3309_v37 = vadd.f32 %v3308_v12, %v3307_v6 }
 0x1ae   : > { %v3420_v33 = vpop.f32.mrb[87].mxu1 }
 0x1af   : > { %v3421_v42 = vadd.f32 %v3420_v33, %v3419_v28  ;;  %v2097_v19 = vadd.f32 %v3309_v37, %v4750_v47  ;;  %v4878_v11 = vadd.f32 %v3418_v40, %v2094_v8 }
 0x1b1   : > { %v3310_v14 = vpop.f32.mrb[88].mxu0  ;;  %v4880_v45 = vadd.f32 %v3421_v42, %v2097_v19 }
 0x1b2   : > { %v3311_v56 = vpop.f32.mrb[89].mxu0 }
 0x1b3   : > { %v3422_v21 = vpop.f32.mrb[88].mxu1  ;;  %v3312_v53 = vadd.f32 %v3311_v56, %v3310_v14  ;;  %v3313_v49 = vpop.f32.mrb[90].mxu0 }
 0x1b4   : > { %v3423_v48 = vpop.f32.mrb[89].mxu1  ;;  %v3314_v43 = vpop.f32.mrb[91].mxu0 }
 0x1b5   : > { %v3424_v38 = vadd.f32 %v3423_v48, %v3422_v21  ;;  %v3425_v25 = vpop.f32.mrb[90].mxu1  ;;  %v2102_v52 = vadd.f32 %v3312_v53, %v4755_v55  ;;  %v3315_v20 = vadd.f32 %v3314_v43, %v3313_v49 }
 0x1b6   : > { %v3426_v32 = vpop.f32.mrb[91].mxu1 }
 0x1b7   : > { %v3427_v51 = vadd.f32 %v3426_v32, %v3425_v25  ;;  %v2105_v47 = vadd.f32 %v3315_v20, %v4758_v10  ;;  %v4884_v35 = vadd.f32 %v3424_v38, %v2102_v52 }
 0x1b9   : > { %v3316_v13 = vpop.f32.mrb[92].mxu0  ;;  %v4886_v9 = vadd.f32 %v3427_v51, %v2105_v47 }
 0x1ba   : > { %v3317_v57 = vpop.f32.mrb[93].mxu0 }
 0x1bb   : > { %v3428_v36 = vpop.f32.mrb[92].mxu1  ;;  %v3318_v31 = vadd.f32 %v3317_v57, %v3316_v13  ;;  %v3319_v50 = vpop.f32.mrb[94].mxu0 }
 0x1bc   : > { %v3429_v16 = vpop.f32.mrb[93].mxu1  ;;  %v3320_v6 = vpop.f32.mrb[95].mxu0 }
 0x1bd   : > { %v3430_v23 = vadd.f32 %v3429_v16, %v3428_v36  ;;  %v3431_v12 = vpop.f32.mrb[94].mxu1  ;;  %v2110_v55 = vadd.f32 %v3318_v31, %v4763_v2  ;;  %v3321_v40 = vadd.f32 %v3320_v6, %v3319_v50 }
 0x1be   : > { %v3432_v28 = vpop.f32.mrb[95].mxu1 }
 0x1bf   : > { %v3433_v8 = vadd.f32 %v3432_v28, %v3431_v12  ;;  %v2113_v10 = vadd.f32 %v3321_v40, %v4769_v34  ;;  %v4890_v37 = vadd.f32 %v3430_v23, %v2110_v55 }
 0x1c1   : > { %v3322_v33 = vpop.f32.mrb[96].mxu0  ;;  %v4892_v42 = vadd.f32 %v3433_v8, %v2113_v10 }
 0x1c2   : > { %v3323_v19 = vpop.f32.mrb[97].mxu0 }
 0x1c3   : > { %v3434_v14 = vpop.f32.mrb[96].mxu1  ;;  %v3324_v56 = vadd.f32 %v3323_v19, %v3322_v33  ;;  %v3325_v21 = vpop.f32.mrb[98].mxu0 }
 0x1c4   : > { %v3435_v53 = vpop.f32.mrb[97].mxu1  ;;  %v3326_v49 = vpop.f32.mrb[99].mxu0 }
 0x1c5   : > { %v3436_v48 = vadd.f32 %v3435_v53, %v3434_v14  ;;  %v3437_v43 = vpop.f32.mrb[98].mxu1  ;;  %v2118_v2 = vadd.f32 %v3324_v56, %v4774_v1  ;;  %v3327_v38 = vadd.f32 %v3326_v49, %v3325_v21 }
 0x1c6   : > { %v3438_v25 = vpop.f32.mrb[99].mxu1 }
 0x1c7   : > { %v3439_v52 = vadd.f32 %v3438_v25, %v3437_v43  ;;  %v2121_v34 = vadd.f32 %v3327_v38, %v4777_v15  ;;  %v4896_v20 = vadd.f32 %v3436_v48, %v2118_v2 }
 0x1c9   : > { %v3328_v32 = vpop.f32.mrb[100].mxu0  ;;  %v4898_v51 = vadd.f32 %v3439_v52, %v2121_v34 }
 0x1ca   : > { %v3329_v47 = vpop.f32.mrb[101].mxu0 }
 0x1cb   : > { %v3440_v13 = vpop.f32.mrb[100].mxu1  ;;  %v3330_v57 = vadd.f32 %v3329_v47, %v3328_v32  ;;  %v3331_v36 = vpop.f32.mrb[102].mxu0 }
 0x1cc   : > { %v3441_v31 = vpop.f32.mrb[101].mxu1  ;;  %v3332_v50 = vpop.f32.mrb[103].mxu0 }
 0x1cd   : > { %v3442_v16 = vadd.f32 %v3441_v31, %v3440_v13  ;;  %v3443_v6 = vpop.f32.mrb[102].mxu1  ;;  %v2126_v1 = vadd.f32 %v3330_v57, %v4782_v54  ;;  %v3333_v23 = vadd.f32 %v3332_v50, %v3331_v36 }
 0x1ce   : > { %v3444_v12 = vpop.f32.mrb[103].mxu1 }
 0x1cf   : > { %v3445_v55 = vadd.f32 %v3444_v12, %v3443_v6  ;;  %v2129_v15 = vadd.f32 %v3333_v23, %v4788_v46  ;;  %v4902_v40 = vadd.f32 %v3442_v16, %v2126_v1 }
 0x1d1   : > { %v3334_v28 = vpop.f32.mrb[104].mxu0  ;;  %v4904_v8 = vadd.f32 %v3445_v55, %v2129_v15 }
 0x1d2   : > { %v3335_v10 = vpop.f32.mrb[105].mxu0 }
 0x1d3   : > { %v3446_v33 = vpop.f32.mrb[104].mxu1  ;;  %v3336_v19 = vadd.f32 %v3335_v10, %v3334_v28  ;;  %v3337_v14 = vpop.f32.mrb[106].mxu0 }
 0x1d4   : > { %v3447_v56 = vpop.f32.mrb[105].mxu1  ;;  %v3338_v21 = vpop.f32.mrb[107].mxu0 }
 0x1d5   : > { %v3448_v53 = vadd.f32 %v3447_v56, %v3446_v33  ;;  %v3449_v49 = vpop.f32.mrb[106].mxu1  ;;  %v2134_v54 = vadd.f32 %v3336_v19, %v4793_v3  ;;  %v3339_v48 = vadd.f32 %v3338_v21, %v3337_v14 }
 0x1d6   : > { %v3450_v43 = vpop.f32.mrb[107].mxu1 }
 0x1d7   : > { %v3451_v2 = vadd.f32 %v3450_v43, %v3449_v49  ;;  %v2137_v46 = vadd.f32 %v3339_v48, %v4797_v0  ;;  %v4908_v38 = vadd.f32 %v3448_v53, %v2134_v54 }
 0x1d9   : > { %v3340_v25 = vpop.f32.mrb[108].mxu0  ;;  %v4910_v52 = vadd.f32 %v3451_v2, %v2137_v46 }
 0x1da   : > { %v3341_v34 = vpop.f32.mrb[109].mxu0 }
 0x1db   : > { %v3452_v32 = vpop.f32.mrb[108].mxu1  ;;  %v3342_v47 = vadd.f32 %v3341_v34, %v3340_v25  ;;  %v3343_v13 = vpop.f32.mrb[110].mxu0 }
 0x1dc   : > { %v3453_v57 = vpop.f32.mrb[109].mxu1  ;;  %v3344_v36 = vpop.f32.mrb[111].mxu0 }
 0x1dd   : > { %v3454_v31 = vadd.f32 %v3453_v57, %v3452_v32  ;;  %v3455_v50 = vpop.f32.mrb[110].mxu1  ;;  %v2142_v3 = vadd.f32 %v3342_v47, %v4804_v39  ;;  %v3345_v16 = vadd.f32 %v3344_v36, %v3343_v13 }
 0x1de   : > { %v3456_v6 = vpop.f32.mrb[111].mxu1 }
 0x1df   : > { %v3457_v1 = vadd.f32 %v3456_v6, %v3455_v50  ;;  %v2145_v0 = vadd.f32 %v3345_v16, %v4814_v61  ;;  %v4914_v23 = vadd.f32 %v3454_v31, %v2142_v3 }
 0x1e1   : > { %v3346_v12 = vpop.f32.mrb[112].mxu0  ;;  %v4916_v55 = vadd.f32 %v3457_v1, %v2145_v0 }
 0x1e2   : > { %v3347_v15 = vpop.f32.mrb[113].mxu0 }
 0x1e3   : > { %v3458_v28 = vpop.f32.mrb[112].mxu1  ;;  %v3348_v10 = vadd.f32 %v3347_v15, %v3346_v12  ;;  %v3349_v33 = vpop.f32.mrb[114].mxu0 }
 0x1e4   : > { %v3459_v19 = vpop.f32.mrb[113].mxu1  ;;  %v3350_v14 = vpop.f32.mrb[115].mxu0 }
 0x1e5   : > { %v3460_v56 = vadd.f32 %v3459_v19, %v3458_v28  ;;  %v3461_v21 = vpop.f32.mrb[114].mxu1  ;;  %v2150_v39 = vadd.f32 %v3348_v10, %v4818_v63  ;;  %v3351_v53 = vadd.f32 %v3350_v14, %v3349_v33 }
 0x1e6   : > { %v3462_v49 = vpop.f32.mrb[115].mxu1 }
 0x1e7   : > { %v3463_v54 = vadd.f32 %v3462_v49, %v3461_v21  ;;  %v2153_v61 = vadd.f32 %v3351_v53, %v4820_v22  ;;  %v4920_v48 = vadd.f32 %v3460_v56, %v2150_v39 }
 0x1e9   : > { %v3352_v43 = vpop.f32.mrb[116].mxu0  ;;  %v4922_v2 = vadd.f32 %v3463_v54, %v2153_v61 }
 0x1ea   : > { %v3353_v46 = vpop.f32.mrb[117].mxu0 }
 0x1eb   : > { %v3464_v25 = vpop.f32.mrb[116].mxu1  ;;  %v3354_v34 = vadd.f32 %v3353_v46, %v3352_v43  ;;  %v3355_v32 = vpop.f32.mrb[118].mxu0 }
 0x1ec   : > { %v3465_v47 = vpop.f32.mrb[117].mxu1  ;;  %v3356_v13 = vpop.f32.mrb[119].mxu0 }
 0x1ed   : > { %v3466_v57 = vadd.f32 %v3465_v47, %v3464_v25  ;;  %v3467_v36 = vpop.f32.mrb[118].mxu1  ;;  %v2158_v63 = vadd.f32 %v3354_v34, %v4824_v44  ;;  %v3357_v31 = vadd.f32 %v3356_v13, %v3355_v32 }
 0x1ee   : > { %v3468_v50 = vpop.f32.mrb[119].mxu1 }
 0x1ef   : > { %v3469_v3 = vadd.f32 %v3468_v50, %v3467_v36  ;;  %v2161_v22 = vadd.f32 %v3357_v31, %v4829_v5  ;;  %v4926_v16 = vadd.f32 %v3466_v57, %v2158_v63 }
 0x1f1   : > { %v3358_v6 = vpop.f32.mrb[120].mxu0  ;;  %v4928_v1 = vadd.f32 %v3469_v3, %v2161_v22 }
 0x1f2   : > { %v3359_v0 = vpop.f32.mrb[121].mxu0 }
 0x1f3   : > { %v3470_v12 = vpop.f32.mrb[120].mxu1  ;;  %v3360_v15 = vadd.f32 %v3359_v0, %v3358_v6  ;;  %v3361_v28 = vpop.f32.mrb[122].mxu0 }
 0x1f4   : > { %v3471_v10 = vpop.f32.mrb[121].mxu1  ;;  %v3362_v33 = vpop.f32.mrb[123].mxu0 }
 0x1f5   : > { %v3472_v19 = vadd.f32 %v3471_v10, %v3470_v12  ;;  %v3473_v14 = vpop.f32.mrb[122].mxu1  ;;  %v2166_v44 = vadd.f32 %v3360_v15, %v4833_v41  ;;  %v3363_v56 = vadd.f32 %v3362_v33, %v3361_v28 }
 0x1f6   : > { %v3474_v21 = vpop.f32.mrb[123].mxu1 }
 0x1f7   : > { %v3475_v39 = vadd.f32 %v3474_v21, %v3473_v14  ;;  %v2169_v5 = vadd.f32 %v3363_v56, %v4835_v59  ;;  %v4932_v53 = vadd.f32 %v3472_v19, %v2166_v44 }
 0x1f9   : > { %v3364_v49 = vpop.f32.mrb[124].mxu0  ;;  %v4934_v54 = vadd.f32 %v3475_v39, %v2169_v5 }
 0x1fa   : > { %v3365_v61 = vpop.f32.mrb[125].mxu0 }
 0x1fb   : > { %v3476_v43 = vpop.f32.mrb[124].mxu1  ;;  %v3366_v46 = vadd.f32 %v3365_v61, %v3364_v49  ;;  %v3367_v25 = vpop.f32.mrb[126].mxu0 }
 0x1fc   : > { %v3477_v34 = vpop.f32.mrb[125].mxu1  ;;  %v3368_v32 = vpop.f32.mrb[127].mxu0 }
 0x1fd   : > { %v3478_v47 = vadd.f32 %v3477_v34, %v3476_v43  ;;  %v3479_v13 = vpop.f32.mrb[126].mxu1  ;;  %v2174_v41 = vadd.f32 %v3366_v46, %v4839_v24  ;;  %v3369_v57 = vadd.f32 %v3368_v32, %v3367_v25 }
 0x1fe   : > { %v3480_v36 = vpop.f32.mrb[127].mxu1 }
 0x1ff   : > { %v3481_v63 = vadd.f32 %v3480_v36, %v3479_v13  ;;  %v2177_v59 = vadd.f32 %v3369_v57, %v4844_v30  ;;  %v4938_v31 = vadd.f32 %v3478_v47, %v2174_v41 }
 0x201   : > { %v3548_v50 = vpop.f32.mrb[128].mxu0  ;;  %v4940_v3 = vadd.f32 %v3481_v63, %v2177_v59 }
 0x202   : > { %v2384_v22 = vadd.f32 %v3548_v50, %v4854_v62  ;;  %v2375_v6 = vpop.f32.mrb[129].mxu0 }
 0x203   : > { %v2376_v0 = vadd.f32 %v2375_v6, %v4848_v60  ;;  %v3549_v12 = vpop.f32.mrb[130].mxu0 }
 0x204   : > { %v2387_v15 = vadd.f32 %v3549_v12, %v4856_v4  ;;  %v2378_v28 = vpop.f32.mrb[131].mxu0  ;;  %v2504_v10 = vmax.f32 %v2384_v22, 0.0 }
 0x205   : > { %v2379_v24 = vadd.f32 %v2378_v28, %v4850_v29  ;;  %v2502_v19 = vmax.f32 %v2376_v0, 0.0 }
 0x206   : > { %v2505_v33 = vmax.f32 %v2387_v15, 0.0 }
 0x207   : > { %v2503_v30 = vmax.f32 %v2379_v24, 0.0 }
 0x208   : > { %v2535_v14 = vpack.c.bf16 %v2505_v33, %v2504_v10 }
 0x209   : > { %v2534_v44 = vpack.c.bf16 %v2503_v30, %v2502_v19  ;;  %v3552_v56 = vpop.f32.mrb[132].mxu0 }
 0x20a   : > { %v2400_v21 = vadd.f32 %v3552_v56, %v4866_v58  ;;  %v2391_v39 = vpop.f32.mrb[133].mxu0 }
 0x20b   : > { %v2392_v62 = vadd.f32 %v2391_v39, %v4860_v27  ;;  %v3553_v5 = vpop.f32.mrb[134].mxu0  ;;  %3594 = vmatprep.mubr.bf16.mxu1 %v2534_v44 }
 0x20c   : > { %v2403_v60 = vadd.f32 %v3553_v5, %v4868_v7  ;;  %v2394_v4 = vpop.f32.mrb[135].mxu0  ;;  %3595 = vmatmul.mubr.bf16.vlgmr.msra.gmra.mrb[128].mxu1 %v2535_v14  ;;  %v2508_v49 = vmax.f32 %v2400_v21, 0.0 }
 0x20d   : > { %v2395_v29 = vadd.f32 %v2394_v4, %v4862_v17  ;;  %v2506_v43 = vmax.f32 %v2392_v62, 0.0 }
 0x20e   : > { %v2509_v61 = vmax.f32 %v2403_v60, 0.0 }
 0x20f   : > { %v2507_v46 = vmax.f32 %v2395_v29, 0.0 }
 0x210   : > { %v2537_v25 = vpack.c.bf16 %v2509_v61, %v2508_v49 }
 0x211   : > { %v2536_v34 = vpack.c.bf16 %v2507_v46, %v2506_v43  ;;  %v3556_v32 = vpop.f32.mrb[136].mxu0 }
 0x212   : > { %v2416_v58 = vadd.f32 %v3556_v32, %v4878_v11  ;;  %v2407_v47 = vpop.f32.mrb[137].mxu0 }
 0x213   : > { %v2408_v27 = vadd.f32 %v2407_v47, %v4872_v18  ;;  %v3557_v13 = vpop.f32.mrb[138].mxu0  ;;  %3598 = vmatprep.mubr.bf16.mxu1 %v2536_v34 }
 0x214   : > { %v2419_v7 = vadd.f32 %v3557_v13, %v4880_v45  ;;  %v2410_v41 = vpop.f32.mrb[139].mxu0  ;;  %3599 = vmatmul.mubr.bf16.gmra.mrb[132].mxu1 %v2537_v25  ;;  %v2512_v57 = vmax.f32 %v2416_v58, 0.0 }
 0x215   : > { %v2411_v17 = vadd.f32 %v2410_v41, %v4874_v26  ;;  %v2510_v63 = vmax.f32 %v2408_v27, 0.0 }
 0x216   : > { %v2513_v36 = vmax.f32 %v2419_v7, 0.0 }
 0x217   : > { %v2511_v59 = vmax.f32 %v2411_v17, 0.0 }
 0x218   : > { %v2539_v50 = vpack.c.bf16 %v2513_v36, %v2512_v57 }
 0x219   : > { %v2538_v22 = vpack.c.bf16 %v2511_v59, %v2510_v63  ;;  %v3560_v6 = vpop.f32.mrb[140].mxu0 }
 0x21a   : > { %v2432_v11 = vadd.f32 %v3560_v6, %v4890_v37  ;;  %v2423_v0 = vpop.f32.mrb[141].mxu0 }
 0x21b   : > { %v2424_v18 = vadd.f32 %v2423_v0, %v4884_v35  ;;  %v3561_v12 = vpop.f32.mrb[142].mxu0  ;;  %3602 = vmatprep.mubr.bf16.mxu1 %v2538_v22 }
 0x21c   : > { %v2435_v45 = vadd.f32 %v3561_v12, %v4892_v42  ;;  %v2426_v15 = vpop.f32.mrb[143].mxu0  ;;  %3603 = vmatmul.mubr.bf16.gmra.mrb[136].mxu1 %v2539_v50  ;;  %v2516_v28 = vmax.f32 %v2432_v11, 0.0 }
 0x21d   : > { %v2427_v26 = vadd.f32 %v2426_v15, %v4886_v9  ;;  %v2514_v10 = vmax.f32 %v2424_v18, 0.0 }
 0x21e   : > { %v2517_v24 = vmax.f32 %v2435_v45, 0.0 }
 0x21f   : > { %v2515_v33 = vmax.f32 %v2427_v26, 0.0 }
 0x220   : > { %v2541_v19 = vpack.c.bf16 %v2517_v24, %v2516_v28 }
 0x221   : > { %v2540_v30 = vpack.c.bf16 %v2515_v33, %v2514_v10  ;;  %v3564_v14 = vpop.f32.mrb[144].mxu0 }
 0x222   : > { %v2448_v37 = vadd.f32 %v3564_v14, %v4902_v40  ;;  %v2439_v44 = vpop.f32.mrb[145].mxu0 }
 0x223   : > { %v2440_v35 = vadd.f32 %v2439_v44, %v4896_v20  ;;  %v3565_v56 = vpop.f32.mrb[146].mxu0  ;;  %3606 = vmatprep.mubr.bf16.mxu1 %v2540_v30 }
 0x224   : > { %v2451_v42 = vadd.f32 %v3565_v56, %v4904_v8  ;;  %v2442_v21 = vpop.f32.mrb[147].mxu0  ;;  %3607 = vmatmul.mubr.bf16.gmra.mrb[140].mxu1 %v2541_v19  ;;  %v2520_v39 = vmax.f32 %v2448_v37, 0.0 }
 0x225   : > { %v2443_v9 = vadd.f32 %v2442_v21, %v4898_v51  ;;  %v2518_v5 = vmax.f32 %v2440_v35, 0.0 }
 0x226   : > { %v2521_v62 = vmax.f32 %v2451_v42, 0.0 }
 0x227   : > { %v2519_v60 = vmax.f32 %v2443_v9, 0.0 }
 0x228   : > { %v2543_v4 = vpack.c.bf16 %v2521_v62, %v2520_v39 }
 0x229   : > { %v2542_v29 = vpack.c.bf16 %v2519_v60, %v2518_v5  ;;  %v3568_v49 = vpop.f32.mrb[148].mxu0 }
 0x22a   : > { %v2464_v40 = vadd.f32 %v3568_v49, %v4914_v23  ;;  %v2455_v61 = vpop.f32.mrb[149].mxu0 }
 0x22b   : > { %v2456_v20 = vadd.f32 %v2455_v61, %v4908_v38  ;;  %v3569_v43 = vpop.f32.mrb[150].mxu0  ;;  %3610 = vmatprep.mubr.bf16.mxu1 %v2542_v29 }
 0x22c   : > { %v2467_v8 = vadd.f32 %v3569_v43, %v4916_v55  ;;  %v2458_v46 = vpop.f32.mrb[151].mxu0  ;;  %3611 = vmatmul.mubr.bf16.gmra.mrb[144].mxu1 %v2543_v4  ;;  %v2524_v25 = vmax.f32 %v2464_v40, 0.0 }
 0x22d   : > { %v2459_v51 = vadd.f32 %v2458_v46, %v4910_v52  ;;  %v2522_v32 = vmax.f32 %v2456_v20, 0.0 }
 0x22e   : > { %v2525_v34 = vmax.f32 %v2467_v8, 0.0 }
 0x22f   : > { %v2523_v58 = vmax.f32 %v2459_v51, 0.0 }
 0x230   : > { %v2545_v47 = vpack.c.bf16 %v2525_v34, %v2524_v25 }
 0x231   : > { %v2544_v27 = vpack.c.bf16 %v2523_v58, %v2522_v32  ;;  %v3572_v13 = vpop.f32.mrb[152].mxu0 }
 0x232   : > { %v2480_v23 = vadd.f32 %v3572_v13, %v4926_v16  ;;  %v2471_v7 = vpop.f32.mrb[153].mxu0 }
 0x233   : > { %v2472_v38 = vadd.f32 %v2471_v7, %v4920_v48  ;;  %v3573_v41 = vpop.f32.mrb[154].mxu0  ;;  %3614 = vmatprep.mubr.bf16.mxu1 %v2544_v27 }
 0x234   : > { %v2483_v55 = vadd.f32 %v3573_v41, %v4928_v1  ;;  %v2474_v17 = vpop.f32.mrb[155].mxu0  ;;  %3615 = vmatmul.mubr.bf16.gmra.mrb[148].mxu1 %v2545_v47  ;;  %v2528_v57 = vmax.f32 %v2480_v23, 0.0 }
 0x235   : > { %v2475_v52 = vadd.f32 %v2474_v17, %v4922_v2  ;;  %v2526_v63 = vmax.f32 %v2472_v38, 0.0 }
 0x236   : > { %v2529_v36 = vmax.f32 %v2483_v55, 0.0 }
 0x237   : > { %v2527_v59 = vmax.f32 %v2475_v52, 0.0 }
 0x238   : > { %v2547_v50 = vpack.c.bf16 %v2529_v36, %v2528_v57 }
 0x239   : > { %v2546_v22 = vpack.c.bf16 %v2527_v59, %v2526_v63  ;;  %v3576_v6 = vpop.f32.mrb[156].mxu0 }
 0x23a   : > { %v2496_v16 = vadd.f32 %v3576_v6, %v4938_v31  ;;  %v2487_v11 = vpop.f32.mrb[157].mxu0 }
 0x23b   : > { %v2488_v48 = vadd.f32 %v2487_v11, %v4932_v53  ;;  %v3577_v0 = vpop.f32.mrb[158].mxu0  ;;  %3618 = vmatprep.mubr.bf16.mxu1 %v2546_v22  ;;  %v4978_v53 = vld [vmem:[%s5056_s4] ss:$0 sm:$0xff] }
 0x23c   : > { %v2499_v1 = vadd.f32 %v3577_v0, %v4940_v3  ;;  %v2490_v18 = vpop.f32.mrb[159].mxu0  ;;  %3619 = vmatmul.mubr.bf16.gmra.mrb[152].mxu1 %v2547_v50  ;;  %v2532_v12 = vmax.f32 %v2496_v16, 0.0 }
 0x23d   : > { %v2491_v2 = vadd.f32 %v2490_v18, %v4934_v54  ;;  %v2530_v15 = vmax.f32 %v2488_v48, 0.0 }
 0x23e   : > { %v2533_v45 = vmax.f32 %v2499_v1, 0.0 }
 0x23f   : > { %v2531_v26 = vmax.f32 %v2491_v2, 0.0 }
 0x240   : > { %v2549_v28 = vpack.c.bf16 %v2533_v45, %v2532_v12 }
 0x241   : > { %v2548_v24 = vpack.c.bf16 %v2531_v26, %v2530_v15 }
 0x243   : > { %3622 = vmatprep.mubr.bf16.mxu1 %v2548_v24 }
 0x244   : > { %3623 = vmatmul.mubr.bf16.gmra.mrb[156].mxu1 %v2549_v28 }
 0x2df   : > { %v3596_v54 = vpop.f32.mrb[128].mxu1 }
 0x2e0   : > { %v2664_v31 = vadd.f32 %v3596_v54, %v4978_v53  ;;  %v2655_v3 = vpop.f32.mrb[129].mxu1 }
 0x2e1   : > { %v2656_v10 = vadd.f32 %v4978_v53, %v2655_v3  ;;  %v3597_v33 = vpop.f32.mrb[130].mxu1 }
 0x2e2   : > { %2784 = vst [vmem:[%s4983_s8 + $0x10] sm:$0xff] %v2664_v31  ;;  %v2667_v19 = vadd.f32 %v3597_v33, %v4978_v53  ;;  %v2658_v30 = vpop.f32.mrb[131].mxu1 }
 0x2e3   : > { %2782 = vst [vmem:[%s4983_s8] sm:$0xff] %v2656_v10  ;;  %v2659_v14 = vadd.f32 %v4978_v53, %v2658_v30 }
 0x2e4   : > { %2785 = vst [vmem:[%s4983_s8 + $0x18] sm:$0xff] %v2667_v19 }
 0x2e5   : > { %2783 = vst [vmem:[%s4983_s8 + $0x8] sm:$0xff] %v2659_v14 }
 0x2e7   : > { %v3600_v37 = vpop.f32.mrb[132].mxu1 }
 0x2e8   : > { %v2680_v44 = vadd.f32 %v3600_v37, %v4978_v53  ;;  %v2671_v35 = vpop.f32.mrb[133].mxu1 }
 0x2e9   : > { %v2672_v56 = vadd.f32 %v4978_v53, %v2671_v35  ;;  %v3601_v42 = vpop.f32.mrb[134].mxu1 }
 0x2ea   : > { %2788 = vst [vmem:[%s4983_s8 + $0x30] sm:$0xff] %v2680_v44  ;;  %v2683_v21 = vadd.f32 %v3601_v42, %v4978_v53  ;;  %v2674_v9 = vpop.f32.mrb[135].mxu1 }
 0x2eb   : > { %2786 = vst [vmem:[%s4983_s8 + $0x20] sm:$0xff] %v2672_v56  ;;  %v2675_v39 = vadd.f32 %v4978_v53, %v2674_v9 }
 0x2ec   : > { %2789 = vst [vmem:[%s4983_s8 + $0x38] sm:$0xff] %v2683_v21 }
 0x2ed   : > { %2787 = vst [vmem:[%s4983_s8 + $0x28] sm:$0xff] %v2675_v39 }
 0x2ef   : > { %v3604_v62 = vpop.f32.mrb[136].mxu1 }
 0x2f0   : > { %v2696_v5 = vadd.f32 %v3604_v62, %v4978_v53  ;;  %v2687_v60 = vpop.f32.mrb[137].mxu1 }
 0x2f1   : > { %v2688_v4 = vadd.f32 %v4978_v53, %v2687_v60  ;;  %v3605_v29 = vpop.f32.mrb[138].mxu1 }
 0x2f2   : > { %2792 = vst [vmem:[%s4983_s8 + $0x50] sm:$0xff] %v2696_v5  ;;  %v2699_v49 = vadd.f32 %v3605_v29, %v4978_v53  ;;  %v2690_v40 = vpop.f32.mrb[139].mxu1 }
 0x2f3   : > { %2790 = vst [vmem:[%s4983_s8 + $0x40] sm:$0xff] %v2688_v4  ;;  %v2691_v61 = vadd.f32 %v4978_v53, %v2690_v40 }
 0x2f4   : > { %2793 = vst [vmem:[%s4983_s8 + $0x58] sm:$0xff] %v2699_v49 }
 0x2f5   : > { %2791 = vst [vmem:[%s4983_s8 + $0x48] sm:$0xff] %v2691_v61 }
 0x2f7   : > { %v3608_v20 = vpop.f32.mrb[140].mxu1 }
 0x2f8   : > { %v2712_v43 = vadd.f32 %v3608_v20, %v4978_v53  ;;  %v2703_v8 = vpop.f32.mrb[141].mxu1 }
 0x2f9   : > { %v2704_v46 = vadd.f32 %v4978_v53, %v2703_v8  ;;  %v3609_v51 = vpop.f32.mrb[142].mxu1 }
 0x2fa   : > { %2796 = vst [vmem:[%s4983_s8 + $0x70] sm:$0xff] %v2712_v43  ;;  %v2715_v25 = vadd.f32 %v3609_v51, %v4978_v53  ;;  %v2706_v34 = vpop.f32.mrb[143].mxu1 }
 0x2fb   : > { %2794 = vst [vmem:[%s4983_s8 + $0x60] sm:$0xff] %v2704_v46  ;;  %v2707_v32 = vadd.f32 %v4978_v53, %v2706_v34 }
 0x2fc   : > { %2797 = vst [vmem:[%s4983_s8 + $0x78] sm:$0xff] %v2715_v25 }
 0x2fd   : > { %2795 = vst [vmem:[%s4983_s8 + $0x68] sm:$0xff] %v2707_v32 }
 0x2ff   : > { %v3612_v58 = vpop.f32.mrb[144].mxu1 }
 0x300   : > { %v2728_v47 = vadd.f32 %v3612_v58, %v4978_v53  ;;  %v2719_v27 = vpop.f32.mrb[145].mxu1 }
 0x301   : > { %v2720_v13 = vadd.f32 %v4978_v53, %v2719_v27  ;;  %v3613_v23 = vpop.f32.mrb[146].mxu1 }
 0x302   : > { %2800 = vst [vmem:[%s4983_s8 + $0x90] sm:$0xff] %v2728_v47  ;;  %v2731_v7 = vadd.f32 %v3613_v23, %v4978_v53  ;;  %v2722_v38 = vpop.f32.mrb[147].mxu1 }
 0x303   : > { %2798 = vst [vmem:[%s4983_s8 + $0x80] sm:$0xff] %v2720_v13  ;;  %v2723_v41 = vadd.f32 %v4978_v53, %v2722_v38 }
 0x304   : > { %2801 = vst [vmem:[%s4983_s8 + $0x98] sm:$0xff] %v2731_v7 }
 0x305   : > { %2799 = vst [vmem:[%s4983_s8 + $0x88] sm:$0xff] %v2723_v41 }
 0x307   : > { %v3616_v55 = vpop.f32.mrb[148].mxu1 }
 0x308   : > { %v2744_v17 = vadd.f32 %v3616_v55, %v4978_v53  ;;  %v2735_v52 = vpop.f32.mrb[149].mxu1 }
 0x309   : > { %v2736_v57 = vadd.f32 %v4978_v53, %v2735_v52  ;;  %v3617_v36 = vpop.f32.mrb[150].mxu1 }
 0x30a   : > { %2804 = vst [vmem:[%s4983_s8 + $0xb0] sm:$0xff] %v2744_v17  ;;  %v2747_v63 = vadd.f32 %v3617_v36, %v4978_v53  ;;  %v2738_v59 = vpop.f32.mrb[151].mxu1 }
 0x30b   : > { %2802 = vst [vmem:[%s4983_s8 + $0xa0] sm:$0xff] %v2736_v57  ;;  %v2739_v50 = vadd.f32 %v4978_v53, %v2738_v59 }
 0x30c   : > { %2805 = vst [vmem:[%s4983_s8 + $0xb8] sm:$0xff] %v2747_v63 }
 0x30d   : > { %2803 = vst [vmem:[%s4983_s8 + $0xa8] sm:$0xff] %v2739_v50 }
 0x30f   : > { %v3620_v22 = vpop.f32.mrb[152].mxu1 }
 0x310   : > { %v2760_v6 = vadd.f32 %v3620_v22, %v4978_v53  ;;  %v2751_v16 = vpop.f32.mrb[153].mxu1 }
 0x311   : > { %v2752_v11 = vadd.f32 %v4978_v53, %v2751_v16  ;;  %v3621_v48 = vpop.f32.mrb[154].mxu1 }
 0x312   : > { %2808 = vst [vmem:[%s4983_s8 + $0xd0] sm:$0xff] %v2760_v6  ;;  %v2763_v0 = vadd.f32 %v3621_v48, %v4978_v53  ;;  %v2754_v1 = vpop.f32.mrb[155].mxu1 }
 0x313   : > { %2806 = vst [vmem:[%s4983_s8 + $0xc0] sm:$0xff] %v2752_v11  ;;  %v2755_v18 = vadd.f32 %v4978_v53, %v2754_v1 }
 0x314   : > { %2809 = vst [vmem:[%s4983_s8 + $0xd8] sm:$0xff] %v2763_v0 }
 0x315   : > { %2807 = vst [vmem:[%s4983_s8 + $0xc8] sm:$0xff] %v2755_v18 }
 0x317   : > { %v3624_v2 = vpop.f32.mrb[156].mxu1 }
 0x318   : > { %v2776_v12 = vadd.f32 %v3624_v2, %v4978_v53  ;;  %v2767_v45 = vpop.f32.mrb[157].mxu1 }
 0x319   : > { %v2768_v15 = vadd.f32 %v4978_v53, %v2767_v45  ;;  %v3625_v26 = vpop.f32.mrb[158].mxu1 }
 0x31a   : > { %2812 = vst [vmem:[%s4983_s8 + $0xf0] sm:$0xff] %v2776_v12  ;;  %v2779_v28 = vadd.f32 %v3625_v26, %v4978_v53  ;;  %v2770_v24 = vpop.f32.mrb[159].mxu1 }
 0x31b   : > { %2810 = vst [vmem:[%s4983_s8 + $0xe0] sm:$0xff] %v2768_v15  ;;  %v2771_v54 = vadd.f32 %v4978_v53, %v2770_v24 }
 0x31c   : > { %2813 = vst [vmem:[%s4983_s8 + $0xf8] sm:$0xff] %v2779_v28 }
 0x31d   : > { %2811 = vst [vmem:[%s4983_s8 + $0xe8] sm:$0xff] %v2771_v54 }
 0x31e PF: > { %s15_s18 = sadd.s32 1, %s3739_s18  }
 0x31f   : > { %p12_p4 = scmp.ge.s32.totalorder %s15_s18, 4  }
 0x321   :  { %14 = sbr.rel (!%p12_p4) target bundleno = 1 (0x1), region = 70 }

// kernel: _forward.5
= control target key start
LH: loop header
LB: loop body
LE: loop exit
PB: predicated region body
PF: predicated region fallthrough
CT: control target
= control target key end

     0   :  { %s3733_s27 = smov 0   ;;  %s4499_s0 = inlined_call_operand.vmem [shape: s32[2,128,1], index: 0, kind: input, shape index: {}]   ;;  %s4500_s1 = inlined_call_operand.vmem [shape: bf16[2,256,128], index: 1, kind: input, shape index: {}]   ;;  %s4501_s2 = inlined_call_operand.vmem [shape: bf16[2048,128], index: 2, kind: input, shape index: {}]   ;;  %s4502_s3 = inlined_call_operand.vmem [shape: f32[1,128], index: 3, kind: input, shape index: {}, may-alias: {3,5,7}]   ;;  %s4503_s4 = inlined_call_operand.vmem [shape: bf16[128,128], index: 4, kind: input, shape index: {}]   ;;  %s4504_s5 = inlined_call_operand.vmem [shape: f32[1,128], index: 5, kind: input, shape index: {}, may-alias: {3,5,7}]   ;;  %s4505_s6 = inlined_call_operand.vmem [shape: bf16[128,128], index: 6, kind: input, shape index: {}]   ;;  %s4506_s7 = inlined_call_operand.vmem [shape: f32[1,128], index: 7, kind: input, shape index: {}, may-alias: {3,5,7}]   ;;  %s4507_s8 = inlined_call_operand.vmem [shape: f32[2,8,128], index: 8, kind: output, shape index: {}]  }
   0x1 LB: > { %s2707_s28 = sadd.s32 4294967295, %s3682_s27   ;;  %p2711_p0 = scmp.ge.s32.totalorder %s3682_s27, 1  ;;  %s3682_s27 = sphi %s3733_s27, %s18_s27  }
   0x2   : > { %p272_p1 = scmp.lt.s32.totalorder %s3682_s27, 3 }
   0x4   : > { %p273_p2 = pnand %p2711_p0, %p272_p1 }
   0x5   : > { %p310_p3 = scmp.lt.s32.totalorder (!%p273_p2), %s2707_s28, 1  ;;  %v3684_v0 = vmov (!%p273_p2), 0   ;;  %v3532_v33 = vld [vmem:[%s4501_s2 + $0x40] sm:$0xff] (!%p273_p2)   ;;  %v3685_v34 = vmov (!%p273_p2), 0.0   ;;  %v3533_v35 = vld [vmem:[%s4501_s2 + $0x48] sm:$0xff] (!%p273_p2)   ;;  %v3535_v36 = vld [vmem:[%s4501_s2 + $0x50] sm:$0xff] (!%p273_p2)   ;;  %v373_v40 = vlaneseq (!%p273_p2) }
   0x6   : > { %276 = sbr.rel (%p273_p2) target bundleno = 1284 (0x504), region = 52  ;;  %3515 = vset.pattern.permute.xlu1 (!%p273_p2), %v3684_v0  ;;  %3514 = vset.pattern.permute.xlu0 (!%p273_p2), %v3684_v0  ;;  %v3537_v37 = vld [vmem:[%s4501_s2 + $0x58] sm:$0xff] (!%p273_p2)   ;;  %v3539_v38 = vld [vmem:[%s4501_s2 + $0x60] sm:$0xff] (!%p273_p2)   ;;  %v3541_v39 = vld [vmem:[%s4501_s2 + $0x68] sm:$0xff] (!%p273_p2)   ;;  %v3686_v48 = vmov (!%p273_p2), 1.0|1.0  }
   0x7   : > { %3142 = vmatprep.subr.bf16.mxu1 (!%p273_p2), %v3685_v34  ;;  %v3812_v41 = vand.u32 (!%p273_p2), 127, %v373_v40  ;;  %v3534_v47 = vld [vmem:[%s4501_s2 + $0x80] sm:$0xff] (!%p273_p2)   ;;  %v3536_v49 = vld [vmem:[%s4501_s2 + $0x88] sm:$0xff] (!%p273_p2)   ;;  %v3538_v52 = vld [vmem:[%s4501_s2 + $0x90] sm:$0xff] (!%p273_p2)  }
   0x8   : > { %3143 = vmatpush3.bf16.msra.mxu1 (!%p273_p2), %v3532_v33  ;;  %v3540_v53 = vld [vmem:[%s4501_s2 + $0x98] sm:$0xff] (!%p273_p2)   ;;  %v3542_v0 = vld [vmem:[%s4501_s2 + $0xa0] sm:$0xff] (!%p273_p2)   ;;  %v3554_v33 = vld [vmem:[%s4501_s2 + $0x110] sm:$0xff] (!%p273_p2)  }
   0x9   : > { %3144 = vmatprep.subr.bf16.mxu1 (!%p273_p2), %v3685_v34  ;;  %v3815_v44 = vadd.s32 (!%p273_p2), 128, %v3812_v41 }
   0xc   : > { %3145 = vmatpush3.bf16.msra.mxu1 (!%p273_p2), %v3533_v35 }
   0xd   : > { %s4509_s28 = smov (!%p310_p3, %s2707_s28), 1  ;;  %3146 = vmatprep.subr.bf16.mxu1 %v3685_v34 }
   0xe   : > { %s2914_s29 = sshll.u32 %s4509_s28, 7  ;;  %s2716_s26 = sshll.u32 %s4509_s28, 3 }
   0xf   : > { %s3747_s10 = scalar_lea.vmem %s4499_s0, %s2914_s29  ;;  %s3756_s13 = scalar_lea.vmem %s4500_s1, %s2914_s29 }
  0x10   : > { %v359_v1 = vld [vmem:[%s3747_s10 + $0x10] sm:$0xff]  ;;  %v357_v2 = vld [vmem:[%s3747_s10] sm:$0xff]  ;;  %v360_v3 = vld [vmem:[%s3747_s10 + $0x18] sm:$0xff]  ;;  %3147 = vmatpush3.bf16.msra.mxu1 %v3535_v36  ;;  %s323_s11 = scalar_lea.vmem %s4507_s8, %s2716_s26 }
  0x11   : > { %383 = vperm.xlu1 %3515, %v359_v1   ;;  %377 = vperm.xlu0 %3514, %v357_v2   ;;  %v358_v4 = vld [vmem:[%s3747_s10 + $0x8] sm:$0xff]  ;;  %v361_v6 = vld [vmem:[%s3747_s10 + $0x20] sm:$0xff]  ;;  %v364_v9 = vld [vmem:[%s3747_s10 + $0x38] sm:$0xff] }
  0x12   : > { %v362_v5 = vld [vmem:[%s3747_s10 + $0x28] sm:$0xff]  ;;  %v3516_v7 = vld [vmem:[%s3756_s13 + $0x40] sm:$0xff]   ;;  %v363_v11 = vld [vmem:[%s3747_s10 + $0x30] sm:$0xff]  ;;  %3148 = vmatprep.subr.bf16.mxu1 %v3685_v34 }
  0x13   : > { %v3517_v8 = vld [vmem:[%s3756_s13] sm:$0xff]   ;;  %2916 = vmatprep.subr.bf16.mxu0 %v3516_v7  ;;  %v3518_v10 = vld [vmem:[%s3756_s13 + $0x48] sm:$0xff]   ;;  %v3520_v13 = vld [vmem:[%s3756_s13 + $0x50] sm:$0xff]  }
  0x14   : > { %2917 = vmatpush3.bf16.msra.mxu0 %v3517_v8  ;;  %v3519_v12 = vld [vmem:[%s3756_s13 + $0x8] sm:$0xff]   ;;  %v365_v15 = vld [vmem:[%s3747_s10 + $0x40] sm:$0xff]  ;;  %v3521_v16 = vld [vmem:[%s3756_s13 + $0x10] sm:$0xff]   ;;  %3149 = vmatpush3.bf16.msra.mxu1 %v3537_v37 }
  0x15   : > { %386 = vperm.xlu1 %3515, %v360_v3   ;;  %380 = vperm.xlu0 %3514, %v358_v4   ;;  %v366_v14 = vld [vmem:[%s3747_s10 + $0x48] sm:$0xff]  ;;  %v3522_v17 = vld [vmem:[%s3756_s13 + $0x58] sm:$0xff]   ;;  %v367_v19 = vld [vmem:[%s3747_s10 + $0x50] sm:$0xff] }
  0x16   : > { %2918 = vmatprep.subr.bf16.mxu0 %v3518_v10  ;;  %v368_v18 = vld [vmem:[%s3747_s10 + $0x58] sm:$0xff]  ;;  %v3524_v21 = vld [vmem:[%s3756_s13 + $0x60] sm:$0xff]   ;;  %v370_v22 = vld [vmem:[%s3747_s10 + $0x68] sm:$0xff]  ;;  %3150 = vmatprep.subr.bf16.mxu1 %v3685_v34 }
  0x17   : > { %v3523_v20 = vld [vmem:[%s3756_s13 + $0x18] sm:$0xff]   ;;  %v369_v23 = vld [vmem:[%s3747_s10 + $0x60] sm:$0xff]  ;;  %v3526_v25 = vld [vmem:[%s3756_s13 + $0x68] sm:$0xff]  }
  0x18   : > { %2919 = vmatpush3.bf16.msra.mxu0 %v3519_v12  ;;  %v3525_v24 = vld [vmem:[%s3756_s13 + $0x20] sm:$0xff]   ;;  %v372_v26 = vld [vmem:[%s3747_s10 + $0x78] sm:$0xff]  ;;  %v371_v27 = vld [vmem:[%s3747_s10 + $0x70] sm:$0xff]  ;;  %3151 = vmatpush3.bf16.msra.mxu1 %v3539_v38 }
  0x19   : > { %392 = vperm.xlu1 %3515, %v362_v5   ;;  %389 = vperm.xlu0 %3514, %v361_v6   ;;  %v3527_v28 = vld [vmem:[%s3756_s13 + $0x28] sm:$0xff]   ;;  %v3528_v29 = vld [vmem:[%s3756_s13 + $0x70] sm:$0xff]   ;;  %v3530_v31 = vld [vmem:[%s3756_s13 + $0x78] sm:$0xff]  }
  0x1a   : > { %2920 = vmatprep.subr.bf16.mxu0 %v3520_v13  ;;  %v3529_v30 = vld [vmem:[%s3756_s13 + $0x30] sm:$0xff]   ;;  %v3531_v32 = vld [vmem:[%s3756_s13 + $0x38] sm:$0xff]   ;;  %3152 = vmatprep.subr.bf16.mxu1 %v3685_v34  ;;  %v3544_v2 = vld [vmem:[%s4501_s2 + $0xa8] sm:$0xff]  }
  0x1b   : > { %v3543_v1 = vld [vmem:[%s4501_s2 + $0x70] sm:$0xff]   ;;  %v3545_v3 = vld [vmem:[%s4501_s2 + $0x78] sm:$0xff]   ;;  %v3547_v13 = vld [vmem:[%s4501_s2] sm:$0xff]  }
  0x1c   : > { %2921 = vmatpush3.bf16.msra.mxu0 %v3521_v16  ;;  %3153 = vmatpush3.bf16.msra.mxu1 %v3541_v39  ;;  %v3546_v4 = vld [vmem:[%s4501_s2 + $0xb0] sm:$0xff]   ;;  %v3548_v5 = vld [vmem:[%s4501_s2 + $0xb8] sm:$0xff]   ;;  %v3555_v36 = vld [vmem:[%s4501_s2 + $0x20] sm:$0xff]  }
  0x1d   : > { %398 = vperm.xlu1 %3515, %v364_v9   ;;  %395 = vperm.xlu0 %3514, %v363_v11   ;;  %v3556_v39 = vld [vmem:[%s4501_s2 + $0x118] sm:$0xff]  }
  0x1e   : > { %2922 = vmatprep.subr.bf16.mxu0 %v3522_v17  ;;  %3154 = vmatprep.subr.bf16.mxu1 %v3685_v34 }
  0x20   : > { %2923 = vmatpush3.bf16.msra.mxu0 %v3523_v20  ;;  %3155 = vmatpush3.bf16.msra.mxu1 %v3543_v1  ;;  %v3549_v20 = vld [vmem:[%s4501_s2 + $0x8] sm:$0xff]  }
  0x21   : > { %404 = vperm.xlu1 %3515, %v366_v14   ;;  %401 = vperm.xlu0 %3514, %v365_v15   ;;  %v3565_v1 = vld [vmem:[%s4501_s2 + $0xc8] sm:$0xff]  }
  0x22   : > { %2924 = vmatprep.subr.bf16.mxu0 %v3524_v21  ;;  %3156 = vmatprep.subr.bf16.mxu1 %v3685_v34 }
  0x24   : > { %2925 = vmatpush3.bf16.msra.mxu0 %v3525_v24  ;;  %3157 = vmatpush3.bf16.msra.mxu1 %v3545_v3  ;;  %v3551_v24 = vld [vmem:[%s4501_s2 + $0x10] sm:$0xff]   ;;  %v3566_v3 = vld [vmem:[%s4501_s2 + $0x180] sm:$0xff]  }
  0x25   : > { %410 = vperm.xlu1 %3515, %v368_v18   ;;  %407 = vperm.xlu0 %3514, %v367_v19  }
  0x26   : > { %2926 = vmatprep.subr.bf16.mxu0 %v3526_v25  ;;  %3162 = vmatprep.subr.bf16.mxu1 %v3685_v34 }
  0x28   : > { %2927 = vmatpush3.bf16.msra.mxu0 %v3527_v28 }
  0x29   : > { %416 = vperm.xlu1 %3515, %v370_v22   ;;  %413 = vperm.xlu0 %3514, %v369_v23   ;;  %v3550_v22 = vld [vmem:[%s4501_s2 + $0x100] sm:$0xff]  }
  0x2a   : > { %2928 = vmatprep.subr.bf16.mxu0 %v3528_v29 }
  0x2c   : > { %2929 = vmatpush3.bf16.msra.mxu0 %v3529_v30 }
  0x2d   : > { %422 = vperm.xlu1 %3515, %v372_v26   ;;  %419 = vperm.xlu0 %3514, %v371_v27   ;;  %v3552_v27 = vld [vmem:[%s4501_s2 + $0x108] sm:$0xff]  }
  0x2e   : > { %2930 = vmatprep.subr.bf16.mxu0 %v3530_v31  ;;  %v3553_v31 = vld [vmem:[%s4501_s2 + $0x18] sm:$0xff]  }
  0x30   : > { %2931 = vmatpush3.bf16.msra.mxu0 %v3531_v32 }
  0x31   : > { %3182 = vmatprep.subr.bf16.mxu0 %v3685_v34 }
  0x90   : > { %v384_v42 = vpop.permute.xlu1 %383  ;;  %v378_v43 = vpop.permute.xlu0 %377 }
  0x91   : > { %vm429_vm0 = vcmp.eq.s32.totalorder %v384_v42, %v3815_v44  ;;  %vm424_vm4 = vcmp.eq.s32.totalorder %v378_v43, %v3812_v41  ;;  %vm425_vm7 = vcmp.eq.s32.totalorder %v378_v43, %v3815_v44  ;;  %vm428_vm9 = vcmp.eq.s32.totalorder %v384_v42, %v3812_v41  ;;  %v3557_v43 = vld [vmem:[%s4501_s2 + $0x28] sm:$0xff]  }
  0x94   : > { %v387_v45 = vpop.permute.xlu1 %386  ;;  %v381_v46 = vpop.permute.xlu0 %380 }
  0x95   : > { %vm431_vm1 = vcmp.eq.s32.totalorder %v387_v45, %v3815_v44  ;;  %vm426_vm2 = vcmp.eq.s32.totalorder %v381_v46, %v3812_v41  ;;  %vm427_vm3 = vcmp.eq.s32.totalorder %v381_v46, %v3815_v44  ;;  %vm430_vm10 = vcmp.eq.s32.totalorder %v387_v45, %v3812_v41  ;;  %v3558_v45 = vld [vmem:[%s4501_s2 + $0x120] sm:$0xff]  }
  0x96   : > { %vm2737_vm5 = vmpackc.low %vm431_vm1, %vm429_vm0 }
  0x97   : > { %vm2735_vm6 = vmpackc.low %vm426_vm2, %vm424_vm4 }
  0x98   : > { %vm2733_vm8 = vmpackc.low %vm427_vm3, %vm425_vm7  ;;  %v393_v50 = vpop.permute.xlu1 %392  ;;  %v390_v51 = vpop.permute.xlu0 %389 }
  0x99   : > { %2734 = vmatprep.mubr.msk.bf16.mxu0 %vm2733_vm8, %v3686_v48  ;;  %vm2739_vm11 = vmpackc.low %vm430_vm10, %vm428_vm9  ;;  %vm435_vm12 = vcmp.eq.s32.totalorder %v393_v50, %v3815_v44  ;;  %vm433_vm13 = vcmp.eq.s32.totalorder %v390_v51, %v3815_v44  ;;  %vm434_vm15 = vcmp.eq.s32.totalorder %v393_v50, %v3812_v41  ;;  %vm432_vm0 = vcmp.eq.s32.totalorder %v390_v51, %v3812_v41  ;;  %v3560_v50 = vld [vmem:[%s4501_s2 + $0x128] sm:$0xff]  }
  0x9a   : > { %2736 = vmatmul.mubr.msk.bf16.vlgmr.msra.gmra.mrb[0].mxu0 %vm2735_vm6, %v3686_v48  ;;  %vm2741_vm14 = vmpackc.low %vm435_vm12, %vm433_vm13 }
  0x9b   : > { %2738 = vmatprep.mubr.msk.bf16.mxu0 %vm2737_vm5, %v3686_v48  ;;  %3183 = vmatpush3.bf16.msra.mxu0 %v3534_v47  ;;  %vm2743_vm3 = vmpackc.low %vm434_vm15, %vm432_vm0  ;;  %v3559_v47 = vld [vmem:[%s4501_s2 + $0x30] sm:$0xff]  }
  0x9c   : > { %3184 = vmatprep.subr.bf16.mxu0 %v3685_v34  ;;  %v399_v54 = vpop.permute.xlu1 %398  ;;  %v396_v55 = vpop.permute.xlu0 %395 }
  0x9d   : > { %vm439_vm1 = vcmp.eq.s32.totalorder %v399_v54, %v3815_v44  ;;  %vm437_vm2 = vcmp.eq.s32.totalorder %v396_v55, %v3815_v44  ;;  %vm438_vm5 = vcmp.eq.s32.totalorder %v399_v54, %v3812_v41  ;;  %vm436_vm6 = vcmp.eq.s32.totalorder %v396_v55, %v3812_v41  ;;  %v3561_v54 = vld [vmem:[%s4501_s2 + $0x38] sm:$0xff]  }
  0x9e   : > { %vm2745_vm4 = vmpackc.low %vm439_vm1, %vm437_vm2 }
  0x9f   : > { %3185 = vmatpush3.bf16.msra.mxu0 %v3536_v49  ;;  %vm2747_vm9 = vmpackc.low %vm438_vm5, %vm436_vm6 }
  0xa0   : > { %3186 = vmatprep.subr.bf16.mxu0 %v3685_v34  ;;  %v405_v56 = vpop.permute.xlu1 %404  ;;  %v402_v57 = vpop.permute.xlu0 %401 }
  0xa1   : > { %vm443_vm7 = vcmp.eq.s32.totalorder %v405_v56, %v3815_v44  ;;  %vm441_vm8 = vcmp.eq.s32.totalorder %v402_v57, %v3815_v44  ;;  %vm440_vm12 = vcmp.eq.s32.totalorder %v402_v57, %v3812_v41 }
  0xa2   : > { %2740 = vmatmul.mubr.msk.bf16.gmra.mrb[4].mxu0 %vm2739_vm11, %v3686_v48  ;;  %vm2749_vm10 = vmpackc.low %vm443_vm7, %vm441_vm8  ;;  %vm442_vm11 = vcmp.eq.s32.totalorder %v405_v56, %v3812_v41  ;;  %v3562_v56 = vld [vmem:[%s4501_s2 + $0x130] sm:$0xff]  }
  0xa3   : > { %2742 = vmatprep.mubr.msk.bf16.mxu0 %vm2741_vm14, %v3686_v48  ;;  %3187 = vmatpush3.bf16.msra.mxu0 %v3538_v52  ;;  %vm2751_vm15 = vmpackc.low %vm442_vm11, %vm440_vm12 }
  0xa4   : > { %3188 = vmatprep.subr.bf16.mxu0 %v3685_v34  ;;  %v411_v58 = vpop.permute.xlu1 %410  ;;  %v408_v59 = vpop.permute.xlu0 %407 }
  0xa5   : > { %vm447_vm13 = vcmp.eq.s32.totalorder %v411_v58, %v3815_v44  ;;  %vm445_vm14 = vcmp.eq.s32.totalorder %v408_v59, %v3815_v44  ;;  %vm446_vm1 = vcmp.eq.s32.totalorder %v411_v58, %v3812_v41  ;;  %vm444_vm2 = vcmp.eq.s32.totalorder %v408_v59, %v3812_v41  ;;  %v3563_v58 = vld [vmem:[%s4501_s2 + $0xc0] sm:$0xff]  }
  0xa6   : > { %vm2753_vm0 = vmpackc.low %vm447_vm13, %vm445_vm14 }
  0xa7   : > { %3189 = vmatpush3.bf16.msra.mxu0 %v3540_v53  ;;  %vm2755_vm5 = vmpackc.low %vm446_vm1, %vm444_vm2 }
  0xa8   : > { %3190 = vmatprep.subr.bf16.mxu0 %v3685_v34  ;;  %v417_v60 = vpop.permute.xlu1 %416  ;;  %v414_v61 = vpop.permute.xlu0 %413 }
  0xa9   : > { %vm450_vm7 = vcmp.eq.s32.totalorder %v417_v60, %v3812_v41  ;;  %vm448_vm8 = vcmp.eq.s32.totalorder %v414_v61, %v3812_v41 }
  0xaa   : > { %2744 = vmatmul.mubr.msk.bf16.gmra.mrb[8].mxu0 %vm2743_vm3, %v3686_v48  ;;  %vm451_vm3 = vcmp.eq.s32.totalorder %v417_v60, %v3815_v44  ;;  %vm2759_vm11 = vmpackc.low %vm450_vm7, %vm448_vm8 }
  0xab   : > { %2746 = vmatprep.mubr.msk.bf16.mxu0 %vm2745_vm4, %v3686_v48  ;;  %vm449_vm4 = vcmp.eq.s32.totalorder %v414_v61, %v3815_v44  ;;  %3191 = vmatpush3.bf16.msra.mxu0 %v3542_v0  ;;  %v3564_v61 = vld [vmem:[%s4501_s2 + $0x138] sm:$0xff]  }
  0xac   : > { %vm2757_vm6 = vmpackc.low %vm451_vm3, %vm449_vm4  ;;  %v423_v62 = vpop.permute.xlu1 %422  ;;  %v420_v63 = vpop.permute.xlu0 %419  ;;  %3192 = vmatprep.subr.bf16.mxu0 %v3685_v34 }
  0xad   : > { %vm454_vm13 = vcmp.eq.s32.totalorder %v423_v62, %v3812_v41  ;;  %vm452_vm14 = vcmp.eq.s32.totalorder %v420_v63, %v3812_v41 }
  0xaf   : > { %3193 = vmatpush3.bf16.msra.mxu0 %v3544_v2 }
  0xb0   : > { %3194 = vmatprep.subr.bf16.mxu0 %v3685_v34 }
  0xb2   : > { %2748 = vmatmul.mubr.msk.bf16.gmra.mrb[12].mxu0 %vm2747_vm9, %v3686_v48  ;;  %vm455_vm9 = vcmp.eq.s32.totalorder %v423_v62, %v3815_v44 }
  0xb3   : > { %2750 = vmatprep.mubr.msk.bf16.mxu0 %vm2749_vm10, %v3686_v48  ;;  %vm453_vm10 = vcmp.eq.s32.totalorder %v420_v63, %v3815_v44  ;;  %3195 = vmatpush3.bf16.msra.mxu0 %v3546_v4 }
  0xb4   : > { %vm2761_vm12 = vmpackc.low %vm455_vm9, %vm453_vm10  ;;  %3196 = vmatprep.subr.bf16.mxu0 %v3685_v34 }
  0xb7   : > { %3197 = vmatpush3.bf16.msra.mxu0 %v3548_v5  ;;  %v3567_v5 = vld [vmem:[%s4501_s2 + $0xd0] sm:$0xff]  }
  0xb8   : > { %3222 = vmatprep.subr.bf16.mxu0 %v3685_v34 }
  0xba   : > { %2752 = vmatmul.mubr.msk.bf16.gmra.mrb[16].mxu0 %vm2751_vm15, %v3686_v48  ;;  %vm2763_vm15 = vmpackc.low %vm454_vm13, %vm452_vm14 }
  0xbb   : > { %2754 = vmatprep.mubr.msk.bf16.mxu0 %vm2753_vm0, %v3686_v48  ;;  %vm3687_vm0 = vmmov 0  }
  0xbc   : > { %3158 = vmatprep.mubr.msk.bf16.mxu1 %vm3687_vm0, %v3685_v34 }
  0xc2   : > { %2756 = vmatmul.mubr.msk.bf16.gmra.mrb[20].mxu0 %vm2755_vm5, %v3686_v48 }
  0xc3   : > { %2758 = vmatprep.mubr.msk.bf16.mxu0 %vm2757_vm6, %v3686_v48 }
  0xca   : > { %2760 = vmatmul.mubr.msk.bf16.gmra.mrb[24].mxu0 %vm2759_vm11, %v3686_v48 }
  0xcb   : > { %2762 = vmatprep.mubr.msk.bf16.mxu0 %vm2761_vm12, %v3686_v48 }
  0xd2   : > { %2764 = vmatmul.mubr.msk.bf16.gmra.mrb[28].mxu0 %vm2763_vm15, %v3686_v48 }
  0xd3   : > { %3198 = vmatprep.mubr.msk.bf16.mxu0 %vm3687_vm0, %v3685_v34 }
 0x16d   : > { %v2932_v6 = vpop.f32.mrb[0].mxu0 }
 0x16e   : > { %v2933_v7 = vpop.f32.mrb[1].mxu0 }
 0x16f   : > { %v2934_v8 = vadd.f32 %v2933_v7, %v2932_v6  ;;  %v2935_v9 = vpop.f32.mrb[2].mxu0 }
 0x170   : > { %v2936_v10 = vpop.f32.mrb[3].mxu0 }
 0x171   : > { %v2937_v11 = vadd.f32 %v2936_v10, %v2935_v9 }
 0x173   : > { %v3909_v12 = vpack.c.bf16 %v2937_v11, %v2934_v8  ;;  %v3568_v8 = vld [vmem:[%s4501_s2 + $0x188] sm:$0xff]  }
 0x175   : > { %v2938_v14 = vpop.f32.mrb[4].mxu0  ;;  %v738_v15 = vrot.slane %v3909_v12, 4 }
 0x176   : > { %v2939_v16 = vpop.f32.mrb[5].mxu0 }
 0x177   : > { %v2940_v17 = vadd.f32 %v2939_v16, %v2938_v14  ;;  %v2941_v18 = vpop.f32.mrb[6].mxu0  ;;  %3159 = vmatmul.mubr.bf16.vlgmr.msra.gmra.mrb[0].mxu1 %v738_v15  ;;  %v3570_v14 = vld [vmem:[%s4501_s2 + $0x190] sm:$0xff]   ;;  %v3571_v16 = vld [vmem:[%s4501_s2 + $0xe0] sm:$0xff]  }
 0x178   : > { %3163 = vmatpush3.bf16.msra.mxu1 %v3547_v13  ;;  %v2942_v19 = vpop.f32.mrb[7].mxu0  ;;  %3178 = vmatprep.mubr.msk.bf16.mxu1 %vm3687_vm0, %v3685_v34 }
 0x179   : > { %v2943_v21 = vadd.f32 %v2942_v19, %v2941_v18  ;;  %3164 = vmatprep.subr.bf16.mxu1 %v3685_v34  ;;  %v3572_v19 = vld [vmem:[%s4501_s2 + $0x198] sm:$0xff]  }
 0x17b   : > { %v3924_v23 = vpack.c.bf16 %v2943_v21, %v2940_v17 }
 0x17c   : > { %3165 = vmatpush3.bf16.msra.mxu1 %v3549_v20 }
 0x17d   : > { %v2944_v25 = vpop.f32.mrb[8].mxu0  ;;  %3199 = vmatmul.mubr.bf16.vlgmr.msra.gmra.mrb[32].mxu0 %v3924_v23  ;;  %3166 = vmatprep.subr.bf16.mxu1 %v3685_v34 }
 0x17e   : > { %3223 = vmatpush3.bf16.msra.mxu0 %v3550_v22  ;;  %v2945_v26 = vpop.f32.mrb[9].mxu0  ;;  %3238 = vmatprep.mubr.msk.bf16.mxu0 %vm3687_vm0, %v3685_v34 }
 0x17f   : > { %v2946_v28 = vadd.f32 %v2945_v26, %v2944_v25  ;;  %v2947_v29 = vpop.f32.mrb[10].mxu0  ;;  %3224 = vmatprep.subr.bf16.mxu0 %v3685_v34  ;;  %v3574_v26 = vld [vmem:[%s4501_s2 + $0x1a0] sm:$0xff]  }
 0x180   : > { %3167 = vmatpush3.bf16.msra.mxu1 %v3551_v24  ;;  %v2948_v30 = vpop.f32.mrb[11].mxu0  ;;  %v3573_v24 = vld [vmem:[%s4501_s2 + $0xe8] sm:$0xff]  }
 0x181   : > { %v2949_v32 = vadd.f32 %v2948_v30, %v2947_v29  ;;  %3168 = vmatprep.subr.bf16.mxu1 %v3685_v34  ;;  %v3576_v29 = vld [vmem:[%s4501_s2 + $0x1a8] sm:$0xff]   ;;  %v3577_v30 = vld [vmem:[%s4501_s2 + $0xf8] sm:$0xff]  }
 0x182   : > { %3225 = vmatpush3.bf16.msra.mxu0 %v3552_v27 }
 0x183   : > { %v3944_v35 = vpack.c.bf16 %v2949_v32, %v2946_v28  ;;  %3226 = vmatprep.subr.bf16.mxu0 %v3685_v34  ;;  %v3575_v28 = vld [vmem:[%s4501_s2 + $0xf0] sm:$0xff]   ;;  %v3579_v32 = vld [vmem:[%s4501_s2 + $0x140] sm:$0xff]  }
 0x184   : > { %3169 = vmatpush3.bf16.msra.mxu1 %v3553_v31  ;;  %v3578_v31 = vld [vmem:[%s4501_s2 + $0x1b0] sm:$0xff]  }
 0x185   : > { %v2950_v37 = vpop.f32.mrb[12].mxu0  ;;  %3170 = vmatprep.subr.bf16.mxu1 %v3685_v34 }
 0x186   : > { %3227 = vmatpush3.bf16.msra.mxu0 %v3554_v33  ;;  %v2951_v38 = vpop.f32.mrb[13].mxu0  ;;  %v1038_v33 = vrot.slane %v3924_v23, 4  ;;  %v3582_v23 = vld [vmem:[%s4501_s2 + $0x200] sm:$0xff]  }
 0x187   : > { %v2952_v40 = vadd.f32 %v2951_v38, %v2950_v37  ;;  %v2953_v41 = vpop.f32.mrb[14].mxu0  ;;  %3228 = vmatprep.subr.bf16.mxu0 %v3685_v34  ;;  %v3581_v37 = vld [vmem:[%s4501_s2 + $0x148] sm:$0xff]   ;;  %v3583_v38 = vld [vmem:[%s4501_s2 + $0x150] sm:$0xff]  }
 0x188   : > { %3171 = vmatpush3.bf16.msra.mxu1 %v3555_v36  ;;  %v2954_v42 = vpop.f32.mrb[15].mxu0  ;;  %v3580_v36 = vld [vmem:[%s4501_s2 + $0x1b8] sm:$0xff]  }
 0x189   : > { %v2955_v44 = vadd.f32 %v2954_v42, %v2953_v41  ;;  %3172 = vmatprep.subr.bf16.mxu1 %v3685_v34  ;;  %v3586_v41 = vld [vmem:[%s4501_s2 + $0x210] sm:$0xff]   ;;  %v3587_v42 = vld [vmem:[%s4501_s2 + $0x160] sm:$0xff]  }
 0x18a   : > { %3229 = vmatpush3.bf16.msra.mxu0 %v3556_v39  ;;  %v3584_v39 = vld [vmem:[%s4501_s2 + $0x208] sm:$0xff]  }
 0x18b   : > { %v3962_v46 = vpack.c.bf16 %v2955_v44, %v2952_v40  ;;  %3230 = vmatprep.subr.bf16.mxu0 %v3685_v34  ;;  %v3585_v40 = vld [vmem:[%s4501_s2 + $0x158] sm:$0xff]   ;;  %v3589_v44 = vld [vmem:[%s4501_s2 + $0x168] sm:$0xff]  }
 0x18c   : > { %3173 = vmatpush3.bf16.msra.mxu1 %v3557_v43  ;;  %v3588_v43 = vld [vmem:[%s4501_s2 + $0x218] sm:$0xff]  }
 0x18d   : > { %v2956_v48 = vpop.f32.mrb[16].mxu0  ;;  %3174 = vmatprep.subr.bf16.mxu1 %v3685_v34 }
 0x18e   : > { %3231 = vmatpush3.bf16.msra.mxu0 %v3558_v45  ;;  %v2957_v49 = vpop.f32.mrb[17].mxu0  ;;  %v3590_v45 = vld [vmem:[%s4501_s2 + $0x220] sm:$0xff]  }
 0x18f   : > { %v2958_v51 = vadd.f32 %v2957_v49, %v2956_v48  ;;  %v2959_v52 = vpop.f32.mrb[18].mxu0  ;;  %3232 = vmatprep.subr.bf16.mxu0 %v3685_v34  ;;  %v3592_v48 = vld [vmem:[%s4501_s2 + $0x228] sm:$0xff]   ;;  %v3593_v49 = vld [vmem:[%s4501_s2 + $0x178] sm:$0xff]  }
 0x190   : > { %3175 = vmatpush3.bf16.msra.mxu1 %v3559_v47  ;;  %v2960_v53 = vpop.f32.mrb[19].mxu0  ;;  %v3591_v47 = vld [vmem:[%s4501_s2 + $0x170] sm:$0xff]  }
 0x191   : > { %v2961_v55 = vadd.f32 %v2960_v53, %v2959_v52  ;;  %3176 = vmatprep.subr.bf16.mxu1 %v3685_v34  ;;  %v1251_v52 = vrot.slane %v3944_v35, 4  ;;  %v3596_v53 = vld [vmem:[%s4501_s2 + $0x238] sm:$0xff]  }
 0x192   : > { %3233 = vmatpush3.bf16.msra.mxu0 %v3560_v50  ;;  %v3594_v50 = vld [vmem:[%s4501_s2 + $0x230] sm:$0xff]  }
 0x193   : > { %v3980_v57 = vpack.c.bf16 %v2961_v55, %v2958_v51  ;;  %3234 = vmatprep.subr.bf16.mxu0 %v3685_v34  ;;  %v3595_v51 = vld [vmem:[%s4501_s2 + $0x1c0] sm:$0xff]   ;;  %v3599_v55 = vld [vmem:[%s4501_s2 + $0x1d0] sm:$0xff]  }
 0x194   : > { %3177 = vmatpush3.bf16.msra.mxu1 %v3561_v54  ;;  %v3597_v54 = vld [vmem:[%s4501_s2 + $0x1c8] sm:$0xff]  }
 0x195   : > { %v2962_v59 = vpop.f32.mrb[20].mxu0  ;;  %3202 = vmatprep.subr.bf16.mxu1 %v3685_v34 }
 0x196   : > { %3235 = vmatpush3.bf16.msra.mxu0 %v3562_v56  ;;  %v2963_v60 = vpop.f32.mrb[21].mxu0  ;;  %v3600_v56 = vld [vmem:[%s4501_s2 + $0x288] sm:$0xff]  }
 0x197   : > { %v2964_v62 = vadd.f32 %v2963_v60, %v2962_v59  ;;  %3179 = vmatmul.mubr.bf16.vlgmr.msra.gmra.mrb[4].mxu1 %v3909_v12  ;;  %v2965_v63 = vpop.f32.mrb[22].mxu0  ;;  %3236 = vmatprep.subr.bf16.mxu0 %v3685_v34  ;;  %v3569_v12 = vld [vmem:[%s4501_s2 + $0xd8] sm:$0xff]   ;;  %v3602_v59 = vld [vmem:[%s4501_s2 + $0x290] sm:$0xff]   ;;  %v3603_v60 = vld [vmem:[%s4501_s2 + $0x1e0] sm:$0xff]  }
 0x198   : > { %3203 = vmatpush3.bf16.msra.mxu1 %v3563_v58  ;;  %v2966_v0 = vpop.f32.mrb[23].mxu0  ;;  %3218 = vmatprep.mubr.msk.bf16.mxu1 %vm3687_vm0, %v3685_v34  ;;  %v3601_v58 = vld [vmem:[%s4501_s2 + $0x1d8] sm:$0xff]  }
 0x199   : > { %v2967_v2 = vadd.f32 %v2966_v0, %v2965_v63  ;;  %3204 = vmatprep.subr.bf16.mxu1 %v3685_v34  ;;  %v3606_v63 = vld [vmem:[%s4501_s2 + $0x2a0] sm:$0xff]   ;;  %v3607_v0 = vld [vmem:[%s4501_s2 + $0x1f0] sm:$0xff]  }
 0x19a   : > { %3237 = vmatpush3.bf16.msra.mxu0 %v3564_v61  ;;  %v3604_v61 = vld [vmem:[%s4501_s2 + $0x298] sm:$0xff]  }
 0x19b   : > { %v4001_v4 = vpack.c.bf16 %v2967_v2, %v2964_v62  ;;  %3262 = vmatprep.subr.bf16.mxu0 %v3685_v34  ;;  %v3605_v62 = vld [vmem:[%s4501_s2 + $0x1e8] sm:$0xff]   ;;  %v3609_v2 = vld [vmem:[%s4501_s2 + $0x1f8] sm:$0xff]  }
 0x19c   : > { %3205 = vmatpush3.bf16.msra.mxu1 %v3565_v1  ;;  %v3608_v1 = vld [vmem:[%s4501_s2 + $0x2a8] sm:$0xff]  }
 0x19d   : > { %3239 = vmatmul.mubr.bf16.vlgmr.msra.gmra.mrb[36].mxu0 %v3944_v35  ;;  %v2968_v6 = vpop.f32.mrb[24].mxu0  ;;  %3206 = vmatprep.subr.bf16.mxu1 %v3685_v34  ;;  %v3598_v35 = vld [vmem:[%s4501_s2 + $0x280] sm:$0xff]  }
 0x19e   : > { %3263 = vmatpush3.bf16.msra.mxu0 %v3566_v3  ;;  %v2969_v7 = vpop.f32.mrb[25].mxu0  ;;  %3278 = vmatprep.mubr.msk.bf16.mxu0 %vm3687_vm0, %v3685_v34  ;;  %v3610_v3 = vld [vmem:[%s4501_s2 + $0x2b0] sm:$0xff]  }
 0x19f   : > { %v2970_v9 = vadd.f32 %v2969_v7, %v2968_v6  ;;  %v2971_v10 = vpop.f32.mrb[26].mxu0  ;;  %3264 = vmatprep.subr.bf16.mxu0 %v3685_v34  ;;  %v1464_v6 = vrot.slane %v3962_v46, 4  ;;  %v3612_v7 = vld [vmem:[%s4501_s2 + $0x2b8] sm:$0xff]  }
 0x1a0   : > { %3207 = vmatpush3.bf16.msra.mxu1 %v3567_v5  ;;  %v2972_v11 = vpop.f32.mrb[27].mxu0  ;;  %v3611_v5 = vld [vmem:[%s4501_s2 + $0x240] sm:$0xff]  }
 0x1a1   : > { %v2973_v13 = vadd.f32 %v2972_v11, %v2971_v10  ;;  %3208 = vmatprep.subr.bf16.mxu1 %v3685_v34  ;;  %v3616_v10 = vld [vmem:[%s4501_s2 + $0x308] sm:$0xff]   ;;  %v3617_v11 = vld [vmem:[%s4501_s2 + $0x258] sm:$0xff]  }
 0x1a2   : > { %3265 = vmatpush3.bf16.msra.mxu0 %v3568_v8  ;;  %v3613_v8 = vld [vmem:[%s4501_s2 + $0x248] sm:$0xff]  }
 0x1a3   : > { %v4022_v15 = vpack.c.bf16 %v2973_v13, %v2970_v9  ;;  %3266 = vmatprep.subr.bf16.mxu0 %v3685_v34  ;;  %v3615_v9 = vld [vmem:[%s4501_s2 + $0x250] sm:$0xff]   ;;  %v3619_v13 = vld [vmem:[%s4501_s2 + $0x260] sm:$0xff]  }
 0x1a4   : > { %3209 = vmatpush3.bf16.msra.mxu1 %v3569_v12  ;;  %v3618_v12 = vld [vmem:[%s4501_s2 + $0x310] sm:$0xff]  }
 0x1a5   : > { %v2974_v17 = vpop.f32.mrb[28].mxu0  ;;  %3210 = vmatprep.subr.bf16.mxu1 %v3685_v34 }
 0x1a6   : > { %3267 = vmatpush3.bf16.msra.mxu0 %v3570_v14  ;;  %v2975_v18 = vpop.f32.mrb[29].mxu0  ;;  %v3620_v14 = vld [vmem:[%s4501_s2 + $0x318] sm:$0xff]  }
 0x1a7   : > { %v2976_v20 = vadd.f32 %v2975_v18, %v2974_v17  ;;  %v2977_v21 = vpop.f32.mrb[30].mxu0  ;;  %3268 = vmatprep.subr.bf16.mxu0 %v3685_v34  ;;  %v3622_v17 = vld [vmem:[%s4501_s2 + $0x320] sm:$0xff]   ;;  %v3623_v18 = vld [vmem:[%s4501_s2 + $0x270] sm:$0xff]  }
 0x1a8   : > { %3211 = vmatpush3.bf16.msra.mxu1 %v3571_v16  ;;  %v2978_v22 = vpop.f32.mrb[31].mxu0  ;;  %v3621_v16 = vld [vmem:[%s4501_s2 + $0x268] sm:$0xff]  }
 0x1a9   : > { %v2979_v25 = vadd.f32 %v2978_v22, %v2977_v21  ;;  %3212 = vmatprep.subr.bf16.mxu1 %v3685_v34  ;;  %v3626_v21 = vld [vmem:[%s4501_s2 + $0x330] sm:$0xff]   ;;  %v3627_v22 = vld [vmem:[%s4501_s2 + $0x2c0] sm:$0xff]  }
 0x1aa   : > { %3269 = vmatpush3.bf16.msra.mxu0 %v3572_v19  ;;  %v3624_v19 = vld [vmem:[%s4501_s2 + $0x328] sm:$0xff]  }
 0x1ab   : > { %v4040_v27 = vpack.c.bf16 %v2979_v25, %v2976_v20  ;;  %3270 = vmatprep.subr.bf16.mxu0 %v3685_v34  ;;  %v3625_v20 = vld [vmem:[%s4501_s2 + $0x278] sm:$0xff]  }
 0x1ac   : > { %3213 = vmatpush3.bf16.msra.mxu1 %v3573_v24  ;;  %v1677_v24 = vrot.slane %v3980_v57, 4  ;;  %v3628_v25 = vld [vmem:[%s4501_s2 + $0x338] sm:$0xff]  }
 0x1ad   : > { %3214 = vmatprep.subr.bf16.mxu1 %v3685_v34 }
 0x1ae   : > { %3271 = vmatpush3.bf16.msra.mxu0 %v3574_v26  ;;  %v3629_v26 = vld [vmem:[%s4501_s2 + $0x2c8] sm:$0xff]  }
 0x1af   : > { %3272 = vmatprep.subr.bf16.mxu0 %v3685_v34 }
 0x1b0   : > { %3215 = vmatpush3.bf16.msra.mxu1 %v3575_v28  ;;  %v3631_v28 = vld [vmem:[%s4501_s2 + $0x2d0] sm:$0xff]  }
 0x1b1   : > { %3216 = vmatprep.subr.bf16.mxu1 %v3685_v34 }
 0x1b2   : > { %3273 = vmatpush3.bf16.msra.mxu0 %v3576_v29  ;;  %v3632_v29 = vld [vmem:[%s4501_s2 + $0x388] sm:$0xff]  }
 0x1b3   : > { %3274 = vmatprep.subr.bf16.mxu0 %v3685_v34 }
 0x1b4   : > { %3217 = vmatpush3.bf16.msra.mxu1 %v3577_v30  ;;  %v3633_v30 = vld [vmem:[%s4501_s2 + $0x2d8] sm:$0xff]  }
 0x1b5   : > { %3242 = vmatprep.subr.bf16.mxu1 %v3685_v34 }
 0x1b6   : > { %3275 = vmatpush3.bf16.msra.mxu0 %v3578_v31  ;;  %v3634_v31 = vld [vmem:[%s4501_s2 + $0x390] sm:$0xff]  }
 0x1b7   : > { %3219 = vmatmul.mubr.bf16.vlgmr.msra.gmra.mrb[8].mxu1 %v1038_v33  ;;  %3276 = vmatprep.subr.bf16.mxu0 %v3685_v34  ;;  %v3636_v33 = vld [vmem:[%s4501_s2 + $0x398] sm:$0xff]  }
 0x1b8   : > { %3243 = vmatpush3.bf16.msra.mxu1 %v3579_v32  ;;  %3258 = vmatprep.mubr.msk.bf16.mxu1 %vm3687_vm0, %v3685_v34  ;;  %v3635_v32 = vld [vmem:[%s4501_s2 + $0x2e0] sm:$0xff]  }
 0x1b9   : > { %3244 = vmatprep.subr.bf16.mxu1 %v3685_v34 }
 0x1ba   : > { %3277 = vmatpush3.bf16.msra.mxu0 %v3580_v36  ;;  %v3637_v36 = vld [vmem:[%s4501_s2 + $0x2e8] sm:$0xff]  }
 0x1bb   : > { %3302 = vmatprep.subr.bf16.mxu0 %v3685_v34 }
 0x1bc   : > { %3245 = vmatpush3.bf16.msra.mxu1 %v3581_v37  ;;  %v3638_v37 = vld [vmem:[%s4501_s2 + $0x3a0] sm:$0xff]  }
 0x1bd   : > { %3279 = vmatmul.mubr.bf16.vlgmr.msra.gmra.mrb[40].mxu0 %v3962_v46  ;;  %3246 = vmatprep.subr.bf16.mxu1 %v3685_v34  ;;  %v3614_v46 = vld [vmem:[%s4501_s2 + $0x300] sm:$0xff]  }
 0x1be   : > { %3303 = vmatpush3.bf16.msra.mxu0 %v3582_v23  ;;  %3318 = vmatprep.mubr.msk.bf16.mxu0 %vm3687_vm0, %v3685_v34  ;;  %v3639_v23 = vld [vmem:[%s4501_s2 + $0x2f0] sm:$0xff]  }
 0x1bf   : > { %3304 = vmatprep.subr.bf16.mxu0 %v3685_v34 }
 0x1c0   : > { %3247 = vmatpush3.bf16.msra.mxu1 %v3583_v38  ;;  %v3640_v38 = vld [vmem:[%s4501_s2 + $0x3a8] sm:$0xff]  }
 0x1c1   : > { %3248 = vmatprep.subr.bf16.mxu1 %v3685_v34 }
 0x1c2   : > { %3305 = vmatpush3.bf16.msra.mxu0 %v3584_v39  ;;  %v3641_v39 = vld [vmem:[%s4501_s2 + $0x2f8] sm:$0xff]  }
 0x1c3   : > { %3306 = vmatprep.subr.bf16.mxu0 %v3685_v34 }
 0x1c4   : > { %3249 = vmatpush3.bf16.msra.mxu1 %v3585_v40  ;;  %v3642_v40 = vld [vmem:[%s4501_s2 + $0x3b0] sm:$0xff]  }
 0x1c5   : > { %3250 = vmatprep.subr.bf16.mxu1 %v3685_v34 }
 0x1c6   : > { %3307 = vmatpush3.bf16.msra.mxu0 %v3586_v41  ;;  %v3643_v41 = vld [vmem:[%s4501_s2 + $0x340] sm:$0xff]  }
 0x1c7   : > { %3308 = vmatprep.subr.bf16.mxu0 %v3685_v34 }
 0x1c8   : > { %3251 = vmatpush3.bf16.msra.mxu1 %v3587_v42  ;;  %v1890_v42 = vrot.slane %v4001_v4, 4 }
 0x1c9   : > { %3252 = vmatprep.subr.bf16.mxu1 %v3685_v34 }
 0x1ca   : > { %3309 = vmatpush3.bf16.msra.mxu0 %v3588_v43  ;;  %v3644_v43 = vld [vmem:[%s4501_s2 + $0x3b8] sm:$0xff]  }
 0x1cb   : > { %3310 = vmatprep.subr.bf16.mxu0 %v3685_v34 }
 0x1cc   : > { %3253 = vmatpush3.bf16.msra.mxu1 %v3589_v44  ;;  %v3645_v44 = vld [vmem:[%s4501_s2 + $0x348] sm:$0xff]  }
 0x1cd   : > { %3254 = vmatprep.subr.bf16.mxu1 %v3685_v34 }
 0x1ce   : > { %3311 = vmatpush3.bf16.msra.mxu0 %v3590_v45  ;;  %v3647_v45 = vld [vmem:[%s4501_s2 + $0x358] sm:$0xff]  }
 0x1cf   : > { %3312 = vmatprep.subr.bf16.mxu0 %v3685_v34 }
 0x1d0   : > { %3255 = vmatpush3.bf16.msra.mxu1 %v3591_v47  ;;  %v3648_v47 = vld [vmem:[%s4501_s2 + $0x360] sm:$0xff]  }
 0x1d1   : > { %3256 = vmatprep.subr.bf16.mxu1 %v3685_v34 }
 0x1d2   : > { %3313 = vmatpush3.bf16.msra.mxu0 %v3592_v48  ;;  %v3649_v48 = vld [vmem:[%s4501_s2 + $0x368] sm:$0xff]  }
 0x1d3   : > { %3314 = vmatprep.subr.bf16.mxu0 %v3685_v34 }
 0x1d4   : > { %3257 = vmatpush3.bf16.msra.mxu1 %v3593_v49 }
 0x1d5   : > { %3282 = vmatprep.subr.bf16.mxu1 %v3685_v34 }
 0x1d6   : > { %3315 = vmatpush3.bf16.msra.mxu0 %v3594_v50 }
 0x1d7   : > { %3259 = vmatmul.mubr.bf16.vlgmr.msra.gmra.mrb[12].mxu1 %v1251_v52  ;;  %3316 = vmatprep.subr.bf16.mxu0 %v3685_v34  ;;  %v3650_v52 = vld [vmem:[%s4501_s2 + $0x370] sm:$0xff]  }
 0x1d8   : > { %3283 = vmatpush3.bf16.msra.mxu1 %v3595_v51  ;;  %3298 = vmatprep.mubr.msk.bf16.mxu1 %vm3687_vm0, %v3685_v34 }
 0x1d9   : > { %3284 = vmatprep.subr.bf16.mxu1 %v3685_v34 }
 0x1da   : > { %3317 = vmatpush3.bf16.msra.mxu0 %v3596_v53 }
 0x1db   : > { %3342 = vmatprep.subr.bf16.mxu0 %v3685_v34 }
 0x1dc   : > { %3285 = vmatpush3.bf16.msra.mxu1 %v3597_v54  ;;  %v3651_v54 = vld [vmem:[%s4501_s2 + $0x378] sm:$0xff]  }
 0x1dd   : > { %3319 = vmatmul.mubr.bf16.vlgmr.msra.gmra.mrb[44].mxu0 %v3980_v57  ;;  %3286 = vmatprep.subr.bf16.mxu1 %v3685_v34  ;;  %v3630_v57 = vld [vmem:[%s4501_s2 + $0x380] sm:$0xff]  }
 0x1de   : > { %3343 = vmatpush3.bf16.msra.mxu0 %v3598_v35  ;;  %3358 = vmatprep.mubr.msk.bf16.mxu0 %vm3687_vm0, %v3685_v34 }
 0x1df   : > { %3344 = vmatprep.subr.bf16.mxu0 %v3685_v34 }
 0x1e0   : > { %3287 = vmatpush3.bf16.msra.mxu1 %v3599_v55 }
 0x1e1   : > { %3288 = vmatprep.subr.bf16.mxu1 %v3685_v34 }
 0x1e2   : > { %3345 = vmatpush3.bf16.msra.mxu0 %v3600_v56 }
 0x1e3   : > { %3346 = vmatprep.subr.bf16.mxu0 %v3685_v34 }
 0x1e4   : > { %3289 = vmatpush3.bf16.msra.mxu1 %v3601_v58 }
 0x1e5   : > { %3290 = vmatprep.subr.bf16.mxu1 %v3685_v34 }
 0x1e6   : > { %3347 = vmatpush3.bf16.msra.mxu0 %v3602_v59  ;;  %v3652_v59 = vld [vmem:[%s4501_s2 + $0x3c0] sm:$0xff]  }
 0x1e7   : > { %3348 = vmatprep.subr.bf16.mxu0 %v3685_v34 }
 0x1e8   : > { %3291 = vmatpush3.bf16.msra.mxu1 %v3603_v60  ;;  %v2103_v60 = vrot.slane %v4022_v15, 4 }
 0x1e9   : > { %3292 = vmatprep.subr.bf16.mxu1 %v3685_v34 }
 0x1ea   : > { %3349 = vmatpush3.bf16.msra.mxu0 %v3604_v61  ;;  %v3653_v61 = vld [vmem:[%s4501_s2 + $0x3c8] sm:$0xff]  }
 0x1eb   : > { %3350 = vmatprep.subr.bf16.mxu0 %v3685_v34 }
 0x1ec   : > { %3293 = vmatpush3.bf16.msra.mxu1 %v3605_v62  ;;  %v3654_v62 = vld [vmem:[%s4501_s2 + $0x3d0] sm:$0xff]  }
 0x1ed   : > { %3294 = vmatprep.subr.bf16.mxu1 %v3685_v34 }
 0x1ee   : > { %3351 = vmatpush3.bf16.msra.mxu0 %v3606_v63  ;;  %v3656_v63 = vld [vmem:[%s4501_s2 + $0x3e0] sm:$0xff]  }
 0x1ef   : > { %3352 = vmatprep.subr.bf16.mxu0 %v3685_v34 }
 0x1f0   : > { %3295 = vmatpush3.bf16.msra.mxu1 %v3607_v0  ;;  %v3657_v0 = vld [vmem:[%s4501_s2 + $0x3e8] sm:$0xff]  }
 0x1f1   : > { %3296 = vmatprep.subr.bf16.mxu1 %v3685_v34 }
 0x1f2   : > { %3353 = vmatpush3.bf16.msra.mxu0 %v3608_v1 }
 0x1f3   : > { %3354 = vmatprep.subr.bf16.mxu0 %v3685_v34 }
 0x1f4   : > { %3297 = vmatpush3.bf16.msra.mxu1 %v3609_v2 }
 0x1f5   : > { %3322 = vmatprep.subr.bf16.mxu1 %v3685_v34 }
 0x1f6   : > { %3355 = vmatpush3.bf16.msra.mxu0 %v3610_v3 }
 0x1f7   : > { %3299 = vmatmul.mubr.bf16.vlgmr.msra.gmra.mrb[16].mxu1 %v1464_v6  ;;  %3356 = vmatprep.subr.bf16.mxu0 %v3685_v34  ;;  %v3658_v6 = vld [vmem:[%s4501_s2 + $0x3f0] sm:$0xff]  }
 0x1f8   : > { %3323 = vmatpush3.bf16.msra.mxu1 %v3611_v5  ;;  %3338 = vmatprep.mubr.msk.bf16.mxu1 %vm3687_vm0, %v3685_v34 }
 0x1f9   : > { %3324 = vmatprep.subr.bf16.mxu1 %v3685_v34 }
 0x1fa   : > { %3357 = vmatpush3.bf16.msra.mxu0 %v3612_v7 }
 0x1fb   : > { %3382 = vmatprep.subr.bf16.mxu0 %v3685_v34 }
 0x1fc   : > { %3325 = vmatpush3.bf16.msra.mxu1 %v3613_v8 }
 0x1fd   : > { %3359 = vmatmul.mubr.bf16.vlgmr.msra.gmra.mrb[48].mxu0 %v4001_v4  ;;  %3326 = vmatprep.subr.bf16.mxu1 %v3685_v34  ;;  %v3646_v4 = vld [vmem:[%s4501_s2 + $0x350] sm:$0xff]  }
 0x1fe   : > { %3383 = vmatpush3.bf16.msra.mxu0 %v3614_v46  ;;  %3398 = vmatprep.mubr.msk.bf16.mxu0 %vm3687_vm0, %v3685_v34 }
 0x1ff   : > { %3384 = vmatprep.subr.bf16.mxu0 %v3685_v34 }
 0x200   : > { %3327 = vmatpush3.bf16.msra.mxu1 %v3615_v9  ;;  %v3659_v9 = vld [vmem:[%s4501_s2 + $0x3f8] sm:$0xff]  }
 0x201   : > { %3328 = vmatprep.subr.bf16.mxu1 %v3685_v34 }
 0x202   : > { %3385 = vmatpush3.bf16.msra.mxu0 %v3616_v10 }
 0x203   : > { %3386 = vmatprep.subr.bf16.mxu0 %v3685_v34 }
 0x204   : > { %3329 = vmatpush3.bf16.msra.mxu1 %v3617_v11 }
 0x205   : > { %3330 = vmatprep.subr.bf16.mxu1 %v3685_v34 }
 0x206   : > { %3387 = vmatpush3.bf16.msra.mxu0 %v3618_v12 }
 0x207   : > { %3388 = vmatprep.subr.bf16.mxu0 %v3685_v34 }
 0x208   : > { %3331 = vmatpush3.bf16.msra.mxu1 %v3619_v13  ;;  %v2316_v13 = vrot.slane %v4040_v27, 4 }
 0x209   : > { %3332 = vmatprep.subr.bf16.mxu1 %v3685_v34 }
 0x20a   : > { %3389 = vmatpush3.bf16.msra.mxu0 %v3620_v14 }
 0x20b   : > { %3390 = vmatprep.subr.bf16.mxu0 %v3685_v34 }
 0x20c   : > { %3333 = vmatpush3.bf16.msra.mxu1 %v3621_v16 }
 0x20d   : > { %3334 = vmatprep.subr.bf16.mxu1 %v3685_v34 }
 0x20e   : > { %3391 = vmatpush3.bf16.msra.mxu0 %v3622_v17 }
 0x20f   : > { %3392 = vmatprep.subr.bf16.mxu0 %v3685_v34 }
 0x210   : > { %3335 = vmatpush3.bf16.msra.mxu1 %v3623_v18 }
 0x211   : > { %3336 = vmatprep.subr.bf16.mxu1 %v3685_v34 }
 0x212   : > { %3393 = vmatpush3.bf16.msra.mxu0 %v3624_v19 }
 0x213   : > { %3394 = vmatprep.subr.bf16.mxu0 %v3685_v34 }
 0x214   : > { %3337 = vmatpush3.bf16.msra.mxu1 %v3625_v20 }
 0x215   : > { %3362 = vmatprep.subr.bf16.mxu1 %v3685_v34 }
 0x216   : > { %3395 = vmatpush3.bf16.msra.mxu0 %v3626_v21 }
 0x217   : > { %3339 = vmatmul.mubr.bf16.vlgmr.msra.gmra.mrb[20].mxu1 %v1677_v24  ;;  %3396 = vmatprep.subr.bf16.mxu0 %v3685_v34 }
 0x218   : > { %3363 = vmatpush3.bf16.msra.mxu1 %v3627_v22  ;;  %3378 = vmatprep.mubr.msk.bf16.mxu1 %vm3687_vm0, %v3685_v34 }
 0x219   : > { %3364 = vmatprep.subr.bf16.mxu1 %v3685_v34 }
 0x21a   : > { %3397 = vmatpush3.bf16.msra.mxu0 %v3628_v25 }
 0x21b   : > { %3422 = vmatprep.subr.bf16.mxu0 %v3685_v34 }
 0x21c   : > { %3365 = vmatpush3.bf16.msra.mxu1 %v3629_v26 }
 0x21d   : > { %3399 = vmatmul.mubr.bf16.vlgmr.msra.gmra.mrb[52].mxu0 %v4022_v15  ;;  %3366 = vmatprep.subr.bf16.mxu1 %v3685_v34  ;;  %v3655_v15 = vld [vmem:[%s4501_s2 + $0x3d8] sm:$0xff]  }
 0x21e   : > { %3423 = vmatpush3.bf16.msra.mxu0 %v3630_v57  ;;  %3438 = vmatprep.mubr.msk.bf16.mxu0 %vm3687_vm0, %v3685_v34 }
 0x21f   : > { %3424 = vmatprep.subr.bf16.mxu0 %v3685_v34 }
 0x220   : > { %3367 = vmatpush3.bf16.msra.mxu1 %v3631_v28 }
 0x221   : > { %3368 = vmatprep.subr.bf16.mxu1 %v3685_v34 }
 0x222   : > { %3425 = vmatpush3.bf16.msra.mxu0 %v3632_v29 }
 0x223   : > { %3426 = vmatprep.subr.bf16.mxu0 %v3685_v34 }
 0x224   : > { %3369 = vmatpush3.bf16.msra.mxu1 %v3633_v30 }
 0x225   : > { %3370 = vmatprep.subr.bf16.mxu1 %v3685_v34 }
 0x226   : > { %3427 = vmatpush3.bf16.msra.mxu0 %v3634_v31  ;;  %v3660_v31 = vld [vmem:[%s4503_s4] sm:$0xff]  }
 0x227   : > { %3428 = vmatprep.subr.bf16.mxu0 %v3685_v34 }
 0x228   : > { %3371 = vmatpush3.bf16.msra.mxu1 %v3635_v32  ;;  %v3661_v32 = vld [vmem:[%s4503_s4 + $0x8] sm:$0xff]  }
 0x229   : > { %3372 = vmatprep.subr.bf16.mxu1 %v3685_v34 }
 0x22a   : > { %3429 = vmatpush3.bf16.msra.mxu0 %v3636_v33 }
 0x22b   : > { %3430 = vmatprep.subr.bf16.mxu0 %v3685_v34 }
 0x22c   : > { %3373 = vmatpush3.bf16.msra.mxu1 %v3637_v36 }
 0x22d   : > { %3374 = vmatprep.subr.bf16.mxu1 %v3685_v34 }
 0x22e   : > { %3431 = vmatpush3.bf16.msra.mxu0 %v3638_v37 }
 0x22f   : > { %3432 = vmatprep.subr.bf16.mxu0 %v3685_v34 }
 0x230   : > { %3375 = vmatpush3.bf16.msra.mxu1 %v3639_v23 }
 0x231   : > { %3376 = vmatprep.subr.bf16.mxu1 %v3685_v34 }
 0x232   : > { %3433 = vmatpush3.bf16.msra.mxu0 %v3640_v38  ;;  %v3662_v38 = vld [vmem:[%s4503_s4 + $0x10] sm:$0xff]  }
 0x233   : > { %3434 = vmatprep.subr.bf16.mxu0 %v3685_v34 }
 0x234   : > { %3377 = vmatpush3.bf16.msra.mxu1 %v3641_v39  ;;  %v3663_v39 = vld [vmem:[%s4503_s4 + $0x18] sm:$0xff]  }
 0x235   : > { %3402 = vmatprep.subr.bf16.mxu1 %v3685_v34 }
 0x236   : > { %3435 = vmatpush3.bf16.msra.mxu0 %v3642_v40  ;;  %v3664_v40 = vld [vmem:[%s4503_s4 + $0x20] sm:$0xff]  }
 0x237   : > { %3379 = vmatmul.mubr.bf16.vlgmr.msra.gmra.mrb[24].mxu1 %v1890_v42  ;;  %3436 = vmatprep.subr.bf16.mxu0 %v3685_v34 }
 0x238   : > { %3403 = vmatpush3.bf16.msra.mxu1 %v3643_v41  ;;  %3418 = vmatprep.mubr.msk.bf16.mxu1 %vm3687_vm0, %v3685_v34  ;;  %v3665_v41 = vld [vmem:[%s4503_s4 + $0x28] sm:$0xff]  }
 0x239   : > { %3404 = vmatprep.subr.bf16.mxu1 %v3685_v34 }
 0x23a   : > { %3437 = vmatpush3.bf16.msra.mxu0 %v3644_v43  ;;  %v3666_v43 = vld [vmem:[%s4503_s4 + $0x30] sm:$0xff]  }
 0x23b   : > { %3462 = vmatprep.subr.bf16.mxu0 %v3685_v34 }
 0x23c   : > { %3405 = vmatpush3.bf16.msra.mxu1 %v3645_v44 }
 0x23d   : > { %3439 = vmatmul.mubr.bf16.vlgmr.msra.gmra.mrb[56].mxu0 %v4040_v27  ;;  %3406 = vmatprep.subr.bf16.mxu1 %v3685_v34 }
 0x23e   : > { %3478 = vmatprep.mubr.msk.bf16.mxu0 %vm3687_vm0, %v3685_v34  ;;  %3463 = vmatpush3.bf16.msra.mxu0 %v3660_v31  ;;  %v3674_v31 = vld [vmem:[%s4505_s6 + $0x30] sm:$0xff]  }
 0x23f   : > { %3464 = vmatprep.subr.bf16.mxu0 %v3685_v34 }
 0x240   : > { %3407 = vmatpush3.bf16.msra.mxu1 %v3646_v4 }
 0x241   : > { %3408 = vmatprep.subr.bf16.mxu1 %v3685_v34 }
 0x242   : > { %3465 = vmatpush3.bf16.msra.mxu0 %v3661_v32  ;;  %v3675_v32 = vld [vmem:[%s4505_s6 + $0x38] sm:$0xff]  }
 0x243   : > { %3466 = vmatprep.subr.bf16.mxu0 %v3685_v34 }
 0x244   : > { %3409 = vmatpush3.bf16.msra.mxu1 %v3647_v45 }
 0x245   : > { %3410 = vmatprep.subr.bf16.mxu1 %v3685_v34 }
 0x246   : > { %3467 = vmatpush3.bf16.msra.mxu0 %v3662_v38 }
 0x247   : > { %3468 = vmatprep.subr.bf16.mxu0 %v3685_v34 }
 0x248   : > { %3411 = vmatpush3.bf16.msra.mxu1 %v3648_v47 }
 0x249   : > { %3412 = vmatprep.subr.bf16.mxu1 %v3685_v34 }
 0x24a   : > { %v822_v49 = vpop.f32.mrb[0].mxu1  ;;  %3469 = vmatpush3.bf16.msra.mxu0 %v3663_v39 }
 0x24b   : > { %v3160_v50 = vpop.f32.mrb[1].mxu1  ;;  %3470 = vmatprep.subr.bf16.mxu0 %v3685_v34 }
 0x24c   : > { %3413 = vmatpush3.bf16.msra.mxu1 %v3649_v48  ;;  %v825_v51 = vpop.f32.mrb[2].mxu1 }
 0x24d   : > { %v3161_v53 = vpop.f32.mrb[3].mxu1  ;;  %3414 = vmatprep.subr.bf16.mxu1 %v3685_v34 }
 0x24e   : > { %3471 = vmatpush3.bf16.msra.mxu0 %v3664_v40 }
 0x24f   : > { %3472 = vmatprep.subr.bf16.mxu0 %v3685_v34 }
 0x250   : > { %3415 = vmatpush3.bf16.msra.mxu1 %v3650_v52  ;;  %v1014_v35 = vpop.f32.mrb[32].mxu0 }
 0x251   : > { %3416 = vmatprep.subr.bf16.mxu1 %v3685_v34  ;;  %v3200_v55 = vpop.f32.mrb[33].mxu0 }
 0x252   : > { %v1017_v56 = vpop.f32.mrb[34].mxu0  ;;  %3473 = vmatpush3.bf16.msra.mxu0 %v3665_v41  ;;  %v3670_v55 = vld [vmem:[%s4505_s6 + $0x10] sm:$0xff]  }
 0x253   : > { %v3201_v58 = vpop.f32.mrb[35].mxu0  ;;  %3474 = vmatprep.subr.bf16.mxu0 %v3685_v34  ;;  %v3671_v56 = vld [vmem:[%s4505_s6 + $0x18] sm:$0xff]  }
 0x254   : > { %3417 = vmatpush3.bf16.msra.mxu1 %v3651_v54  ;;  %v3668_v54 = vld [vmem:[%s4505_s6] sm:$0xff]  }
 0x255   : > { %3442 = vmatprep.subr.bf16.mxu1 %v3685_v34  ;;  %v3672_v58 = vld [vmem:[%s4505_s6 + $0x20] sm:$0xff]  }
 0x256   : > { %3475 = vmatpush3.bf16.msra.mxu0 %v3666_v43 }
 0x257   : > { %3419 = vmatmul.mubr.bf16.vlgmr.msra.gmra.mrb[28].mxu1 %v2103_v60  ;;  %3476 = vmatprep.subr.bf16.mxu0 %v3685_v34 }
 0x258   : > { %3443 = vmatpush3.bf16.msra.mxu1 %v3652_v59  ;;  %3458 = vmatprep.mubr.msk.bf16.mxu1 %vm3687_vm0, %v3685_v34  ;;  %v3673_v59 = vld [vmem:[%s4505_s6 + $0x28] sm:$0xff]  }
 0x259   : > { %3444 = vmatprep.subr.bf16.mxu1 %v3685_v34 }
 0x25c   : > { %3445 = vmatpush3.bf16.msra.mxu1 %v3653_v61 }
 0x25d   : > { %3446 = vmatprep.subr.bf16.mxu1 %v3685_v34 }
 0x260   : > { %3447 = vmatpush3.bf16.msra.mxu1 %v3654_v62 }
 0x261   : > { %3448 = vmatprep.subr.bf16.mxu1 %v3685_v34 }
 0x264   : > { %3449 = vmatpush3.bf16.msra.mxu1 %v3655_v15 }
 0x265   : > { %3450 = vmatprep.subr.bf16.mxu1 %v3685_v34 }
 0x268   : > { %3451 = vmatpush3.bf16.msra.mxu1 %v3656_v63 }
 0x269   : > { %3452 = vmatprep.subr.bf16.mxu1 %v3685_v34 }
 0x26a   : > { %v910_v1 = vpop.f32.mrb[4].mxu1 }
 0x26b   : > { %v911_v2 = vadd.f32 %v910_v1, %v822_v49  ;;  %v3180_v3 = vpop.f32.mrb[5].mxu1  ;;  %v3667_v49 = vld [vmem:[%s4503_s4 + $0x38] sm:$0xff]  }
 0x26c   : > { %v913_v5 = vpop.f32.mrb[6].mxu1  ;;  %3453 = vmatpush3.bf16.msra.mxu1 %v3657_v0  ;;  %3477 = vmatpush3.bf16.msra.mxu0 %v3667_v49 }
 0x26d   : > { %v1020_v7 = vadd.f32 %v1014_v35, %v911_v2  ;;  %v3181_v8 = vpop.f32.mrb[7].mxu1  ;;  %3454 = vmatprep.subr.bf16.mxu1 %v3685_v34  ;;  %v3669_v35 = vld [vmem:[%s4505_s6 + $0x8] sm:$0xff]  }
 0x270   : > { %v1227_v46 = vpop.f32.mrb[36].mxu0  ;;  %3455 = vmatpush3.bf16.msra.mxu1 %v3658_v6 }
 0x271   : > { %v3240_v10 = vpop.f32.mrb[37].mxu0  ;;  %3456 = vmatprep.subr.bf16.mxu1 %v3685_v34 }
 0x272   : > { %v1230_v11 = vpop.f32.mrb[38].mxu0 }
 0x273   : > { %v3241_v12 = vpop.f32.mrb[39].mxu0 }
 0x274   : > { %3457 = vmatpush3.bf16.msra.mxu1 %v3659_v9 }
 0x275   : > { %3482 = vmatprep.subr.bf16.mxu1 %v3685_v34 }
 0x277   : > { %3459 = vmatmul.mubr.bf16.vlgmr.msra.gmra.mrb[32].mxu1 %v2316_v13 }
 0x278   : > { %3498 = vmatprep.mubr.msk.bf16.mxu1 %vm3687_vm0, %v3685_v34  ;;  %3483 = vmatpush3.bf16.msra.mxu1 %v3668_v54 }
 0x279   : > { %3484 = vmatprep.subr.bf16.mxu1 %v3685_v34 }
 0x27c   : > { %3485 = vmatpush3.bf16.msra.mxu1 %v3669_v35 }
 0x27d   : > { %3486 = vmatprep.subr.bf16.mxu1 %v3685_v34 }
 0x280   : > { %3487 = vmatpush3.bf16.msra.mxu1 %v3670_v55 }
 0x281   : > { %3488 = vmatprep.subr.bf16.mxu1 %v3685_v34 }
 0x284   : > { %3489 = vmatpush3.bf16.msra.mxu1 %v3671_v56 }
 0x285   : > { %3490 = vmatprep.subr.bf16.mxu1 %v3685_v34 }
 0x288   : > { %3491 = vmatpush3.bf16.msra.mxu1 %v3672_v58 }
 0x289   : > { %3492 = vmatprep.subr.bf16.mxu1 %v3685_v34 }
 0x28a   : > { %v1122_v14 = vpop.f32.mrb[8].mxu1 }
 0x28b   : > { %v1128_v16 = vadd.f32 %v1122_v14, %v1020_v7  ;;  %v3220_v17 = vpop.f32.mrb[9].mxu1 }
 0x28c   : > { %v1125_v18 = vpop.f32.mrb[10].mxu1  ;;  %3493 = vmatpush3.bf16.msra.mxu1 %v3673_v59 }
 0x28d   : > { %v3221_v19 = vpop.f32.mrb[11].mxu1  ;;  %v1233_v20 = vadd.f32 %v1227_v46, %v1128_v16  ;;  %3494 = vmatprep.subr.bf16.mxu1 %v3685_v34 }
 0x290   : > { %v1440_v21 = vpop.f32.mrb[40].mxu0  ;;  %3495 = vmatpush3.bf16.msra.mxu1 %v3674_v31 }
 0x291   : > { %v3280_v22 = vpop.f32.mrb[41].mxu0  ;;  %3496 = vmatprep.subr.bf16.mxu1 %v3685_v34  ;;  %v2903_v34 = vld [vmem:[%s4506_s7] ss:$0 sm:$0xff] }
 0x292   : > { %v1443_v24 = vpop.f32.mrb[42].mxu0 }
 0x293   : > { %v3281_v25 = vpop.f32.mrb[43].mxu0  ;;  %v2893_v24 = vld [vmem:[%s4502_s3] ss:$0 sm:$0xff] }
 0x294   : > { %3497 = vmatpush3.bf16.msra.mxu1 %v3675_v32 }
 0x2aa   : > { %v1335_v26 = vpop.f32.mrb[12].mxu1 }
 0x2ab   : > { %v1341_v57 = vadd.f32 %v1335_v26, %v1233_v20  ;;  %v3260_v28 = vpop.f32.mrb[13].mxu1 }
 0x2ac   : > { %v1338_v27 = vpop.f32.mrb[14].mxu1 }
 0x2ad   : > { %v3261_v29 = vpop.f32.mrb[15].mxu1  ;;  %v1446_v30 = vadd.f32 %v1440_v21, %v1341_v57 }
 0x2b0   : > { %v1653_v33 = vpop.f32.mrb[44].mxu0 }
 0x2b1   : > { %v3320_v36 = vpop.f32.mrb[45].mxu0 }
 0x2b2   : > { %v1656_v37 = vpop.f32.mrb[46].mxu0 }
 0x2b3   : > { %v3321_v23 = vpop.f32.mrb[47].mxu0 }
 0x2ca   : > { %v1548_v42 = vpop.f32.mrb[16].mxu1 }
 0x2cb   : > { %v1554_v44 = vadd.f32 %v1548_v42, %v1446_v30  ;;  %v3300_v4 = vpop.f32.mrb[17].mxu1 }
 0x2cc   : > { %v1551_v45 = vpop.f32.mrb[18].mxu1 }
 0x2cd   : > { %v3301_v47 = vpop.f32.mrb[19].mxu1  ;;  %v1659_v48 = vadd.f32 %v1653_v33, %v1554_v44  ;;  %v2894_v33 = vld [vmem:[%s4504_s5] ss:$0 sm:$0xff] }
 0x2d0   : > { %v1866_v50 = vpop.f32.mrb[48].mxu0 }
 0x2d1   : > { %v3360_v51 = vpop.f32.mrb[49].mxu0 }
 0x2d2   : > { %v1869_v52 = vpop.f32.mrb[50].mxu0 }
 0x2d3   : > { %v3361_v53 = vpop.f32.mrb[51].mxu0 }
 0x2ea   : > { %v1761_v60 = vpop.f32.mrb[20].mxu1 }
 0x2eb   : > { %v1767_v61 = vadd.f32 %v1761_v60, %v1659_v48  ;;  %v3340_v62 = vpop.f32.mrb[21].mxu1 }
 0x2ec   : > { %v1764_v15 = vpop.f32.mrb[22].mxu1 }
 0x2ed   : > { %v3341_v63 = vpop.f32.mrb[23].mxu1  ;;  %v1872_v0 = vadd.f32 %v1866_v50, %v1767_v61 }
 0x2f0   : > { %v2079_v1 = vpop.f32.mrb[52].mxu0 }
 0x2f1   : > { %v3400_v2 = vpop.f32.mrb[53].mxu0 }
 0x2f2   : > { %v2082_v3 = vpop.f32.mrb[54].mxu0 }
 0x2f3   : > { %v3401_v5 = vpop.f32.mrb[55].mxu0 }
 0x30a   : > { %v1974_v6 = vpop.f32.mrb[24].mxu1 }
 0x30b   : > { %v1980_v7 = vadd.f32 %v1974_v6, %v1872_v0  ;;  %v3380_v8 = vpop.f32.mrb[25].mxu1 }
 0x30c   : > { %v1977_v46 = vpop.f32.mrb[26].mxu1 }
 0x30d   : > { %v3381_v9 = vpop.f32.mrb[27].mxu1  ;;  %v2085_v10 = vadd.f32 %v2079_v1, %v1980_v7 }
 0x310   : > { %v2292_v11 = vpop.f32.mrb[56].mxu0 }
 0x311   : > { %v3440_v12 = vpop.f32.mrb[57].mxu0 }
 0x312   : > { %v2295_v13 = vpop.f32.mrb[58].mxu0 }
 0x313   : > { %v3441_v14 = vpop.f32.mrb[59].mxu0 }
 0x32a   : > { %v2187_v16 = vpop.f32.mrb[28].mxu1 }
 0x32b   : > { %v2193_v17 = vadd.f32 %v2187_v16, %v2085_v10  ;;  %v3420_v18 = vpop.f32.mrb[29].mxu1 }
 0x32c   : > { %v2190_v19 = vpop.f32.mrb[30].mxu1 }
 0x32d   : > { %v3421_v20 = vpop.f32.mrb[31].mxu1  ;;  %v2298_v21 = vadd.f32 %v2292_v11, %v2193_v17 }
 0x34a   : > { %v2400_v22 = vpop.f32.mrb[32].mxu1 }
 0x34b   : > { %v2406_v25 = vadd.f32 %v2400_v22, %v2298_v21  ;;  %v3460_v26 = vpop.f32.mrb[33].mxu1 }
 0x34c   : > { %v2403_v57 = vpop.f32.mrb[34].mxu1 }
 0x34d   : > { %v2414_v28 = vadd.f32 %v2893_v24, %v2406_v25  ;;  %v3461_v27 = vpop.f32.mrb[35].mxu1 }
 0x34f   : > { %v2415_v29 = vmax.f32 %v2414_v28, 0.0 }
 0x351   : > { %v2416_v30 = vpack.c.bf16 %v2415_v29, %v2415_v29 }
 0x353   : > { %3479 = vmatmul.mubr.bf16.vlgmr.msra.gmra.mrb[60].mxu0 %v2416_v30 }
 0x426   : > { %v2522_v36 = vpop.f32.mrb[60].mxu0 }
 0x427   : > { %v2523_v37 = vadd.f32 %v2894_v33, %v2522_v36  ;;  %v3480_v23 = vpop.f32.mrb[61].mxu0 }
 0x428   : > { %v2525_v38 = vpop.f32.mrb[62].mxu0 }
 0x429   : > { %v2528_v39 = vmax.f32 %v2523_v37, 0.0  ;;  %v3481_v40 = vpop.f32.mrb[63].mxu0 }
 0x42b   : > { %v2529_v41 = vpack.c.bf16 %v2528_v39, %v2528_v39 }
 0x42d   : > { %3499 = vmatmul.mubr.bf16.vlgmr.msra.gmra.mrb[36].mxu1 %v2529_v41 }
 0x500   : > { %v2635_v42 = vpop.f32.mrb[36].mxu1 }
 0x501   : > { %v2636_v43 = vadd.f32 %v2903_v34, %v2635_v42  ;;  %v3500_v44 = vpop.f32.mrb[37].mxu1 }
 0x502   : > { %v2638_v4 = vpop.f32.mrb[38].mxu1 }
 0x503   : > { %2641 = vst [vmem:[%s323_s11] sm:$0xff] %v2636_v43  ;;  %v3501_v45 = vpop.f32.mrb[39].mxu1 }
 0x504 PF: > { %s18_s27 = sadd.s32 1, %s3682_s27  }
 0x505   : > { %p15_p4 = scmp.ge.s32.totalorder %s18_s27, 4  }
 0x507   :  { %17 = sbr.rel (!%p15_p4) target bundleno = 1 (0x1), region = 85 }

</bundles_post_ra>
